<compile_context>
chip_gen: v5e
topology: v5e:2x2
jax: 0.10.0
libtpu: 0.0.40
codegen_flags: <defaults>
</compile_context>

<pallas_src>
import functools

import numpy as np
import jax
import jax.numpy as jnp
from jax import lax
from jax.experimental import pallas as pl
from jax.experimental.pallas import tpu as pltpu


# ----------------------------- Pallas kernels ------------------------------

def _conv3x3_bn_stats_kernel(x_ref, w_ref, scale_ref, shift_ref,
                             y_ref, psum_ref, pssq_ref, xf_ref,
                             *, pre_act, w_valid, wp_in):
    """3x3 / stride-1 / pad-1 conv for ONE batch element, with
       (a) optional fused pre-activation  y_in = relu(x*scale + shift)
       (b) fused per-channel partial BN statistics of the conv output.

    x_ref   : (H*wp_in, Cin)   flattened rows; image row h lives in rows
                               [h*wp_in, h*wp_in + w_valid) (cols >= w_valid,
                               if any, are junk from the previous stage).
    w_ref   : (9, Cin, Cout)   taps in (dy*3+dx) order (HWIO flattened).
    scale/shift: (1, Cin) f32  folded BN of the PREVIOUS layer (iff pre_act).
    y_ref   : (H*Wp, Cout)     conv output, flattened with Wp = w_valid+2 cols
                               per row; cols [w_valid, Wp) are zero/junk.
    psum/pssq: (1, Cout) f32   partial sum / sum-of-squares over VALID outputs.
    xf_ref  : ((H+3)*Wp, Cin)  VMEM scratch: zero-padded flattened input slab.
    """
    Cout = y_ref.shape[-1]
    Wv = w_valid
    Wp = Wv + 2
    H = x_ref.shape[0] // wp_in
    M = H * Wp                     # flattened output rows (incl. 2 junk cols/row)

    # --- stage 1: build the zero-padded (and optionally BN+ReLU'd) slab ------
    # Zeroing the whole scratch gives the top/bottom/left/right halo for free.
    xf_ref[...] = jnp.zeros(xf_ref.shape, xf_ref.dtype)
    if pre_act:
        s = scale_ref[...]         # (1, Cin) f32
        t = shift_ref[...]
    # TODO(synk): for large H use lax.fori_loop + pl.ds instead of a static
    # unroll, and add an H-row grid axis with a 2-row halo so a tile (not the
    # whole image) has to fit v7x's smaller VMEM.
    for h in range(H):
        row = x_ref[h * wp_in:h * wp_in + Wv, :].astype(jnp.float32)  # (Wv, Cin)
        if pre_act:
            row = jnp.maximum(row * s + t, 0.0)      # fused BN1 + ReLU (f32)
        dst = (h + 1) * Wp + 1                       # interior of padded slab
        xf_ref[dst:dst + Wv, :] = row.astype(xf_ref.dtype)

    # --- stage 2: 3x3 conv as 9 shifted row-window matmuls -------------------
    # Output position q = h*Wp + w reads slab rows q + dy*Wp + dx; each tap is
    # therefore a contiguous row window of the flattened slab -> no W-crossing
    # slices and no reshapes.  Junk columns (w >= Wv) read only zeroed tail
    # rows of the scratch and are masked out below.
    # TODO(synk): for very small Cin, group the 3 dx taps per dy into a single
    # K=3*Cin matmul (or full im2col, K=9*Cin) for better MXU fill.
    acc = jnp.zeros((M, Cout), jnp.float32)
    for dy in range(3):
        for dx in range(3):
            k = dy * Wp + dx
            acc = acc + jnp.dot(xf_ref[k:k + M, :], w_ref[dy * 3 + dx],
                                preferred_element_type=jnp.float32)

    # --- stage 3: mask junk columns, fused partial BN stats, store -----------
    col = lax.broadcasted_iota(jnp.int32, (M, 1), 0) % Wp
    acc = jnp.where(col < Wv, acc, 0.0)              # zero the 2 junk cols/row
    psum_ref[...] = jnp.sum(acc, axis=0, keepdims=True)          # f32 stats
    pssq_ref[...] = jnp.sum(acc * acc, axis=0, keepdims=True)
    y_ref[...] = acc.astype(y_ref.dtype)             # ONE dense store, no bias


def _bn_relu_kernel(y_ref, scale_ref, shift_ref, o_ref):
    """Final normalize+affine+ReLU on a lane-dense flattened (rows, Wp*C) view."""
    y = y_ref[...].astype(jnp.float32)               # elementwise math in f32
    o_ref[...] = jnp.maximum(y * scale_ref[...] + shift_ref[...],
                             0.0).astype(o_ref.dtype)


# ------------------------------- wrappers ----------------------------------

def _conv3x3_call(x_flat, w_hwio, *, H, W, wp_in, pre_act, scale, shift, dtype):
    """x_flat: (N, H*wp_in, Cin).  Returns (y, psum, pssq) with
       y: (N, H*(W+2), Cout) flattened conv output (2 junk cols per row)."""
    N = x_flat.shape[0]
    Cin = x_flat.shape[-1]
    Cout = w_hwio.shape[-1]
    Wp = W + 2
    w9 = w_hwio.reshape(9, Cin, Cout).astype(dtype)

    kernel = functools.partial(_conv3x3_bn_stats_kernel,
                               pre_act=pre_act, w_valid=W, wp_in=wp_in)
    return pl.pallas_call(
        kernel,
        out_shape=(
            jax.ShapeDtypeStruct((N, H * Wp, Cout), dtype),       # conv output
            jax.ShapeDtypeStruct((N, 1, Cout), jnp.float32),      # partial sum
            jax.ShapeDtypeStruct((N, 1, Cout), jnp.float32),      # partial sumsq
        ),
        grid=(N,),
        in_specs=[
            pl.BlockSpec((None, H * wp_in, Cin), lambda n: (n, 0, 0)),
            pl.BlockSpec((9, Cin, Cout), lambda n: (0, 0, 0)),
            pl.BlockSpec((1, Cin), lambda n: (0, 0)),
            pl.BlockSpec((1, Cin), lambda n: (0, 0)),
        ],
        out_specs=[
            pl.BlockSpec((None, H * Wp, Cout), lambda n: (n, 0, 0)),
            pl.BlockSpec((None, 1, Cout), lambda n: (n, 0, 0)),
            pl.BlockSpec((None, 1, Cout), lambda n: (n, 0, 0)),
        ],
        scratch_shapes=[pltpu.VMEM(((H + 3) * Wp, Cin), dtype)],
        compiler_params=pltpu.CompilerParams(
            dimension_semantics=("parallel",)),
    )(x_flat, w9, scale.astype(jnp.float32), shift.astype(jnp.float32))


def _fold_bn(psum, pssq, count, gamma, beta, eps):
    """Fold fused (sum, sumsq) partials into BN scale/shift (training-mode,
    biased variance, eps=1e-5).  Tiny O(C) work, kept in JAX glue."""
    mean = jnp.sum(psum, axis=(0, 1)) / count
    ex2 = jnp.sum(pssq, axis=(0, 1)) / count
    var = jnp.maximum(ex2 - mean * mean, 0.0)
    scale = gamma * lax.rsqrt(var + eps)
    shift = beta - mean * scale
    return scale, shift


def _row_tile(rows, target=512):
    """Largest row tile <= target that evenly divides `rows` (mult of 8)."""
    if rows <= target:
        return rows
    for t in range(target - target % 8, 7, -8):
        if rows % t == 0:
            return t
    return rows


def _bn_relu_call(y_flat, scale_row, shift_row, *, dtype):
    """y_flat: (rows, Ld) lane-dense flattened activation; scale/shift (Ld,)."""
    R, Ld = y_flat.shape
    tr = _row_tile(R)
    return pl.pallas_call(
        _bn_relu_kernel,
        out_shape=jax.ShapeDtypeStruct((R, Ld), dtype),
        grid=(R // tr,),
        in_specs=[
            pl.BlockSpec((tr, Ld), lambda r: (r, 0)),
            pl.BlockSpec((1, Ld), lambda r: (0, 0)),
            pl.BlockSpec((1, Ld), lambda r: (0, 0)),
        ],
        out_specs=pl.BlockSpec((tr, Ld), lambda r: (r, 0)),
        compiler_params=pltpu.CompilerParams(
            dimension_semantics=("parallel",)),
    )(y_flat, scale_row.reshape(1, Ld).astype(jnp.float32),
      shift_row.reshape(1, Ld).astype(jnp.float32))


def double_conv(x_nchw, params, *, eps=1e-5, dtype=jnp.float32):
    """DoubleConv forward: (conv3x3 s1 p1 -> BN(train) -> ReLU) * 2, NCHW in/out.

    Set dtype=jnp.bfloat16 on v6e/v7x to halve activation HBM traffic and use
    the bf16 MXU path (BN stats / elementwise math stay in f32).
    Conv biases are ignored: training-mode BN cancels them exactly.
    """
    N, Cin, H, W = x_nchw.shape
    Cmid = params["w1"].shape[-1]
    Cout = params["w2"].shape[-1]
    Wp = W + 2
    count = float(N * H * W)

    # NCHW -> NHWC (one layout pass) -> free reshape to flat rows.
    # TODO(synk): drop both transposes (two full activation passes) if the
    # caller can accept NHWC directly.
    x = jnp.transpose(x_nchw, (0, 2, 3, 1)).astype(dtype).reshape(N, H * W, Cin)

    zero_c = jnp.zeros((1, Cin), jnp.float32)        # dummies (pre_act=False)

    # conv1 + fused partial BN1 statistics (one read of x, one write of y1).
    y1, s1, q1 = _conv3x3_call(x, params["w1"], H=H, W=W, wp_in=W,
                               pre_act=False, scale=zero_c, shift=zero_c,
                               dtype=dtype)
    sc1, sh1 = _fold_bn(s1, q1, count, params["g1"], params["be1"], eps)

    # conv2 with BN1+ReLU fused into its input load + fused partial BN2 stats.
    y2, s2, q2 = _conv3x3_call(y1, params["w2"], H=H, W=W, wp_in=Wp,
                               pre_act=True, scale=sc1.reshape(1, Cmid),
                               shift=sh1.reshape(1, Cmid), dtype=dtype)
    sc2, sh2 = _fold_bn(s2, q2, count, params["g2"], params["be2"], eps)

    # Final BN2 + ReLU on a lane-dense flattened (N*H, Wp*Cout) view.
    out = _bn_relu_call(y2.reshape(N * H, Wp * Cout),
                        jnp.tile(sc2, Wp), jnp.tile(sh2, Wp), dtype=dtype)
    out = out.reshape(N, H, Wp, Cout)[:, :, :W, :]   # drop the 2 junk columns
    return jnp.transpose(out, (0, 3, 1, 2))          # NHWC -> NCHW


# ------------------------------ pure-JAX ref --------------------------------

def ref_double_conv(x_nchw, params, eps=1e-5):
    """Reference, including the conv biases (kernel path drops them; BN cancels
    them, which the allclose check verifies)."""
    x = jnp.transpose(x_nchw, (0, 2, 3, 1)).astype(jnp.float32)

    def block(x, w, b, g, be):
        y = lax.conv_general_dilated(
            x, w, window_strides=(1, 1), padding=((1, 1), (1, 1)),
            dimension_numbers=("NHWC", "HWIO", "NHWC")) + b
        m = jnp.mean(y, axis=(0, 1, 2))
        v = jnp.var(y, axis=(0, 1, 2))               # biased var, PyTorch BN fwd
        return jnp.maximum((y - m) * lax.rsqrt(v + eps) * g + be, 0.0)

    y = block(x, params["w1"], params["b1"], params["g1"], params["be1"])
    y = block(y, params["w2"], params["b2"], params["g2"], params["be2"])
    return jnp.transpose(y, (0, 3, 1, 2))


# --------------------------------- main -------------------------------------

def init_params(key, in_channels, mid_channels, out_channels):
    ks = jax.random.split(key, 8)
    return {
        # HWIO weight layout (kh, kw, Cin, Cout)
        "w1": 0.1 * jax.random.normal(ks[0], (3, 3, in_channels, mid_channels),
                                      jnp.float32),
        "b1": 0.1 * jax.random.normal(ks[1], (mid_channels,), jnp.float32),
        "g1": 1.0 + 0.1 * jax.random.normal(ks[2], (mid_channels,), jnp.float32),
        "be1": 0.1 * jax.random.normal(ks[3], (mid_channels,), jnp.float32),
        "w2": 0.1 * jax.random.normal(ks[4], (3, 3, mid_channels, out_channels),
                                      jnp.float32),
        "b2": 0.1 * jax.random.normal(ks[5], (out_channels,), jnp.float32),
        "g2": 1.0 + 0.1 * jax.random.normal(ks[6], (out_channels,), jnp.float32),
        "be2": 0.1 * jax.random.normal(ks[7], (out_channels,), jnp.float32),
    }


if __name__ == "__main__":
    # TODO(synk): the kernel_size=5 / stride=2 branch of the PyTorch module is
    # not implemented (default kernel_size=3 / stride=1 path only).
    key = jax.random.PRNGKey(0)
    kx, kp = jax.random.split(key)

    N, Cin, H, W = 2, 4, 16, 16
    Cout = 8                       # mid_channels defaults to out_channels
    x = jax.random.normal(kx, (N, Cin, H, W), jnp.float32)   # NCHW like torch
    params = init_params(kp, Cin, Cout, Cout)

    out = jax.block_until_ready(jax.jit(double_conv)(x, params))
    ref = jax.block_until_ready(ref_double_conv(x, params))

    assert out.shape == (N, Cout, H, W), out.shape
    np.testing.assert_allclose(np.asarray(out), np.asarray(ref),
                               rtol=1e-4, atol=1e-4)
    print("KERNEL_OK")
</pallas_src>

<mosaic_0001>
module attributes {stable_mosaic.version = 11 : i64} {
  func.func @_conv3x3_bn_stats_kernel(%arg0: i32, %arg1: memref<1x256x4xf32, #tpu.memory_space<vmem>>, %arg2: memref<9x4x8xf32, #tpu.memory_space<vmem>>, %arg3: memref<1x4xf32, #tpu.memory_space<vmem>>, %arg4: memref<1x4xf32, #tpu.memory_space<vmem>>, %arg5: memref<1x288x8xf32, #tpu.memory_space<vmem>>, %arg6: memref<1x1x8xf32, #tpu.memory_space<vmem>>, %arg7: memref<1x1x8xf32, #tpu.memory_space<vmem>>, %arg8: memref<342x4xf32, #tpu.memory_space<vmem>>) attributes {dimension_semantics = [#tpu.dimension_semantics<parallel>], iteration_bounds = array<i64: 2>, scalar_prefetch = 0 : i64, scratch_operands = 1 : i64, tpu.core_type = #tpu.core_type<tc>, window_params = [{transform_indices = @transform_0, window_bounds = array<i64: 1, 256, 4>}, {pipeline_mode = #tpu.pipeline_mode<synchronous>, transform_indices = @transform_1, window_bounds = array<i64: 9, 4, 8>}, {pipeline_mode = #tpu.pipeline_mode<synchronous>, transform_indices = @transform_2, window_bounds = array<i64: 1, 4>}, {pipeline_mode = #tpu.pipeline_mode<synchronous>, transform_indices = @transform_3, window_bounds = array<i64: 1, 4>}, {transform_indices = @transform_4, window_bounds = array<i64: 1, 288, 8>}, {transform_indices = @transform_5, window_bounds = array<i64: 1, 1, 8>}, {transform_indices = @transform_6, window_bounds = array<i64: 1, 1, 8>}]} {
    %cst = arith.constant 0.000000e+00 : f32
    %0 = vector.broadcast %cst : f32 to vector<342x4xf32>
    %c0 = arith.constant 0 : index
    %c0_0 = arith.constant 0 : index
    %1 = vector.load %arg8[%c0, %c0_0] : memref<342x4xf32, #tpu.memory_space<vmem>>, vector<342x4xf32>
    tpu.vector_store %arg8[%c0, %c0_0], %0 {strides = array<i32>} : memref<342x4xf32, #tpu.memory_space<vmem>>, vector<342x4xf32>,
    %c0_1 = arith.constant 0 : index
    %c0_2 = arith.constant 0 : index
    %c0_3 = arith.constant 0 : index
    %2 = vector.load %arg1[%c0_1, %c0_2, %c0_3] : memref<1x256x4xf32, #tpu.memory_space<vmem>>, vector<1x16x4xf32>
    %3 = vector.shape_cast %2 : vector<1x16x4xf32> to vector<16x4xf32>
    %c19 = arith.constant 19 : index
    %c0_4 = arith.constant 0 : index
    %4 = vector.load %arg8[%c19, %c0_4] : memref<342x4xf32, #tpu.memory_space<vmem>>, vector<16x4xf32>
    tpu.vector_store %arg8[%c19, %c0_4], %3 {strides = array<i32>} : memref<342x4xf32, #tpu.memory_space<vmem>>, vector<16x4xf32>,
    %c0_5 = arith.constant 0 : index
    %c16 = arith.constant 16 : index
    %c0_6 = arith.constant 0 : index
    %5 = vector.load %arg1[%c0_5, %c16, %c0_6] : memref<1x256x4xf32, #tpu.memory_space<vmem>>, vector<1x16x4xf32>
    %6 = vector.shape_cast %5 : vector<1x16x4xf32> to vector<16x4xf32>
    %c37 = arith.constant 37 : index
    %c0_7 = arith.constant 0 : index
    %7 = vector.load %arg8[%c37, %c0_7] : memref<342x4xf32, #tpu.memory_space<vmem>>, vector<16x4xf32>
    tpu.vector_store %arg8[%c37, %c0_7], %6 {strides = array<i32>} : memref<342x4xf32, #tpu.memory_space<vmem>>, vector<16x4xf32>,
    %c0_8 = arith.constant 0 : index
    %c32 = arith.constant 32 : index
    %c0_9 = arith.constant 0 : index
    %8 = vector.load %arg1[%c0_8, %c32, %c0_9] : memref<1x256x4xf32, #tpu.memory_space<vmem>>, vector<1x16x4xf32>
    %9 = vector.shape_cast %8 : vector<1x16x4xf32> to vector<16x4xf32>
    %c55 = arith.constant 55 : index
    %c0_10 = arith.constant 0 : index
    %10 = vector.load %arg8[%c55, %c0_10] : memref<342x4xf32, #tpu.memory_space<vmem>>, vector<16x4xf32>
    tpu.vector_store %arg8[%c55, %c0_10], %9 {strides = array<i32>} : memref<342x4xf32, #tpu.memory_space<vmem>>, vector<16x4xf32>,
    %c0_11 = arith.constant 0 : index
    %c48 = arith.constant 48 : index
    %c0_12 = arith.constant 0 : index
    %11 = vector.load %arg1[%c0_11, %c48, %c0_12] : memref<1x256x4xf32, #tpu.memory_space<vmem>>, vector<1x16x4xf32>
    %12 = vector.shape_cast %11 : vector<1x16x4xf32> to vector<16x4xf32>
    %c73 = arith.constant 73 : index
    %c0_13 = arith.constant 0 : index
    %13 = vector.load %arg8[%c73, %c0_13] : memref<342x4xf32, #tpu.memory_space<vmem>>, vector<16x4xf32>
    tpu.vector_store %arg8[%c73, %c0_13], %12 {strides = array<i32>} : memref<342x4xf32, #tpu.memory_space<vmem>>, vector<16x4xf32>,
    %c0_14 = arith.constant 0 : index
    %c64 = arith.constant 64 : index
    %c0_15 = arith.constant 0 : index
    %14 = vector.load %arg1[%c0_14, %c64, %c0_15] : memref<1x256x4xf32, #tpu.memory_space<vmem>>, vector<1x16x4xf32>
    %15 = vector.shape_cast %14 : vector<1x16x4xf32> to vector<16x4xf32>
    %c91 = arith.constant 91 : index
    %c0_16 = arith.constant 0 : index
    %16 = vector.load %arg8[%c91, %c0_16] : memref<342x4xf32, #tpu.memory_space<vmem>>, vector<16x4xf32>
    tpu.vector_store %arg8[%c91, %c0_16], %15 {strides = array<i32>} : memref<342x4xf32, #tpu.memory_space<vmem>>, vector<16x4xf32>,
    %c0_17 = arith.constant 0 : index
    %c80 = arith.constant 80 : index
    %c0_18 = arith.constant 0 : index
    %17 = vector.load %arg1[%c0_17, %c80, %c0_18] : memref<1x256x4xf32, #tpu.memory_space<vmem>>, vector<1x16x4xf32>
    %18 = vector.shape_cast %17 : vector<1x16x4xf32> to vector<16x4xf32>
    %c109 = arith.constant 109 : index
    %c0_19 = arith.constant 0 : index
    %19 = vector.load %arg8[%c109, %c0_19] : memref<342x4xf32, #tpu.memory_space<vmem>>, vector<16x4xf32>
    tpu.vector_store %arg8[%c109, %c0_19], %18 {strides = array<i32>} : memref<342x4xf32, #tpu.memory_space<vmem>>, vector<16x4xf32>,
    %c0_20 = arith.constant 0 : index
    %c96 = arith.constant 96 : index
    %c0_21 = arith.constant 0 : index
    %20 = vector.load %arg1[%c0_20, %c96, %c0_21] : memref<1x256x4xf32, #tpu.memory_space<vmem>>, vector<1x16x4xf32>
    %21 = vector.shape_cast %20 : vector<1x16x4xf32> to vector<16x4xf32>
    %c127 = arith.constant 127 : index
    %c0_22 = arith.constant 0 : index
    %22 = vector.load %arg8[%c127, %c0_22] : memref<342x4xf32, #tpu.memory_space<vmem>>, vector<16x4xf32>
    tpu.vector_store %arg8[%c127, %c0_22], %21 {strides = array<i32>} : memref<342x4xf32, #tpu.memory_space<vmem>>, vector<16x4xf32>,
    %c0_23 = arith.constant 0 : index
    %c112 = arith.constant 112 : index
    %c0_24 = arith.constant 0 : index
    %23 = vector.load %arg1[%c0_23, %c112, %c0_24] : memref<1x256x4xf32, #tpu.memory_space<vmem>>, vector<1x16x4xf32>
    %24 = vector.shape_cast %23 : vector<1x16x4xf32> to vector<16x4xf32>
    %c145 = arith.constant 145 : index
    %c0_25 = arith.constant 0 : index
    %25 = vector.load %arg8[%c145, %c0_25] : memref<342x4xf32, #tpu.memory_space<vmem>>, vector<16x4xf32>
    tpu.vector_store %arg8[%c145, %c0_25], %24 {strides = array<i32>} : memref<342x4xf32, #tpu.memory_space<vmem>>, vector<16x4xf32>,
    %c0_26 = arith.constant 0 : index
    %c128 = arith.constant 128 : index
    %c0_27 = arith.constant 0 : index
    %26 = vector.load %arg1[%c0_26, %c128, %c0_27] : memref<1x256x4xf32, #tpu.memory_space<vmem>>, vector<1x16x4xf32>
    %27 = vector.shape_cast %26 : vector<1x16x4xf32> to vector<16x4xf32>
    %c163 = arith.constant 163 : index
    %c0_28 = arith.constant 0 : index
    %28 = vector.load %arg8[%c163, %c0_28] : memref<342x4xf32, #tpu.memory_space<vmem>>, vector<16x4xf32>
    tpu.vector_store %arg8[%c163, %c0_28], %27 {strides = array<i32>} : memref<342x4xf32, #tpu.memory_space<vmem>>, vector<16x4xf32>,
    %c0_29 = arith.constant 0 : index
    %c144 = arith.constant 144 : index
    %c0_30 = arith.constant 0 : index
    %29 = vector.load %arg1[%c0_29, %c144, %c0_30] : memref<1x256x4xf32, #tpu.memory_space<vmem>>, vector<1x16x4xf32>
    %30 = vector.shape_cast %29 : vector<1x16x4xf32> to vector<16x4xf32>
    %c181 = arith.constant 181 : index
    %c0_31 = arith.constant 0 : index
    %31 = vector.load %arg8[%c181, %c0_31] : memref<342x4xf32, #tpu.memory_space<vmem>>, vector<16x4xf32>
    tpu.vector_store %arg8[%c181, %c0_31], %30 {strides = array<i32>} : memref<342x4xf32, #tpu.memory_space<vmem>>, vector<16x4xf32>,
    %c0_32 = arith.constant 0 : index
    %c160 = arith.constant 160 : index
    %c0_33 = arith.constant 0 : index
    %32 = vector.load %arg1[%c0_32, %c160, %c0_33] : memref<1x256x4xf32, #tpu.memory_space<vmem>>, vector<1x16x4xf32>
    %33 = vector.shape_cast %32 : vector<1x16x4xf32> to vector<16x4xf32>
    %c199 = arith.constant 199 : index
    %c0_34 = arith.constant 0 : index
    %34 = vector.load %arg8[%c199, %c0_34] : memref<342x4xf32, #tpu.memory_space<vmem>>, vector<16x4xf32>
    tpu.vector_store %arg8[%c199, %c0_34], %33 {strides = array<i32>} : memref<342x4xf32, #tpu.memory_space<vmem>>, vector<16x4xf32>,
    %c0_35 = arith.constant 0 : index
    %c176 = arith.constant 176 : index
    %c0_36 = arith.constant 0 : index
    %35 = vector.load %arg1[%c0_35, %c176, %c0_36] : memref<1x256x4xf32, #tpu.memory_space<vmem>>, vector<1x16x4xf32>
    %36 = vector.shape_cast %35 : vector<1x16x4xf32> to vector<16x4xf32>
    %c217 = arith.constant 217 : index
    %c0_37 = arith.constant 0 : index
    %37 = vector.load %arg8[%c217, %c0_37] : memref<342x4xf32, #tpu.memory_space<vmem>>, vector<16x4xf32>
    tpu.vector_store %arg8[%c217, %c0_37], %36 {strides = array<i32>} : memref<342x4xf32, #tpu.memory_space<vmem>>, vector<16x4xf32>,
    %c0_38 = arith.constant 0 : index
    %c192 = arith.constant 192 : index
    %c0_39 = arith.constant 0 : index
    %38 = vector.load %arg1[%c0_38, %c192, %c0_39] : memref<1x256x4xf32, #tpu.memory_space<vmem>>, vector<1x16x4xf32>
    %39 = vector.shape_cast %38 : vector<1x16x4xf32> to vector<16x4xf32>
    %c235 = arith.constant 235 : index
    %c0_40 = arith.constant 0 : index
    %40 = vector.load %arg8[%c235, %c0_40] : memref<342x4xf32, #tpu.memory_space<vmem>>, vector<16x4xf32>
    tpu.vector_store %arg8[%c235, %c0_40], %39 {strides = array<i32>} : memref<342x4xf32, #tpu.memory_space<vmem>>, vector<16x4xf32>,
    %c0_41 = arith.constant 0 : index
    %c208 = arith.constant 208 : index
    %c0_42 = arith.constant 0 : index
    %41 = vector.load %arg1[%c0_41, %c208, %c0_42] : memref<1x256x4xf32, #tpu.memory_space<vmem>>, vector<1x16x4xf32>
    %42 = vector.shape_cast %41 : vector<1x16x4xf32> to vector<16x4xf32>
    %c253 = arith.constant 253 : index
    %c0_43 = arith.constant 0 : index
    %43 = vector.load %arg8[%c253, %c0_43] : memref<342x4xf32, #tpu.memory_space<vmem>>, vector<16x4xf32>
    tpu.vector_store %arg8[%c253, %c0_43], %42 {strides = array<i32>} : memref<342x4xf32, #tpu.memory_space<vmem>>, vector<16x4xf32>,
    %c0_44 = arith.constant 0 : index
    %c224 = arith.constant 224 : index
    %c0_45 = arith.constant 0 : index
    %44 = vector.load %arg1[%c0_44, %c224, %c0_45] : memref<1x256x4xf32, #tpu.memory_space<vmem>>, vector<1x16x4xf32>
    %45 = vector.shape_cast %44 : vector<1x16x4xf32> to vector<16x4xf32>
    %c271 = arith.constant 271 : index
    %c0_46 = arith.constant 0 : index
    %46 = vector.load %arg8[%c271, %c0_46] : memref<342x4xf32, #tpu.memory_space<vmem>>, vector<16x4xf32>
    tpu.vector_store %arg8[%c271, %c0_46], %45 {strides = array<i32>} : memref<342x4xf32, #tpu.memory_space<vmem>>, vector<16x4xf32>,
    %c0_47 = arith.constant 0 : index
    %c240 = arith.constant 240 : index
    %c0_48 = arith.constant 0 : index
    %47 = vector.load %arg1[%c0_47, %c240, %c0_48] : memref<1x256x4xf32, #tpu.memory_space<vmem>>, vector<1x16x4xf32>
    %48 = vector.shape_cast %47 : vector<1x16x4xf32> to vector<16x4xf32>
    %c289 = arith.constant 289 : index
    %c0_49 = arith.constant 0 : index
    %49 = vector.load %arg8[%c289, %c0_49] : memref<342x4xf32, #tpu.memory_space<vmem>>, vector<16x4xf32>
    tpu.vector_store %arg8[%c289, %c0_49], %48 {strides = array<i32>} : memref<342x4xf32, #tpu.memory_space<vmem>>, vector<16x4xf32>,
    %cst_50 = arith.constant 0.000000e+00 : f32
    %50 = vector.broadcast %cst_50 : f32 to vector<288x8xf32>
    %c0_51 = arith.constant 0 : index
    %c0_52 = arith.constant 0 : index
    %51 = vector.load %arg8[%c0_51, %c0_52] : memref<342x4xf32, #tpu.memory_space<vmem>>, vector<288x4xf32>
    %c0_53 = arith.constant 0 : index
    %c0_54 = arith.constant 0 : index
    %c0_55 = arith.constant 0 : index
    %52 = vector.load %arg2[%c0_53, %c0_54, %c0_55] : memref<9x4x8xf32, #tpu.memory_space<vmem>>, vector<1x4x8xf32>
    %53 = vector.shape_cast %52 : vector<1x4x8xf32> to vector<4x8xf32>
    %cst_56 = arith.constant dense<0.000000e+00> : vector<288x8xf32>
    %54 = tpu.matmul %51, %53, %cst_56 {dimension_numbers = #tpu.dot_dimension_numbers<[1], [0], [0], [1], [0, 0, 1, 1], [], []>} : vector<288x4xf32>, vector<4x8xf32>, vector<288x8xf32> -> vector<288x8xf32>
    %55 = arith.addf %50, %54 : vector<288x8xf32>
    %c1 = arith.constant 1 : index
    %c0_57 = arith.constant 0 : index
    %56 = vector.load %arg8[%c1, %c0_57] : memref<342x4xf32, #tpu.memory_space<vmem>>, vector<288x4xf32>
    %c1_58 = arith.constant 1 : index
    %c0_59 = arith.constant 0 : index
    %c0_60 = arith.constant 0 : index
    %57 = vector.load %arg2[%c1_58, %c0_59, %c0_60] : memref<9x4x8xf32, #tpu.memory_space<vmem>>, vector<1x4x8xf32>
    %58 = vector.shape_cast %57 : vector<1x4x8xf32> to vector<4x8xf32>
    %cst_61 = arith.constant dense<0.000000e+00> : vector<288x8xf32>
    %59 = tpu.matmul %56, %58, %cst_61 {dimension_numbers = #tpu.dot_dimension_numbers<[1], [0], [0], [1], [0, 0, 1, 1], [], []>} : vector<288x4xf32>, vector<4x8xf32>, vector<288x8xf32> -> vector<288x8xf32>
    %60 = arith.addf %55, %59 : vector<288x8xf32>
    %c2 = arith.constant 2 : index
    %c0_62 = arith.constant 0 : index
    %61 = vector.load %arg8[%c2, %c0_62] : memref<342x4xf32, #tpu.memory_space<vmem>>, vector<288x4xf32>
    %c2_63 = arith.constant 2 : index
    %c0_64 = arith.constant 0 : index
    %c0_65 = arith.constant 0 : index
    %62 = vector.load %arg2[%c2_63, %c0_64, %c0_65] : memref<9x4x8xf32, #tpu.memory_space<vmem>>, vector<1x4x8xf32>
    %63 = vector.shape_cast %62 : vector<1x4x8xf32> to vector<4x8xf32>
    %cst_66 = arith.constant dense<0.000000e+00> : vector<288x8xf32>
    %64 = tpu.matmul %61, %63, %cst_66 {dimension_numbers = #tpu.dot_dimension_numbers<[1], [0], [0], [1], [0, 0, 1, 1], [], []>} : vector<288x4xf32>, vector<4x8xf32>, vector<288x8xf32> -> vector<288x8xf32>
    %65 = arith.addf %60, %64 : vector<288x8xf32>
    %c18 = arith.constant 18 : index
    %c0_67 = arith.constant 0 : index
    %66 = vector.load %arg8[%c18, %c0_67] : memref<342x4xf32, #tpu.memory_space<vmem>>, vector<288x4xf32>
    %c3 = arith.constant 3 : index
    %c0_68 = arith.constant 0 : index
    %c0_69 = arith.constant 0 : index
    %67 = vector.load %arg2[%c3, %c0_68, %c0_69] : memref<9x4x8xf32, #tpu.memory_space<vmem>>, vector<1x4x8xf32>
    %68 = vector.shape_cast %67 : vector<1x4x8xf32> to vector<4x8xf32>
    %cst_70 = arith.constant dense<0.000000e+00> : vector<288x8xf32>
    %69 = tpu.matmul %66, %68, %cst_70 {dimension_numbers = #tpu.dot_dimension_numbers<[1], [0], [0], [1], [0, 0, 1, 1], [], []>} : vector<288x4xf32>, vector<4x8xf32>, vector<288x8xf32> -> vector<288x8xf32>
    %70 = arith.addf %65, %69 : vector<288x8xf32>
    %c19_71 = arith.constant 19 : index
    %c0_72 = arith.constant 0 : index
    %71 = vector.load %arg8[%c19_71, %c0_72] : memref<342x4xf32, #tpu.memory_space<vmem>>, vector<288x4xf32>
    %c4 = arith.constant 4 : index
    %c0_73 = arith.constant 0 : index
    %c0_74 = arith.constant 0 : index
    %72 = vector.load %arg2[%c4, %c0_73, %c0_74] : memref<9x4x8xf32, #tpu.memory_space<vmem>>, vector<1x4x8xf32>
    %73 = vector.shape_cast %72 : vector<1x4x8xf32> to vector<4x8xf32>
    %cst_75 = arith.constant dense<0.000000e+00> : vector<288x8xf32>
    %74 = tpu.matmul %71, %73, %cst_75 {dimension_numbers = #tpu.dot_dimension_numbers<[1], [0], [0], [1], [0, 0, 1, 1], [], []>} : vector<288x4xf32>, vector<4x8xf32>, vector<288x8xf32> -> vector<288x8xf32>
    %75 = arith.addf %70, %74 : vector<288x8xf32>
    %c20 = arith.constant 20 : index
    %c0_76 = arith.constant 0 : index
    %76 = vector.load %arg8[%c20, %c0_76] : memref<342x4xf32, #tpu.memory_space<vmem>>, vector<288x4xf32>
    %c5 = arith.constant 5 : index
    %c0_77 = arith.constant 0 : index
    %c0_78 = arith.constant 0 : index
    %77 = vector.load %arg2[%c5, %c0_77, %c0_78] : memref<9x4x8xf32, #tpu.memory_space<vmem>>, vector<1x4x8xf32>
    %78 = vector.shape_cast %77 : vector<1x4x8xf32> to vector<4x8xf32>
    %cst_79 = arith.constant dense<0.000000e+00> : vector<288x8xf32>
    %79 = tpu.matmul %76, %78, %cst_79 {dimension_numbers = #tpu.dot_dimension_numbers<[1], [0], [0], [1], [0, 0, 1, 1], [], []>} : vector<288x4xf32>, vector<4x8xf32>, vector<288x8xf32> -> vector<288x8xf32>
    %80 = arith.addf %75, %79 : vector<288x8xf32>
    %c36 = arith.constant 36 : index
    %c0_80 = arith.constant 0 : index
    %81 = vector.load %arg8[%c36, %c0_80] : memref<342x4xf32, #tpu.memory_space<vmem>>, vector<288x4xf32>
    %c6 = arith.constant 6 : index
    %c0_81 = arith.constant 0 : index
    %c0_82 = arith.constant 0 : index
    %82 = vector.load %arg2[%c6, %c0_81, %c0_82] : memref<9x4x8xf32, #tpu.memory_space<vmem>>, vector<1x4x8xf32>
    %83 = vector.shape_cast %82 : vector<1x4x8xf32> to vector<4x8xf32>
    %cst_83 = arith.constant dense<0.000000e+00> : vector<288x8xf32>
    %84 = tpu.matmul %81, %83, %cst_83 {dimension_numbers = #tpu.dot_dimension_numbers<[1], [0], [0], [1], [0, 0, 1, 1], [], []>} : vector<288x4xf32>, vector<4x8xf32>, vector<288x8xf32> -> vector<288x8xf32>
    %85 = arith.addf %80, %84 : vector<288x8xf32>
    %c37_84 = arith.constant 37 : index
    %c0_85 = arith.constant 0 : index
    %86 = vector.load %arg8[%c37_84, %c0_85] : memref<342x4xf32, #tpu.memory_space<vmem>>, vector<288x4xf32>
    %c7 = arith.constant 7 : index
    %c0_86 = arith.constant 0 : index
    %c0_87 = arith.constant 0 : index
    %87 = vector.load %arg2[%c7, %c0_86, %c0_87] : memref<9x4x8xf32, #tpu.memory_space<vmem>>, vector<1x4x8xf32>
    %88 = vector.shape_cast %87 : vector<1x4x8xf32> to vector<4x8xf32>
    %cst_88 = arith.constant dense<0.000000e+00> : vector<288x8xf32>
    %89 = tpu.matmul %86, %88, %cst_88 {dimension_numbers = #tpu.dot_dimension_numbers<[1], [0], [0], [1], [0, 0, 1, 1], [], []>} : vector<288x4xf32>, vector<4x8xf32>, vector<288x8xf32> -> vector<288x8xf32>
    %90 = arith.addf %85, %89 : vector<288x8xf32>
    %c38 = arith.constant 38 : index
    %c0_89 = arith.constant 0 : index
    %91 = vector.load %arg8[%c38, %c0_89] : memref<342x4xf32, #tpu.memory_space<vmem>>, vector<288x4xf32>
    %c8 = arith.constant 8 : index
    %c0_90 = arith.constant 0 : index
    %c0_91 = arith.constant 0 : index
    %92 = vector.load %arg2[%c8, %c0_90, %c0_91] : memref<9x4x8xf32, #tpu.memory_space<vmem>>, vector<1x4x8xf32>
    %93 = vector.shape_cast %92 : vector<1x4x8xf32> to vector<4x8xf32>
    %cst_92 = arith.constant dense<0.000000e+00> : vector<288x8xf32>
    %94 = tpu.matmul %91, %93, %cst_92 {dimension_numbers = #tpu.dot_dimension_numbers<[1], [0], [0], [1], [0, 0, 1, 1], [], []>} : vector<288x4xf32>, vector<4x8xf32>, vector<288x8xf32> -> vector<288x8xf32>
    %95 = arith.addf %90, %94 : vector<288x8xf32>
    %96 = tpu.iota {dimensions = array<i32: 0>} : vector<288x1xi32>
    %c18_i32 = arith.constant 18 : i32
    %c0_i32 = arith.constant 0 : i32
    %97 = arith.cmpi eq, %c18_i32, %c0_i32 : i32
    %c1_i32 = arith.constant 1 : i32
    %98 = arith.select %97, %c1_i32, %c18_i32 : i32
    %99 = vector.broadcast %98 : i32 to vector<288x1xi32>
    %100 = arith.remsi %96, %99 : vector<288x1xi32>
    %c0_i32_93 = arith.constant 0 : i32
    %101 = vector.broadcast %c0_i32_93 : i32 to vector<288x1xi32>
    %102 = arith.cmpi ne, %100, %101 : vector<288x1xi32>
    %c0_i32_94 = arith.constant 0 : i32
    %103 = vector.broadcast %c0_i32_94 : i32 to vector<288x1xi32>
    %104 = arith.cmpi slt, %100, %103 : vector<288x1xi32>
    %c0_i32_95 = arith.constant 0 : i32
    %105 = arith.cmpi slt, %98, %c0_i32_95 : i32
    %106 = vector.broadcast %105 : i1 to vector<288x1xi1>
    %107 = vector.broadcast %106 : vector<288x1xi1> to vector<288x1xi1>
    %108 = arith.xori %104, %107 : vector<288x1xi1>
    %109 = arith.andi %108, %102 : vector<288x1xi1>
    %110 = vector.broadcast %98 : i32 to vector<288x1xi32>
    %111 = arith.addi %100, %110 : vector<288x1xi32>
    %112 = arith.select %109, %111, %100 : vector<288x1xi1>, vector<288x1xi32>
    %c16_i32 = arith.constant 16 : i32
    %113 = vector.broadcast %c16_i32 : i32 to vector<288x1xi32>
    %114 = arith.cmpi slt, %112, %113 : vector<288x1xi32>
    %cst_96 = arith.constant 0.000000e+00 : f32
    %115 = vector.shape_cast %114 : vector<288x1xi1> to vector<288x1xi1>
    %116 = vector.broadcast %115 : vector<288x1xi1> to vector<288x8xi1>
    %117 = vector.broadcast %cst_96 : f32 to vector<288x8xf32>
    %118 = arith.select %116, %95, %117 : vector<288x8xi1>, vector<288x8xf32>
    %cst_97 = arith.constant dense<0.000000e+00> : vector<8xf32>
    %119 = vector.multi_reduction <add>, %118, %cst_97 [0] : vector<288x8xf32> to vector<8xf32>
    %120 = vector.shape_cast %119 : vector<8xf32> to vector<1x8xf32>
    %c0_98 = arith.constant 0 : index
    %c0_99 = arith.constant 0 : index
    %c0_100 = arith.constant 0 : index
    %121 = vector.load %arg6[%c0_98, %c0_99, %c0_100] : memref<1x1x8xf32, #tpu.memory_space<vmem>>, vector<1x1x8xf32>
    %122 = vector.shape_cast %121 : vector<1x1x8xf32> to vector<1x8xf32>
    %123 = vector.shape_cast %120 : vector<1x8xf32> to vector<1x1x8xf32>
    tpu.vector_store %arg6[%c0_98, %c0_99, %c0_100], %123 {strides = array<i32>} : memref<1x1x8xf32, #tpu.memory_space<vmem>>, vector<1x1x8xf32>,
    %124 = arith.mulf %118, %118 : vector<288x8xf32>
    %cst_101 = arith.constant dense<0.000000e+00> : vector<8xf32>
    %125 = vector.multi_reduction <add>, %124, %cst_101 [0] : vector<288x8xf32> to vector<8xf32>
    %126 = vector.shape_cast %125 : vector<8xf32> to vector<1x8xf32>
    %c0_102 = arith.constant 0 : index
    %c0_103 = arith.constant 0 : index
    %c0_104 = arith.constant 0 : index
    %127 = vector.load %arg7[%c0_102, %c0_103, %c0_104] : memref<1x1x8xf32, #tpu.memory_space<vmem>>, vector<1x1x8xf32>
    %128 = vector.shape_cast %127 : vector<1x1x8xf32> to vector<1x8xf32>
    %129 = vector.shape_cast %126 : vector<1x8xf32> to vector<1x1x8xf32>
    tpu.vector_store %arg7[%c0_102, %c0_103, %c0_104], %129 {strides = array<i32>} : memref<1x1x8xf32, #tpu.memory_space<vmem>>, vector<1x1x8xf32>,
    %c0_105 = arith.constant 0 : index
    %c0_106 = arith.constant 0 : index
    %c0_107 = arith.constant 0 : index
    %130 = vector.load %arg5[%c0_105, %c0_106, %c0_107] : memref<1x288x8xf32, #tpu.memory_space<vmem>>, vector<1x288x8xf32>
    %131 = vector.shape_cast %130 : vector<1x288x8xf32> to vector<288x8xf32>
    %132 = vector.shape_cast %118 : vector<288x8xf32> to vector<1x288x8xf32>
    tpu.vector_store %arg5[%c0_105, %c0_106, %c0_107], %132 {strides = array<i32>} : memref<1x288x8xf32, #tpu.memory_space<vmem>>, vector<1x288x8xf32>,
    return
  }
  func.func @transform_0(%arg0: i32) -> (i32, i32, i32) {
    %c0_i32 = arith.constant 0 : i32
    %c0_i32_0 = arith.constant 0 : i32
    %c0_i32_1 = arith.constant 0 : i32
    return %arg0, %c0_i32, %c0_i32_0 : i32, i32, i32
  }
  func.func @transform_1(%arg0: i32) -> (i32, i32, i32) {
    %c0_i32 = arith.constant 0 : i32
    %c0_i32_0 = arith.constant 0 : i32
    %c0_i32_1 = arith.constant 0 : i32
    %c0_i32_2 = arith.constant 0 : i32
    return %c0_i32, %c0_i32_0, %c0_i32_1 : i32, i32, i32
  }
  func.func @transform_2(%arg0: i32) -> (i32, i32) {
    %c0_i32 = arith.constant 0 : i32
    %c0_i32_0 = arith.constant 0 : i32
    %c0_i32_1 = arith.constant 0 : i32
    return %c0_i32, %c0_i32_0 : i32, i32
  }
  func.func @transform_3(%arg0: i32) -> (i32, i32) {
    %c0_i32 = arith.constant 0 : i32
    %c0_i32_0 = arith.constant 0 : i32
    %c0_i32_1 = arith.constant 0 : i32
    return %c0_i32, %c0_i32_0 : i32, i32
  }
  func.func @transform_4(%arg0: i32) -> (i32, i32, i32) {
    %c0_i32 = arith.constant 0 : i32
    %c0_i32_0 = arith.constant 0 : i32
    %c0_i32_1 = arith.constant 0 : i32
    return %arg0, %c0_i32, %c0_i32_0 : i32, i32, i32
  }
  func.func @transform_5(%arg0: i32) -> (i32, i32, i32) {
    %c0_i32 = arith.constant 0 : i32
    %c0_i32_0 = arith.constant 0 : i32
    %c0_i32_1 = arith.constant 0 : i32
    return %arg0, %c0_i32, %c0_i32_0 : i32, i32, i32
  }
  func.func @transform_6(%arg0: i32) -> (i32, i32, i32) {
    %c0_i32 = arith.constant 0 : i32
    %c0_i32_0 = arith.constant 0 : i32
    %c0_i32_1 = arith.constant 0 : i32
    return %arg0, %c0_i32, %c0_i32_0 : i32, i32, i32
  }
}

module attributes {stable_mosaic.version = 11 : i64} {
  func.func @_conv3x3_bn_stats_kernel(%arg0: i32, %arg1: memref<1x288x8xf32, #tpu.memory_space<vmem>>, %arg2: memref<9x8x8xf32, #tpu.memory_space<vmem>>, %arg3: memref<1x8xf32, #tpu.memory_space<vmem>>, %arg4: memref<1x8xf32, #tpu.memory_space<vmem>>, %arg5: memref<1x288x8xf32, #tpu.memory_space<vmem>>, %arg6: memref<1x1x8xf32, #tpu.memory_space<vmem>>, %arg7: memref<1x1x8xf32, #tpu.memory_space<vmem>>, %arg8: memref<342x8xf32, #tpu.memory_space<vmem>>) attributes {dimension_semantics = [#tpu.dimension_semantics<parallel>], iteration_bounds = array<i64: 2>, scalar_prefetch = 0 : i64, scratch_operands = 1 : i64, tpu.core_type = #tpu.core_type<tc>, window_params = [{transform_indices = @transform_0, window_bounds = array<i64: 1, 288, 8>}, {pipeline_mode = #tpu.pipeline_mode<synchronous>, transform_indices = @transform_1, window_bounds = array<i64: 9, 8, 8>}, {pipeline_mode = #tpu.pipeline_mode<synchronous>, transform_indices = @transform_2, window_bounds = array<i64: 1, 8>}, {pipeline_mode = #tpu.pipeline_mode<synchronous>, transform_indices = @transform_3, window_bounds = array<i64: 1, 8>}, {transform_indices = @transform_4, window_bounds = array<i64: 1, 288, 8>}, {transform_indices = @transform_5, window_bounds = array<i64: 1, 1, 8>}, {transform_indices = @transform_6, window_bounds = array<i64: 1, 1, 8>}]} {
    %cst = arith.constant 0.000000e+00 : f32
    %0 = vector.broadcast %cst : f32 to vector<342x8xf32>
    %c0 = arith.constant 0 : index
    %c0_0 = arith.constant 0 : index
    %1 = vector.load %arg8[%c0, %c0_0] : memref<342x8xf32, #tpu.memory_space<vmem>>, vector<342x8xf32>
    tpu.vector_store %arg8[%c0, %c0_0], %0 {strides = array<i32>} : memref<342x8xf32, #tpu.memory_space<vmem>>, vector<342x8xf32>,
    %c0_1 = arith.constant 0 : index
    %c0_2 = arith.constant 0 : index
    %2 = vector.load %arg3[%c0_1, %c0_2] : memref<1x8xf32, #tpu.memory_space<vmem>>, vector<1x8xf32>
    %c0_3 = arith.constant 0 : index
    %c0_4 = arith.constant 0 : index
    %3 = vector.load %arg4[%c0_3, %c0_4] : memref<1x8xf32, #tpu.memory_space<vmem>>, vector<1x8xf32>
    %c0_5 = arith.constant 0 : index
    %c0_6 = arith.constant 0 : index
    %c0_7 = arith.constant 0 : index
    %4 = vector.load %arg1[%c0_5, %c0_6, %c0_7] : memref<1x288x8xf32, #tpu.memory_space<vmem>>, vector<1x16x8xf32>
    %5 = vector.shape_cast %4 : vector<1x16x8xf32> to vector<16x8xf32>
    %6 = vector.broadcast %2 : vector<1x8xf32> to vector<16x8xf32>
    %7 = arith.mulf %5, %6 : vector<16x8xf32>
    %8 = vector.broadcast %3 : vector<1x8xf32> to vector<16x8xf32>
    %9 = arith.addf %7, %8 : vector<16x8xf32>
    %cst_8 = arith.constant 0.000000e+00 : f32
    %10 = vector.broadcast %cst_8 : f32 to vector<16x8xf32>
    %11 = arith.maximumf %9, %10 : vector<16x8xf32>
    %c19 = arith.constant 19 : index
    %c0_9 = arith.constant 0 : index
    %12 = vector.load %arg8[%c19, %c0_9] : memref<342x8xf32, #tpu.memory_space<vmem>>, vector<16x8xf32>
    tpu.vector_store %arg8[%c19, %c0_9], %11 {strides = array<i32>} : memref<342x8xf32, #tpu.memory_space<vmem>>, vector<16x8xf32>,
    %c0_10 = arith.constant 0 : index
    %c18 = arith.constant 18 : index
    %c0_11 = arith.constant 0 : index
    %13 = vector.load %arg1[%c0_10, %c18, %c0_11] : memref<1x288x8xf32, #tpu.memory_space<vmem>>, vector<1x16x8xf32>
    %14 = vector.shape_cast %13 : vector<1x16x8xf32> to vector<16x8xf32>
    %15 = vector.broadcast %2 : vector<1x8xf32> to vector<16x8xf32>
    %16 = arith.mulf %14, %15 : vector<16x8xf32>
    %17 = vector.broadcast %3 : vector<1x8xf32> to vector<16x8xf32>
    %18 = arith.addf %16, %17 : vector<16x8xf32>
    %cst_12 = arith.constant 0.000000e+00 : f32
    %19 = vector.broadcast %cst_12 : f32 to vector<16x8xf32>
    %20 = arith.maximumf %18, %19 : vector<16x8xf32>
    %c37 = arith.constant 37 : index
    %c0_13 = arith.constant 0 : index
    %21 = vector.load %arg8[%c37, %c0_13] : memref<342x8xf32, #tpu.memory_space<vmem>>, vector<16x8xf32>
    tpu.vector_store %arg8[%c37, %c0_13], %20 {strides = array<i32>} : memref<342x8xf32, #tpu.memory_space<vmem>>, vector<16x8xf32>,
    %c0_14 = arith.constant 0 : index
    %c36 = arith.constant 36 : index
    %c0_15 = arith.constant 0 : index
    %22 = vector.load %arg1[%c0_14, %c36, %c0_15] : memref<1x288x8xf32, #tpu.memory_space<vmem>>, vector<1x16x8xf32>
    %23 = vector.shape_cast %22 : vector<1x16x8xf32> to vector<16x8xf32>
    %24 = vector.broadcast %2 : vector<1x8xf32> to vector<16x8xf32>
    %25 = arith.mulf %23, %24 : vector<16x8xf32>
    %26 = vector.broadcast %3 : vector<1x8xf32> to vector<16x8xf32>
    %27 = arith.addf %25, %26 : vector<16x8xf32>
    %cst_16 = arith.constant 0.000000e+00 : f32
    %28 = vector.broadcast %cst_16 : f32 to vector<16x8xf32>
    %29 = arith.maximumf %27, %28 : vector<16x8xf32>
    %c55 = arith.constant 55 : index
    %c0_17 = arith.constant 0 : index
    %30 = vector.load %arg8[%c55, %c0_17] : memref<342x8xf32, #tpu.memory_space<vmem>>, vector<16x8xf32>
    tpu.vector_store %arg8[%c55, %c0_17], %29 {strides = array<i32>} : memref<342x8xf32, #tpu.memory_space<vmem>>, vector<16x8xf32>,
    %c0_18 = arith.constant 0 : index
    %c54 = arith.constant 54 : index
    %c0_19 = arith.constant 0 : index
    %31 = vector.load %arg1[%c0_18, %c54, %c0_19] : memref<1x288x8xf32, #tpu.memory_space<vmem>>, vector<1x16x8xf32>
    %32 = vector.shape_cast %31 : vector<1x16x8xf32> to vector<16x8xf32>
    %33 = vector.broadcast %2 : vector<1x8xf32> to vector<16x8xf32>
    %34 = arith.mulf %32, %33 : vector<16x8xf32>
    %35 = vector.broadcast %3 : vector<1x8xf32> to vector<16x8xf32>
    %36 = arith.addf %34, %35 : vector<16x8xf32>
    %cst_20 = arith.constant 0.000000e+00 : f32
    %37 = vector.broadcast %cst_20 : f32 to vector<16x8xf32>
    %38 = arith.maximumf %36, %37 : vector<16x8xf32>
    %c73 = arith.constant 73 : index
    %c0_21 = arith.constant 0 : index
    %39 = vector.load %arg8[%c73, %c0_21] : memref<342x8xf32, #tpu.memory_space<vmem>>, vector<16x8xf32>
    tpu.vector_store %arg8[%c73, %c0_21], %38 {strides = array<i32>} : memref<342x8xf32, #tpu.memory_space<vmem>>, vector<16x8xf32>,
    %c0_22 = arith.constant 0 : index
    %c72 = arith.constant 72 : index
    %c0_23 = arith.constant 0 : index
    %40 = vector.load %arg1[%c0_22, %c72, %c0_23] : memref<1x288x8xf32, #tpu.memory_space<vmem>>, vector<1x16x8xf32>
    %41 = vector.shape_cast %40 : vector<1x16x8xf32> to vector<16x8xf32>
    %42 = vector.broadcast %2 : vector<1x8xf32> to vector<16x8xf32>
    %43 = arith.mulf %41, %42 : vector<16x8xf32>
    %44 = vector.broadcast %3 : vector<1x8xf32> to vector<16x8xf32>
    %45 = arith.addf %43, %44 : vector<16x8xf32>
    %cst_24 = arith.constant 0.000000e+00 : f32
    %46 = vector.broadcast %cst_24 : f32 to vector<16x8xf32>
    %47 = arith.maximumf %45, %46 : vector<16x8xf32>
    %c91 = arith.constant 91 : index
    %c0_25 = arith.constant 0 : index
    %48 = vector.load %arg8[%c91, %c0_25] : memref<342x8xf32, #tpu.memory_space<vmem>>, vector<16x8xf32>
    tpu.vector_store %arg8[%c91, %c0_25], %47 {strides = array<i32>} : memref<342x8xf32, #tpu.memory_space<vmem>>, vector<16x8xf32>,
    %c0_26 = arith.constant 0 : index
    %c90 = arith.constant 90 : index
    %c0_27 = arith.constant 0 : index
    %49 = vector.load %arg1[%c0_26, %c90, %c0_27] : memref<1x288x8xf32, #tpu.memory_space<vmem>>, vector<1x16x8xf32>
    %50 = vector.shape_cast %49 : vector<1x16x8xf32> to vector<16x8xf32>
    %51 = vector.broadcast %2 : vector<1x8xf32> to vector<16x8xf32>
    %52 = arith.mulf %50, %51 : vector<16x8xf32>
    %53 = vector.broadcast %3 : vector<1x8xf32> to vector<16x8xf32>
    %54 = arith.addf %52, %53 : vector<16x8xf32>
    %cst_28 = arith.constant 0.000000e+00 : f32
    %55 = vector.broadcast %cst_28 : f32 to vector<16x8xf32>
    %56 = arith.maximumf %54, %55 : vector<16x8xf32>
    %c109 = arith.constant 109 : index
    %c0_29 = arith.constant 0 : index
    %57 = vector.load %arg8[%c109, %c0_29] : memref<342x8xf32, #tpu.memory_space<vmem>>, vector<16x8xf32>
    tpu.vector_store %arg8[%c109, %c0_29], %56 {strides = array<i32>} : memref<342x8xf32, #tpu.memory_space<vmem>>, vector<16x8xf32>,
    %c0_30 = arith.constant 0 : index
    %c108 = arith.constant 108 : index
    %c0_31 = arith.constant 0 : index
    %58 = vector.load %arg1[%c0_30, %c108, %c0_31] : memref<1x288x8xf32, #tpu.memory_space<vmem>>, vector<1x16x8xf32>
    %59 = vector.shape_cast %58 : vector<1x16x8xf32> to vector<16x8xf32>
    %60 = vector.broadcast %2 : vector<1x8xf32> to vector<16x8xf32>
    %61 = arith.mulf %59, %60 : vector<16x8xf32>
    %62 = vector.broadcast %3 : vector<1x8xf32> to vector<16x8xf32>
    %63 = arith.addf %61, %62 : vector<16x8xf32>
    %cst_32 = arith.constant 0.000000e+00 : f32
    %64 = vector.broadcast %cst_32 : f32 to vector<16x8xf32>
    %65 = arith.maximumf %63, %64 : vector<16x8xf32>
    %c127 = arith.constant 127 : index
    %c0_33 = arith.constant 0 : index
    %66 = vector.load %arg8[%c127, %c0_33] : memref<342x8xf32, #tpu.memory_space<vmem>>, vector<16x8xf32>
    tpu.vector_store %arg8[%c127, %c0_33], %65 {strides = array<i32>} : memref<342x8xf32, #tpu.memory_space<vmem>>, vector<16x8xf32>,
    %c0_34 = arith.constant 0 : index
    %c126 = arith.constant 126 : index
    %c0_35 = arith.constant 0 : index
    %67 = vector.load %arg1[%c0_34, %c126, %c0_35] : memref<1x288x8xf32, #tpu.memory_space<vmem>>, vector<1x16x8xf32>
    %68 = vector.shape_cast %67 : vector<1x16x8xf32> to vector<16x8xf32>
    %69 = vector.broadcast %2 : vector<1x8xf32> to vector<16x8xf32>
    %70 = arith.mulf %68, %69 : vector<16x8xf32>
    %71 = vector.broadcast %3 : vector<1x8xf32> to vector<16x8xf32>
    %72 = arith.addf %70, %71 : vector<16x8xf32>
    %cst_36 = arith.constant 0.000000e+00 : f32
    %73 = vector.broadcast %cst_36 : f32 to vector<16x8xf32>
    %74 = arith.maximumf %72, %73 : vector<16x8xf32>
    %c145 = arith.constant 145 : index
    %c0_37 = arith.constant 0 : index
    %75 = vector.load %arg8[%c145, %c0_37] : memref<342x8xf32, #tpu.memory_space<vmem>>, vector<16x8xf32>
    tpu.vector_store %arg8[%c145, %c0_37], %74 {strides = array<i32>} : memref<342x8xf32, #tpu.memory_space<vmem>>, vector<16x8xf32>,
    %c0_38 = arith.constant 0 : index
    %c144 = arith.constant 144 : index
    %c0_39 = arith.constant 0 : index
    %76 = vector.load %arg1[%c0_38, %c144, %c0_39] : memref<1x288x8xf32, #tpu.memory_space<vmem>>, vector<1x16x8xf32>
    %77 = vector.shape_cast %76 : vector<1x16x8xf32> to vector<16x8xf32>
    %78 = vector.broadcast %2 : vector<1x8xf32> to vector<16x8xf32>
    %79 = arith.mulf %77, %78 : vector<16x8xf32>
    %80 = vector.broadcast %3 : vector<1x8xf32> to vector<16x8xf32>
    %81 = arith.addf %79, %80 : vector<16x8xf32>
    %cst_40 = arith.constant 0.000000e+00 : f32
    %82 = vector.broadcast %cst_40 : f32 to vector<16x8xf32>
    %83 = arith.maximumf %81, %82 : vector<16x8xf32>
    %c163 = arith.constant 163 : index
    %c0_41 = arith.constant 0 : index
    %84 = vector.load %arg8[%c163, %c0_41] : memref<342x8xf32, #tpu.memory_space<vmem>>, vector<16x8xf32>
    tpu.vector_store %arg8[%c163, %c0_41], %83 {strides = array<i32>} : memref<342x8xf32, #tpu.memory_space<vmem>>, vector<16x8xf32>,
    %c0_42 = arith.constant 0 : index
    %c162 = arith.constant 162 : index
    %c0_43 = arith.constant 0 : index
    %85 = vector.load %arg1[%c0_42, %c162, %c0_43] : memref<1x288x8xf32, #tpu.memory_space<vmem>>, vector<1x16x8xf32>
    %86 = vector.shape_cast %85 : vector<1x16x8xf32> to vector<16x8xf32>
    %87 = vector.broadcast %2 : vector<1x8xf32> to vector<16x8xf32>
    %88 = arith.mulf %86, %87 : vector<16x8xf32>
    %89 = vector.broadcast %3 : vector<1x8xf32> to vector<16x8xf32>
    %90 = arith.addf %88, %89 : vector<16x8xf32>
    %cst_44 = arith.constant 0.000000e+00 : f32
    %91 = vector.broadcast %cst_44 : f32 to vector<16x8xf32>
    %92 = arith.maximumf %90, %91 : vector<16x8xf32>
    %c181 = arith.constant 181 : index
    %c0_45 = arith.constant 0 : index
    %93 = vector.load %arg8[%c181, %c0_45] : memref<342x8xf32, #tpu.memory_space<vmem>>, vector<16x8xf32>
    tpu.vector_store %arg8[%c181, %c0_45], %92 {strides = array<i32>} : memref<342x8xf32, #tpu.memory_space<vmem>>, vector<16x8xf32>,
    %c0_46 = arith.constant 0 : index
    %c180 = arith.constant 180 : index
    %c0_47 = arith.constant 0 : index
    %94 = vector.load %arg1[%c0_46, %c180, %c0_47] : memref<1x288x8xf32, #tpu.memory_space<vmem>>, vector<1x16x8xf32>
    %95 = vector.shape_cast %94 : vector<1x16x8xf32> to vector<16x8xf32>
    %96 = vector.broadcast %2 : vector<1x8xf32> to vector<16x8xf32>
    %97 = arith.mulf %95, %96 : vector<16x8xf32>
    %98 = vector.broadcast %3 : vector<1x8xf32> to vector<16x8xf32>
    %99 = arith.addf %97, %98 : vector<16x8xf32>
    %cst_48 = arith.constant 0.000000e+00 : f32
    %100 = vector.broadcast %cst_48 : f32 to vector<16x8xf32>
    %101 = arith.maximumf %99, %100 : vector<16x8xf32>
    %c199 = arith.constant 199 : index
    %c0_49 = arith.constant 0 : index
    %102 = vector.load %arg8[%c199, %c0_49] : memref<342x8xf32, #tpu.memory_space<vmem>>, vector<16x8xf32>
    tpu.vector_store %arg8[%c199, %c0_49], %101 {strides = array<i32>} : memref<342x8xf32, #tpu.memory_space<vmem>>, vector<16x8xf32>,
    %c0_50 = arith.constant 0 : index
    %c198 = arith.constant 198 : index
    %c0_51 = arith.constant 0 : index
    %103 = vector.load %arg1[%c0_50, %c198, %c0_51] : memref<1x288x8xf32, #tpu.memory_space<vmem>>, vector<1x16x8xf32>
    %104 = vector.shape_cast %103 : vector<1x16x8xf32> to vector<16x8xf32>
    %105 = vector.broadcast %2 : vector<1x8xf32> to vector<16x8xf32>
    %106 = arith.mulf %104, %105 : vector<16x8xf32>
    %107 = vector.broadcast %3 : vector<1x8xf32> to vector<16x8xf32>
    %108 = arith.addf %106, %107 : vector<16x8xf32>
    %cst_52 = arith.constant 0.000000e+00 : f32
    %109 = vector.broadcast %cst_52 : f32 to vector<16x8xf32>
    %110 = arith.maximumf %108, %109 : vector<16x8xf32>
    %c217 = arith.constant 217 : index
    %c0_53 = arith.constant 0 : index
    %111 = vector.load %arg8[%c217, %c0_53] : memref<342x8xf32, #tpu.memory_space<vmem>>, vector<16x8xf32>
    tpu.vector_store %arg8[%c217, %c0_53], %110 {strides = array<i32>} : memref<342x8xf32, #tpu.memory_space<vmem>>, vector<16x8xf32>,
    %c0_54 = arith.constant 0 : index
    %c216 = arith.constant 216 : index
    %c0_55 = arith.constant 0 : index
    %112 = vector.load %arg1[%c0_54, %c216, %c0_55] : memref<1x288x8xf32, #tpu.memory_space<vmem>>, vector<1x16x8xf32>
    %113 = vector.shape_cast %112 : vector<1x16x8xf32> to vector<16x8xf32>
    %114 = vector.broadcast %2 : vector<1x8xf32> to vector<16x8xf32>
    %115 = arith.mulf %113, %114 : vector<16x8xf32>
    %116 = vector.broadcast %3 : vector<1x8xf32> to vector<16x8xf32>
    %117 = arith.addf %115, %116 : vector<16x8xf32>
    %cst_56 = arith.constant 0.000000e+00 : f32
    %118 = vector.broadcast %cst_56 : f32 to vector<16x8xf32>
    %119 = arith.maximumf %117, %118 : vector<16x8xf32>
    %c235 = arith.constant 235 : index
    %c0_57 = arith.constant 0 : index
    %120 = vector.load %arg8[%c235, %c0_57] : memref<342x8xf32, #tpu.memory_space<vmem>>, vector<16x8xf32>
    tpu.vector_store %arg8[%c235, %c0_57], %119 {strides = array<i32>} : memref<342x8xf32, #tpu.memory_space<vmem>>, vector<16x8xf32>,
    %c0_58 = arith.constant 0 : index
    %c234 = arith.constant 234 : index
    %c0_59 = arith.constant 0 : index
    %121 = vector.load %arg1[%c0_58, %c234, %c0_59] : memref<1x288x8xf32, #tpu.memory_space<vmem>>, vector<1x16x8xf32>
    %122 = vector.shape_cast %121 : vector<1x16x8xf32> to vector<16x8xf32>
    %123 = vector.broadcast %2 : vector<1x8xf32> to vector<16x8xf32>
    %124 = arith.mulf %122, %123 : vector<16x8xf32>
    %125 = vector.broadcast %3 : vector<1x8xf32> to vector<16x8xf32>
    %126 = arith.addf %124, %125 : vector<16x8xf32>
    %cst_60 = arith.constant 0.000000e+00 : f32
    %127 = vector.broadcast %cst_60 : f32 to vector<16x8xf32>
    %128 = arith.maximumf %126, %127 : vector<16x8xf32>
    %c253 = arith.constant 253 : index
    %c0_61 = arith.constant 0 : index
    %129 = vector.load %arg8[%c253, %c0_61] : memref<342x8xf32, #tpu.memory_space<vmem>>, vector<16x8xf32>
    tpu.vector_store %arg8[%c253, %c0_61], %128 {strides = array<i32>} : memref<342x8xf32, #tpu.memory_space<vmem>>, vector<16x8xf32>,
    %c0_62 = arith.constant 0 : index
    %c252 = arith.constant 252 : index
    %c0_63 = arith.constant 0 : index
    %130 = vector.load %arg1[%c0_62, %c252, %c0_63] : memref<1x288x8xf32, #tpu.memory_space<vmem>>, vector<1x16x8xf32>
    %131 = vector.shape_cast %130 : vector<1x16x8xf32> to vector<16x8xf32>
    %132 = vector.broadcast %2 : vector<1x8xf32> to vector<16x8xf32>
    %133 = arith.mulf %131, %132 : vector<16x8xf32>
    %134 = vector.broadcast %3 : vector<1x8xf32> to vector<16x8xf32>
    %135 = arith.addf %133, %134 : vector<16x8xf32>
    %cst_64 = arith.constant 0.000000e+00 : f32
    %136 = vector.broadcast %cst_64 : f32 to vector<16x8xf32>
    %137 = arith.maximumf %135, %136 : vector<16x8xf32>
    %c271 = arith.constant 271 : index
    %c0_65 = arith.constant 0 : index
    %138 = vector.load %arg8[%c271, %c0_65] : memref<342x8xf32, #tpu.memory_space<vmem>>, vector<16x8xf32>
    tpu.vector_store %arg8[%c271, %c0_65], %137 {strides = array<i32>} : memref<342x8xf32, #tpu.memory_space<vmem>>, vector<16x8xf32>,
    %c0_66 = arith.constant 0 : index
    %c270 = arith.constant 270 : index
    %c0_67 = arith.constant 0 : index
    %139 = vector.load %arg1[%c0_66, %c270, %c0_67] : memref<1x288x8xf32, #tpu.memory_space<vmem>>, vector<1x16x8xf32>
    %140 = vector.shape_cast %139 : vector<1x16x8xf32> to vector<16x8xf32>
    %141 = vector.broadcast %2 : vector<1x8xf32> to vector<16x8xf32>
    %142 = arith.mulf %140, %141 : vector<16x8xf32>
    %143 = vector.broadcast %3 : vector<1x8xf32> to vector<16x8xf32>
    %144 = arith.addf %142, %143 : vector<16x8xf32>
    %cst_68 = arith.constant 0.000000e+00 : f32
    %145 = vector.broadcast %cst_68 : f32 to vector<16x8xf32>
    %146 = arith.maximumf %144, %145 : vector<16x8xf32>
    %c289 = arith.constant 289 : index
    %c0_69 = arith.constant 0 : index
    %147 = vector.load %arg8[%c289, %c0_69] : memref<342x8xf32, #tpu.memory_space<vmem>>, vector<16x8xf32>
    tpu.vector_store %arg8[%c289, %c0_69], %146 {strides = array<i32>} : memref<342x8xf32, #tpu.memory_space<vmem>>, vector<16x8xf32>,
    %cst_70 = arith.constant 0.000000e+00 : f32
    %148 = vector.broadcast %cst_70 : f32 to vector<288x8xf32>
    %c0_71 = arith.constant 0 : index
    %c0_72 = arith.constant 0 : index
    %149 = vector.load %arg8[%c0_71, %c0_72] : memref<342x8xf32, #tpu.memory_space<vmem>>, vector<288x8xf32>
    %c0_73 = arith.constant 0 : index
    %c0_74 = arith.constant 0 : index
    %c0_75 = arith.constant 0 : index
    %150 = vector.load %arg2[%c0_73, %c0_74, %c0_75] : memref<9x8x8xf32, #tpu.memory_space<vmem>>, vector<1x8x8xf32>
    %151 = vector.shape_cast %150 : vector<1x8x8xf32> to vector<8x8xf32>
    %cst_76 = arith.constant dense<0.000000e+00> : vector<288x8xf32>
    %152 = tpu.matmul %149, %151, %cst_76 {dimension_numbers = #tpu.dot_dimension_numbers<[1], [0], [0], [1], [0, 0, 1, 1], [], []>} : vector<288x8xf32>, vector<8x8xf32>, vector<288x8xf32> -> vector<288x8xf32>
    %153 = arith.addf %148, %152 : vector<288x8xf32>
    %c1 = arith.constant 1 : index
    %c0_77 = arith.constant 0 : index
    %154 = vector.load %arg8[%c1, %c0_77] : memref<342x8xf32, #tpu.memory_space<vmem>>, vector<288x8xf32>
    %c1_78 = arith.constant 1 : index
    %c0_79 = arith.constant 0 : index
    %c0_80 = arith.constant 0 : index
    %155 = vector.load %arg2[%c1_78, %c0_79, %c0_80] : memref<9x8x8xf32, #tpu.memory_space<vmem>>, vector<1x8x8xf32>
    %156 = vector.shape_cast %155 : vector<1x8x8xf32> to vector<8x8xf32>
    %cst_81 = arith.constant dense<0.000000e+00> : vector<288x8xf32>
    %157 = tpu.matmul %154, %156, %cst_81 {dimension_numbers = #tpu.dot_dimension_numbers<[1], [0], [0], [1], [0, 0, 1, 1], [], []>} : vector<288x8xf32>, vector<8x8xf32>, vector<288x8xf32> -> vector<288x8xf32>
    %158 = arith.addf %153, %157 : vector<288x8xf32>
    %c2 = arith.constant 2 : index
    %c0_82 = arith.constant 0 : index
    %159 = vector.load %arg8[%c2, %c0_82] : memref<342x8xf32, #tpu.memory_space<vmem>>, vector<288x8xf32>
    %c2_83 = arith.constant 2 : index
    %c0_84 = arith.constant 0 : index
    %c0_85 = arith.constant 0 : index
    %160 = vector.load %arg2[%c2_83, %c0_84, %c0_85] : memref<9x8x8xf32, #tpu.memory_space<vmem>>, vector<1x8x8xf32>
    %161 = vector.shape_cast %160 : vector<1x8x8xf32> to vector<8x8xf32>
    %cst_86 = arith.constant dense<0.000000e+00> : vector<288x8xf32>
    %162 = tpu.matmul %159, %161, %cst_86 {dimension_numbers = #tpu.dot_dimension_numbers<[1], [0], [0], [1], [0, 0, 1, 1], [], []>} : vector<288x8xf32>, vector<8x8xf32>, vector<288x8xf32> -> vector<288x8xf32>
    %163 = arith.addf %158, %162 : vector<288x8xf32>
    %c18_87 = arith.constant 18 : index
    %c0_88 = arith.constant 0 : index
    %164 = vector.load %arg8[%c18_87, %c0_88] : memref<342x8xf32, #tpu.memory_space<vmem>>, vector<288x8xf32>
    %c3 = arith.constant 3 : index
    %c0_89 = arith.constant 0 : index
    %c0_90 = arith.constant 0 : index
    %165 = vector.load %arg2[%c3, %c0_89, %c0_90] : memref<9x8x8xf32, #tpu.memory_space<vmem>>, vector<1x8x8xf32>
    %166 = vector.shape_cast %165 : vector<1x8x8xf32> to vector<8x8xf32>
    %cst_91 = arith.constant dense<0.000000e+00> : vector<288x8xf32>
    %167 = tpu.matmul %164, %166, %cst_91 {dimension_numbers = #tpu.dot_dimension_numbers<[1], [0], [0], [1], [0, 0, 1, 1], [], []>} : vector<288x8xf32>, vector<8x8xf32>, vector<288x8xf32> -> vector<288x8xf32>
    %168 = arith.addf %163, %167 : vector<288x8xf32>
    %c19_92 = arith.constant 19 : index
    %c0_93 = arith.constant 0 : index
    %169 = vector.load %arg8[%c19_92, %c0_93] : memref<342x8xf32, #tpu.memory_space<vmem>>, vector<288x8xf32>
    %c4 = arith.constant 4 : index
    %c0_94 = arith.constant 0 : index
    %c0_95 = arith.constant 0 : index
    %170 = vector.load %arg2[%c4, %c0_94, %c0_95] : memref<9x8x8xf32, #tpu.memory_space<vmem>>, vector<1x8x8xf32>
    %171 = vector.shape_cast %170 : vector<1x8x8xf32> to vector<8x8xf32>
    %cst_96 = arith.constant dense<0.000000e+00> : vector<288x8xf32>
    %172 = tpu.matmul %169, %171, %cst_96 {dimension_numbers = #tpu.dot_dimension_numbers<[1], [0], [0], [1], [0, 0, 1, 1], [], []>} : vector<288x8xf32>, vector<8x8xf32>, vector<288x8xf32> -> vector<288x8xf32>
    %173 = arith.addf %168, %172 : vector<288x8xf32>
    %c20 = arith.constant 20 : index
    %c0_97 = arith.constant 0 : index
    %174 = vector.load %arg8[%c20, %c0_97] : memref<342x8xf32, #tpu.memory_space<vmem>>, vector<288x8xf32>
    %c5 = arith.constant 5 : index
    %c0_98 = arith.constant 0 : index
    %c0_99 = arith.constant 0 : index
    %175 = vector.load %arg2[%c5, %c0_98, %c0_99] : memref<9x8x8xf32, #tpu.memory_space<vmem>>, vector<1x8x8xf32>
    %176 = vector.shape_cast %175 : vector<1x8x8xf32> to vector<8x8xf32>
    %cst_100 = arith.constant dense<0.000000e+00> : vector<288x8xf32>
    %177 = tpu.matmul %174, %176, %cst_100 {dimension_numbers = #tpu.dot_dimension_numbers<[1], [0], [0], [1], [0, 0, 1, 1], [], []>} : vector<288x8xf32>, vector<8x8xf32>, vector<288x8xf32> -> vector<288x8xf32>
    %178 = arith.addf %173, %177 : vector<288x8xf32>
    %c36_101 = arith.constant 36 : index
    %c0_102 = arith.constant 0 : index
    %179 = vector.load %arg8[%c36_101, %c0_102] : memref<342x8xf32, #tpu.memory_space<vmem>>, vector<288x8xf32>
    %c6 = arith.constant 6 : index
    %c0_103 = arith.constant 0 : index
    %c0_104 = arith.constant 0 : index
    %180 = vector.load %arg2[%c6, %c0_103, %c0_104] : memref<9x8x8xf32, #tpu.memory_space<vmem>>, vector<1x8x8xf32>
    %181 = vector.shape_cast %180 : vector<1x8x8xf32> to vector<8x8xf32>
    %cst_105 = arith.constant dense<0.000000e+00> : vector<288x8xf32>
    %182 = tpu.matmul %179, %181, %cst_105 {dimension_numbers = #tpu.dot_dimension_numbers<[1], [0], [0], [1], [0, 0, 1, 1], [], []>} : vector<288x8xf32>, vector<8x8xf32>, vector<288x8xf32> -> vector<288x8xf32>
    %183 = arith.addf %178, %182 : vector<288x8xf32>
    %c37_106 = arith.constant 37 : index
    %c0_107 = arith.constant 0 : index
    %184 = vector.load %arg8[%c37_106, %c0_107] : memref<342x8xf32, #tpu.memory_space<vmem>>, vector<288x8xf32>
    %c7 = arith.constant 7 : index
    %c0_108 = arith.constant 0 : index
    %c0_109 = arith.constant 0 : index
    %185 = vector.load %arg2[%c7, %c0_108, %c0_109] : memref<9x8x8xf32, #tpu.memory_space<vmem>>, vector<1x8x8xf32>
    %186 = vector.shape_cast %185 : vector<1x8x8xf32> to vector<8x8xf32>
    %cst_110 = arith.constant dense<0.000000e+00> : vector<288x8xf32>
    %187 = tpu.matmul %184, %186, %cst_110 {dimension_numbers = #tpu.dot_dimension_numbers<[1], [0], [0], [1], [0, 0, 1, 1], [], []>} : vector<288x8xf32>, vector<8x8xf32>, vector<288x8xf32> -> vector<288x8xf32>
    %188 = arith.addf %183, %187 : vector<288x8xf32>
    %c38 = arith.constant 38 : index
    %c0_111 = arith.constant 0 : index
    %189 = vector.load %arg8[%c38, %c0_111] : memref<342x8xf32, #tpu.memory_space<vmem>>, vector<288x8xf32>
    %c8 = arith.constant 8 : index
    %c0_112 = arith.constant 0 : index
    %c0_113 = arith.constant 0 : index
    %190 = vector.load %arg2[%c8, %c0_112, %c0_113] : memref<9x8x8xf32, #tpu.memory_space<vmem>>, vector<1x8x8xf32>
    %191 = vector.shape_cast %190 : vector<1x8x8xf32> to vector<8x8xf32>
    %cst_114 = arith.constant dense<0.000000e+00> : vector<288x8xf32>
    %192 = tpu.matmul %189, %191, %cst_114 {dimension_numbers = #tpu.dot_dimension_numbers<[1], [0], [0], [1], [0, 0, 1, 1], [], []>} : vector<288x8xf32>, vector<8x8xf32>, vector<288x8xf32> -> vector<288x8xf32>
    %193 = arith.addf %188, %192 : vector<288x8xf32>
    %194 = tpu.iota {dimensions = array<i32: 0>} : vector<288x1xi32>
    %c18_i32 = arith.constant 18 : i32
    %c0_i32 = arith.constant 0 : i32
    %195 = arith.cmpi eq, %c18_i32, %c0_i32 : i32
    %c1_i32 = arith.constant 1 : i32
    %196 = arith.select %195, %c1_i32, %c18_i32 : i32
    %197 = vector.broadcast %196 : i32 to vector<288x1xi32>
    %198 = arith.remsi %194, %197 : vector<288x1xi32>
    %c0_i32_115 = arith.constant 0 : i32
    %199 = vector.broadcast %c0_i32_115 : i32 to vector<288x1xi32>
    %200 = arith.cmpi ne, %198, %199 : vector<288x1xi32>
    %c0_i32_116 = arith.constant 0 : i32
    %201 = vector.broadcast %c0_i32_116 : i32 to vector<288x1xi32>
    %202 = arith.cmpi slt, %198, %201 : vector<288x1xi32>
    %c0_i32_117 = arith.constant 0 : i32
    %203 = arith.cmpi slt, %196, %c0_i32_117 : i32
    %204 = vector.broadcast %203 : i1 to vector<288x1xi1>
    %205 = vector.broadcast %204 : vector<288x1xi1> to vector<288x1xi1>
    %206 = arith.xori %202, %205 : vector<288x1xi1>
    %207 = arith.andi %206, %200 : vector<288x1xi1>
    %208 = vector.broadcast %196 : i32 to vector<288x1xi32>
    %209 = arith.addi %198, %208 : vector<288x1xi32>
    %210 = arith.select %207, %209, %198 : vector<288x1xi1>, vector<288x1xi32>
    %c16_i32 = arith.constant 16 : i32
    %211 = vector.broadcast %c16_i32 : i32 to vector<288x1xi32>
    %212 = arith.cmpi slt, %210, %211 : vector<288x1xi32>
    %cst_118 = arith.constant 0.000000e+00 : f32
    %213 = vector.shape_cast %212 : vector<288x1xi1> to vector<288x1xi1>
    %214 = vector.broadcast %213 : vector<288x1xi1> to vector<288x8xi1>
    %215 = vector.broadcast %cst_118 : f32 to vector<288x8xf32>
    %216 = arith.select %214, %193, %215 : vector<288x8xi1>, vector<288x8xf32>
    %cst_119 = arith.constant dense<0.000000e+00> : vector<8xf32>
    %217 = vector.multi_reduction <add>, %216, %cst_119 [0] : vector<288x8xf32> to vector<8xf32>
    %218 = vector.shape_cast %217 : vector<8xf32> to vector<1x8xf32>
    %c0_120 = arith.constant 0 : index
    %c0_121 = arith.constant 0 : index
    %c0_122 = arith.constant 0 : index
    %219 = vector.load %arg6[%c0_120, %c0_121, %c0_122] : memref<1x1x8xf32, #tpu.memory_space<vmem>>, vector<1x1x8xf32>
    %220 = vector.shape_cast %219 : vector<1x1x8xf32> to vector<1x8xf32>
    %221 = vector.shape_cast %218 : vector<1x8xf32> to vector<1x1x8xf32>
    tpu.vector_store %arg6[%c0_120, %c0_121, %c0_122], %221 {strides = array<i32>} : memref<1x1x8xf32, #tpu.memory_space<vmem>>, vector<1x1x8xf32>,
    %222 = arith.mulf %216, %216 : vector<288x8xf32>
    %cst_123 = arith.constant dense<0.000000e+00> : vector<8xf32>
    %223 = vector.multi_reduction <add>, %222, %cst_123 [0] : vector<288x8xf32> to vector<8xf32>
    %224 = vector.shape_cast %223 : vector<8xf32> to vector<1x8xf32>
    %c0_124 = arith.constant 0 : index
    %c0_125 = arith.constant 0 : index
    %c0_126 = arith.constant 0 : index
    %225 = vector.load %arg7[%c0_124, %c0_125, %c0_126] : memref<1x1x8xf32, #tpu.memory_space<vmem>>, vector<1x1x8xf32>
    %226 = vector.shape_cast %225 : vector<1x1x8xf32> to vector<1x8xf32>
    %227 = vector.shape_cast %224 : vector<1x8xf32> to vector<1x1x8xf32>
    tpu.vector_store %arg7[%c0_124, %c0_125, %c0_126], %227 {strides = array<i32>} : memref<1x1x8xf32, #tpu.memory_space<vmem>>, vector<1x1x8xf32>,
    %c0_127 = arith.constant 0 : index
    %c0_128 = arith.constant 0 : index
    %c0_129 = arith.constant 0 : index
    %228 = vector.load %arg5[%c0_127, %c0_128, %c0_129] : memref<1x288x8xf32, #tpu.memory_space<vmem>>, vector<1x288x8xf32>
    %229 = vector.shape_cast %228 : vector<1x288x8xf32> to vector<288x8xf32>
    %230 = vector.shape_cast %216 : vector<288x8xf32> to vector<1x288x8xf32>
    tpu.vector_store %arg5[%c0_127, %c0_128, %c0_129], %230 {strides = array<i32>} : memref<1x288x8xf32, #tpu.memory_space<vmem>>, vector<1x288x8xf32>,
    return
  }
  func.func @transform_0(%arg0: i32) -> (i32, i32, i32) {
    %c0_i32 = arith.constant 0 : i32
    %c0_i32_0 = arith.constant 0 : i32
    %c0_i32_1 = arith.constant 0 : i32
    return %arg0, %c0_i32, %c0_i32_0 : i32, i32, i32
  }
  func.func @transform_1(%arg0: i32) -> (i32, i32, i32) {
    %c0_i32 = arith.constant 0 : i32
    %c0_i32_0 = arith.constant 0 : i32
    %c0_i32_1 = arith.constant 0 : i32
    %c0_i32_2 = arith.constant 0 : i32
    return %c0_i32, %c0_i32_0, %c0_i32_1 : i32, i32, i32
  }
  func.func @transform_2(%arg0: i32) -> (i32, i32) {
    %c0_i32 = arith.constant 0 : i32
    %c0_i32_0 = arith.constant 0 : i32
    %c0_i32_1 = arith.constant 0 : i32
    return %c0_i32, %c0_i32_0 : i32, i32
  }
  func.func @transform_3(%arg0: i32) -> (i32, i32) {
    %c0_i32 = arith.constant 0 : i32
    %c0_i32_0 = arith.constant 0 : i32
    %c0_i32_1 = arith.constant 0 : i32
    return %c0_i32, %c0_i32_0 : i32, i32
  }
  func.func @transform_4(%arg0: i32) -> (i32, i32, i32) {
    %c0_i32 = arith.constant 0 : i32
    %c0_i32_0 = arith.constant 0 : i32
    %c0_i32_1 = arith.constant 0 : i32
    return %arg0, %c0_i32, %c0_i32_0 : i32, i32, i32
  }
  func.func @transform_5(%arg0: i32) -> (i32, i32, i32) {
    %c0_i32 = arith.constant 0 : i32
    %c0_i32_0 = arith.constant 0 : i32
    %c0_i32_1 = arith.constant 0 : i32
    return %arg0, %c0_i32, %c0_i32_0 : i32, i32, i32
  }
  func.func @transform_6(%arg0: i32) -> (i32, i32, i32) {
    %c0_i32 = arith.constant 0 : i32
    %c0_i32_0 = arith.constant 0 : i32
    %c0_i32_1 = arith.constant 0 : i32
    return %arg0, %c0_i32, %c0_i32_0 : i32, i32, i32
  }
}

module attributes {stable_mosaic.version = 11 : i64} {
  func.func @_bn_relu_kernel(%arg0: i32, %arg1: memref<32x144xf32, #tpu.memory_space<vmem>>, %arg2: memref<1x144xf32, #tpu.memory_space<vmem>>, %arg3: memref<1x144xf32, #tpu.memory_space<vmem>>, %arg4: memref<32x144xf32, #tpu.memory_space<vmem>>) attributes {dimension_semantics = [#tpu.dimension_semantics<parallel>], iteration_bounds = array<i64: 1>, scalar_prefetch = 0 : i64, scratch_operands = 0 : i64, tpu.core_type = #tpu.core_type<tc>, window_params = [{transform_indices = @transform_0, window_bounds = array<i64: 32, 144>}, {pipeline_mode = #tpu.pipeline_mode<synchronous>, transform_indices = @transform_1, window_bounds = array<i64: 1, 144>}, {pipeline_mode = #tpu.pipeline_mode<synchronous>, transform_indices = @transform_2, window_bounds = array<i64: 1, 144>}, {transform_indices = @transform_3, window_bounds = array<i64: 32, 144>}]} {
    %c0 = arith.constant 0 : index
    %c0_0 = arith.constant 0 : index
    %0 = vector.load %arg1[%c0, %c0_0] : memref<32x144xf32, #tpu.memory_space<vmem>>, vector<32x144xf32>
    %c0_1 = arith.constant 0 : index
    %c0_2 = arith.constant 0 : index
    %1 = vector.load %arg2[%c0_1, %c0_2] : memref<1x144xf32, #tpu.memory_space<vmem>>, vector<1x144xf32>
    %2 = vector.broadcast %1 : vector<1x144xf32> to vector<32x144xf32>
    %3 = arith.mulf %0, %2 : vector<32x144xf32>
    %c0_3 = arith.constant 0 : index
    %c0_4 = arith.constant 0 : index
    %4 = vector.load %arg3[%c0_3, %c0_4] : memref<1x144xf32, #tpu.memory_space<vmem>>, vector<1x144xf32>
    %5 = vector.broadcast %4 : vector<1x144xf32> to vector<32x144xf32>
    %6 = arith.addf %3, %5 : vector<32x144xf32>
    %cst = arith.constant 0.000000e+00 : f32
    %7 = vector.broadcast %cst : f32 to vector<32x144xf32>
    %8 = arith.maximumf %6, %7 : vector<32x144xf32>
    %c0_5 = arith.constant 0 : index
    %c0_6 = arith.constant 0 : index
    %9 = vector.load %arg4[%c0_5, %c0_6] : memref<32x144xf32, #tpu.memory_space<vmem>>, vector<32x144xf32>
    tpu.vector_store %arg4[%c0_5, %c0_6], %8 {strides = array<i32>} : memref<32x144xf32, #tpu.memory_space<vmem>>, vector<32x144xf32>,
    return
  }
  func.func @transform_0(%arg0: i32) -> (i32, i32) {
    %c0_i32 = arith.constant 0 : i32
    %c0_i32_0 = arith.constant 0 : i32
    return %arg0, %c0_i32 : i32, i32
  }
  func.func @transform_1(%arg0: i32) -> (i32, i32) {
    %c0_i32 = arith.constant 0 : i32
    %c0_i32_0 = arith.constant 0 : i32
    %c0_i32_1 = arith.constant 0 : i32
    return %c0_i32, %c0_i32_0 : i32, i32
  }
  func.func @transform_2(%arg0: i32) -> (i32, i32) {
    %c0_i32 = arith.constant 0 : i32
    %c0_i32_0 = arith.constant 0 : i32
    %c0_i32_1 = arith.constant 0 : i32
    return %c0_i32, %c0_i32_0 : i32, i32
  }
  func.func @transform_3(%arg0: i32) -> (i32, i32) {
    %c0_i32 = arith.constant 0 : i32
    %c0_i32_0 = arith.constant 0 : i32
    return %arg0, %c0_i32 : i32, i32
  }
}

</mosaic_0001>

<bundles_post_ra>
// kernel: tile.17
= control target key start
LH: loop header
LB: loop body
LE: loop exit
PB: predicated region body
PF: predicated region fallthrough
CT: control target
= control target key end

     0   :  { %s34_s0 = inlined_call_operand.vmem [shape: f32[8], index: 0, kind: input, shape index: {}]   ;;  %s35_s1 = inlined_call_operand.vmem [shape: f32[18,8], index: 1, kind: output, shape index: {}]  }
   0x1   :  { %v4_v0 = vld [vmem:[%s34_s0] ss:$0 sm:$0xff] }
   0x2   :  { %5 = vst [vmem:[%s35_s1] sm:$0xff] %v4_v0 }
   0x3   :  { %10 = vst [vmem:[%s35_s1 + $0x8] sm:$0xff] %v4_v0 }
   0x4   :  { %11 = vst [vmem:[%s35_s1 + $0x10] sm:$0xff] %v4_v0 }

// kernel: tile.19
= control target key start
LH: loop header
LB: loop body
LE: loop exit
PB: predicated region body
PF: predicated region fallthrough
CT: control target
= control target key end

     0   :  { %s140_s10 = smov 120   ;;  %s141_s11 = smov 104   ;;  %vm4_vm0 = vcmask 64512   ;;  %vm10_vm1 = vcmask 1048512   ;;  %vm16_vm2 = vcmask 982912   ;;  %vm22_vm3 = vcmask 917312   ;;  %s219_s0 = inlined_call_operand.vmem [shape: f32[18,8], index: 0, kind: input, shape index: {}]   ;;  %s220_s1 = inlined_call_operand.vmem [shape: f32[1,144], index: 1, kind: output, shape index: {}]  }
   0x1   :  { %v109_v0 = vld [vmem:[%s219_s0 + $0xf] sm:$0x1]   ;;  %v111_v1 = vld [vmem:[%s219_s0 + $0xd] sm:$0x1]   ;;  %v113_v2 = vld [vmem:[%s219_s0 + $0xb] sm:$0x1]  }
   0x2   :  { %8 = vrot.lane.b32.xlu0 %v109_v0, %s140_s10  ;;  %20 = vrot.lane.b32.xlu1 %v111_v1, %s141_s11  ;;  %s142_s14 = smov 88   ;;  %v110_v3 = vld [vmem:[%s219_s0 + $0xe] sm:$0x1]   ;;  %v112_v4 = vld [vmem:[%s219_s0 + $0xc] sm:$0x1]   ;;  %s143_s19 = smov 112  }
   0x3   :  { %32 = vrot.lane.b32.xlu2 %v113_v2, %s142_s14  ;;  %s144_s20 = smov 96   ;;  %v114_v5 = vld [vmem:[%s219_s0 + $0xa] sm:$0x1]   ;;  %s145_s23 = smov 80   ;;  %v115_v6 = vld [vmem:[%s219_s0 + $0x9] sm:$0x1]  }
   0x4   :  { %v116_v7 = vld [vmem:[%s219_s0 + $0x8] sm:$0x1]   ;;  %s146_s28 = smov 72   ;;  %s147_s29 = smov 64   ;;  %v117_v8 = vld [vmem:[%s219_s0 + $0x7] sm:$0x1]  }
   0x5   :  { %s148_s3 = smov 56   ;;  %v118_v9 = vld [vmem:[%s219_s0 + $0x6] sm:$0x1]   ;;  %v119_v10 = vld [vmem:[%s219_s0 + $0x5] sm:$0x1]   ;;  %s149_s8 = smov 48  }
   0x6   :  { %s150_s9 = smov 40   ;;  %v120_v11 = vld [vmem:[%s219_s0 + $0x4] sm:$0x1]   ;;  %s151_s12 = smov 32   ;;  %v121_v12 = vld [vmem:[%s219_s0 + $0x3] sm:$0x1]  }
   0x7   :  { %v122_v13 = vld [vmem:[%s219_s0 + $0x2] sm:$0x1]   ;;  %s91_s17 = smov 3  ;;  %s152_s18 = smov 24   ;;  %vm28_vm4 = vcmask 851712   ;;  %vm34_vm5 = vcmask 786112  }
   0x8   :  { %v123_v14 = vld [vmem:[%s219_s0 + $0x1] ss:$16 sm:%s91_s17]   ;;  %s154_s22 = smov 8   ;;  %vm40_vm6 = vcmask 720512   ;;  %vm46_vm7 = vcmask 654912   ;;  %vm52_vm8 = vcmask 589312  }
   0x9   :  { %vm58_vm9 = vcmask 523712   ;;  %vm64_vm10 = vcmask 458112   ;;  %vm70_vm11 = vcmask 392512   ;;  %vm76_vm12 = vcmask 326912  }
   0xa   :  { %14 = vrot.lane.b32.xlu0 %v110_v3, %s143_s19  ;;  %26 = vrot.lane.b32.xlu1 %v112_v4, %s144_s20  ;;  %s153_s19 = smov 16   ;;  %vm82_vm13 = vcmask 261312   ;;  %vm88_vm14 = vcmask 195712   ;;  %vm95_vm15 = vcmask 130112  }
   0xb   :  { %38 = vrot.lane.b32.xlu2 %v114_v5, %s145_s23  ;;  %s2_s23 = smov 3 }
   0xc   :  { %v3_v15 = vld [vmem:[%s219_s0] ss:$16 sm:%s2_s23]  }
   0xd   :  { %5 = vst.msk [vmem:[#allocation0] ss:$8 sm:$0x3] %vm4_vm0, %v3_v15  }
  0x12   :  { %44 = vrot.lane.b32.xlu0 %v115_v6, %s146_s28  ;;  %50 = vrot.lane.b32.xlu1 %v116_v7, %s147_s29 }
  0x13   :  { %56 = vrot.lane.b32.xlu2 %v117_v8, %s148_s3 }
  0x1a   :  { %62 = vrot.lane.b32.xlu0 %v118_v9, %s149_s8  ;;  %68 = vrot.lane.b32.xlu1 %v119_v10, %s150_s9 }
  0x1b   :  { %74 = vrot.lane.b32.xlu2 %v120_v11, %s151_s12 }
  0x22   :  { %80 = vrot.lane.b32.xlu0 %v121_v12, %s152_s18  ;;  %86 = vrot.lane.b32.xlu1 %v122_v13, %s153_s19 }
  0x23   :  { %93 = vrot.lane.b32.xlu2 %v123_v14, %s154_s22 }
  0x5d   :  { %v33_v16 = vpop.permute.xlu2 %32  }
  0x65   :  { %v39_v17 = vpop.permute.xlu2 %38  }
  0x6d   :  { %v57_v18 = vpop.permute.xlu2 %56  }
  0x74   :  { %v9_v19 = vpop.permute.xlu0 %8   ;;  %v21_v20 = vpop.permute.xlu1 %20  }
  0x75   :  { %11 = vst.msk [vmem:[#allocation0] sm:$0x1] %vm10_vm1, %v9_v19   ;;  %v75_v21 = vpop.permute.xlu2 %74  }
  0x7c   :  { %v15_v22 = vpop.permute.xlu0 %14   ;;  %v27_v23 = vpop.permute.xlu1 %26  }
  0x7d   :  { %17 = vst.msk [vmem:[#allocation0] sm:$0x1] %vm16_vm2, %v15_v22   ;;  %v94_v24 = vpop.permute.xlu2 %93  }
  0x7e   :  { %23 = vst.msk [vmem:[#allocation0] sm:$0x1] %vm22_vm3, %v21_v20  }
  0x7f   :  { %29 = vst.msk [vmem:[#allocation0] sm:$0x1] %vm28_vm4, %v27_v23  }
  0x80   :  { %35 = vst.msk [vmem:[#allocation0] sm:$0x1] %vm34_vm5, %v33_v16  }
  0x81   :  { %41 = vst.msk [vmem:[#allocation0] sm:$0x1] %vm40_vm6, %v39_v17  }
  0x84   :  { %v45_v25 = vpop.permute.xlu0 %44   ;;  %v51_v26 = vpop.permute.xlu1 %50  }
  0x85   :  { %47 = vst.msk [vmem:[#allocation0] sm:$0x1] %vm46_vm7, %v45_v25  }
  0x86   :  { %53 = vst.msk [vmem:[#allocation0] sm:$0x1] %vm52_vm8, %v51_v26  }
  0x87   :  { %59 = vst.msk [vmem:[#allocation0] sm:$0x1] %vm58_vm9, %v57_v18  }
  0x8c   :  { %v63_v27 = vpop.permute.xlu0 %62   ;;  %v69_v28 = vpop.permute.xlu1 %68  }
  0x8d   :  { %65 = vst.msk [vmem:[#allocation0] sm:$0x1] %vm64_vm10, %v63_v27  }
  0x8e   :  { %71 = vst.msk [vmem:[#allocation0] sm:$0x1] %vm70_vm11, %v69_v28  }
  0x8f   :  { %77 = vst.msk [vmem:[#allocation0] sm:$0x1] %vm76_vm12, %v75_v21  }
  0x94   :  { %v81_v29 = vpop.permute.xlu0 %80   ;;  %v87_v30 = vpop.permute.xlu1 %86  }
  0x95   :  { %83 = vst.msk [vmem:[#allocation0] sm:$0x1] %vm82_vm13, %v81_v29  }
  0x96   :  { %89 = vst.msk [vmem:[#allocation0] sm:$0x1] %vm88_vm14, %v87_v30  }
  0x97   :  { %96 = vst.msk [vmem:[#allocation0] ss:$8 sm:$0x3] %vm95_vm15, %v94_v24  }
  0x9e   :  { %v99_v31 = vld [vmem:[#allocation0] sm:$0x1]  ;;  %v104_v32 = vld [vmem:[#allocation0 + $0x8] sm:$0x1] }
  0x9f   :  { %102 = vst [vmem:[%s220_s1] sm:$0x1] %v99_v31 }
  0xa0   :  { %124 = vst [vmem:[%s220_s1 + $0x1] sm:$0x1] %v104_v32 }

// kernel: double_conv.5
= control target key start
LH: loop header
LB: loop body
LE: loop exit
PB: predicated region body
PF: predicated region fallthrough
CT: control target
= control target key end

     0   :  { %vm59_vm0 = vcmask 130048   ;;  %s149_s0 = inlined_call_operand.vmem [shape: f32[32,144], index: 0, kind: input, shape index: {}]   ;;  %s150_s1 = inlined_call_operand.vmem [shape: f32[1,144], index: 1, kind: input, shape index: {}]   ;;  %s151_s2 = inlined_call_operand.vmem [shape: f32[1,144], index: 2, kind: input, shape index: {}]   ;;  %s152_s3 = inlined_call_operand.vmem [shape: f32[32,144], index: 3, kind: output, shape index: {}]  }
   0x1   :  { %v14_v0 = vld [vmem:[%s149_s0] sm:$0xff]  ;;  %v15_v7 = vld [vmem:[%s149_s0 + $0x8] sm:$0xff]  ;;  %v16_v8 = vld [vmem:[%s149_s0 + $0x10] sm:$0xff] }
   0x2   :  { %v22_v1 = vld [vmem:[%s150_s1] sm:$0x3]  ;;  %v17_v9 = vld [vmem:[%s149_s0 + $0x18] sm:$0xff]  ;;  %v19_v11 = vld [vmem:[%s149_s0 + $0x28] sm:$0xff] }
   0x3   :  { %v36_v2 = vld [vmem:[%s151_s2] sm:$0x3]  ;;  %v24_v3 = vperm.slane %v22_v1, 0  ;;  %v25_v4 = vperm.slane %v22_v1, 1  ;;  %v20_v16 = vld [vmem:[%s149_s0 + $0x30] sm:$0xff]  ;;  %v21_v17 = vld [vmem:[%s149_s0 + $0x38] sm:$0xff] }
   0x4   :  { %v38_v5 = vperm.slane %v36_v2, 0  ;;  %v39_v6 = vperm.slane %v36_v2, 1  ;;  %v18_v10 = vld [vmem:[%s149_s0 + $0x20] sm:$0xff] }
   0x5   :  { %v28_v12 = vmul.f32 %v24_v3, %v14_v0  ;;  %v29_v13 = vmul.f32 %v25_v4, %v15_v7  ;;  %v30_v14 = vmul.f32 %v24_v3, %v16_v8  ;;  %v31_v15 = vmul.f32 %v25_v4, %v17_v9 }
   0x6   :  { %v32_v18 = vmul.f32 %v24_v3, %v18_v10  ;;  %v33_v19 = vmul.f32 %v25_v4, %v19_v11  ;;  %v34_v20 = vmul.f32 %v24_v3, %v20_v16  ;;  %v35_v21 = vmul.f32 %v25_v4, %v21_v17 }
   0x7   :  { %v42_v22 = vadd.f32 %v38_v5, %v28_v12  ;;  %v43_v23 = vadd.f32 %v39_v6, %v29_v13  ;;  %v44_v24 = vadd.f32 %v38_v5, %v30_v14  ;;  %v45_v25 = vadd.f32 %v39_v6, %v31_v15 }
   0x8   :  { %v46_v26 = vadd.f32 %v38_v5, %v32_v18  ;;  %v47_v27 = vadd.f32 %v39_v6, %v33_v19  ;;  %v48_v31 = vadd.f32 %v38_v5, %v34_v20  ;;  %v49_v33 = vadd.f32 %v39_v6, %v35_v21 }
   0x9   :  { %v50_v28 = vmax.f32 %v42_v22, 0.0  ;;  %v51_v29 = vmax.f32 %v43_v23, 0.0  ;;  %v52_v30 = vmax.f32 %v44_v24, 0.0  ;;  %v53_v32 = vmax.f32 %v45_v25, 0.0 }
   0xa   :  { %v54_v34 = vmax.f32 %v46_v26, 0.0  ;;  %v55_v35 = vmax.f32 %v47_v27, 0.0  ;;  %v56_v36 = vmax.f32 %v48_v31, 0.0  ;;  %v57_v37 = vmax.f32 %v49_v33, 0.0 }
   0xb   :  { %58 = vst [vmem:[%s152_s3] sm:$0xff] %v50_v28 }
   0xc   :  { %60 = vst.msk [vmem:[%s152_s3 + $0x8] sm:$0xff] %vm59_vm0, %v51_v29 }
   0xd   :  { %61 = vst [vmem:[%s152_s3 + $0x10] sm:$0xff] %v52_v30 }
   0xe   :  { %62 = vst.msk [vmem:[%s152_s3 + $0x18] sm:$0xff] %vm59_vm0, %v53_v32 }
   0xf   :  { %63 = vst [vmem:[%s152_s3 + $0x20] sm:$0xff] %v54_v34 }
  0x10   :  { %64 = vst.msk [vmem:[%s152_s3 + $0x28] sm:$0xff] %vm59_vm0, %v55_v35 }
  0x11   :  { %65 = vst [vmem:[%s152_s3 + $0x30] sm:$0xff] %v56_v36 }
  0x12   :  { %66 = vst.msk [vmem:[%s152_s3 + $0x38] sm:$0xff] %vm59_vm0, %v57_v37 }

// kernel: double_conv.3
= control target key start
LH: loop header
LB: loop body
LE: loop exit
PB: predicated region body
PF: predicated region fallthrough
CT: control target
= control target key end

     0   :  { %s5247_s21 = smov 0   ;;  %s7094_s0 = inlined_call_operand.vmem [shape: f32[2,256,4], index: 0, kind: input, shape index: {}]   ;;  %s7095_s1 = inlined_call_operand.vmem [shape: f32[9,4,8], index: 1, kind: input, shape index: {}]   ;;  %s7096_s2 = inlined_call_operand.vmem [shape: f32[1,4], index: 2, kind: input, shape index: {}, may-alias: {2,3}]   ;;  %s7097_s3 = inlined_call_operand.vmem [shape: f32[1,4], index: 3, kind: input, shape index: {}, may-alias: {2,3}]   ;;  %s7098_s4 = inlined_call_operand.vmem [shape: f32[2,288,8], index: 4, kind: output, shape index: {0}]   ;;  %s7099_s5 = inlined_call_operand.vmem [shape: f32[2,1,8], index: 5, kind: output, shape index: {1}]   ;;  %s7100_s6 = inlined_call_operand.vmem [shape: f32[2,1,8], index: 6, kind: output, shape index: {2}]  }
   0x1 LB: > { %s4836_s2 = sadd.s32 4294967295, %s5208_s21   ;;  %p4840_p0 = scmp.ge.s32.totalorder %s5208_s21, 1  ;;  %s5208_s21 = sphi %s5247_s21, %s17_s21  }
   0x2   : > { %p217_p1 = scmp.lt.s32.totalorder %s5208_s21, 3 }
   0x4   : > { %p218_p2 = pnand %p4840_p0, %p217_p1 }
   0x6   : > { %221 = sbr.rel (%p218_p2) target bundleno = 884 (0x374), region = 36 }
   0xb   : > { %v4844_v0 = vld [vmem:[%s7095_s1 + $0x4] sm:$0xf]  ;;  %vm561_vm0 = vcmask 1043456   ;;  %p253_p3 = scmp.lt.s32.totalorder %s4836_s2, 1  ;;  %vm269_vm1 = vcmask 31744   ;;  %v5210_v1 = vmov 0.0  }
   0xc   : > { %5188 = vmatpush.msk.msra.mxu1 %vm561_vm0, %v4844_v0  ;;  %5189 = vmatpush.msk.msra.mxu2 %vm561_vm0, %v4844_v0  ;;  %279 = vst.msk [vmem:[#allocation2 + $0x48] sm:$0xff] %vm269_vm1, %v5210_v1  ;;  %v4919_v4 = vld [vmem:[%s7095_s1 + $0x8] sm:$0xf]  ;;  %v4957_v5 = vld [vmem:[%s7095_s1 + $0xc] sm:$0xf] }
   0xd   : > { %s7197_s2 = smov (!%p253_p3, %s4836_s2), 1  ;;  %280 = vst.msk [vmem:[#allocation2 + $0x50] sm:$0xff] %vm269_vm1, %v5210_v1  ;;  %5190 = vmatpush.msk.msra.mxu3 %vm561_vm0, %v4844_v0  ;;  %4845 = vmatpush.msk.msra.mxu0 %vm561_vm0, %v4844_v0  ;;  %v414_v6 = vld [vmem:[%s7095_s1] sm:$0xf]  ;;  %v4995_v8 = vld [vmem:[%s7095_s1 + $0x10] sm:$0xf] }
   0xe   : > { %270 = vst.msk [vmem:[#allocation2] sm:$0xff] %vm269_vm1, %v5210_v1  ;;  %s5187_s23 = sshll.u32 %s7197_s2, 8  ;;  %4920 = vmatpush.msk.msrb.mxu2 %vm561_vm0, %v4919_v4  ;;  %4882 = vmatpush.msk.msrb.mxu1 %vm561_vm0, %v414_v6  ;;  %v5071_v62 = vld [vmem:[%s7095_s1 + $0x18] sm:$0xf]  ;;  %v5109_v63 = vld [vmem:[%s7095_s1 + $0x1c] sm:$0xf]  ;;  %s265_s25 = scalar_lea.vmem %s7099_s5, %s7197_s2 }
   0xf   : > { %271 = vst.msk [vmem:[#allocation2 + $0x8] sm:$0xff] %vm269_vm1, %v5210_v1  ;;  %s5276_s26 = scalar_lea.vmem %s7094_s0, %s5187_s23  ;;  %4958 = vmatpush.msk.msrb.mxu3 %vm561_vm0, %v4957_v5  ;;  %4996 = vmatpush.msk.msrb.mxu0 %vm561_vm0, %v4995_v8  ;;  %v5033_v0 = vld [vmem:[%s7095_s1 + $0x14] sm:$0xf]  ;;  %v5147_v5 = vld [vmem:[%s7095_s1 + $0x20] sm:$0xf]  ;;  %s5191_s19 = smul.u32 288, %s7197_s2 }
  0x10   : > { %272 = vst.msk [vmem:[#allocation2 + $0x10] sm:$0xff] %vm269_vm1, %v5210_v1  ;;  %v326_v2 = vld [vmem:[%s5276_s26 + $0x30] sm:$0xff]  ;;  %v327_v12 = vld [vmem:[%s5276_s26 + $0x38] sm:$0xff]  ;;  %v330_v15 = vld [vmem:[%s5276_s26 + $0x40] sm:$0xff]  ;;  %s268_s28 = scalar_lea.vmem %s7100_s6, %s7197_s2 }
  0x11   : > { %273 = vst.msk [vmem:[#allocation2 + $0x18] sm:$0xff] %vm269_vm1, %v5210_v1  ;;  %v342_v10 = vld [vmem:[%s5276_s26 + $0x70] sm:$0xff]  ;;  %v343_v13 = vld [vmem:[%s5276_s26 + $0x78] sm:$0xff]  ;;  %v346_v16 = vld [vmem:[%s5276_s26 + $0x80] sm:$0xff]  ;;  %s6050_s22 = scalar_lea.vmem %s7098_s4, %s5191_s19 }
  0x12   : > { %328 = vst.msk [vmem:[#allocation2 + $0x49] sm:$0xff] %vm269_vm1, %v326_v2  ;;  %v358_v11 = vld [vmem:[%s5276_s26 + $0xb0] sm:$0xff]  ;;  %v359_v14 = vld [vmem:[%s5276_s26 + $0xb8] sm:$0xff]  ;;  %v362_v17 = vld [vmem:[%s5276_s26 + $0xc0] sm:$0xff] }
  0x13   : > { %274 = vst.msk [vmem:[#allocation2 + $0x20] sm:$0xff] %vm269_vm1, %v5210_v1  ;;  %v331_v18 = vld [vmem:[%s5276_s26 + $0x48] sm:$0xff]  ;;  %v314_v22 = vld [vmem:[%s5276_s26] sm:$0xff]  ;;  %v334_v25 = vld [vmem:[%s5276_s26 + $0x50] sm:$0xff] }
  0x14   : > { %275 = vst.msk [vmem:[#allocation2 + $0x28] sm:$0xff] %vm269_vm1, %v5210_v1  ;;  %v347_v20 = vld [vmem:[%s5276_s26 + $0x88] sm:$0xff]  ;;  %v350_v26 = vld [vmem:[%s5276_s26 + $0x90] sm:$0xff]  ;;  %v335_v31 = vld [vmem:[%s5276_s26 + $0x58] sm:$0xff] }
  0x15   : > { %276 = vst.msk [vmem:[#allocation2 + $0x30] sm:$0xff] %vm269_vm1, %v5210_v1  ;;  %v363_v24 = vld [vmem:[%s5276_s26 + $0xc8] sm:$0xff]  ;;  %v366_v29 = vld [vmem:[%s5276_s26 + $0xd0] sm:$0xff]  ;;  %v351_v33 = vld [vmem:[%s5276_s26 + $0x98] sm:$0xff] }
  0x16   : > { %277 = vst.msk [vmem:[#allocation2 + $0x38] sm:$0xff] %vm269_vm1, %v5210_v1  ;;  %v415_v7 = vld [vmem:[#allocation2 + $0x1] sm:$0xff]  ;;  %v318_v34 = vld [vmem:[%s5276_s26 + $0x10] sm:$0xff]  ;;  %v367_v35 = vld [vmem:[%s5276_s26 + $0xd8] sm:$0xff] }
  0x17   : > { %278 = vst.msk [vmem:[#allocation2 + $0x40] sm:$0xff] %vm269_vm1, %v5210_v1  ;;  %4846 = vmatmul.msk.f32.vlgmr.msra.gmra.mxu0 %vm269_vm1, %v415_v7  ;;  %v416_v9 = vld [vmem:[#allocation2 + $0x9] sm:$0xff]  ;;  %v338_v37 = vld [vmem:[%s5276_s26 + $0x60] sm:$0xff]  ;;  %v319_v39 = vld [vmem:[%s5276_s26 + $0x18] sm:$0xff] }
  0x18   : > { %281 = vst.msk [vmem:[#allocation2 + $0x58] sm:$0xff] %vm269_vm1, %v5210_v1  ;;  %v315_v27 = vld [vmem:[%s5276_s26 + $0x8] sm:$0xff]  ;;  %v354_v38 = vld [vmem:[%s5276_s26 + $0xa0] sm:$0xff]  ;;  %5148 = vmatpush.msk.msra.mxu0 %vm561_vm0, %v5147_v5 }
  0x19   : > { %v424_v3 = vld [vmem:[#allocation2 + $0x49] sm:$0xff]  ;;  %282 = vst.msk [vmem:[#allocation2 + $0x60] sm:$0xff] %vm269_vm1, %v5210_v1  ;;  %v370_v41 = vld [vmem:[%s5276_s26 + $0xe0] sm:$0xff] }
  0x1a   : > { %4855 = vmatmul.msk.f32.vlgmr.msra.gmra.mxu1 %vm269_vm1, %v424_v3  ;;  %283 = vst.msk [vmem:[#allocation2 + $0x68] sm:$0xff] %vm269_vm1, %v5210_v1  ;;  %v339_v44 = vld [vmem:[%s5276_s26 + $0x68] sm:$0xff]  ;;  %v322_v47 = vld [vmem:[%s5276_s26 + $0x20] sm:$0xff] }
  0x1b   : > { %284 = vst.msk [vmem:[#allocation2 + $0x70] sm:$0xff] %vm269_vm1, %v5210_v1  ;;  %v355_v45 = vld [vmem:[%s5276_s26 + $0xa8] sm:$0xff]  ;;  %5034 = vmatpush.msk.msra.mxu1 %vm561_vm0, %v5033_v0 }
  0x1c   : > { %285 = vst.msk [vmem:[#allocation2 + $0x78] sm:$0xff] %vm269_vm1, %v5210_v1  ;;  %v371_v48 = vld [vmem:[%s5276_s26 + $0xe8] sm:$0xff] }
  0x1d   : > { %286 = vst.msk [vmem:[#allocation2 + $0x80] sm:$0xff] %vm269_vm1, %v5210_v1  ;;  %v323_v53 = vld [vmem:[%s5276_s26 + $0x28] sm:$0xff] }
  0x1e   : > { %287 = vst.msk [vmem:[#allocation2 + $0x88] sm:$0xff] %vm269_vm1, %v5210_v1 }
  0x1f   : > { %288 = vst.msk [vmem:[#allocation2 + $0x90] sm:$0xff] %vm269_vm1, %v5210_v1  ;;  %4847 = vmatmul.msk.f32.gmra.mxu0 %vm269_vm1, %v416_v9 }
  0x20   : > { %289 = vst.msk [vmem:[#allocation2 + $0x98] sm:$0xff] %vm269_vm1, %v5210_v1 }
  0x21   : > { %290 = vst.msk [vmem:[#allocation2 + $0xa0] sm:$0xff] %vm269_vm1, %v5210_v1 }
  0x22   : > { %291 = vst.msk [vmem:[#allocation2 + $0xa8] sm:$0xff] %vm269_vm1, %v5210_v1 }
  0x23   : > { %292 = vst.msk [vmem:[#allocation2 + $0xb0] sm:$0xff] %vm269_vm1, %v5210_v1 }
  0x24   : > { %293 = vst.msk [vmem:[#allocation2 + $0xb8] sm:$0xff] %vm269_vm1, %v5210_v1 }
  0x25   : > { %294 = vst.msk [vmem:[#allocation2 + $0xc0] sm:$0xff] %vm269_vm1, %v5210_v1 }
  0x26   : > { %295 = vst.msk [vmem:[#allocation2 + $0xc8] sm:$0xff] %vm269_vm1, %v5210_v1 }
  0x27   : > { %296 = vst.msk [vmem:[#allocation2 + $0xd0] sm:$0xff] %vm269_vm1, %v5210_v1 }
  0x28   : > { %297 = vst.msk [vmem:[#allocation2 + $0xd8] sm:$0xff] %vm269_vm1, %v5210_v1 }
  0x29   : > { %298 = vst.msk [vmem:[#allocation2 + $0xe0] sm:$0xff] %vm269_vm1, %v5210_v1 }
  0x2a   : > { %299 = vst.msk [vmem:[#allocation2 + $0xe8] sm:$0xff] %vm269_vm1, %v5210_v1 }
  0x2b   : > { %300 = vst.msk [vmem:[#allocation2 + $0xf0] sm:$0xff] %vm269_vm1, %v5210_v1 }
  0x2c   : > { %301 = vst.msk [vmem:[#allocation2 + $0xf8] sm:$0xff] %vm269_vm1, %v5210_v1 }
  0x2d   : > { %302 = vst.msk [vmem:[#allocation2 + $0x100] sm:$0xff] %vm269_vm1, %v5210_v1 }
  0x2e   : > { %303 = vst.msk [vmem:[#allocation2 + $0x108] sm:$0xff] %vm269_vm1, %v5210_v1 }
  0x2f   : > { %304 = vst.msk [vmem:[#allocation2 + $0x110] sm:$0xff] %vm269_vm1, %v5210_v1 }
  0x30   : > { %305 = vst.msk [vmem:[#allocation2 + $0x118] sm:$0xff] %vm269_vm1, %v5210_v1 }
  0x31   : > { %306 = vst.msk [vmem:[#allocation2 + $0x120] sm:$0xff] %vm269_vm1, %v5210_v1 }
  0x32   : > { %307 = vst.msk [vmem:[#allocation2 + $0x128] sm:$0xff] %vm269_vm1, %v5210_v1 }
  0x33   : > { %308 = vst.msk [vmem:[#allocation2 + $0x130] sm:$0xff] %vm269_vm1, %v5210_v1 }
  0x34   : > { %309 = vst.msk [vmem:[#allocation2 + $0x138] sm:$0xff] %vm269_vm1, %v5210_v1 }
  0x35   : > { %310 = vst.msk [vmem:[#allocation2 + $0x140] sm:$0xff] %vm269_vm1, %v5210_v1 }
  0x36   : > { %344 = vst.msk [vmem:[#allocation2 + $0x91] sm:$0xff] %vm269_vm1, %v342_v10 }
  0x37   : > { %360 = vst.msk [vmem:[#allocation2 + $0xd9] sm:$0xff] %vm269_vm1, %v358_v11 }
  0x38   : > { %329 = vst.msk [vmem:[#allocation2 + $0x51] sm:$0xff] %vm269_vm1, %v327_v12  ;;  %v378_v12 = vld [vmem:[#allocation2] sm:$0xff] }
  0x39   : > { %345 = vst.msk [vmem:[#allocation2 + $0x99] sm:$0xff] %vm269_vm1, %v343_v13 }
  0x3a   : > { %361 = vst.msk [vmem:[#allocation2 + $0xe1] sm:$0xff] %vm269_vm1, %v359_v14  ;;  %v926_v14 = vld [vmem:[#allocation2 + $0x2] sm:$0xff] }
  0x3b   : > { %332 = vst.msk [vmem:[#allocation2 + $0x5b] sm:$0xff] %vm269_vm1, %v330_v15 }
  0x3c   : > { %348 = vst.msk [vmem:[#allocation2 + $0xa3] sm:$0xff] %vm269_vm1, %v346_v16  ;;  %v379_v16 = vld [vmem:[#allocation2 + $0x8] sm:$0xff] }
  0x3d   : > { %v433_v19 = vld [vmem:[#allocation2 + $0x91] sm:$0xff]  ;;  %364 = vst.msk [vmem:[#allocation2 + $0xeb] sm:$0xff] %vm269_vm1, %v362_v17 }
  0x3e   : > { %4864 = vmatmul.msk.f32.vlgmr.msra.gmra.mxu2 %vm269_vm1, %v433_v19  ;;  %v442_v21 = vld [vmem:[#allocation2 + $0xd9] sm:$0xff]  ;;  %333 = vst.msk [vmem:[#allocation2 + $0x63] sm:$0xff] %vm269_vm1, %v331_v18  ;;  %v927_v18 = vld [vmem:[#allocation2 + $0xa] sm:$0xff] }
  0x3f   : > { %4873 = vmatmul.msk.f32.vlgmr.msra.gmra.mxu3 %vm269_vm1, %v442_v21  ;;  %v425_v23 = vld [vmem:[#allocation2 + $0x51] sm:$0xff]  ;;  %349 = vst.msk [vmem:[#allocation2 + $0xab] sm:$0xff] %vm269_vm1, %v347_v20  ;;  %5072 = vmatpush.msk.msra.mxu2 %vm561_vm0, %v5071_v62 }
  0x40   : > { %4856 = vmatmul.msk.f32.gmra.mxu1 %vm269_vm1, %v425_v23  ;;  %316 = vst.msk [vmem:[#allocation2 + $0x13] sm:$0xff] %vm269_vm1, %v314_v22  ;;  %v434_v28 = vld [vmem:[#allocation2 + $0x99] sm:$0xff]  ;;  %5110 = vmatpush.msk.msra.mxu3 %vm561_vm0, %v5109_v63 }
  0x41   : > { %365 = vst.msk [vmem:[#allocation2 + $0xf3] sm:$0xff] %vm269_vm1, %v363_v24  ;;  %v443_v30 = vld [vmem:[#allocation2 + $0xe1] sm:$0xff] }
  0x42   : > { %336 = vst.msk [vmem:[#allocation2 + $0x6d] sm:$0xff] %vm269_vm1, %v334_v25  ;;  %v426_v32 = vld [vmem:[#allocation2 + $0x59] sm:$0xff] }
  0x43   : > { %352 = vst.msk [vmem:[#allocation2 + $0xb5] sm:$0xff] %vm269_vm1, %v350_v26  ;;  %v435_v40 = vld [vmem:[#allocation2 + $0xa1] sm:$0xff]  ;;  %v389_v62 = vld [vmem:[#allocation2 + $0x58] sm:$0xff] }
  0x44   : > { %317 = vst.msk [vmem:[#allocation2 + $0x1b] sm:$0xff] %vm269_vm1, %v315_v27  ;;  %v444_v42 = vld [vmem:[#allocation2 + $0xe9] sm:$0xff] }
  0x45   : > { %368 = vst.msk [vmem:[#allocation2 + $0xfd] sm:$0xff] %vm269_vm1, %v366_v29  ;;  %v427_v43 = vld [vmem:[#allocation2 + $0x61] sm:$0xff] }
  0x46   : > { %4865 = vmatmul.msk.f32.gmra.mxu2 %vm269_vm1, %v434_v28  ;;  %337 = vst.msk [vmem:[#allocation2 + $0x75] sm:$0xff] %vm269_vm1, %v335_v31  ;;  %v436_v49 = vld [vmem:[#allocation2 + $0xa9] sm:$0xff]  ;;  %v390_v5 = vld [vmem:[#allocation2 + $0x60] sm:$0xff] }
  0x47   : > { %4874 = vmatmul.msk.f32.gmra.mxu3 %vm269_vm1, %v443_v30  ;;  %v417_v36 = vld [vmem:[#allocation2 + $0x11] sm:$0xff]  ;;  %353 = vst.msk [vmem:[#allocation2 + $0xbd] sm:$0xff] %vm269_vm1, %v351_v33 }
  0x48   : > { %4857 = vmatmul.msk.f32.gmra.mxu1 %vm269_vm1, %v426_v32  ;;  %4848 = vmatmul.msk.f32.gmra.mxu0 %vm269_vm1, %v417_v36  ;;  %320 = vst.msk [vmem:[#allocation2 + $0x25] sm:$0xff] %vm269_vm1, %v318_v34  ;;  %v445_v50 = vld [vmem:[#allocation2 + $0xf1] sm:$0xff] }
  0x49   : > { %369 = vst.msk [vmem:[#allocation2 + $0x105] sm:$0xff] %vm269_vm1, %v367_v35  ;;  %v428_v51 = vld [vmem:[#allocation2 + $0x69] sm:$0xff]  ;;  %v1546_v13 = vld [vmem:[#allocation2 + $0x13] sm:$0xff] }
  0x4a   : > { %340 = vst.msk [vmem:[#allocation2 + $0x7f] sm:$0xff] %vm269_vm1, %v338_v37  ;;  %v437_v54 = vld [vmem:[#allocation2 + $0xb1] sm:$0xff] }
  0x4b   : > { %356 = vst.msk [vmem:[#allocation2 + $0xc7] sm:$0xff] %vm269_vm1, %v354_v38  ;;  %v418_v46 = vld [vmem:[#allocation2 + $0x19] sm:$0xff]  ;;  %v380_v20 = vld [vmem:[#allocation2 + $0x10] sm:$0xff] }
  0x4c   : > { %321 = vst.msk [vmem:[#allocation2 + $0x2d] sm:$0xff] %vm269_vm1, %v319_v39  ;;  %v446_v55 = vld [vmem:[#allocation2 + $0xf9] sm:$0xff]  ;;  %v1553_v38 = vld [vmem:[#allocation2 + $0x4b] sm:$0xff] }
  0x4d   : > { %372 = vst.msk [vmem:[#allocation2 + $0x10f] sm:$0xff] %vm269_vm1, %v370_v41  ;;  %v429_v56 = vld [vmem:[#allocation2 + $0x71] sm:$0xff]  ;;  %v1547_v17 = vld [vmem:[#allocation2 + $0x1b] sm:$0xff] }
  0x4e   : > { %4866 = vmatmul.msk.f32.gmra.mxu2 %vm269_vm1, %v435_v40  ;;  %341 = vst.msk [vmem:[#allocation2 + $0x87] sm:$0xff] %vm269_vm1, %v339_v44  ;;  %v438_v58 = vld [vmem:[#allocation2 + $0xb9] sm:$0xff]  ;;  %v1243_v39 = vld [vmem:[#allocation2 + $0x4a] sm:$0xff] }
  0x4f   : > { %4875 = vmatmul.msk.f32.gmra.mxu3 %vm269_vm1, %v444_v42  ;;  %357 = vst.msk [vmem:[#allocation2 + $0xcf] sm:$0xff] %vm269_vm1, %v355_v45  ;;  %v419_v52 = vld [vmem:[#allocation2 + $0x21] sm:$0xff]  ;;  %v1236_v15 = vld [vmem:[#allocation2 + $0x12] sm:$0xff] }
  0x50   : > { %4858 = vmatmul.msk.f32.gmra.mxu1 %vm269_vm1, %v427_v43  ;;  %4849 = vmatmul.msk.f32.gmra.mxu0 %vm269_vm1, %v418_v46  ;;  %324 = vst.msk [vmem:[#allocation2 + $0x37] sm:$0xff] %vm269_vm1, %v322_v47  ;;  %v447_v59 = vld [vmem:[#allocation2 + $0x101] sm:$0xff]  ;;  %v381_v23 = vld [vmem:[#allocation2 + $0x18] sm:$0xff]  ;;  %v1557_v0 = vld [vmem:[#allocation2 + $0x6b] sm:$0xff] }
  0x51   : > { %373 = vst.msk [vmem:[#allocation2 + $0x117] sm:$0xff] %vm269_vm1, %v371_v48  ;;  %v430_v60 = vld [vmem:[#allocation2 + $0x79] sm:$0xff]  ;;  %v1548_v21 = vld [vmem:[#allocation2 + $0x23] sm:$0xff] }
  0x52   : > { %325 = vst.msk [vmem:[#allocation2 + $0x3f] sm:$0xff] %vm269_vm1, %v323_v53  ;;  %v439_v1 = vld [vmem:[#allocation2 + $0xc1] sm:$0xff]  ;;  %v1554_v43 = vld [vmem:[#allocation2 + $0x53] sm:$0xff] }
  0x53   : > { %v420_v57 = vld [vmem:[#allocation2 + $0x29] sm:$0xff]  ;;  %v1237_v19 = vld [vmem:[#allocation2 + $0x1a] sm:$0xff]  ;;  %v1244_v46 = vld [vmem:[#allocation2 + $0x52] sm:$0xff] }
  0x54   : > { %v448_v2 = vld [vmem:[#allocation2 + $0x109] sm:$0xff]  ;;  %v382_v26 = vld [vmem:[#allocation2 + $0x20] sm:$0xff] }
  0x55   : > { %v431_v3 = vld [vmem:[#allocation2 + $0x81] sm:$0xff]  ;;  %v432_v8 = vld [vmem:[#allocation2 + $0x89] sm:$0xff] }
  0x56   : > { %4867 = vmatmul.msk.f32.gmra.mxu2 %vm269_vm1, %v436_v49  ;;  %v440_v6 = vld [vmem:[#allocation2 + $0xc9] sm:$0xff]  ;;  %v441_v10 = vld [vmem:[#allocation2 + $0xd1] sm:$0xff]  ;;  %v1245_v53 = vld [vmem:[#allocation2 + $0x5a] sm:$0xff] }
  0x57   : > { %4876 = vmatmul.msk.f32.gmra.mxu3 %vm269_vm1, %v445_v50  ;;  %v421_v61 = vld [vmem:[#allocation2 + $0x31] sm:$0xff]  ;;  %v1238_v22 = vld [vmem:[#allocation2 + $0x22] sm:$0xff] }
  0x58   : > { %4859 = vmatmul.msk.f32.gmra.mxu1 %vm269_vm1, %v428_v51  ;;  %4850 = vmatmul.msk.f32.gmra.mxu0 %vm269_vm1, %v419_v52  ;;  %v449_v7 = vld [vmem:[#allocation2 + $0x111] sm:$0xff]  ;;  %v450_v11 = vld [vmem:[#allocation2 + $0x119] sm:$0xff]  ;;  %v383_v29 = vld [vmem:[#allocation2 + $0x28] sm:$0xff] }
  0x59   : > { %v422_v4 = vld [vmem:[#allocation2 + $0x39] sm:$0xff]  ;;  %v423_v9 = vld [vmem:[#allocation2 + $0x41] sm:$0xff]  ;;  %v1549_v24 = vld [vmem:[#allocation2 + $0x2b] sm:$0xff] }
  0x5a   : > { %v1239_v25 = vld [vmem:[#allocation2 + $0x2a] sm:$0xff]  ;;  %v1550_v27 = vld [vmem:[#allocation2 + $0x33] sm:$0xff]  ;;  %v1551_v30 = vld [vmem:[#allocation2 + $0x3b] sm:$0xff] }
  0x5b   : > { %v1240_v28 = vld [vmem:[#allocation2 + $0x32] sm:$0xff]  ;;  %v1241_v31 = vld [vmem:[#allocation2 + $0x3a] sm:$0xff]  ;;  %v1552_v33 = vld [vmem:[#allocation2 + $0x43] sm:$0xff] }
  0x5c   : > { %v384_v32 = vld [vmem:[#allocation2 + $0x30] sm:$0xff]  ;;  %v1242_v36 = vld [vmem:[#allocation2 + $0x42] sm:$0xff]  ;;  %v385_v37 = vld [vmem:[#allocation2 + $0x38] sm:$0xff] }
  0x5d   : > { %v386_v42 = vld [vmem:[#allocation2 + $0x40] sm:$0xff]  ;;  %v387_v48 = vld [vmem:[#allocation2 + $0x48] sm:$0xff] }
  0x5e   : > { %4868 = vmatmul.msk.f32.gmra.mxu2 %vm269_vm1, %v437_v54  ;;  %v1555_v50 = vld [vmem:[#allocation2 + $0x5b] sm:$0xff] }
  0x5f   : > { %4877 = vmatmul.msk.f32.gmra.mxu3 %vm269_vm1, %v446_v55  ;;  %v388_v55 = vld [vmem:[#allocation2 + $0x50] sm:$0xff] }
  0x60   : > { %4860 = vmatmul.msk.f32.gmra.mxu1 %vm269_vm1, %v429_v56  ;;  %4851 = vmatmul.msk.f32.gmra.mxu0 %vm269_vm1, %v420_v57  ;;  %v1556_v57 = vld [vmem:[#allocation2 + $0x63] sm:$0xff] }
  0x66   : > { %4869 = vmatmul.msk.f32.gmra.mxu2 %vm269_vm1, %v438_v58 }
  0x67   : > { %4878 = vmatmul.msk.f32.gmra.mxu3 %vm269_vm1, %v447_v59 }
  0x68   : > { %4861 = vmatmul.msk.f32.gmra.mxu1 %vm269_vm1, %v430_v60  ;;  %4852 = vmatmul.msk.f32.gmra.mxu0 %vm269_vm1, %v421_v61  ;;  %v1246_v60 = vld [vmem:[#allocation2 + $0x62] sm:$0xff] }
  0x6e   : > { %4870 = vmatmul.msk.f32.gmra.mxu2 %vm269_vm1, %v439_v1 }
  0x6f   : > { %4879 = vmatmul.msk.f32.gmra.mxu3 %vm269_vm1, %v448_v2 }
  0x70   : > { %4862 = vmatmul.msk.f32.gmra.mxu1 %vm269_vm1, %v431_v3  ;;  %4853 = vmatmul.msk.f32.gmra.mxu0 %vm269_vm1, %v422_v4  ;;  %v1247_v3 = vld [vmem:[#allocation2 + $0x6a] sm:$0xff] }
  0x76   : > { %4871 = vmatmul.msk.f32.gmra.mxu2 %vm269_vm1, %v440_v6 }
  0x77   : > { %4880 = vmatmul.msk.f32.gmra.mxu3 %vm269_vm1, %v449_v7  ;;  %v1558_v7 = vld [vmem:[#allocation2 + $0x73] sm:$0xff] }
  0x78   : > { %4863 = vmatmul.msk.f32.gmra.mxu1 %vm269_vm1, %v432_v8  ;;  %4854 = vmatmul.msk.f32.gmra.mxu0 %vm269_vm1, %v423_v9 }
  0x7e   : > { %4872 = vmatmul.msk.f32.gmra.mxu2 %vm269_vm1, %v441_v10  ;;  %v1248_v10 = vld [vmem:[#allocation2 + $0x72] sm:$0xff] }
  0x7f   : > { %4881 = vmatmul.msk.f32.gmra.mxu3 %vm269_vm1, %v450_v11 }
  0x80   : > { %4883 = vmatmul.msk.f32.vlgmr.msrb.gmra.mxu1 %vm269_vm1, %v378_v12  ;;  %4997 = vmatmul.msk.f32.vlgmr.msrb.gmra.mxu0 %vm269_vm1, %v1546_v13  ;;  %v391_v12 = vld [vmem:[#allocation2 + $0x68] sm:$0xff] }
  0x86   : > { %4921 = vmatmul.msk.f32.vlgmr.msrb.gmra.mxu2 %vm269_vm1, %v926_v14  ;;  %v1559_v14 = vld [vmem:[#allocation2 + $0x7b] sm:$0xff] }
  0x87   : > { %4959 = vmatmul.msk.f32.vlgmr.msrb.gmra.mxu3 %vm269_vm1, %v1236_v15 }
  0x88   : > { %4884 = vmatmul.msk.f32.gmra.mxu1 %vm269_vm1, %v379_v16  ;;  %4998 = vmatmul.msk.f32.gmra.mxu0 %vm269_vm1, %v1547_v17  ;;  %v1249_v17 = vld [vmem:[#allocation2 + $0x7a] sm:$0xff] }
  0x8e   : > { %4922 = vmatmul.msk.f32.gmra.mxu2 %vm269_vm1, %v927_v18 }
  0x8f   : > { %4960 = vmatmul.msk.f32.gmra.mxu3 %vm269_vm1, %v1237_v19 }
  0x90   : > { %4885 = vmatmul.msk.f32.gmra.mxu1 %vm269_vm1, %v380_v20  ;;  %4999 = vmatmul.msk.f32.gmra.mxu0 %vm269_vm1, %v1548_v21  ;;  %v1560_v21 = vld [vmem:[#allocation2 + $0x83] sm:$0xff] }
  0x94   : > { %v5506_v34 = vpop.f32.mrf.mxu0 }
  0x96   : > { %4923 = vmatmul.msk.f32.gmra.mxu2 %vm269_vm1, %v1236_v15 }
  0x97   : > { %4961 = vmatmul.msk.f32.gmra.mxu3 %vm269_vm1, %v1238_v22  ;;  %v5508_v35 = vpop.f32.mrf.mxu1 }
  0x98   : > { %4886 = vmatmul.msk.f32.gmra.mxu1 %vm269_vm1, %v381_v23  ;;  %5000 = vmatmul.msk.f32.gmra.mxu0 %vm269_vm1, %v1549_v24  ;;  %v1250_v24 = vld [vmem:[#allocation2 + $0x82] sm:$0xff] }
  0x9c   : > { %v5514_v40 = vpop.f32.mrf.mxu0 }
  0x9e   : > { %4924 = vmatmul.msk.f32.gmra.mxu2 %vm269_vm1, %v1237_v19  ;;  %v392_v19 = vld [vmem:[#allocation2 + $0x70] sm:$0xff] }
  0x9f   : > { %4962 = vmatmul.msk.f32.gmra.mxu3 %vm269_vm1, %v1239_v25 }
  0xa0   : > { %4887 = vmatmul.msk.f32.gmra.mxu1 %vm269_vm1, %v382_v26  ;;  %5001 = vmatmul.msk.f32.gmra.mxu0 %vm269_vm1, %v1550_v27  ;;  %v393_v26 = vld [vmem:[#allocation2 + $0x78] sm:$0xff] }
  0xa6   : > { %4925 = vmatmul.msk.f32.gmra.mxu2 %vm269_vm1, %v1238_v22 }
  0xa7   : > { %4963 = vmatmul.msk.f32.gmra.mxu3 %vm269_vm1, %v1240_v28 }
  0xa8   : > { %4888 = vmatmul.msk.f32.gmra.mxu1 %vm269_vm1, %v383_v29  ;;  %5002 = vmatmul.msk.f32.gmra.mxu0 %vm269_vm1, %v1551_v30 }
  0xae   : > { %4926 = vmatmul.msk.f32.gmra.mxu2 %vm269_vm1, %v1239_v25 }
  0xaf   : > { %4964 = vmatmul.msk.f32.gmra.mxu3 %vm269_vm1, %v1241_v31 }
  0xb0   : > { %4889 = vmatmul.msk.f32.gmra.mxu1 %vm269_vm1, %v384_v32  ;;  %5003 = vmatmul.msk.f32.gmra.mxu0 %vm269_vm1, %v1552_v33  ;;  %v394_v33 = vld [vmem:[#allocation2 + $0x80] sm:$0xff] }
  0xb6   : > { %4927 = vmatmul.msk.f32.gmra.mxu2 %vm269_vm1, %v1240_v28  ;;  %v1561_v28 = vld [vmem:[#allocation2 + $0x8b] sm:$0xff] }
  0xb7   : > { %4965 = vmatmul.msk.f32.gmra.mxu3 %vm269_vm1, %v1242_v36 }
  0xb8   : > { %4890 = vmatmul.msk.f32.gmra.mxu1 %vm269_vm1, %v385_v37  ;;  %5004 = vmatmul.msk.f32.gmra.mxu0 %vm269_vm1, %v1553_v38  ;;  %v1562_v37 = vld [vmem:[#allocation2 + $0x93] sm:$0xff] }
  0xbd   : > { %v5516_v41 = vpop.f32.mrf.mxu1 }
  0xbe   : > { %4928 = vmatmul.msk.f32.gmra.mxu2 %vm269_vm1, %v1241_v31  ;;  %v1251_v31 = vld [vmem:[#allocation2 + $0x8a] sm:$0xff] }
  0xbf   : > { %4966 = vmatmul.msk.f32.gmra.mxu3 %vm269_vm1, %v1243_v39 }
  0xc0   : > { %4891 = vmatmul.msk.f32.gmra.mxu1 %vm269_vm1, %v386_v42  ;;  %5005 = vmatmul.msk.f32.gmra.mxu0 %vm269_vm1, %v1554_v43  ;;  %v1252_v42 = vld [vmem:[#allocation2 + $0x92] sm:$0xff] }
  0xc1   : > { %v5521_v44 = vpop.f32.mrf.mxu2 }
  0xc2   : > { %v5524_v45 = vpop.f32.mrf.mxu3 }
  0xc5   : > { %v5526_v47 = vpop.f32.mrf.mxu1  ;;  %v5529_v49 = vpop.f32.mrf.mxu0 }
  0xc6   : > { %4929 = vmatmul.msk.f32.gmra.mxu2 %vm269_vm1, %v1242_v36 }
  0xc7   : > { %4967 = vmatmul.msk.f32.gmra.mxu3 %vm269_vm1, %v1244_v46 }
  0xc8   : > { %4892 = vmatmul.msk.f32.gmra.mxu1 %vm269_vm1, %v387_v48  ;;  %5006 = vmatmul.msk.f32.gmra.mxu0 %vm269_vm1, %v1555_v50  ;;  %v1563_v50 = vld [vmem:[#allocation2 + $0x9b] sm:$0xff] }
  0xc9   : > { %v5533_v51 = vpop.f32.mrf.mxu2 }
  0xca   : > { %v5536_v52 = vpop.f32.mrf.mxu3 }
  0xcd   : > { %v5538_v54 = vpop.f32.mrf.mxu1  ;;  %v5541_v56 = vpop.f32.mrf.mxu0 }
  0xce   : > { %4930 = vmatmul.msk.f32.gmra.mxu2 %vm269_vm1, %v1243_v39 }
  0xcf   : > { %4968 = vmatmul.msk.f32.gmra.mxu3 %vm269_vm1, %v1245_v53 }
  0xd0   : > { %4893 = vmatmul.msk.f32.gmra.mxu1 %vm269_vm1, %v388_v55  ;;  %5007 = vmatmul.msk.f32.gmra.mxu0 %vm269_vm1, %v1556_v57 }
  0xd1   : > { %v5545_v58 = vpop.f32.mrf.mxu2 }
  0xd2   : > { %v5548_v59 = vpop.f32.mrf.mxu3 }
  0xd5   : > { %v5550_v61 = vpop.f32.mrf.mxu1  ;;  %v5553_v63 = vpop.f32.mrf.mxu0 }
  0xd6   : > { %4931 = vmatmul.msk.f32.gmra.mxu2 %vm269_vm1, %v1244_v46  ;;  %v395_v46 = vld [vmem:[#allocation2 + $0x88] sm:$0xff] }
  0xd7   : > { %4969 = vmatmul.msk.f32.gmra.mxu3 %vm269_vm1, %v1246_v60 }
  0xd8   : > { %4894 = vmatmul.msk.f32.gmra.mxu1 %vm269_vm1, %v389_v62  ;;  %5008 = vmatmul.msk.f32.gmra.mxu0 %vm269_vm1, %v1557_v0  ;;  %v1253_v0 = vld [vmem:[#allocation2 + $0x9a] sm:$0xff] }
  0xd9   : > { %v5557_v1 = vpop.f32.mrf.mxu2 }
  0xda   : > { %v5560_v2 = vpop.f32.mrf.mxu3 }
  0xdd   : > { %v5562_v4 = vpop.f32.mrf.mxu1  ;;  %v5565_v6 = vpop.f32.mrf.mxu0 }
  0xde   : > { %4932 = vmatmul.msk.f32.gmra.mxu2 %vm269_vm1, %v1245_v53 }
  0xdf   : > { %4970 = vmatmul.msk.f32.gmra.mxu3 %vm269_vm1, %v1247_v3 }
  0xe0   : > { %4895 = vmatmul.msk.f32.gmra.mxu1 %vm269_vm1, %v390_v5  ;;  %5009 = vmatmul.msk.f32.gmra.mxu0 %vm269_vm1, %v1558_v7  ;;  %v396_v5 = vld [vmem:[#allocation2 + $0x90] sm:$0xff] }
  0xe1   : > { %v5569_v8 = vpop.f32.mrf.mxu2 }
  0xe2   : > { %v5572_v9 = vpop.f32.mrf.mxu3 }
  0xe5   : > { %v5574_v11 = vpop.f32.mrf.mxu1  ;;  %v5577_v13 = vpop.f32.mrf.mxu0 }
  0xe6   : > { %4933 = vmatmul.msk.f32.gmra.mxu2 %vm269_vm1, %v1246_v60 }
  0xe7   : > { %4971 = vmatmul.msk.f32.gmra.mxu3 %vm269_vm1, %v1248_v10 }
  0xe8   : > { %4896 = vmatmul.msk.f32.gmra.mxu1 %vm269_vm1, %v391_v12  ;;  %5010 = vmatmul.msk.f32.gmra.mxu0 %vm269_vm1, %v1559_v14  ;;  %v1564_v12 = vld [vmem:[#allocation2 + $0xa3] sm:$0xff] }
  0xe9   : > { %v5581_v15 = vpop.f32.mrf.mxu2 }
  0xea   : > { %v5584_v16 = vpop.f32.mrf.mxu3 }
  0xed   : > { %v5586_v18 = vpop.f32.mrf.mxu1  ;;  %v5589_v20 = vpop.f32.mrf.mxu0 }
  0xee   : > { %4934 = vmatmul.msk.f32.gmra.mxu2 %vm269_vm1, %v1247_v3 }
  0xef   : > { %4972 = vmatmul.msk.f32.gmra.mxu3 %vm269_vm1, %v1249_v17 }
  0xf0   : > { %4897 = vmatmul.msk.f32.gmra.mxu1 %vm269_vm1, %v392_v19  ;;  %5011 = vmatmul.msk.f32.gmra.mxu0 %vm269_vm1, %v1560_v21 }
  0xf1   : > { %v5593_v22 = vpop.f32.mrf.mxu2 }
  0xf2   : > { %v5596_v23 = vpop.f32.mrf.mxu3 }
  0xf5   : > { %v5598_v25 = vpop.f32.mrf.mxu1  ;;  %v5601_v27 = vpop.f32.mrf.mxu0 }
  0xf6   : > { %4935 = vmatmul.msk.f32.gmra.mxu2 %vm269_vm1, %v1248_v10 }
  0xf7   : > { %4973 = vmatmul.msk.f32.gmra.mxu3 %vm269_vm1, %v1250_v24 }
  0xf8   : > { %4898 = vmatmul.msk.f32.gmra.mxu1 %vm269_vm1, %v393_v26  ;;  %5012 = vmatmul.msk.f32.gmra.mxu0 %vm269_vm1, %v1561_v28  ;;  %v397_v28 = vld [vmem:[#allocation2 + $0x98] sm:$0xff] }
  0xf9   : > { %v5605_v29 = vpop.f32.mrf.mxu2 }
  0xfa   : > { %v5608_v30 = vpop.f32.mrf.mxu3 }
  0xfd   : > { %v818_v32 = vpop.f32.mrf.mxu1  ;;  %v1712_v36 = vpop.f32.mrf.mxu0 }
  0xfe   : > { %4936 = vmatmul.msk.f32.gmra.mxu2 %vm269_vm1, %v1249_v17  ;;  %v819_v53 = vadd.f32 %v818_v32, %v5506_v34 }
  0xff   : > { %4974 = vmatmul.msk.f32.gmra.mxu3 %vm269_vm1, %v1251_v31 }
 0x100   : > { %4899 = vmatmul.msk.f32.gmra.mxu1 %vm269_vm1, %v394_v33  ;;  %5013 = vmatmul.msk.f32.gmra.mxu0 %vm269_vm1, %v1562_v37  ;;  %v1565_v33 = vld [vmem:[#allocation2 + $0xab] sm:$0xff] }
 0x101   : > { %v5613_v38 = vpop.f32.mrf.mxu2 }
 0x102   : > { %v5616_v39 = vpop.f32.mrf.mxu3 }
 0x105   : > { %v821_v43 = vpop.f32.mrf.mxu1  ;;  %v1715_v48 = vpop.f32.mrf.mxu0 }
 0x106   : > { %4937 = vmatmul.msk.f32.gmra.mxu2 %vm269_vm1, %v1250_v24  ;;  %v822_v34 = vadd.f32 %v821_v43, %v5514_v40  ;;  %v1254_v24 = vld [vmem:[#allocation2 + $0xa2] sm:$0xff] }
 0x107   : > { %4975 = vmatmul.msk.f32.gmra.mxu3 %vm269_vm1, %v1252_v42 }
 0x108   : > { %4900 = vmatmul.msk.f32.gmra.mxu1 %vm269_vm1, %v395_v46  ;;  %5014 = vmatmul.msk.f32.gmra.mxu0 %vm269_vm1, %v1563_v50  ;;  %v1255_v50 = vld [vmem:[#allocation2 + $0xaa] sm:$0xff] }
 0x109   : > { %v1092_v55 = vpop.f32.mrf.mxu2 }
 0x10a   : > { %v1200_v57 = vadd.f32 %v1092_v55, %v819_v53  ;;  %v1402_v60 = vpop.f32.mrf.mxu3 }
 0x10c   : > { %v1510_v62 = vadd.f32 %v1402_v60, %v1200_v57  ;;  %v1566_v57 = vld [vmem:[#allocation2 + $0xb3] sm:$0xff] }
 0x10d   : > { %v824_v3 = vpop.f32.mrf.mxu1  ;;  %v1718_v10 = vpop.f32.mrf.mxu0 }
 0x10e   : > { %v5623_v7 = vadd.f32 %v1712_v36, %v1510_v62  ;;  %4938 = vmatmul.msk.f32.gmra.mxu2 %vm269_vm1, %v1251_v31  ;;  %v825_v40 = vadd.f32 %v824_v3, %v5529_v49 }
 0x10f   : > { %4976 = vmatmul.msk.f32.gmra.mxu3 %vm269_vm1, %v1253_v0 }
 0x110   : > { %4901 = vmatmul.msk.f32.gmra.mxu1 %vm269_vm1, %v396_v5  ;;  %5015 = vmatmul.msk.f32.gmra.mxu0 %vm269_vm1, %v1564_v12  ;;  %v1256_v12 = vld [vmem:[#allocation2 + $0xb2] sm:$0xff] }
 0x111   : > { %v1095_v14 = vpop.f32.mrf.mxu2 }
 0x112   : > { %v1201_v17 = vadd.f32 %v1095_v14, %v822_v34  ;;  %v1405_v19 = vpop.f32.mrf.mxu3 }
 0x114   : > { %v1511_v21 = vadd.f32 %v1405_v19, %v1201_v17  ;;  %v1567_v17 = vld [vmem:[#allocation2 + $0xbb] sm:$0xff] }
 0x115   : > { %v827_v26 = vpop.f32.mrf.mxu1  ;;  %v1721_v31 = vpop.f32.mrf.mxu0 }
 0x116   : > { %v5630_v32 = vadd.f32 %v1715_v48, %v1511_v21  ;;  %4939 = vmatmul.msk.f32.gmra.mxu2 %vm269_vm1, %v1252_v42  ;;  %v398_v48 = vld [vmem:[#allocation2 + $0xa0] sm:$0xff]  ;;  %v828_v49 = vadd.f32 %v827_v26, %v5541_v56 }
 0x117   : > { %4977 = vmatmul.msk.f32.gmra.mxu3 %vm269_vm1, %v1254_v24 }
 0x118   : > { %4902 = vmatmul.msk.f32.gmra.mxu1 %vm269_vm1, %v397_v28  ;;  %5016 = vmatmul.msk.f32.gmra.mxu0 %vm269_vm1, %v1565_v33  ;;  %v1257_v33 = vld [vmem:[#allocation2 + $0xba] sm:$0xff] }
 0x119   : > { %v1098_v36 = vpop.f32.mrf.mxu2 }
 0x11a   : > { %v1202_v37 = vadd.f32 %v1098_v36, %v825_v40  ;;  %v1408_v43 = vpop.f32.mrf.mxu3 }
 0x11c   : > { %v1512_v46 = vadd.f32 %v1408_v43, %v1202_v37  ;;  %v1568_v37 = vld [vmem:[#allocation2 + $0xc3] sm:$0xff] }
 0x11d   : > { %v830_v53 = vpop.f32.mrf.mxu1  ;;  %v1724_v42 = vpop.f32.mrf.mxu0 }
 0x11e   : > { %v5637_v55 = vadd.f32 %v1718_v10, %v1512_v46  ;;  %4940 = vmatmul.msk.f32.gmra.mxu2 %vm269_vm1, %v1253_v0  ;;  %v399_v10 = vld [vmem:[#allocation2 + $0xa8] sm:$0xff]  ;;  %v831_v56 = vadd.f32 %v830_v53, %v5553_v63 }
 0x11f   : > { %4978 = vmatmul.msk.f32.gmra.mxu3 %vm269_vm1, %v1255_v50 }
 0x120   : > { %4903 = vmatmul.msk.f32.gmra.mxu1 %vm269_vm1, %v398_v48  ;;  %5017 = vmatmul.msk.f32.gmra.mxu0 %vm269_vm1, %v1566_v57  ;;  %v1258_v57 = vld [vmem:[#allocation2 + $0xc2] sm:$0xff] }
 0x121   : > { %v1101_v60 = vpop.f32.mrf.mxu2 }
 0x122   : > { %v1203_v62 = vadd.f32 %v1101_v60, %v828_v49  ;;  %v1411_v3 = vpop.f32.mrf.mxu3 }
 0x124   : > { %v1513_v5 = vadd.f32 %v1411_v3, %v1203_v62  ;;  %v1569_v62 = vld [vmem:[#allocation2 + $0xcb] sm:$0xff] }
 0x125   : > { %v833_v34 = vpop.f32.mrf.mxu1  ;;  %v1727_v0 = vpop.f32.mrf.mxu0 }
 0x126   : > { %v5644_v14 = vadd.f32 %v1721_v31, %v1513_v5  ;;  %4941 = vmatmul.msk.f32.gmra.mxu2 %vm269_vm1, %v1254_v24  ;;  %v400_v31 = vld [vmem:[#allocation2 + $0xb0] sm:$0xff]  ;;  %v834_v63 = vadd.f32 %v833_v34, %v5565_v6 }
 0x127   : > { %4979 = vmatmul.msk.f32.gmra.mxu3 %vm269_vm1, %v1256_v12 }
 0x128   : > { %4904 = vmatmul.msk.f32.gmra.mxu1 %vm269_vm1, %v399_v10  ;;  %5018 = vmatmul.msk.f32.gmra.mxu0 %vm269_vm1, %v1567_v17  ;;  %v1259_v17 = vld [vmem:[#allocation2 + $0xca] sm:$0xff] }
 0x129   : > { %v1104_v19 = vpop.f32.mrf.mxu2 }
 0x12a   : > { %v1204_v21 = vadd.f32 %v1104_v19, %v831_v56  ;;  %v1414_v26 = vpop.f32.mrf.mxu3 }
 0x12c   : > { %v1514_v28 = vadd.f32 %v1414_v26, %v1204_v21  ;;  %v1570_v21 = vld [vmem:[#allocation2 + $0xd3] sm:$0xff] }
 0x12d   : > { %v836_v40 = vpop.f32.mrf.mxu1  ;;  %v1730_v24 = vpop.f32.mrf.mxu0 }
 0x12e   : > { %v5651_v36 = vadd.f32 %v1724_v42, %v1514_v28  ;;  %4942 = vmatmul.msk.f32.gmra.mxu2 %vm269_vm1, %v1255_v50  ;;  %v401_v42 = vld [vmem:[#allocation2 + $0xb8] sm:$0xff]  ;;  %v837_v6 = vadd.f32 %v836_v40, %v5577_v13 }
 0x12f   : > { %4980 = vmatmul.msk.f32.gmra.mxu3 %vm269_vm1, %v1257_v33 }
 0x130   : > { %4905 = vmatmul.msk.f32.gmra.mxu1 %vm269_vm1, %v400_v31  ;;  %5019 = vmatmul.msk.f32.gmra.mxu0 %vm269_vm1, %v1568_v37  ;;  %v1260_v37 = vld [vmem:[#allocation2 + $0xd2] sm:$0xff] }
 0x131   : > { %v1107_v43 = vpop.f32.mrf.mxu2 }
 0x132   : > { %v1205_v46 = vadd.f32 %v1107_v43, %v834_v63  ;;  %v1417_v53 = vpop.f32.mrf.mxu3 }
 0x134   : > { %v1515_v48 = vadd.f32 %v1417_v53, %v1205_v46  ;;  %v1571_v46 = vld [vmem:[#allocation2 + $0xdb] sm:$0xff] }
 0x135   : > { %v839_v49 = vpop.f32.mrf.mxu1  ;;  %v1733_v50 = vpop.f32.mrf.mxu0 }
 0x136   : > { %v5658_v60 = vadd.f32 %v1727_v0, %v1515_v48  ;;  %4943 = vmatmul.msk.f32.gmra.mxu2 %vm269_vm1, %v1256_v12  ;;  %v402_v0 = vld [vmem:[#allocation2 + $0xc0] sm:$0xff]  ;;  %v840_v13 = vadd.f32 %v839_v49, %v5589_v20 }
 0x137   : > { %4981 = vmatmul.msk.f32.gmra.mxu3 %vm269_vm1, %v1258_v57 }
 0x138   : > { %4906 = vmatmul.msk.f32.gmra.mxu1 %vm269_vm1, %v401_v42  ;;  %5020 = vmatmul.msk.f32.gmra.mxu0 %vm269_vm1, %v1569_v62  ;;  %v1261_v62 = vld [vmem:[#allocation2 + $0xda] sm:$0xff] }
 0x139   : > { %v1110_v3 = vpop.f32.mrf.mxu2 }
 0x13a   : > { %v1206_v5 = vadd.f32 %v1110_v3, %v837_v6  ;;  %v1420_v34 = vpop.f32.mrf.mxu3 }
 0x13c   : > { %v1516_v10 = vadd.f32 %v1420_v34, %v1206_v5  ;;  %v1572_v5 = vld [vmem:[#allocation2 + $0xe3] sm:$0xff] }
 0x13d   : > { %v842_v56 = vpop.f32.mrf.mxu1  ;;  %v1736_v12 = vpop.f32.mrf.mxu0 }
 0x13e   : > { %v5665_v19 = vadd.f32 %v1730_v24, %v1516_v10  ;;  %4944 = vmatmul.msk.f32.gmra.mxu2 %vm269_vm1, %v1257_v33  ;;  %v403_v24 = vld [vmem:[#allocation2 + $0xc8] sm:$0xff]  ;;  %v843_v20 = vadd.f32 %v842_v56, %v5601_v27 }
 0x13f   : > { %4982 = vmatmul.msk.f32.gmra.mxu3 %vm269_vm1, %v1259_v17 }
 0x140   : > { %4907 = vmatmul.msk.f32.gmra.mxu1 %vm269_vm1, %v402_v0  ;;  %5021 = vmatmul.msk.f32.gmra.mxu0 %vm269_vm1, %v1570_v21  ;;  %v1262_v21 = vld [vmem:[#allocation2 + $0xe2] sm:$0xff] }
 0x141   : > { %v1113_v26 = vpop.f32.mrf.mxu2 }
 0x142   : > { %v1207_v28 = vadd.f32 %v1113_v26, %v840_v13  ;;  %v1423_v40 = vpop.f32.mrf.mxu3 }
 0x144   : > { %v1517_v31 = vadd.f32 %v1423_v40, %v1207_v28  ;;  %v1573_v28 = vld [vmem:[#allocation2 + $0xeb] sm:$0xff] }
 0x145   : > { %v845_v63 = vpop.f32.mrf.mxu1  ;;  %v1739_v33 = vpop.f32.mrf.mxu0 }
 0x146   : > { %v5672_v43 = vadd.f32 %v1733_v50, %v1517_v31  ;;  %4945 = vmatmul.msk.f32.gmra.mxu2 %vm269_vm1, %v1258_v57  ;;  %v404_v50 = vld [vmem:[#allocation2 + $0xd0] sm:$0xff]  ;;  %v846_v27 = vadd.f32 %v845_v63, %v5508_v35 }
 0x147   : > { %4983 = vmatmul.msk.f32.gmra.mxu3 %vm269_vm1, %v1260_v37 }
 0x148   : > { %4908 = vmatmul.msk.f32.gmra.mxu1 %vm269_vm1, %v403_v24  ;;  %5022 = vmatmul.msk.f32.gmra.mxu0 %vm269_vm1, %v1571_v46  ;;  %v1263_v46 = vld [vmem:[#allocation2 + $0xea] sm:$0xff] }
 0x149   : > { %v1116_v53 = vpop.f32.mrf.mxu2 }
 0x14a   : > { %v1208_v48 = vadd.f32 %v1116_v53, %v843_v20  ;;  %v1426_v49 = vpop.f32.mrf.mxu3 }
 0x14c   : > { %v1518_v42 = vadd.f32 %v1426_v49, %v1208_v48  ;;  %v1574_v48 = vld [vmem:[#allocation2 + $0xf3] sm:$0xff] }
 0x14d   : > { %v848_v6 = vpop.f32.mrf.mxu1  ;;  %v1742_v57 = vpop.f32.mrf.mxu0 }
 0x14e   : > { %v5679_v3 = vadd.f32 %v1736_v12, %v1518_v42  ;;  %4946 = vmatmul.msk.f32.gmra.mxu2 %vm269_vm1, %v1259_v17  ;;  %v405_v12 = vld [vmem:[#allocation2 + $0xd8] sm:$0xff]  ;;  %v849_v35 = vadd.f32 %v848_v6, %v5516_v41 }
 0x14f   : > { %4984 = vmatmul.msk.f32.gmra.mxu3 %vm269_vm1, %v1261_v62 }
 0x150   : > { %4909 = vmatmul.msk.f32.gmra.mxu1 %vm269_vm1, %v404_v50  ;;  %5023 = vmatmul.msk.f32.gmra.mxu0 %vm269_vm1, %v1572_v5  ;;  %v1264_v5 = vld [vmem:[#allocation2 + $0xf2] sm:$0xff] }
 0x151   : > { %v1119_v34 = vpop.f32.mrf.mxu2 }
 0x152   : > { %v1209_v10 = vadd.f32 %v1119_v34, %v846_v27  ;;  %v1429_v56 = vpop.f32.mrf.mxu3  ;;  %v407_v27 = vld [vmem:[#allocation2 + $0xe8] sm:$0xff] }
 0x154   : > { %v1519_v0 = vadd.f32 %v1429_v56, %v1209_v10  ;;  %v1575_v10 = vld [vmem:[#allocation2 + $0xfb] sm:$0xff] }
 0x155   : > { %v851_v13 = vpop.f32.mrf.mxu1  ;;  %v1745_v17 = vpop.f32.mrf.mxu0 }
 0x156   : > { %v5686_v26 = vadd.f32 %v1739_v33, %v1519_v0  ;;  %4947 = vmatmul.msk.f32.gmra.mxu2 %vm269_vm1, %v1260_v37  ;;  %v406_v33 = vld [vmem:[#allocation2 + $0xe0] sm:$0xff]  ;;  %v852_v41 = vadd.f32 %v851_v13, %v5526_v47  ;;  %v374_v47 = vld [vmem:[%s5276_s26 + $0xf0] sm:$0xff] }
 0x157   : > { %4985 = vmatmul.msk.f32.gmra.mxu3 %vm269_vm1, %v1262_v21  ;;  %376 = vst.msk [vmem:[#allocation2 + $0x121] sm:$0xff] %vm269_vm1, %v374_v47 }
 0x158   : > { %4910 = vmatmul.msk.f32.gmra.mxu1 %vm269_vm1, %v405_v12  ;;  %5024 = vmatmul.msk.f32.gmra.mxu0 %vm269_vm1, %v1573_v28  ;;  %v1265_v28 = vld [vmem:[#allocation2 + $0xfa] sm:$0xff] }
 0x159   : > { %v1122_v40 = vpop.f32.mrf.mxu2 }
 0x15a   : > { %v1210_v31 = vadd.f32 %v1122_v40, %v849_v35  ;;  %v1432_v63 = vpop.f32.mrf.mxu3  ;;  %v408_v35 = vld [vmem:[#allocation2 + $0xf0] sm:$0xff] }
 0x15c   : > { %v1520_v24 = vadd.f32 %v1432_v63, %v1210_v31  ;;  %v375_v63 = vld [vmem:[%s5276_s26 + $0xf8] sm:$0xff] }
 0x15d   : > { %v854_v20 = vpop.f32.mrf.mxu1  ;;  %v1748_v37 = vpop.f32.mrf.mxu0  ;;  %377 = vst.msk [vmem:[#allocation2 + $0x129] sm:$0xff] %vm269_vm1, %v375_v63  ;;  %v1268_v63 = vld [vmem:[#allocation2 + $0x112] sm:$0xff] }
 0x15e   : > { %v5693_v53 = vadd.f32 %v1742_v57, %v1520_v24  ;;  %4948 = vmatmul.msk.f32.gmra.mxu2 %vm269_vm1, %v1261_v62  ;;  %v855_v56 = vadd.f32 %v854_v20, %v5538_v54  ;;  %v1576_v54 = vld [vmem:[#allocation2 + $0x103] sm:$0xff] }
 0x15f   : > { %4986 = vmatmul.msk.f32.gmra.mxu3 %vm269_vm1, %v1263_v46 }
 0x160   : > { %4911 = vmatmul.msk.f32.gmra.mxu1 %vm269_vm1, %v406_v33  ;;  %5025 = vmatmul.msk.f32.gmra.mxu0 %vm269_vm1, %v1574_v48 }
 0x161   : > { %v1125_v49 = vpop.f32.mrf.mxu2 }
 0x162   : > { %v1211_v42 = vadd.f32 %v1125_v49, %v852_v41  ;;  %v1435_v6 = vpop.f32.mrf.mxu3  ;;  %v1266_v41 = vld [vmem:[#allocation2 + $0x102] sm:$0xff] }
 0x164   : > { %v1521_v50 = vadd.f32 %v1435_v6, %v1211_v42 }
 0x165   : > { %v857_v57 = vpop.f32.mrf.mxu1  ;;  %v1751_v62 = vpop.f32.mrf.mxu0 }
 0x166   : > { %v5700_v34 = vadd.f32 %v1745_v17, %v1521_v50  ;;  %4949 = vmatmul.msk.f32.gmra.mxu2 %vm269_vm1, %v1262_v21  ;;  %v858_v24 = vadd.f32 %v857_v57, %v5550_v61  ;;  %v1577_v50 = vld [vmem:[#allocation2 + $0x10b] sm:$0xff] }
 0x167   : > { %4987 = vmatmul.msk.f32.gmra.mxu3 %vm269_vm1, %v1264_v5 }
 0x168   : > { %4912 = vmatmul.msk.f32.gmra.mxu1 %vm269_vm1, %v407_v27  ;;  %5026 = vmatmul.msk.f32.gmra.mxu0 %vm269_vm1, %v1575_v10 }
 0x169   : > { %v1128_v0 = vpop.f32.mrf.mxu2 }
 0x16a   : > { %v1212_v13 = vadd.f32 %v1128_v0, %v855_v56  ;;  %v1438_v12 = vpop.f32.mrf.mxu3  ;;  %v1267_v56 = vld [vmem:[#allocation2 + $0x10a] sm:$0xff] }
 0x16c   : > { %v1522_v17 = vadd.f32 %v1438_v12, %v1212_v13  ;;  %v1578_v12 = vld [vmem:[#allocation2 + $0x113] sm:$0xff] }
 0x16d   : > { %v860_v21 = vpop.f32.mrf.mxu1  ;;  %v1754_v31 = vpop.f32.mrf.mxu0 }
 0x16e   : > { %v5709_v40 = vadd.f32 %v1748_v37, %v1522_v17  ;;  %4950 = vmatmul.msk.f32.gmra.mxu2 %vm269_vm1, %v1263_v46  ;;  %v409_v46 = vld [vmem:[#allocation2 + $0xf8] sm:$0xff]  ;;  %v861_v61 = vadd.f32 %v860_v21, %v5562_v4 }
 0x16f   : > { %4988 = vmatmul.msk.f32.gmra.mxu3 %vm269_vm1, %v1265_v28 }
 0x170   : > { %4913 = vmatmul.msk.f32.gmra.mxu1 %vm269_vm1, %v408_v35  ;;  %5027 = vmatmul.msk.f32.gmra.mxu0 %vm269_vm1, %v1576_v54 }
 0x171   : > { %v1131_v20 = vpop.f32.mrf.mxu2 }
 0x172   : > { %v1213_v33 = vadd.f32 %v1131_v20, %v858_v24  ;;  %v1441_v48 = vpop.f32.mrf.mxu3 }
 0x174   : > { %v1523_v37 = vadd.f32 %v1441_v48, %v1213_v33  ;;  %v1579_v33 = vld [vmem:[#allocation2 + $0x11b] sm:$0xff] }
 0x175   : > { %v863_v49 = vpop.f32.mrf.mxu1  ;;  %v1757_v6 = vpop.f32.mrf.mxu0 }
 0x176   : > { %v5718_v42 = vadd.f32 %v1751_v62, %v1523_v37  ;;  %4951 = vmatmul.msk.f32.gmra.mxu2 %vm269_vm1, %v1264_v5  ;;  %v410_v62 = vld [vmem:[#allocation2 + $0x100] sm:$0xff]  ;;  %v864_v4 = vadd.f32 %v863_v49, %v5574_v11 }
 0x177   : > { %4989 = vmatmul.msk.f32.gmra.mxu3 %vm269_vm1, %v1266_v41 }
 0x178   : > { %4914 = vmatmul.msk.f32.gmra.mxu1 %vm269_vm1, %v409_v46  ;;  %5028 = vmatmul.msk.f32.gmra.mxu0 %vm269_vm1, %v1577_v50  ;;  %v1269_v50 = vld [vmem:[#allocation2 + $0x11a] sm:$0xff] }
 0x179   : > { %v1134_v57 = vpop.f32.mrf.mxu2 }
 0x17a   : > { %v1214_v27 = vadd.f32 %v1134_v57, %v861_v61  ;;  %v1444_v10 = vpop.f32.mrf.mxu3 }
 0x17c   : > { %v1524_v47 = vadd.f32 %v1444_v10, %v1214_v27  ;;  %v1580_v27 = vld [vmem:[#allocation2 + $0x123] sm:$0xff] }
 0x17d   : > { %v866_v0 = vpop.f32.mrf.mxu1  ;;  %v1760_v5 = vpop.f32.mrf.mxu0 }
 0x17e   : > { %v5725_v13 = vadd.f32 %v1754_v31, %v1524_v47  ;;  %4952 = vmatmul.msk.f32.gmra.mxu2 %vm269_vm1, %v1265_v28  ;;  %v411_v31 = vld [vmem:[#allocation2 + $0x108] sm:$0xff]  ;;  %v867_v11 = vadd.f32 %v866_v0, %v5586_v18 }
 0x17f   : > { %4990 = vmatmul.msk.f32.gmra.mxu3 %vm269_vm1, %v1267_v56 }
 0x180   : > { %4915 = vmatmul.msk.f32.gmra.mxu1 %vm269_vm1, %v410_v62  ;;  %5029 = vmatmul.msk.f32.gmra.mxu0 %vm269_vm1, %v1578_v12  ;;  %v1270_v12 = vld [vmem:[#allocation2 + $0x122] sm:$0xff] }
 0x181   : > { %v1137_v17 = vpop.f32.mrf.mxu2 }
 0x182   : > { %v1215_v21 = vadd.f32 %v1137_v17, %v864_v4  ;;  %v1447_v35 = vpop.f32.mrf.mxu3 }
 0x184   : > { %v1525_v54 = vadd.f32 %v1447_v35, %v1215_v21  ;;  %v1581_v21 = vld [vmem:[#allocation2 + $0x12b] sm:$0xff] }
 0x185   : > { %v869_v24 = vpop.f32.mrf.mxu1  ;;  %v1763_v28 = vpop.f32.mrf.mxu0 }
 0x186   : > { %v5732_v20 = vadd.f32 %v1757_v6, %v1525_v54  ;;  %4953 = vmatmul.msk.f32.gmra.mxu2 %vm269_vm1, %v1266_v41  ;;  %v412_v6 = vld [vmem:[#allocation2 + $0x110] sm:$0xff]  ;;  %v870_v18 = vadd.f32 %v869_v24, %v5598_v25 }
 0x187   : > { %4991 = vmatmul.msk.f32.gmra.mxu3 %vm269_vm1, %v1268_v63 }
 0x188   : > { %4916 = vmatmul.msk.f32.gmra.mxu1 %vm269_vm1, %v411_v31  ;;  %5030 = vmatmul.msk.f32.gmra.mxu0 %vm269_vm1, %v1579_v33  ;;  %v1271_v33 = vld [vmem:[#allocation2 + $0x12a] sm:$0xff] }
 0x189   : > { %v1140_v48 = vpop.f32.mrf.mxu2 }
 0x18a   : > { %v1216_v37 = vadd.f32 %v1140_v48, %v867_v11  ;;  %v1450_v49 = vpop.f32.mrf.mxu3 }
 0x18c   : > { %v1526_v46 = vadd.f32 %v1450_v49, %v1216_v37  ;;  %v2786_v37 = vld [vmem:[#allocation2 + $0x26] sm:$0xff] }
 0x18d   : > { %v872_v61 = vpop.f32.mrf.mxu1  ;;  %v1766_v41 = vpop.f32.mrf.mxu0 }
 0x18e   : > { %v5739_v57 = vadd.f32 %v1760_v5, %v1526_v46  ;;  %4954 = vmatmul.msk.f32.gmra.mxu2 %vm269_vm1, %v1267_v56  ;;  %v413_v5 = vld [vmem:[#allocation2 + $0x118] sm:$0xff]  ;;  %v873_v25 = vadd.f32 %v872_v61, %v5521_v44 }
 0x18f   : > { %4992 = vmatmul.msk.f32.gmra.mxu3 %vm269_vm1, %v1269_v50 }
 0x190   : > { %4917 = vmatmul.msk.f32.gmra.mxu1 %vm269_vm1, %v412_v6  ;;  %5031 = vmatmul.msk.f32.gmra.mxu0 %vm269_vm1, %v1580_v27  ;;  %v2166_v6 = vld [vmem:[#allocation2 + $0x24] sm:$0xff] }
 0x191   : > { %v1143_v10 = vpop.f32.mrf.mxu2 }
 0x192   : > { %v1217_v47 = vadd.f32 %v1143_v10, %v870_v18  ;;  %v1453_v0 = vpop.f32.mrf.mxu3  ;;  %v2476_v18 = vld [vmem:[#allocation2 + $0x25] sm:$0xff]  ;;  %v1857_v10 = vld [vmem:[#allocation2 + $0x1c] sm:$0xff] }
 0x194   : > { %v1527_v62 = vadd.f32 %v1453_v0, %v1217_v47  ;;  %v2787_v0 = vld [vmem:[#allocation2 + $0x2e] sm:$0xff] }
 0x195   : > { %v875_v4 = vpop.f32.mrf.mxu1  ;;  %v1769_v56 = vpop.f32.mrf.mxu0 }
 0x196   : > { %v5746_v17 = vadd.f32 %v1763_v28, %v1527_v62  ;;  %4955 = vmatmul.msk.f32.gmra.mxu2 %vm269_vm1, %v1268_v63  ;;  %v1856_v28 = vld [vmem:[#allocation2 + $0x14] sm:$0xff]  ;;  %v876_v44 = vadd.f32 %v875_v4, %v5533_v51 }
 0x197   : > { %4993 = vmatmul.msk.f32.gmra.mxu3 %vm269_vm1, %v1270_v12 }
 0x198   : > { %4918 = vmatmul.msk.f32.gmra.mxu1 %vm269_vm1, %v413_v5  ;;  %5032 = vmatmul.msk.f32.gmra.mxu0 %vm269_vm1, %v1581_v21  ;;  %v2167_v5 = vld [vmem:[#allocation2 + $0x2c] sm:$0xff] }
 0x199   : > { %v1146_v35 = vpop.f32.mrf.mxu2 }
 0x19a   : > { %v1218_v54 = vadd.f32 %v1146_v35, %v873_v25  ;;  %v1456_v24 = vpop.f32.mrf.mxu3  ;;  %v2477_v25 = vld [vmem:[#allocation2 + $0x2d] sm:$0xff] }
 0x19c   : > { %v1528_v31 = vadd.f32 %v1456_v24, %v1218_v54  ;;  %v2788_v24 = vld [vmem:[#allocation2 + $0x36] sm:$0xff] }
 0x19d   : > { %v878_v11 = vpop.f32.mrf.mxu1  ;;  %v1772_v63 = vpop.f32.mrf.mxu0 }
 0x19e   : > { %v5753_v48 = vadd.f32 %v1766_v41, %v1528_v31  ;;  %4956 = vmatmul.msk.f32.gmra.mxu2 %vm269_vm1, %v1269_v50  ;;  %v879_v51 = vadd.f32 %v878_v11, %v5545_v58 }
 0x19f   : > { %4994 = vmatmul.msk.f32.gmra.mxu3 %vm269_vm1, %v1271_v33 }
 0x1a0   : > { %5035 = vmatmul.msk.f32.vlgmr.msra.gmra.mxu1 %vm269_vm1, %v1856_v28  ;;  %5149 = vmatmul.msk.f32.vlgmr.msra.gmra.mxu0 %vm269_vm1, %v2786_v37  ;;  %v2168_v28 = vld [vmem:[#allocation2 + $0x34] sm:$0xff] }
 0x1a1   : > { %v1149_v49 = vpop.f32.mrf.mxu2 }
 0x1a2   : > { %v1219_v46 = vadd.f32 %v1149_v49, %v876_v44  ;;  %v1459_v61 = vpop.f32.mrf.mxu3  ;;  %v2478_v44 = vld [vmem:[#allocation2 + $0x35] sm:$0xff] }
 0x1a4   : > { %v1529_v27 = vadd.f32 %v1459_v61, %v1219_v46  ;;  %v2789_v61 = vld [vmem:[#allocation2 + $0x3e] sm:$0xff] }
 0x1a5   : > { %v881_v41 = vpop.f32.mrf.mxu1  ;;  %v1775_v50 = vpop.f32.mrf.mxu0 }
 0x1a6   : > { %v5760_v47 = vadd.f32 %v1769_v56, %v1529_v27  ;;  %5073 = vmatmul.msk.f32.vlgmr.msra.gmra.mxu2 %vm269_vm1, %v2166_v6  ;;  %v882_v58 = vadd.f32 %v881_v41, %v5557_v1  ;;  %v2169_v41 = vld [vmem:[#allocation2 + $0x3c] sm:$0xff] }
 0x1a7   : > { %5111 = vmatmul.msk.f32.vlgmr.msra.gmra.mxu3 %vm269_vm1, %v2476_v18 }
 0x1a8   : > { %5036 = vmatmul.msk.f32.gmra.mxu1 %vm269_vm1, %v1857_v10  ;;  %5150 = vmatmul.msk.f32.gmra.mxu0 %vm269_vm1, %v2787_v0  ;;  %v2479_v0 = vld [vmem:[#allocation2 + $0x3d] sm:$0xff] }
 0x1a9   : > { %v1152_v62 = vpop.f32.mrf.mxu2 }
 0x1aa   : > { %v1220_v12 = vadd.f32 %v1152_v62, %v879_v51  ;;  %v1462_v4 = vpop.f32.mrf.mxu3 }
 0x1ac   : > { %v1530_v21 = vadd.f32 %v1462_v4, %v1220_v12  ;;  %v2790_v12 = vld [vmem:[#allocation2 + $0x46] sm:$0xff] }
 0x1ad   : > { %v884_v56 = vpop.f32.mrf.mxu1  ;;  %v1778_v54 = vpop.f32.mrf.mxu0 }
 0x1ae   : > { %v5767_v35 = vadd.f32 %v1772_v63, %v1530_v21  ;;  %5074 = vmatmul.msk.f32.gmra.mxu2 %vm269_vm1, %v2167_v5  ;;  %v885_v1 = vadd.f32 %v884_v56, %v5569_v8 }
 0x1af   : > { %5112 = vmatmul.msk.f32.gmra.mxu3 %vm269_vm1, %v2477_v25  ;;  %v2170_v25 = vld [vmem:[#allocation2 + $0x44] sm:$0xff] }
 0x1b0   : > { %5037 = vmatmul.msk.f32.gmra.mxu1 %vm269_vm1, %v2166_v6  ;;  %5151 = vmatmul.msk.f32.gmra.mxu0 %vm269_vm1, %v2788_v24  ;;  %v2480_v24 = vld [vmem:[#allocation2 + $0x45] sm:$0xff] }
 0x1b1   : > { %v1155_v31 = vpop.f32.mrf.mxu2 }
 0x1b2   : > { %v1221_v33 = vadd.f32 %v1155_v31, %v882_v58  ;;  %v1465_v11 = vpop.f32.mrf.mxu3 }
 0x1b4   : > { %v1531_v37 = vadd.f32 %v1465_v11, %v1221_v33  ;;  %v2791_v33 = vld [vmem:[#allocation2 + $0x4e] sm:$0xff] }
 0x1b5   : > { %v887_v63 = vpop.f32.mrf.mxu1  ;;  %v1781_v46 = vpop.f32.mrf.mxu0 }
 0x1b6   : > { %v5774_v49 = vadd.f32 %v1775_v50, %v1531_v37  ;;  %5075 = vmatmul.msk.f32.gmra.mxu2 %vm269_vm1, %v2168_v28  ;;  %v888_v8 = vadd.f32 %v887_v63, %v5581_v15 }
 0x1b7   : > { %5113 = vmatmul.msk.f32.gmra.mxu3 %vm269_vm1, %v2478_v44  ;;  %v2171_v44 = vld [vmem:[#allocation2 + $0x4c] sm:$0xff] }
 0x1b8   : > { %5038 = vmatmul.msk.f32.gmra.mxu1 %vm269_vm1, %v2167_v5  ;;  %5152 = vmatmul.msk.f32.gmra.mxu0 %vm269_vm1, %v2789_v61  ;;  %v2481_v61 = vld [vmem:[#allocation2 + $0x4d] sm:$0xff] }
 0x1b9   : > { %v1158_v6 = vpop.f32.mrf.mxu2 }
 0x1ba   : > { %v1222_v27 = vadd.f32 %v1158_v6, %v885_v1  ;;  %v1468_v18 = vpop.f32.mrf.mxu3 }
 0x1bc   : > { %v1532_v10 = vadd.f32 %v1468_v18, %v1222_v27  ;;  %v2792_v27 = vld [vmem:[#allocation2 + $0x56] sm:$0xff] }
 0x1bd   : > { %v890_v50 = vpop.f32.mrf.mxu1  ;;  %v1784_v62 = vpop.f32.mrf.mxu0 }
 0x1be   : > { %v5781_v51 = vadd.f32 %v1778_v54, %v1532_v10  ;;  %5076 = vmatmul.msk.f32.gmra.mxu2 %vm269_vm1, %v2169_v41  ;;  %v891_v15 = vadd.f32 %v890_v50, %v5593_v22 }
 0x1bf   : > { %5114 = vmatmul.msk.f32.gmra.mxu3 %vm269_vm1, %v2479_v0  ;;  %v2172_v0 = vld [vmem:[#allocation2 + $0x54] sm:$0xff] }
 0x1c0   : > { %5039 = vmatmul.msk.f32.gmra.mxu1 %vm269_vm1, %v2168_v28  ;;  %5153 = vmatmul.msk.f32.gmra.mxu0 %vm269_vm1, %v2790_v12  ;;  %v2482_v12 = vld [vmem:[#allocation2 + $0x55] sm:$0xff] }
 0x1c1   : > { %v1161_v4 = vpop.f32.mrf.mxu2 }
 0x1c2   : > { %v1223_v5 = vadd.f32 %v1161_v4, %v888_v8  ;;  %v1471_v21 = vpop.f32.mrf.mxu3 }
 0x1c4   : > { %v1533_v56 = vadd.f32 %v1471_v21, %v1223_v5  ;;  %v2793_v5 = vld [vmem:[#allocation2 + $0x5e] sm:$0xff] }
 0x1c5   : > { %v893_v54 = vpop.f32.mrf.mxu1  ;;  %v1787_v31 = vpop.f32.mrf.mxu0 }
 0x1c6   : > { %v5788_v58 = vadd.f32 %v1781_v46, %v1533_v56  ;;  %5077 = vmatmul.msk.f32.gmra.mxu2 %vm269_vm1, %v2170_v25  ;;  %v894_v22 = vadd.f32 %v893_v54, %v5605_v29 }
 0x1c7   : > { %5115 = vmatmul.msk.f32.gmra.mxu3 %vm269_vm1, %v2480_v24  ;;  %v2173_v24 = vld [vmem:[#allocation2 + $0x5c] sm:$0xff] }
 0x1c8   : > { %5040 = vmatmul.msk.f32.gmra.mxu1 %vm269_vm1, %v2169_v41  ;;  %5154 = vmatmul.msk.f32.gmra.mxu0 %vm269_vm1, %v2791_v33  ;;  %v2483_v33 = vld [vmem:[#allocation2 + $0x5d] sm:$0xff] }
 0x1c9   : > { %v1164_v11 = vpop.f32.mrf.mxu2 }
 0x1ca   : > { %v1224_v28 = vadd.f32 %v1164_v11, %v891_v15  ;;  %v1474_v37 = vpop.f32.mrf.mxu3 }
 0x1cc   : > { %v1534_v63 = vadd.f32 %v1474_v37, %v1224_v28  ;;  %v2794_v28 = vld [vmem:[#allocation2 + $0x66] sm:$0xff] }
 0x1cd   : > { %v896_v46 = vpop.f32.mrf.mxu1  ;;  %v1790_v6 = vpop.f32.mrf.mxu0 }
 0x1ce   : > { %v5795_v1 = vadd.f32 %v1784_v62, %v1534_v63  ;;  %5078 = vmatmul.msk.f32.gmra.mxu2 %vm269_vm1, %v2171_v44  ;;  %v897_v29 = vadd.f32 %v896_v46, %v5613_v38 }
 0x1cf   : > { %5116 = vmatmul.msk.f32.gmra.mxu3 %vm269_vm1, %v2481_v61  ;;  %v2174_v61 = vld [vmem:[#allocation2 + $0x64] sm:$0xff] }
 0x1d0   : > { %5041 = vmatmul.msk.f32.gmra.mxu1 %vm269_vm1, %v2170_v25  ;;  %5155 = vmatmul.msk.f32.gmra.mxu0 %vm269_vm1, %v2792_v27  ;;  %v2484_v27 = vld [vmem:[#allocation2 + $0x65] sm:$0xff] }
 0x1d1   : > { %v1167_v18 = vpop.f32.mrf.mxu2 }
 0x1d2   : > { %v1225_v41 = vadd.f32 %v1167_v18, %v894_v22  ;;  %v1477_v10 = vpop.f32.mrf.mxu3 }
 0x1d4   : > { %v1535_v50 = vadd.f32 %v1477_v10, %v1225_v41  ;;  %v2795_v41 = vld [vmem:[#allocation2 + $0x6e] sm:$0xff] }
 0x1d5   : > { %v899_v62 = vpop.f32.mrf.mxu1  ;;  %v1793_v4 = vpop.f32.mrf.mxu0 }
 0x1d6   : > { %v5802_v8 = vadd.f32 %v1787_v31, %v1535_v50  ;;  %5079 = vmatmul.msk.f32.gmra.mxu2 %vm269_vm1, %v2172_v0  ;;  %v900_v38 = vadd.f32 %v899_v62, %v5524_v45 }
 0x1d7   : > { %5117 = vmatmul.msk.f32.gmra.mxu3 %vm269_vm1, %v2482_v12  ;;  %v2175_v12 = vld [vmem:[#allocation2 + $0x6c] sm:$0xff] }
 0x1d8   : > { %5042 = vmatmul.msk.f32.gmra.mxu1 %vm269_vm1, %v2171_v44  ;;  %5156 = vmatmul.msk.f32.gmra.mxu0 %vm269_vm1, %v2793_v5  ;;  %v2485_v5 = vld [vmem:[#allocation2 + $0x6d] sm:$0xff] }
 0x1d9   : > { %v1170_v21 = vpop.f32.mrf.mxu2 }
 0x1da   : > { %v1226_v25 = vadd.f32 %v1170_v21, %v897_v29  ;;  %v1480_v56 = vpop.f32.mrf.mxu3 }
 0x1dc   : > { %v1536_v54 = vadd.f32 %v1480_v56, %v1226_v25  ;;  %v2796_v25 = vld [vmem:[#allocation2 + $0x76] sm:$0xff] }
 0x1dd   : > { %v902_v31 = vpop.f32.mrf.mxu1  ;;  %v1796_v11 = vpop.f32.mrf.mxu0 }
 0x1de   : > { %v5809_v15 = vadd.f32 %v1790_v6, %v1536_v54  ;;  %5080 = vmatmul.msk.f32.gmra.mxu2 %vm269_vm1, %v2173_v24  ;;  %v903_v45 = vadd.f32 %v902_v31, %v5536_v52  ;;  %v2176_v31 = vld [vmem:[#allocation2 + $0x74] sm:$0xff] }
 0x1df   : > { %5118 = vmatmul.msk.f32.gmra.mxu3 %vm269_vm1, %v2483_v33  ;;  %v3096_v33 = vlaneseq }
 0x1e0   : > { %7103 = vst [vmem:[#allocation3_spill] sm:$0xff] %v5809_v15  ;;  %5043 = vmatmul.msk.f32.gmra.mxu1 %vm269_vm1, %v2172_v0  ;;  %5157 = vmatmul.msk.f32.gmra.mxu0 %vm269_vm1, %v2794_v28 }
 0x1e1   : > { %v1173_v37 = vpop.f32.mrf.mxu2 }
 0x1e2   : > { %v1227_v44 = vadd.f32 %v1173_v37, %v900_v38  ;;  %v1483_v63 = vpop.f32.mrf.mxu3  ;;  %v5830_v38 = vshrl.u32 %v3096_v33, 7  ;;  %v2798_v33 = vld [vmem:[#allocation2 + $0x86] sm:$0xff] }
 0x1e4   : > { %v1537_v46 = vadd.f32 %v1483_v63, %v1227_v44 }
 0x1e5   : > { %v905_v6 = vpop.f32.mrf.mxu1  ;;  %v1799_v18 = vpop.f32.mrf.mxu0 }
 0x1e6   : > { %v5816_v22 = vadd.f32 %v1793_v4, %v1537_v46  ;;  %5081 = vmatmul.msk.f32.gmra.mxu2 %vm269_vm1, %v2174_v61  ;;  %v906_v52 = vadd.f32 %v905_v6, %v5548_v59  ;;  %v2797_v59 = vld [vmem:[#allocation2 + $0x7e] sm:$0xff] }
 0x1e7   : > { %5119 = vmatmul.msk.f32.gmra.mxu3 %vm269_vm1, %v2484_v27  ;;  %v3137_v27 = vshrl.u32 %v5830_v38, 16 }
 0x1e8   : > { %7104 = vst [vmem:[#allocation4_spill] sm:$0xff] %v5816_v22  ;;  %5044 = vmatmul.msk.f32.gmra.mxu1 %vm269_vm1, %v2173_v24  ;;  %5158 = vmatmul.msk.f32.gmra.mxu0 %vm269_vm1, %v2795_v41 }
 0x1e9   : > { %v1176_v10 = vpop.f32.mrf.mxu2 }
 0x1ea   : > { %v1228_v0 = vadd.f32 %v1176_v10, %v903_v45  ;;  %v1486_v50 = vpop.f32.mrf.mxu3 }
 0x1ec   : > { %v1538_v62 = vadd.f32 %v1486_v50, %v1228_v0  ;;  %v3141_v0 = vmul.u32 14564, %v3137_v27 }
 0x1ed   : > { %v908_v4 = vpop.f32.mrf.mxu1  ;;  %v1802_v21 = vpop.f32.mrf.mxu0 }
 0x1ee   : > { %v5823_v29 = vadd.f32 %v1796_v11, %v1538_v62  ;;  %5082 = vmatmul.msk.f32.gmra.mxu2 %vm269_vm1, %v2175_v12  ;;  %v2486_v11 = vld [vmem:[#allocation2 + $0x75] sm:$0xff]  ;;  %v909_v46 = vadd.f32 %v908_v4, %v5560_v2 }
 0x1ef   : > { %5120 = vmatmul.msk.f32.gmra.mxu3 %vm269_vm1, %v2485_v5  ;;  %v2177_v62 = vld [vmem:[#allocation2 + $0x7c] sm:$0xff] }
 0x1f0   : > { %7105 = vst [vmem:[#allocation5_spill] sm:$0xff] %v5823_v29  ;;  %5045 = vmatmul.msk.f32.gmra.mxu1 %vm269_vm1, %v2174_v61  ;;  %5159 = vmatmul.msk.f32.gmra.mxu0 %vm269_vm1, %v2796_v25  ;;  %v3136_v61 = vand.u32 65535, %v5830_v38  ;;  %v2487_v25 = vld [vmem:[#allocation2 + $0x7d] sm:$0xff] }
 0x1f1   : > { %v1179_v56 = vpop.f32.mrf.mxu2 }
 0x1f2   : > { %v1229_v24 = vadd.f32 %v1179_v56, %v906_v52  ;;  %v1489_v54 = vpop.f32.mrf.mxu3  ;;  %v3140_v6 = vmul.u32 58254, %v3136_v61  ;;  %v3139_v10 = vmul.u32 14564, %v3136_v61  ;;  %v3142_v52 = vmul.u32 58254, %v3137_v27 }
 0x1f3   : > { %v3145_v56 = vshll.u32 %v3141_v0, 16 }
 0x1f4   : > { %v1539_v28 = vadd.f32 %v1489_v54, %v1229_v24  ;;  %v3143_v50 = vshll.u32 %v3140_v6, 16 }
 0x1f5   : > { %v911_v37 = vpop.f32.mrf.mxu1  ;;  %v1805_v63 = vpop.f32.mrf.mxu0 }
 0x1f6   : > { %v5832_v44 = vadd.f32 %v1799_v18, %v1539_v28  ;;  %5083 = vmatmul.msk.f32.gmra.mxu2 %vm269_vm1, %v2176_v31  ;;  %vm3147_vm2 = vc.u32 %v3139_v10, %v3143_v50  ;;  %v3149_v4 = vadd.s32 %v3143_v50, %v3139_v10  ;;  %v7101_v28 = vmov 0  }
 0x1f7   : > { %5121 = vmatmul.msk.f32.gmra.mxu3 %vm269_vm1, %v2486_v11  ;;  %v3148_v11 = vsel %vm3147_vm2, 1, %v7101_v28 }
 0x1f8   : > { %7106 = vst [vmem:[#allocation6_spill] sm:$0xff] %v5832_v44  ;;  %5046 = vmatmul.msk.f32.gmra.mxu1 %vm269_vm1, %v2175_v12  ;;  %5160 = vmatmul.msk.f32.gmra.mxu0 %vm269_vm1, %v2797_v59  ;;  %v5842_v12 = vadd.s32 8, %v5830_v38  ;;  %v3150_v59 = vadd.s32 %v3148_v11, %v3142_v52  ;;  %vm3151_vm3 = vc.u32 %v3149_v4, %v3145_v56  ;;  %v2178_v4 = vld [vmem:[#allocation2 + $0x84] sm:$0xff] }
 0x1f9   : > { %v1182_v41 = vpop.f32.mrf.mxu2  ;;  %v3152_v27 = vsel %vm3151_vm3, 1, %v7101_v28  ;;  %v5858_v28 = vadd.s32 16, %v5830_v38 }
 0x1fa   : > { %v1230_v18 = vadd.f32 %v1182_v41, %v909_v46  ;;  %v1492_v45 = vpop.f32.mrf.mxu3  ;;  %v3165_v61 = vand.u32 65535, %v5842_v12  ;;  %v912_v46 = vadd.f32 %v911_v37, %v5572_v9  ;;  %v3166_v41 = vshrl.u32 %v5842_v12, 16 }
 0x1fc   : > { %v1540_v5 = vadd.f32 %v1492_v45, %v1230_v18  ;;  %v3154_v45 = vadd.s32 %v3152_v27, %v3150_v59  ;;  %v3169_v10 = vmul.u32 58254, %v3165_v61  ;;  %v3168_v52 = vmul.u32 14564, %v3165_v61  ;;  %v2799_v61 = vld [vmem:[#allocation2 + $0x8e] sm:$0xff] }
 0x1fd   : > { %v914_v2 = vpop.f32.mrf.mxu1  ;;  %v5847_v54 = vpop.f32.mrf.mxu0  ;;  %v3170_v56 = vmul.u32 14564, %v3166_v41  ;;  %v3194_v27 = vand.u32 65535, %v5858_v28 }
 0x1fe   : > { %v5844_v24 = vadd.f32 %v1802_v21, %v1540_v5  ;;  %5084 = vmatmul.msk.f32.gmra.mxu2 %vm269_vm1, %v2177_v62  ;;  %v3144_v21 = vshrl.u32 %v3140_v6, 16  ;;  %v3172_v9 = vshll.u32 %v3169_v10, 16  ;;  %v3171_v6 = vmul.u32 58254, %v3166_v41 }
 0x1ff   : > { %5122 = vmatmul.msk.f32.gmra.mxu3 %vm269_vm1, %v2487_v25  ;;  %v3146_v25 = vshrl.u32 %v3141_v0, 16  ;;  %v915_v41 = vadd.f32 %v914_v2, %v5584_v16  ;;  %v3175_v16 = vshrl.u32 %v3170_v56, 16  ;;  %v3197_v2 = vmul.u32 14564, %v3194_v27 }
 0x200   : > { %7107 = vst [vmem:[#allocation7_spill] sm:$0xff] %v5844_v24  ;;  %5047 = vmatmul.msk.f32.gmra.mxu1 %vm269_vm1, %v2176_v31  ;;  %5161 = vmatmul.msk.f32.gmra.mxu0 %vm269_vm1, %v2798_v33  ;;  %v3155_v11 = vadd.s32 %v3154_v45, %v3144_v21  ;;  %v2488_v31 = vld [vmem:[#allocation2 + $0x85] sm:$0xff]  ;;  %v3174_v24 = vshll.u32 %v3170_v56, 16  ;;  %vm3176_vm4 = vc.u32 %v3168_v52, %v3172_v9 }
 0x201   : > { %v1185_v18 = vpop.f32.mrf.mxu2  ;;  %v3178_v33 = vadd.s32 %v3172_v9, %v3168_v52 }
 0x202   : > { %v1231_v50 = vadd.f32 %v1185_v18, %v912_v46  ;;  %v1495_v5 = vpop.f32.mrf.mxu3  ;;  %v3156_v29 = vadd.s32 %v3155_v11, %v3146_v25  ;;  %v7109_v46 = vmov 0   ;;  %v3198_v25 = vmul.u32 58254, %v3194_v27  ;;  %v2800_v27 = vld [vmem:[#allocation2 + $0x96] sm:$0xff] }
 0x203   : > { %v3177_v21 = vsel %vm3176_vm4, 1, %v7109_v46  ;;  %vm3180_vm5 = vc.u32 %v3178_v33, %v3174_v24 }
 0x204   : > { %v1541_v37 = vadd.f32 %v1495_v5, %v1231_v50  ;;  %v3157_v18 = vshrl.u32 %v3156_v29, 4  ;;  %v3179_v45 = vadd.s32 %v3177_v21, %v3171_v6  ;;  %v3181_v50 = vsel %vm3180_vm5, 1, %v7109_v46  ;;  %v2179_v29 = vld [vmem:[#allocation2 + $0x8c] sm:$0xff] }
 0x205   : > { %v917_v44 = vpop.f32.mrf.mxu1  ;;  %v5863_v0 = vpop.f32.mrf.mxu0  ;;  %v3195_v5 = vshrl.u32 %v5858_v28, 16  ;;  %v3201_v24 = vshll.u32 %v3198_v25, 16 }
 0x206   : > { %v5860_v59 = vadd.f32 %v1805_v63, %v1541_v37  ;;  %5085 = vmatmul.msk.f32.gmra.mxu2 %vm269_vm1, %v2178_v4  ;;  %v3173_v63 = vshrl.u32 %v3169_v10, 16  ;;  %v3183_v11 = vadd.s32 %v3181_v50, %v3179_v45  ;;  %v3158_v10 = vmul.u32 18, %v3157_v18 }
 0x207   : > { %5123 = vmatmul.msk.f32.gmra.mxu3 %vm269_vm1, %v2488_v31  ;;  %v3199_v31 = vmul.u32 14564, %v3195_v5  ;;  %v3200_v21 = vmul.u32 58254, %v3195_v5  ;;  %vm3205_vm6 = vc.u32 %v3197_v2, %v3201_v24  ;;  %v3207_v45 = vadd.s32 %v3201_v24, %v3197_v2 }
 0x208   : > { %7108 = vst [vmem:[#allocation8_spill] sm:$0xff] %v5860_v59  ;;  %5048 = vmatmul.msk.f32.gmra.mxu1 %vm269_vm1, %v2177_v62  ;;  %5162 = vmatmul.msk.f32.gmra.mxu0 %vm269_vm1, %v2799_v61  ;;  %v3184_v6 = vadd.s32 %v3183_v11, %v3173_v63  ;;  %v2489_v62 = vld [vmem:[#allocation2 + $0x8d] sm:$0xff]  ;;  %v5874_v59 = vadd.s32 24, %v5830_v38  ;;  %v3206_v18 = vsel %vm3205_vm6, 1, %v7109_v46  ;;  %v918_v50 = vadd.f32 %v917_v44, %v5596_v23 }
 0x209   : > { %v1188_v52 = vpop.f32.mrf.mxu2  ;;  %v3203_v15 = vshll.u32 %v3199_v31, 16  ;;  %v3208_v5 = vadd.s32 %v3206_v18, %v3200_v21  ;;  %v3202_v11 = vshrl.u32 %v3198_v25, 16  ;;  %v5893_v44 = vld [vmem:[#allocation2 + $0x94] sm:$0xff] }
 0x20a   : > { %v1232_v9 = vadd.f32 %v1188_v52, %v915_v41  ;;  %v1498_v37 = vpop.f32.mrf.mxu3  ;;  %v3185_v41 = vadd.s32 %v3184_v6, %v3175_v16  ;;  %v3223_v63 = vand.u32 65535, %v5874_v59  ;;  %v2490_v18 = vld [vmem:[#allocation2 + $0x95] sm:$0xff] }
 0x20b   : > { %vm3209_vm7 = vc.u32 %v3207_v45, %v3203_v15  ;;  %v5896_v15 = vadd.s32 32, %v5830_v38 }
 0x20c   : > { %v1542_v33 = vadd.f32 %v1498_v37, %v1232_v9  ;;  %v3224_v9 = vshrl.u32 %v5874_v59, 16  ;;  %v3227_v37 = vmul.u32 58254, %v3223_v63  ;;  %v3186_v6 = vshrl.u32 %v3185_v41, 4 }
 0x20d   : > { %v920_v22 = vpop.f32.mrf.mxu1  ;;  %v5880_v56 = vpop.f32.mrf.mxu0  ;;  %v3210_v24 = vsel %vm3209_vm7, 1, %v7109_v46  ;;  %v3226_v23 = vmul.u32 14564, %v3223_v63  ;;  %v2801_v63 = vld [vmem:[#allocation2 + $0x9e] sm:$0xff] }
 0x20e   : > { %v5877_v61 = vadd.f32 %v5847_v54, %v1542_v33  ;;  %5086 = vmatmul.msk.f32.gmra.mxu2 %vm269_vm1, %v2179_v29  ;;  %v5888_v54 = vsub.s32 %v5830_v38, %v3158_v10  ;;  %v3212_v33 = vadd.s32 %v3210_v24, %v3208_v5  ;;  %v3230_v10 = vshll.u32 %v3227_v37, 16 }
 0x20f   : > { %5124 = vmatmul.msk.f32.gmra.mxu3 %vm269_vm1, %v2489_v62  ;;  %v3228_v62 = vmul.u32 14564, %v3224_v9 }
 0x210   : > { %7110 = vst [vmem:[#allocation9_spill] sm:$0xff] %v5877_v61  ;;  %5049 = vmatmul.msk.f32.gmra.mxu1 %vm269_vm1, %v2178_v4  ;;  %5163 = vmatmul.msk.f32.gmra.mxu0 %vm269_vm1, %v2800_v27  ;;  %v3204_v4 = vshrl.u32 %v3199_v31, 16  ;;  %v3229_v27 = vmul.u32 58254, %v3224_v9  ;;  %vm4177_vm8 = vcmp.ne.s32.totalorder %v5888_v54, 0  ;;  %v3213_v45 = vadd.s32 %v3212_v33, %v3202_v11 }
 0x211   : > { %v1191_v52 = vpop.f32.mrf.mxu2  ;;  %v3232_v5 = vshll.u32 %v3228_v62, 16  ;;  %vm3234_vm9 = vc.u32 %v3226_v23, %v3230_v10  ;;  %vm4213_vm10 = vcmp.lt.s32.totalorder %v5888_v54, 0  ;;  %v3236_v11 = vadd.s32 %v3230_v10, %v3226_v23  ;;  %v5929_v10 = vld [vmem:[#allocation2 + $0x9c] sm:$0xff] }
 0x212   : > { %v1233_v16 = vadd.f32 %v1191_v52, %v918_v50  ;;  %v1501_v2 = vpop.f32.mrf.mxu3  ;;  %v3187_v50 = vmul.u32 18, %v3186_v6  ;;  %v3214_v52 = vadd.s32 %v3213_v45, %v3204_v4  ;;  %v3235_v9 = vsel %vm3234_vm9, 1, %v7109_v46  ;;  %vm5921_vm12 = vmand %vm4213_vm10, %vm4177_vm8 }
 0x213   : > { %v3252_v6 = vand.u32 65535, %v5896_v15  ;;  %vm3238_vm11 = vc.u32 %v3236_v11, %v3232_v5  ;;  %v3253_v4 = vshrl.u32 %v5896_v15, 16  ;;  %v5936_v11 = vadd.s32 40, %v5830_v38 }
 0x214   : > { %v1543_v21 = vadd.f32 %v1501_v2, %v1233_v16  ;;  %v5912_v16 = vadd.s32 18, %v5888_v54  ;;  %v3237_v2 = vadd.s32 %v3235_v9, %v3229_v27  ;;  %v3215_v33 = vshrl.u32 %v3214_v52, 4  ;;  %v2491_v52 = vld [vmem:[#allocation2 + $0x9d] sm:$0xff] }
 0x215   : > { %v923_v25 = vpop.f32.mrf.mxu1  ;;  %v5904_v31 = vpop.f32.mrf.mxu0  ;;  %v5931_v45 = vmul.u32 58254, %v3252_v6  ;;  %v3255_v9 = vmul.u32 14564, %v3252_v6 }
 0x216   : > { %v5900_v41 = vadd.f32 %v5863_v0, %v1543_v21  ;;  %5087 = vmatmul.msk.f32.gmra.mxu2 %vm269_vm1, %v5893_v44  ;;  %v921_v0 = vadd.f32 %v920_v22, %v5608_v30  ;;  %v3231_v21 = vshrl.u32 %v3227_v37, 16  ;;  %v5926_v22 = vsub.s32 %v5842_v12, %v3187_v50 }
 0x217   : > { %5125 = vmatmul.msk.f32.gmra.mxu3 %vm269_vm1, %v2490_v18  ;;  %v3233_v37 = vshrl.u32 %v3228_v62, 16  ;;  %v4321_v12 = vsel %vm5921_vm12, %v5912_v16, %v5888_v54  ;;  %v3216_v50 = vmul.u32 18, %v3215_v33  ;;  %v3259_v62 = vshll.u32 %v5931_v45, 16 }
 0x218   : > { %7111 = vst [vmem:[#allocation10_spill] sm:$0xff] %v5900_v41  ;;  %5050 = vmatmul.msk.f32.gmra.mxu1 %vm269_vm1, %v2179_v29  ;;  %5164 = vmatmul.msk.f32.gmra.mxu0 %vm269_vm1, %v2801_v63  ;;  %v3239_v29 = vsel %vm3238_vm11, 1, %v7109_v46  ;;  %v5933_v63 = vmul.u32 14564, %v3253_v4  ;;  %vm4178_vm13 = vcmp.ne.s32.totalorder %v5926_v22, 0  ;;  %vm4214_vm14 = vcmp.lt.s32.totalorder %v5926_v22, 0 }
 0x219   : > { %v1194_v24 = vpop.f32.mrf.mxu2  ;;  %v3241_v27 = vadd.s32 %v3239_v29, %v3237_v2  ;;  %v3281_v29 = vand.u32 65535, %v5936_v11  ;;  %v5955_v54 = vadd.s32 18, %v5926_v22  ;;  %v924_v33 = vadd.f32 %v923_v25, %v5616_v39  ;;  %vm5977_vm0 = vmand %vm4214_vm14, %vm4178_vm13 }
 0x21a   : > { %v1234_v18 = vadd.f32 %v1194_v24, %v921_v0  ;;  %v1504_v23 = vpop.f32.mrf.mxu3  ;;  %v3261_v16 = vshll.u32 %v5933_v63, 16  ;;  %vm3263_vm15 = vc.u32 %v3255_v9, %v3259_v62  ;;  %v3260_v25 = vshrl.u32 %v5931_v45, 16  ;;  %v2492_v45 = vld [vmem:[#allocation2 + $0xa5] sm:$0xff] }
 0x21b   : > { %v3242_v24 = vadd.s32 %v3241_v27, %v3231_v21  ;;  %v3265_v21 = vadd.s32 %v3259_v62, %v3255_v9  ;;  %v5964_v27 = vsub.s32 %v5858_v28, %v3216_v50  ;;  %v5971_v62 = vld [vmem:[#allocation2 + $0xa4] sm:$0xff]  ;;  %vm5987_vm3 = vcmp.lt.s32.totalorder %v4321_v12, 16  ;;  %v2803_v12 = vld [vmem:[#allocation2 + $0xae] sm:$0xff] }
 0x21c   : > { %v1544_v5 = vadd.f32 %v1504_v23, %v1234_v18  ;;  %v2802_v18 = vld [vmem:[#allocation2 + $0xa6] sm:$0xff]  ;;  %v3258_v23 = vmul.u32 58254, %v3253_v4  ;;  %v3282_v4 = vshrl.u32 %v5936_v11, 16  ;;  %vm4501_vm11 = vcmask 64512  }
 0x21d   : > { %v2022_v0 = vpop.f32.mrf.mxu1  ;;  %v5948_v6 = vpop.f32.mrf.mxu0  ;;  %vm3267_vm2 = vc.u32 %v3265_v21, %v3261_v16  ;;  %v5996_v21 = vadd.s32 48, %v5830_v38  ;;  %vm4179_vm5 = vcmp.ne.s32.totalorder %v5964_v27, 0  ;;  %vm4215_vm6 = vcmp.lt.s32.totalorder %v5964_v27, 0 }
 0x21e   : > { %v5944_v2 = vadd.f32 %v5880_v56, %v1544_v5  ;;  %5088 = vmatmul.msk.f32.gmra.mxu2 %vm269_vm1, %v5929_v10  ;;  %v3243_v56 = vadd.s32 %v3242_v24, %v3233_v37  ;;  %v3264_v37 = vsel %vm3263_vm15, 1, %v7109_v46  ;;  %vm6039_vm10 = vmand %vm4215_vm6, %vm4179_vm5 }
 0x21f   : > { %5126 = vmatmul.msk.f32.gmra.mxu3 %vm269_vm1, %v2491_v52  ;;  %v5967_v52 = vmul.u32 58254, %v3281_v29  ;;  %v3266_v9 = vadd.s32 %v3264_v37, %v3258_v23  ;;  %v3287_v23 = vmul.u32 58254, %v3282_v4 }
 0x220   : > { %7114 = vst [vmem:[#allocation11_spill] sm:$0xff] %v5944_v2  ;;  %5051 = vmatmul.msk.f32.gmra.mxu1 %vm269_vm1, %v5893_v44  ;;  %5165 = vmatmul.msk.f32.gmra.mxu0 %vm269_vm1, %v2802_v18  ;;  %v3244_v5 = vshrl.u32 %v3243_v56, 4  ;;  %v3262_v44 = vshrl.u32 %v5933_v63, 16  ;;  %v3284_v18 = vmul.u32 14564, %v3281_v29  ;;  %v5981_v56 = vmul.u32 14564, %v3282_v4 }
 0x221   : > { %v1197_v30 = vpop.f32.mrf.mxu2  ;;  %v3268_v63 = vsel %vm3267_vm2, 1, %v7109_v46 }
 0x222   : > { %v1235_v24 = vadd.f32 %v1197_v30, %v924_v33  ;;  %v1507_v39 = vpop.f32.mrf.mxu3  ;;  %v3245_v50 = vmul.u32 18, %v3244_v5  ;;  %v3288_v30 = vshll.u32 %v5967_v52, 16  ;;  %v3270_v16 = vadd.s32 %v3268_v63, %v3266_v9 }
 0x223   : > { %v3290_v29 = vshll.u32 %v5981_v56, 16 }
 0x224   : > { %v1545_v33 = vadd.f32 %v1507_v39, %v1235_v24  ;;  %v5992_v41 = vsub.s32 %v5874_v59, %v3245_v50  ;;  %v4322_v59 = vsel %vm5977_vm0, %v5955_v54, %v5926_v22  ;;  %vm3292_vm4 = vc.u32 %v3284_v18, %v3288_v30 }
 0x225   : > { %v5985_v37 = vpop.f32.mrf.mxu1  ;;  %v6003_v4 = vpop.f32.mrf.mxu0  ;;  %v3294_v24 = vadd.s32 %v3288_v30, %v3284_v18  ;;  %v2130_v39 = vadd.f32 %v2022_v0, %v5623_v7  ;;  %v3293_v22 = vsel %vm3292_vm4, 1, %v7109_v46  ;;  %v3310_v54 = vand.u32 65535, %v5996_v21 }
 0x226   : > { %v5999_v5 = vadd.f32 %v5904_v31, %v1545_v33  ;;  %5089 = vmatmul.msk.f32.gmra.mxu2 %vm269_vm1, %v5971_v62  ;;  %v3271_v31 = vadd.s32 %v3270_v16, %v3260_v25  ;;  %vm4180_vm7 = vcmp.ne.s32.totalorder %v5992_v41, 0  ;;  %v3289_v0 = vshrl.u32 %v5967_v52, 16 }
 0x227   : > { %5127 = vmatmul.msk.f32.gmra.mxu3 %vm269_vm1, %v2492_v45  ;;  %vm3296_vm8 = vc.u32 %v3294_v24, %v3290_v29  ;;  %v3295_v28 = vadd.s32 %v3293_v22, %v3287_v23  ;;  %vm4216_vm9 = vcmp.lt.s32.totalorder %v5992_v41, 0  ;;  %v3311_v33 = vshrl.u32 %v5996_v21, 16  ;;  %v6025_v45 = vld [vmem:[#allocation2 + $0xac] sm:$0xff] }
 0x228   : > { %7119 = vst [vmem:[#allocation12_spill] sm:$0xff] %v5999_v5  ;;  %5052 = vmatmul.msk.f32.gmra.mxu1 %vm269_vm1, %v5929_v10  ;;  %5166 = vmatmul.msk.f32.gmra.mxu0 %vm269_vm1, %v2803_v12  ;;  %v3272_v7 = vadd.s32 %v3271_v31, %v3262_v44  ;;  %v3297_v50 = vsel %vm3296_vm8, 1, %v7109_v46  ;;  %v3291_v10 = vshrl.u32 %v5981_v56, 16  ;;  %v3313_v16 = vmul.u32 14564, %v3310_v54  ;;  %v2493_v23 = vld [vmem:[#allocation2 + $0xad] sm:$0xff]  ;;  %vm6061_vm12 = vmand %vm4216_vm9, %vm4180_vm7 }
 0x229   : > { %v2332_v9 = vpop.f32.mrf.mxu2  ;;  %v3299_v30 = vadd.s32 %v3297_v50, %v3295_v28  ;;  %v6027_v44 = vmul.u32 58254, %v3310_v54  ;;  %v4287_v29 = vadd.s32 18, %v5964_v27  ;;  %v6031_v12 = vadd.s32 18, %v5992_v41 }
 0x22a   : > { %v2440_v25 = vadd.f32 %v2332_v9, %v2130_v39  ;;  %v2642_v18 = vpop.f32.mrf.mxu3  ;;  %v3273_v63 = vshrl.u32 %v3272_v7, 4  ;;  %v6033_v24 = vmul.u32 14564, %v3311_v33  ;;  %v6045_v9 = vadd.s32 56, %v5830_v38 }
 0x22b   : > { %v3300_v22 = vadd.s32 %v3299_v30, %v3289_v0  ;;  %v3317_v54 = vshll.u32 %v6027_v44, 16  ;;  %v2804_v0 = vld [vmem:[#allocation2 + $0xb6] sm:$0xff]  ;;  %v2131_v30 = vadd.f32 %v5985_v37, %v5630_v32  ;;  %vm6071_vm14 = vcmp.lt.s32.totalorder %v4322_v59, 16 }
 0x22c   : > { %v2750_v52 = vadd.f32 %v2642_v18, %v2440_v25  ;;  %v3274_v31 = vmul.u32 18, %v3273_v63  ;;  %v3316_v25 = vmul.u32 58254, %v3311_v33  ;;  %v3319_v18 = vshll.u32 %v6033_v24, 16 }
 0x22d   : > { %v2028_v39 = vpop.f32.mrf.mxu1  ;;  %v6055_v28 = vpop.f32.mrf.mxu0  ;;  %vm3321_vm13 = vc.u32 %v3313_v16, %v3317_v54  ;;  %v3323_v63 = vadd.s32 %v3317_v54, %v3313_v16  ;;  %v4323_v16 = vsel %vm6039_vm10, %v4287_v29, %v5964_v27  ;;  %v3340_v56 = vshrl.u32 %v6045_v9, 16  ;;  %v6095_v29 = vld [vmem:[#allocation2 + $0xb4] sm:$0xff] }
 0x22e   : > { %v3060_v7 = vadd.f32 %v5948_v6, %v2750_v52  ;;  %5090 = vmatmul.msk.f32.gmra.mxu2 %vm269_vm1, %v6025_v45  ;;  %v3301_v6 = vadd.s32 %v3300_v22, %v3291_v10  ;;  %v3322_v33 = vsel %vm3321_vm13, 1, %v7109_v46  ;;  %v6089_v2 = vsub.s32 %v5896_v15, %v3274_v31  ;;  %v2494_v31 = vld [vmem:[#allocation2 + $0xb5] sm:$0xff] }
 0x22f   : > { %5128 = vmatmul.msk.f32.gmra.mxu3 %vm269_vm1, %v2493_v23  ;;  %v2132_v59 = vadd.f32 %v2028_v39, %v5637_v55  ;;  %v3318_v54 = vshrl.u32 %v6027_v44, 16  ;;  %vm3325_vm15 = vc.u32 %v3323_v63, %v3319_v18  ;;  %vm6099_vm0 = vcmp.lt.s32.totalorder %v4323_v16, 16  ;;  %v2805_v18 = vld [vmem:[#allocation2 + $0xbe] sm:$0xff] }
 0x230   : > { %v4465_v52 = vsel %vm5987_vm3, %v3060_v7, 0.0  ;;  %5053 = vmatmul.msk.f32.gmra.mxu1 %vm269_vm1, %v5971_v62  ;;  %5167 = vmatmul.msk.f32.gmra.mxu0 %vm269_vm1, %v2804_v0  ;;  %v3339_v62 = vand.u32 65535, %v6045_v9  ;;  %v3302_v22 = vshrl.u32 %v3301_v6, 4  ;;  %v3324_v7 = vadd.s32 %v3322_v33, %v3316_v25 }
 0x231   : > { %4695 = vst.msk [vmem:[%s6050_s22] sm:$0xff] %vm4501_vm11, %v4465_v52  ;;  %v2335_v10 = vpop.f32.mrf.mxu2  ;;  %v4502_v27 = vsel %vm4501_vm11, %v4465_v52, 0.0  ;;  %v4581_v0 = vmul.f32 %v4465_v52, %v4465_v52  ;;  %vm4181_vm2 = vcmp.ne.s32.totalorder %v6089_v2, 0  ;;  %v3320_v39 = vshrl.u32 %v6033_v24, 16 }
 0x232   : > { %v2441_v37 = vadd.f32 %v2335_v10, %v2131_v30  ;;  %v2645_v23 = vpop.f32.mrf.mxu3  ;;  %v3303_v32 = vmul.u32 18, %v3302_v22  ;;  %v3326_v30 = vsel %vm3325_vm15, 1, %v7109_v46  ;;  %v6105_v61 = vmul.u32 58254, %v3339_v62 }
 0x233   : > { %v3328_v6 = vadd.s32 %v3326_v30, %v3324_v7  ;;  %vm4217_vm3 = vcmp.lt.s32.totalorder %v6089_v2, 0  ;;  %v6116_v52 = vmul.u32 14564, %v3340_v56  ;;  %v6120_v24 = vadd.s32 18, %v6089_v2  ;;  %v6139_v30 = vld [vmem:[#allocation2 + $0xbc] sm:$0xff] }
 0x234   : > { %v2751_v15 = vadd.f32 %v2645_v23, %v2441_v37  ;;  %v6114_v63 = vsub.s32 %v5936_v11, %v3303_v32  ;;  %v3342_v33 = vmul.u32 14564, %v3339_v62  ;;  %v3346_v16 = vshll.u32 %v6105_v61, 16  ;;  %vm6145_vm6 = vmand %vm4217_vm3, %vm4181_vm2 }
 0x235   : > { %v2031_v10 = vpop.f32.mrf.mxu1  ;;  %v6110_v25 = vpop.f32.mrf.mxu0  ;;  %v3345_v11 = vmul.u32 58254, %v3340_v56  ;;  %v6129_v32 = vadd.s32 64, %v5830_v38  ;;  %v3348_v56 = vshll.u32 %v6116_v52, 16  ;;  %v3347_v50 = vshrl.u32 %v6105_v61, 16 }
 0x236   : > { %v3061_v44 = vadd.f32 %v6003_v4, %v2751_v15  ;;  %5091 = vmatmul.msk.f32.gmra.mxu2 %vm269_vm1, %v6095_v29  ;;  %v3329_v4 = vadd.s32 %v3328_v6, %v3318_v54  ;;  %vm4182_vm4 = vcmp.ne.s32.totalorder %v6114_v63, 0  ;;  %vm4218_vm5 = vcmp.lt.s32.totalorder %v6114_v63, 0 }
 0x237   : > { %5129 = vmatmul.msk.f32.gmra.mxu3 %vm269_vm1, %v2494_v31  ;;  %v4617_v54 = vsel %vm4501_vm11, %v4581_v0, 0.0  ;;  %vm3350_vm7 = vc.u32 %v3342_v33, %v3346_v16  ;;  %vm6156_vm8 = vmand %vm4218_vm5, %vm4182_vm4  ;;  %v3349_v61 = vshrl.u32 %v6116_v52, 16  ;;  %v6206_v52 = vadd.s32 72, %v5830_v38 }
 0x238   : > { %v4466_v37 = vsel %vm6071_vm14, %v3061_v44, 0.0  ;;  %5054 = vmatmul.msk.f32.gmra.mxu1 %vm269_vm1, %v6025_v45  ;;  %5168 = vmatmul.msk.f32.gmra.mxu0 %vm269_vm1, %v2805_v18  ;;  %v3330_v5 = vadd.s32 %v3329_v4, %v3320_v39  ;;  %v6150_v39 = vadd.s32 18, %v6114_v63  ;;  %v2495_v44 = vld [vmem:[#allocation2 + $0xbd] sm:$0xff]  ;;  %v3351_v4 = vsel %vm3350_vm7, 1, %v7109_v46 }
 0x239   : > { %v4503_v23 = vsel %vm4501_vm11, %v4466_v37, 0.0  ;;  %v4582_v22 = vmul.f32 %v4466_v37, %v4466_v37  ;;  %4696 = vst.msk [vmem:[%s6050_s22 + $0x8] sm:$0xff] %vm4501_vm11, %v4466_v37  ;;  %v2338_v62 = vpop.f32.mrf.mxu2  ;;  %v3352_v37 = vadd.s32 %v3346_v16, %v3342_v33  ;;  %v2133_v16 = vadd.f32 %v2031_v10, %v5644_v14 }
 0x23a   : > { %v4504_v45 = vadd.f32 %v4503_v23, %v4502_v27  ;;  %v2442_v7 = vadd.f32 %v2338_v62, %v2132_v59  ;;  %v2648_v15 = vpop.f32.mrf.mxu3  ;;  %v3331_v27 = vshrl.u32 %v3330_v5, 4 }
 0x23b   : > { %v4618_v31 = vsel %vm4501_vm11, %v4582_v22, 0.0  ;;  %v7132_v22 = vsel %vm6061_vm12, %v6031_v12, %v5992_v41  ;;  %v4325_v41 = vsel %vm6145_vm6, %v6120_v24, %v6089_v2  ;;  %v2806_v12 = vld [vmem:[#allocation2 + $0xc6] sm:$0xff]  ;;  %vm3354_vm10 = vc.u32 %v3352_v37, %v3348_v56 }
 0x23c   : > { %v4619_v59 = vadd.f32 %v4618_v31, %v4617_v54  ;;  %v2752_v0 = vadd.f32 %v2648_v15, %v2442_v7  ;;  %vm6166_vm9 = vcmp.lt.s32.totalorder %v7132_v22, 16  ;;  %v3332_v5 = vmul.u32 18, %v3331_v27 }
 0x23d   : > { %v2034_v23 = vpop.f32.mrf.mxu1  ;;  %v3353_v54 = vadd.s32 %v3351_v4, %v3345_v11  ;;  %v3368_v7 = vand.u32 65535, %v6129_v32  ;;  %v3369_v15 = vshrl.u32 %v6129_v32, 16  ;;  %v6175_v33 = vpop.f32.mrf.mxu0  ;;  %v3355_v11 = vsel %vm3354_vm10, 1, %v7109_v46 }
 0x23e   : > { %v3062_v31 = vadd.f32 %v6055_v28, %v2752_v0  ;;  %5092 = vmatmul.msk.f32.gmra.mxu2 %vm269_vm1, %v6139_v30  ;;  %v6203_v0 = vsub.s32 %v5996_v21, %v3332_v5  ;;  %v2134_v21 = vadd.f32 %v2034_v23, %v5651_v36  ;;  %vm6214_vm12 = vcmp.lt.s32.totalorder %v4325_v41, 16 }
 0x23f   : > { %5130 = vmatmul.msk.f32.gmra.mxu3 %vm269_vm1, %v2495_v44  ;;  %v6189_v27 = vmul.u32 58254, %v3368_v7  ;;  %v3357_v14 = vadd.s32 %v3355_v11, %v3353_v54  ;;  %v6196_v10 = vmul.u32 14564, %v3369_v15  ;;  %v3371_v55 = vmul.u32 14564, %v3368_v7  ;;  %v6209_v54 = vld [vmem:[#allocation2 + $0xc4] sm:$0xff] }
 0x240   : > { %v4467_v2 = vsel %vm6099_vm0, %v3062_v31, 0.0  ;;  %5055 = vmatmul.msk.f32.gmra.mxu1 %vm269_vm1, %v6095_v29  ;;  %5169 = vmatmul.msk.f32.gmra.mxu0 %vm269_vm1, %v2806_v12  ;;  %v3374_v31 = vmul.u32 58254, %v3369_v15  ;;  %vm4183_vm13 = vcmp.ne.s32.totalorder %v6203_v0, 0  ;;  %vm4219_vm14 = vcmp.lt.s32.totalorder %v6203_v0, 0 }
 0x241   : > { %v4505_v24 = vsel %vm4501_vm11, %v4467_v2, 0.0  ;;  %v4583_v56 = vmul.f32 %v4467_v2, %v4467_v2  ;;  %4697 = vst.msk [vmem:[%s6050_s22 + $0x10] sm:$0xff] %vm4501_vm11, %v4467_v2  ;;  %v2341_v6 = vpop.f32.mrf.mxu2  ;;  %v3358_v37 = vadd.s32 %v3357_v14, %v3347_v50  ;;  %v3375_v11 = vshll.u32 %v6189_v27, 16  ;;  %vm6246_vm2 = vmand %vm4219_vm14, %vm4183_vm13 }
 0x242   : > { %v4506_v44 = vadd.f32 %v4505_v24, %v4504_v45  ;;  %v2443_v4 = vadd.f32 %v2341_v6, %v2133_v16  ;;  %v2651_v29 = vpop.f32.mrf.mxu3  ;;  %v3377_v12 = vshll.u32 %v6196_v10, 16  ;;  %v2496_v45 = vld [vmem:[#allocation2 + $0xc5] sm:$0xff]  ;;  %v3376_v41 = vshrl.u32 %v6189_v27, 16 }
 0x243   : > { %v4620_v22 = vsel %vm4501_vm11, %v4583_v56, 0.0  ;;  %v3359_v7 = vadd.s32 %v3358_v37, %v3349_v61  ;;  %vm3379_vm15 = vc.u32 %v3371_v55, %v3375_v11  ;;  %v3381_v15 = vadd.s32 %v3375_v11, %v3371_v55 }
 0x244   : > { %v4621_v2 = vadd.f32 %v4620_v22, %v4619_v59  ;;  %v2753_v5 = vadd.f32 %v2651_v29, %v2443_v4  ;;  %v2807_v59 = vld [vmem:[#allocation2 + $0xce] sm:$0xff]  ;;  %v3380_v61 = vsel %vm3379_vm15, 1, %v7109_v46  ;;  %v3397_v56 = vand.u32 65535, %v6206_v52 }
 0x245   : > { %v2037_v16 = vpop.f32.mrf.mxu1  ;;  %v6223_v36 = vpop.f32.mrf.mxu0  ;;  %v3360_v23 = vshrl.u32 %v3359_v7, 4  ;;  %v3382_v24 = vadd.s32 %v3380_v61, %v3374_v31  ;;  %vm3383_vm0 = vc.u32 %v3381_v15, %v3377_v12  ;;  %v6235_v55 = vadd.s32 18, %v6203_v0 }
 0x246   : > { %v3063_v14 = vadd.f32 %v6110_v25, %v2753_v5  ;;  %5093 = vmatmul.msk.f32.gmra.mxu2 %vm269_vm1, %v6209_v54  ;;  %v3398_v25 = vshrl.u32 %v6206_v52, 16  ;;  %v3384_v4 = vsel %vm3383_vm0, 1, %v7109_v46  ;;  %v3378_v62 = vshrl.u32 %v6196_v10, 16  ;;  %v2497_v10 = vld [vmem:[#allocation2 + $0xcd] sm:$0xff] }
 0x247   : > { %5131 = vmatmul.msk.f32.gmra.mxu3 %vm269_vm1, %v2496_v45  ;;  %v3361_v27 = vmul.u32 18, %v3360_v23  ;;  %v3386_v31 = vadd.s32 %v3384_v4, %v3382_v24  ;;  %v6254_v7 = vmul.u32 58254, %v3397_v56  ;;  %v3400_v23 = vmul.u32 14564, %v3397_v56 }
 0x248   : > { %v4468_v6 = vsel %vm6166_vm9, %v3063_v14, 0.0  ;;  %5056 = vmatmul.msk.f32.gmra.mxu1 %vm269_vm1, %v6139_v30  ;;  %5170 = vmatmul.msk.f32.gmra.mxu0 %vm269_vm1, %v2807_v59  ;;  %v6257_v14 = vld [vmem:[#allocation2 + $0xcc] sm:$0xff]  ;;  %v6259_v61 = vmul.u32 14564, %v3398_v25 }
 0x249   : > { %v4507_v29 = vsel %vm4501_vm11, %v4468_v6, 0.0  ;;  %v4584_v37 = vmul.f32 %v4468_v6, %v4468_v6  ;;  %4698 = vst.msk [vmem:[%s6050_s22 + $0x18] sm:$0xff] %vm4501_vm11, %v4468_v6  ;;  %v2344_v22 = vpop.f32.mrf.mxu2  ;;  %v6252_v45 = vsub.s32 %v6045_v9, %v3361_v27  ;;  %v3387_v59 = vadd.s32 %v3386_v31, %v3376_v41 }
 0x24a   : > { %v4508_v11 = vadd.f32 %v4507_v29, %v4506_v44  ;;  %v2444_v12 = vadd.f32 %v2344_v22, %v2134_v21  ;;  %v2654_v5 = vpop.f32.mrf.mxu3  ;;  %v4327_v44 = vsel %vm6246_vm2, %v6235_v55, %v6203_v0  ;;  %v6266_v9 = vadd.s32 80, %v5830_v38 }
 0x24b   : > { %v4622_v15 = vsel %vm4501_vm11, %v4584_v37, 0.0  ;;  %v2135_v21 = vadd.f32 %v2037_v16, %v5658_v60  ;;  %v7139_v41 = vsel %vm6156_vm8, %v6150_v39, %v6114_v63  ;;  %v3388_v56 = vadd.s32 %v3387_v59, %v3378_v62  ;;  %v2808_v16 = vld [vmem:[#allocation2 + $0xd6] sm:$0xff] }
 0x24c   : > { %v4623_v6 = vadd.f32 %v4622_v15, %v4621_v2  ;;  %v2754_v28 = vadd.f32 %v2654_v5, %v2444_v12  ;;  %vm6274_vm3 = vcmp.lt.s32.totalorder %v7139_v41, 16  ;;  %v3403_v27 = vmul.u32 58254, %v3398_v25  ;;  %v6304_v15 = vld [vmem:[#allocation2 + $0xd4] sm:$0xff] }
 0x24d   : > { %v2040_v24 = vpop.f32.mrf.mxu1  ;;  %v3404_v4 = vshll.u32 %v6254_v7, 16  ;;  %v6282_v60 = vpop.f32.mrf.mxu0  ;;  %vm4184_vm4 = vcmp.ne.s32.totalorder %v6252_v45, 0  ;;  %vm4220_vm5 = vcmp.lt.s32.totalorder %v6252_v45, 0  ;;  %v3406_v63 = vshll.u32 %v6259_v61, 16 }
 0x24e   : > { %v3064_v0 = vadd.f32 %v6175_v33, %v2754_v28  ;;  %5094 = vmatmul.msk.f32.gmra.mxu2 %vm269_vm1, %v6257_v14  ;;  %v6289_v39 = vadd.s32 18, %v6252_v45  ;;  %v3389_v18 = vshrl.u32 %v3388_v56, 4  ;;  %v3405_v25 = vshrl.u32 %v6254_v7, 16  ;;  %vm6310_vm8 = vmand %vm4220_vm5, %vm4184_vm4  ;;  %v2498_v56 = vld [vmem:[#allocation2 + $0xd5] sm:$0xff] }
 0x24f   : > { %5132 = vmatmul.msk.f32.gmra.mxu3 %vm269_vm1, %v2497_v10  ;;  %vm3408_vm6 = vc.u32 %v3400_v23, %v3404_v4  ;;  %v3410_v33 = vadd.s32 %v3404_v4, %v3400_v23  ;;  %v3426_v29 = vand.u32 65535, %v6266_v9  ;;  %vm6320_vm9 = vcmp.lt.s32.totalorder %v4327_v44, 16 }
 0x250   : > { %v4469_v28 = vsel %vm6214_vm12, %v3064_v0, 0.0  ;;  %5057 = vmatmul.msk.f32.gmra.mxu1 %vm269_vm1, %v6209_v54  ;;  %v3409_v55 = vsel %vm3408_vm6, 1, %v7109_v46  ;;  %5171 = vmatmul.msk.f32.gmra.mxu0 %vm269_vm1, %v2808_v16  ;;  %v3390_v62 = vmul.u32 18, %v3389_v18  ;;  %v3427_v54 = vshrl.u32 %v6266_v9, 16 }
 0x251   : > { %v4509_v37 = vsel %vm4501_vm11, %v4469_v28, 0.0  ;;  %v4585_v22 = vmul.f32 %v4469_v28, %v4469_v28  ;;  %4699 = vst.msk [vmem:[%s6050_s22 + $0x20] sm:$0xff] %vm4501_vm11, %v4469_v28  ;;  %v2347_v30 = vpop.f32.mrf.mxu2  ;;  %v3411_v50 = vadd.s32 %v3409_v55, %v3403_v27  ;;  %vm3412_vm7 = vc.u32 %v3410_v33, %v3406_v63 }
 0x252   : > { %v4510_v31 = vadd.f32 %v4509_v37, %v4508_v11  ;;  %v2445_v12 = vadd.f32 %v2347_v30, %v2135_v21  ;;  %v2657_v5 = vpop.f32.mrf.mxu3  ;;  %v6315_v23 = vsub.s32 %v6129_v32, %v3390_v62  ;;  %v3407_v11 = vshrl.u32 %v6259_v61, 16 }
 0x253   : > { %v4624_v7 = vsel %vm4501_vm11, %v4585_v22, 0.0  ;;  %v3413_v10 = vsel %vm3412_vm7, 1, %v7109_v46  ;;  %v3430_v4 = vmul.u32 58254, %v3426_v29  ;;  %v2136_v0 = vadd.f32 %v2040_v24, %v5665_v19 }
 0x254   : > { %v4625_v21 = vadd.f32 %v4624_v7, %v4623_v6  ;;  %v2755_v41 = vadd.f32 %v2657_v5, %v2445_v12  ;;  %v3415_v27 = vadd.s32 %v3413_v10, %v3411_v50  ;;  %v3429_v18 = vmul.u32 14564, %v3426_v29  ;;  %v2809_v6 = vld [vmem:[#allocation2 + $0xde] sm:$0xff] }
 0x255   : > { %v2043_v16 = vpop.f32.mrf.mxu1  ;;  %v6324_v33 = vmul.u32 14564, %v3427_v54  ;;  %v6329_v61 = vpop.f32.mrf.mxu0  ;;  %v4328_v19 = vsel %vm6310_vm8, %v6289_v39, %v6252_v45  ;;  %vm4185_vm10 = vcmp.ne.s32.totalorder %v6315_v23, 0  ;;  %vm4221_vm12 = vcmp.lt.s32.totalorder %v6315_v23, 0 }
 0x256   : > { %v3065_v32 = vadd.f32 %v6223_v36, %v2755_v41  ;;  %5095 = vmatmul.msk.f32.gmra.mxu2 %vm269_vm1, %v6304_v15  ;;  %v3416_v44 = vadd.s32 %v3415_v27, %v3405_v25  ;;  %v3432_v36 = vmul.u32 58254, %v3427_v54  ;;  %v3433_v24 = vshll.u32 %v3430_v4, 16  ;;  %v6352_v54 = vld [vmem:[#allocation2 + $0xdc] sm:$0xff]  ;;  %vm6358_vm14 = vmand %vm4221_vm12, %vm4185_vm10 }
 0x257   : > { %5133 = vmatmul.msk.f32.gmra.mxu3 %vm269_vm1, %v2498_v56  ;;  %v3435_v28 = vshll.u32 %v6324_v33, 16  ;;  %v6344_v45 = vadd.s32 18, %v6315_v23  ;;  %v3434_v29 = vshrl.u32 %v3430_v4, 16  ;;  %v2499_v41 = vld [vmem:[#allocation2 + $0xdd] sm:$0xff]  ;;  %vm6366_vm0 = vcmp.lt.s32.totalorder %v4328_v19, 16  ;;  %v2810_v19 = vld [vmem:[#allocation2 + $0xe6] sm:$0xff] }
 0x258   : > { %v4470_v55 = vsel %vm6274_vm3, %v3065_v32, 0.0  ;;  %5058 = vmatmul.msk.f32.gmra.mxu1 %vm269_vm1, %v6257_v14  ;;  %v3417_v39 = vadd.s32 %v3416_v44, %v3407_v11  ;;  %5172 = vmatmul.msk.f32.gmra.mxu0 %vm269_vm1, %v2809_v6  ;;  %vm3437_vm13 = vc.u32 %v3429_v18, %v3433_v24  ;;  %v3439_v30 = vadd.s32 %v3433_v24, %v3429_v18 }
 0x259   : > { %v4511_v25 = vsel %vm4501_vm11, %v4470_v55, 0.0  ;;  %v4586_v37 = vmul.f32 %v4470_v55, %v4470_v55  ;;  %4700 = vst.msk [vmem:[%s6050_s22 + $0x28] sm:$0xff] %vm4501_vm11, %v4470_v55  ;;  %v2350_v22 = vpop.f32.mrf.mxu2  ;;  %v3438_v14 = vsel %vm3437_vm13, 1, %v7109_v46  ;;  %v3436_v18 = vshrl.u32 %v6324_v33, 16 }
 0x25a   : > { %v4512_v2 = vadd.f32 %v4511_v25, %v4510_v31  ;;  %v2446_v62 = vadd.f32 %v2350_v22, %v2136_v0  ;;  %v2660_v50 = vpop.f32.mrf.mxu3  ;;  %v3418_v12 = vshrl.u32 %v3417_v39, 4  ;;  %v3440_v59 = vadd.s32 %v3438_v14, %v3432_v36 }
 0x25b   : > { %v4626_v5 = vsel %vm4501_vm11, %v4586_v37, 0.0  ;;  %vm3441_vm15 = vc.u32 %v3439_v30, %v3435_v28  ;;  %v6363_v31 = vadd.s32 88, %v5830_v38  ;;  %v2137_v36 = vadd.f32 %v2043_v16, %v5672_v43 }
 0x25c   : > { %v4627_v11 = vadd.f32 %v4626_v5, %v4625_v21  ;;  %v2756_v10 = vadd.f32 %v2660_v50, %v2446_v62  ;;  %v3419_v56 = vmul.u32 18, %v3418_v12  ;;  %v3442_v27 = vsel %vm3441_vm15, 1, %v7109_v46 }
 0x25d   : > { %v2046_v4 = vpop.f32.mrf.mxu1  ;;  %v3444_v32 = vadd.s32 %v3442_v27, %v3440_v59  ;;  %v3455_v6 = vand.u32 65535, %v6363_v31  ;;  %v3456_v44 = vshrl.u32 %v6363_v31, 16  ;;  %v6377_v24 = vpop.f32.mrf.mxu0  ;;  %v4329_v33 = vsel %vm6358_vm14, %v6344_v45, %v6315_v23  ;;  %v6414_v59 = vld [vmem:[#allocation2 + $0xe4] sm:$0xff] }
 0x25e   : > { %v3066_v21 = vadd.f32 %v6282_v60, %v2756_v10  ;;  %5096 = vmatmul.msk.f32.gmra.mxu2 %vm269_vm1, %v6352_v54  ;;  %v6384_v28 = vsub.s32 %v6206_v52, %v3419_v56  ;;  %v6392_v55 = vadd.s32 96, %v5830_v38  ;;  %v2138_v50 = vadd.f32 %v2046_v4, %v5679_v3 }
 0x25f   : > { %5134 = vmatmul.msk.f32.gmra.mxu3 %vm269_vm1, %v2499_v41  ;;  %v3445_v43 = vadd.s32 %v3444_v32, %v3434_v29  ;;  %v6387_v16 = vmul.u32 58254, %v3455_v6  ;;  %v6389_v60 = vmul.u32 14564, %v3456_v44  ;;  %v3458_v22 = vmul.u32 14564, %v3455_v6 }
 0x260   : > { %v4471_v39 = vsel %vm6320_vm9, %v3066_v21, 0.0  ;;  %5059 = vmatmul.msk.f32.gmra.mxu1 %vm269_vm1, %v6304_v15  ;;  %vm4186_vm2 = vcmp.ne.s32.totalorder %v6384_v28, 0  ;;  %vm4222_vm3 = vcmp.lt.s32.totalorder %v6384_v28, 0  ;;  %v6401_v52 = vadd.s32 18, %v6384_v28  ;;  %5173 = vmatmul.msk.f32.gmra.mxu0 %vm269_vm1, %v2810_v19 }
 0x261   : > { %v4513_v29 = vsel %vm4501_vm11, %v4471_v39, 0.0  ;;  %v4587_v25 = vmul.f32 %v4471_v39, %v4471_v39  ;;  %4701 = vst.msk [vmem:[%s6050_s22 + $0x30] sm:$0xff] %vm4501_vm11, %v4471_v39  ;;  %v2353_v37 = vpop.f32.mrf.mxu2  ;;  %vm6407_vm4 = vmand %vm4222_vm3, %vm4186_vm2  ;;  %v3446_v15 = vadd.s32 %v3445_v43, %v3436_v18  ;;  %v3462_v14 = vshll.u32 %v6387_v16, 16 }
 0x262   : > { %v4514_v30 = vadd.f32 %v4513_v29, %v4512_v2  ;;  %v2447_v62 = vadd.f32 %v2353_v37, %v2137_v36  ;;  %v2663_v12 = vpop.f32.mrf.mxu3  ;;  %v4330_v10 = vsel %vm6407_vm4, %v6401_v52, %v6384_v28  ;;  %v3461_v56 = vmul.u32 58254, %v3456_v44  ;;  %v2500_v2 = vld [vmem:[#allocation2 + $0xe5] sm:$0xff] }
 0x263   : > { %v4628_v5 = vsel %vm4501_vm11, %v4587_v25, 0.0  ;;  %v3447_v41 = vshrl.u32 %v3446_v15, 4  ;;  %v3463_v32 = vshrl.u32 %v6387_v16, 16  ;;  %v3464_v3 = vshll.u32 %v6389_v60, 16 }
 0x264   : > { %v4629_v27 = vadd.f32 %v4628_v5, %v4627_v11  ;;  %v2757_v18 = vadd.f32 %v2663_v12, %v2447_v62  ;;  %vm3466_vm5 = vc.u32 %v3458_v22, %v3462_v14  ;;  %v3468_v36 = vadd.s32 %v3462_v14, %v3458_v22  ;;  %v2811_v11 = vld [vmem:[#allocation2 + $0xee] sm:$0xff] }
 0x265   : > { %v2049_v4 = vpop.f32.mrf.mxu1  ;;  %v3448_v6 = vmul.u32 18, %v3447_v41  ;;  %v3484_v21 = vand.u32 65535, %v6392_v55  ;;  %v6426_v28 = vpop.f32.mrf.mxu0  ;;  %v3465_v44 = vshrl.u32 %v6389_v60, 16  ;;  %v3467_v43 = vsel %vm3466_vm5, 1, %v7109_v46  ;;  %v6452_v5 = vld [vmem:[#allocation2 + $0xec] sm:$0xff] }
 0x266   : > { %v3067_v19 = vadd.f32 %v6329_v61, %v2757_v18  ;;  %5097 = vmatmul.msk.f32.gmra.mxu2 %vm269_vm1, %v6414_v59  ;;  %v3485_v16 = vshrl.u32 %v6392_v55, 16  ;;  %v3469_v52 = vadd.s32 %v3467_v43, %v3461_v56  ;;  %vm3470_vm6 = vc.u32 %v3468_v36, %v3464_v3 }
 0x267   : > { %5135 = vmatmul.msk.f32.gmra.mxu3 %vm269_vm1, %v2500_v2  ;;  %v6433_v39 = vsub.s32 %v6266_v9, %v3448_v6  ;;  %v3487_v61 = vmul.u32 14564, %v3484_v21  ;;  %v3471_v60 = vsel %vm3470_vm6, 1, %v7109_v46  ;;  %v6440_v25 = vmul.u32 58254, %v3484_v21  ;;  %v2501_v6 = vld [vmem:[#allocation2 + $0xed] sm:$0xff] }
 0x268   : > { %v4472_v29 = vsel %vm6366_vm0, %v3067_v19, 0.0  ;;  %5060 = vmatmul.msk.f32.gmra.mxu1 %vm269_vm1, %v6352_v54  ;;  %v6442_v37 = vmul.u32 14564, %v3485_v16  ;;  %5174 = vmatmul.msk.f32.gmra.mxu0 %vm269_vm1, %v2811_v11  ;;  %v3473_v12 = vadd.s32 %v3471_v60, %v3469_v52  ;;  %v3490_v56 = vmul.u32 58254, %v3485_v16 }
 0x269   : > { %v4515_v63 = vsel %vm4501_vm11, %v4472_v29, 0.0  ;;  %v4588_v15 = vmul.f32 %v4472_v29, %v4472_v29  ;;  %4702 = vst.msk [vmem:[%s6050_s22 + $0x38] sm:$0xff] %vm4501_vm11, %v4472_v29  ;;  %v2356_v9 = vpop.f32.mrf.mxu2  ;;  %vm4187_vm7 = vcmp.ne.s32.totalorder %v6433_v39, 0  ;;  %vm4223_vm8 = vcmp.lt.s32.totalorder %v6433_v39, 0 }
 0x26a   : > { %v4516_v0 = vadd.f32 %v4515_v63, %v4514_v30  ;;  %v2448_v54 = vadd.f32 %v2356_v9, %v2138_v50  ;;  %v2666_v22 = vpop.f32.mrf.mxu3  ;;  %v4295_v62 = vadd.s32 18, %v6433_v39  ;;  %vm6454_vm9 = vmand %vm4223_vm8, %vm4187_vm7  ;;  %v3491_v18 = vshll.u32 %v6440_v25, 16 }
 0x26b   : > { %v4630_v14 = vsel %vm4501_vm11, %v4588_v15, 0.0  ;;  %v6460_v2 = vadd.s32 104, %v5830_v38  ;;  %vm6467_vm10 = vcmp.lt.s32.totalorder %v4329_v33, 16  ;;  %v3474_v36 = vadd.s32 %v3473_v12, %v3463_v32  ;;  %v2812_v33 = vld [vmem:[#allocation2 + $0xf6] sm:$0xff] }
 0x26c   : > { %v4631_v30 = vadd.f32 %v4630_v14, %v4629_v27  ;;  %v2758_v50 = vadd.f32 %v2666_v22, %v2448_v54  ;;  %v2139_v21 = vadd.f32 %v2049_v4, %v5686_v26  ;;  %vm6472_vm12 = vcmp.lt.s32.totalorder %v4330_v10, 16 }
 0x26d   : > { %v2052_v19 = vpop.f32.mrf.mxu1  ;;  %v3492_v27 = vshrl.u32 %v6440_v25, 16  ;;  %v3493_v7 = vshll.u32 %v6442_v37, 16  ;;  %vm3495_vm13 = vc.u32 %v3487_v61, %v3491_v18  ;;  %v6481_v45 = vpop.f32.mrf.mxu0  ;;  %v4331_v26 = vsel %vm6454_vm9, %v4295_v62, %v6433_v39  ;;  %v6502_v62 = vld [vmem:[#allocation2 + $0xf4] sm:$0xff] }
 0x26e   : > { %v3068_v23 = vadd.f32 %v6377_v24, %v2758_v50  ;;  %5098 = vmatmul.msk.f32.gmra.mxu2 %vm269_vm1, %v6452_v5  ;;  %v3475_v10 = vadd.s32 %v3474_v36, %v3465_v44  ;;  %v3496_v32 = vsel %vm3495_vm13, 1, %v7109_v46  ;;  %v3497_v4 = vadd.s32 %v3491_v18, %v3487_v61  ;;  %v2502_v18 = vld [vmem:[#allocation2 + $0xf5] sm:$0xff] }
 0x26f   : > { %5136 = vmatmul.msk.f32.gmra.mxu3 %vm269_vm1, %v2501_v6  ;;  %v3498_v43 = vadd.s32 %v3496_v32, %v3490_v56  ;;  %v3513_v24 = vand.u32 65535, %v6460_v2  ;;  %v3514_v16 = vshrl.u32 %v6460_v2, 16  ;;  %v2140_v29 = vadd.f32 %v2052_v19, %v5693_v53 }
 0x270   : > { %v4473_v52 = vsel %vm6467_vm10, %v3068_v23, 0.0  ;;  %5061 = vmatmul.msk.f32.gmra.mxu1 %vm269_vm1, %v6414_v59  ;;  %v3476_v39 = vshrl.u32 %v3475_v10, 4  ;;  %v3494_v44 = vshrl.u32 %v6442_v37, 16  ;;  %5175 = vmatmul.msk.f32.gmra.mxu0 %vm269_vm1, %v2812_v33  ;;  %vm3499_vm14 = vc.u32 %v3497_v4, %v3493_v7  ;;  %v2813_v23 = vld [vmem:[#allocation2 + $0xfe] sm:$0xff] }
 0x271   : > { %v4517_v60 = vsel %vm4501_vm11, %v4473_v52, 0.0  ;;  %v4589_v25 = vmul.f32 %v4473_v52, %v4473_v52  ;;  %4703 = vst.msk [vmem:[%s6050_s22 + $0x40] sm:$0xff] %vm4501_vm11, %v4473_v52  ;;  %v2359_v61 = vpop.f32.mrf.mxu2  ;;  %v3516_v63 = vmul.u32 14564, %v3513_v24  ;;  %v3500_v22 = vsel %vm3499_vm14, 1, %v7109_v46 }
 0x272   : > { %v4518_v15 = vadd.f32 %v4517_v60, %v4516_v0  ;;  %v2449_v9 = vadd.f32 %v2359_v61, %v2139_v21  ;;  %v2669_v54 = vpop.f32.mrf.mxu3  ;;  %v3477_v53 = vmul.u32 18, %v3476_v39  ;;  %v3502_v37 = vadd.s32 %v3500_v22, %v3498_v43 }
 0x273   : > { %v4632_v59 = vsel %vm4501_vm11, %v4589_v25, 0.0  ;;  %v6504_v12 = vmul.u32 58254, %v3513_v24  ;;  %v6506_v14 = vmul.u32 14564, %v3514_v16  ;;  %v6510_v0 = vadd.s32 112, %v5830_v38 }
 0x274   : > { %v4633_v41 = vadd.f32 %v4632_v59, %v4631_v30  ;;  %v2759_v56 = vadd.f32 %v2669_v54, %v2449_v9  ;;  %v3478_v50 = vsub.s32 %v6363_v31, %v3477_v53  ;;  %vm6512_vm15 = vcmp.lt.s32.totalorder %v4331_v26, 16  ;;  %v6546_v9 = vld [vmem:[#allocation2 + $0xfc] sm:$0xff] }
 0x275   : > { %v2055_v3 = vpop.f32.mrf.mxu1  ;;  %v3503_v36 = vadd.s32 %v3502_v37, %v3492_v27  ;;  %v3519_v21 = vmul.u32 58254, %v3514_v16  ;;  %v3520_v19 = vshll.u32 %v6504_v12, 16  ;;  %v6518_v7 = vadd.s32 120, %v5830_v38  ;;  %v6523_v31 = vpop.f32.mrf.mxu0  ;;  %v2503_v37 = vld [vmem:[#allocation2 + $0xfd] sm:$0xff] }
 0x276   : > { %v3069_v30 = vadd.f32 %v6426_v28, %v2759_v56  ;;  %5099 = vmatmul.msk.f32.gmra.mxu2 %vm269_vm1, %v6502_v62  ;;  %vm4188_vm0 = vcmp.ne.s32.totalorder %v3478_v50, 0  ;;  %vm4224_vm2 = vcmp.lt.s32.totalorder %v3478_v50, 0  ;;  %v3521_v26 = vshrl.u32 %v6504_v12, 16 }
 0x277   : > { %5137 = vmatmul.msk.f32.gmra.mxu3 %vm269_vm1, %v2502_v18  ;;  %vm6527_vm3 = vmand %vm4224_vm2, %vm4188_vm0  ;;  %v4296_v33 = vadd.s32 18, %v3478_v50  ;;  %v3504_v10 = vadd.s32 %v3503_v36, %v3494_v44  ;;  %v3522_v28 = vshll.u32 %v6506_v14, 16  ;;  %vm3524_vm4 = vc.u32 %v3516_v63, %v3520_v19 }
 0x278   : > { %v4474_v32 = vsel %vm6472_vm12, %v3069_v30, 0.0  ;;  %v2141_v4 = vadd.f32 %v2055_v3, %v5700_v34  ;;  %5062 = vmatmul.msk.f32.gmra.mxu1 %vm269_vm1, %v6452_v5  ;;  %v3525_v43 = vsel %vm3524_vm4, 1, %v7109_v46  ;;  %v3526_v24 = vadd.s32 %v3520_v19, %v3516_v63  ;;  %5176 = vmatmul.msk.f32.gmra.mxu0 %vm269_vm1, %v2813_v23 }
 0x279   : > { %v4519_v16 = vsel %vm4501_vm11, %v4474_v32, 0.0  ;;  %v4590_v52 = vmul.f32 %v4474_v32, %v4474_v32  ;;  %4704 = vst.msk [vmem:[%s6050_s22 + $0x48] sm:$0xff] %vm4501_vm11, %v4474_v32  ;;  %v2362_v39 = vpop.f32.mrf.mxu2  ;;  %v3505_v44 = vshrl.u32 %v3504_v10, 4  ;;  %v3542_v11 = vand.u32 65535, %v6510_v0 }
 0x27a   : > { %v4520_v60 = vadd.f32 %v4519_v16, %v4518_v15  ;;  %v2450_v25 = vadd.f32 %v2362_v39, %v2140_v29  ;;  %v2672_v34 = vpop.f32.mrf.mxu3  ;;  %v4332_v5 = vsel %vm6527_vm3, %v4296_v33, %v3478_v50  ;;  %v3527_v61 = vadd.s32 %v3525_v43, %v3519_v21 }
 0x27b   : > { %v4634_v63 = vsel %vm4501_vm11, %v4590_v52, 0.0  ;;  %v3506_v54 = vmul.u32 18, %v3505_v44  ;;  %vm3528_vm5 = vc.u32 %v3526_v24, %v3522_v28  ;;  %v3543_v53 = vshrl.u32 %v6510_v0, 16 }
 0x27c   : > { %v4635_v22 = vadd.f32 %v4634_v63, %v4633_v41  ;;  %v2760_v59 = vadd.f32 %v2672_v34, %v2450_v25  ;;  %v3523_v12 = vshrl.u32 %v6506_v14, 16  ;;  %v3529_v29 = vsel %vm3528_vm5, 1, %v7109_v46  ;;  %v2504_v63 = vld [vmem:[#allocation2 + $0x105] sm:$0xff] }
 0x27d   : > { %v2058_v15 = vpop.f32.mrf.mxu1  ;;  %v3507_v56 = vsub.s32 %v6392_v55, %v3506_v54  ;;  %v3531_v18 = vadd.s32 %v3529_v29, %v3527_v61  ;;  %v6552_v50 = vmul.u32 58254, %v3542_v11  ;;  %v6554_v3 = vmul.u32 14564, %v3543_v53  ;;  %v6566_v21 = vpop.f32.mrf.mxu0  ;;  %v2814_v55 = vld [vmem:[#allocation2 + $0x106] sm:$0xff] }
 0x27e   : > { %v3070_v36 = vadd.f32 %v6481_v45, %v2760_v59  ;;  %5100 = vmatmul.msk.f32.gmra.mxu2 %vm269_vm1, %v6546_v9  ;;  %v6560_v41 = vadd.f32 %v2058_v15, %v5709_v40  ;;  %vm6562_vm6 = vcmp.lt.s32.totalorder %v4332_v5, 16  ;;  %v3545_v19 = vmul.u32 14564, %v3542_v11  ;;  %v6588_v11 = vld [vmem:[#allocation2 + $0x104] sm:$0xff]  ;;  %v2815_v15 = vld [vmem:[#allocation2 + $0x10e] sm:$0xff] }
 0x27f   : > { %5138 = vmatmul.msk.f32.gmra.mxu3 %vm269_vm1, %v2503_v37  ;;  %vm4189_vm7 = vcmp.ne.s32.totalorder %v3507_v56, 0  ;;  %vm4225_vm8 = vcmp.lt.s32.totalorder %v3507_v56, 0  ;;  %v4297_v45 = vadd.s32 18, %v3507_v56  ;;  %v3532_v30 = vadd.s32 %v3531_v18, %v3521_v26 }
 0x280   : > { %v4475_v23 = vsel %vm6512_vm15, %v3070_v36, 0.0  ;;  %5063 = vmatmul.msk.f32.gmra.mxu1 %vm269_vm1, %v6502_v62  ;;  %vm6573_vm9 = vmand %vm4225_vm8, %vm4189_vm7  ;;  %v3548_v27 = vmul.u32 58254, %v3543_v53  ;;  %v3549_v33 = vshll.u32 %v6552_v50, 16  ;;  %v3571_v10 = vand.u32 65535, %v6518_v7  ;;  %5177 = vmatmul.msk.f32.gmra.mxu0 %vm269_vm1, %v2814_v55 }
 0x281   : > { %v4521_v28 = vsel %vm4501_vm11, %v4475_v23, 0.0  ;;  %v4591_v32 = vmul.f32 %v4475_v23, %v4475_v23  ;;  %4705 = vst.msk [vmem:[%s6050_s22 + $0x50] sm:$0xff] %vm4501_vm11, %v4475_v23  ;;  %v2365_v26 = vpop.f32.mrf.mxu2  ;;  %v3533_v6 = vadd.s32 %v3532_v30, %v3523_v12  ;;  %v3551_v62 = vshll.u32 %v6554_v3, 16 }
 0x282   : > { %v4522_v43 = vadd.f32 %v4521_v28, %v4520_v60  ;;  %v2451_v24 = vadd.f32 %v2365_v26, %v2141_v4  ;;  %v2675_v16 = vpop.f32.mrf.mxu3  ;;  %v4333_v52 = vsel %vm6573_vm9, %v4297_v45, %v3507_v56  ;;  %v3550_v39 = vshrl.u32 %v6552_v50, 16  ;;  %v6628_v26 = vld [vmem:[#allocation2 + $0x10c] sm:$0xff] }
 0x283   : > { %v4636_v44 = vsel %vm4501_vm11, %v4591_v32, 0.0  ;;  %v3534_v25 = vshrl.u32 %v3533_v6, 4  ;;  %vm3553_vm10 = vc.u32 %v3545_v19, %v3549_v33  ;;  %v3555_v34 = vadd.s32 %v3549_v33, %v3545_v19 }
 0x284   : > { %v4637_v5 = vadd.f32 %v4636_v44, %v4635_v22  ;;  %v2761_v61 = vadd.f32 %v2675_v16, %v2451_v24  ;;  %v3554_v54 = vsel %vm3553_vm10, 1, %v7109_v46  ;;  %v3572_v4 = vshrl.u32 %v6518_v7, 16  ;;  %v2505_v16 = vld [vmem:[#allocation2 + $0x10d] sm:$0xff] }
 0x285   : > { %v2061_v60 = vpop.f32.mrf.mxu1  ;;  %vm6592_vm12 = vcmp.lt.s32.totalorder %v4333_v52, 16  ;;  %v3535_v59 = vmul.u32 18, %v3534_v25  ;;  %v3552_v37 = vshrl.u32 %v6554_v3, 16  ;;  %v3556_v12 = vadd.s32 %v3554_v54, %v3548_v27  ;;  %v6600_v22 = vpop.f32.mrf.mxu0 }
 0x286   : > { %vm3557_vm13 = vc.u32 %v3555_v34, %v3551_v62  ;;  %v3071_v29 = vadd.f32 %v6523_v31, %v2761_v61  ;;  %5101 = vmatmul.msk.f32.gmra.mxu2 %vm269_vm1, %v6588_v11  ;;  %v3574_v18 = vmul.u32 14564, %v3571_v10  ;;  %v6603_v50 = vmul.u32 58254, %v3571_v10 }
 0x287   : > { %v3558_v56 = vsel %vm3557_vm13, 1, %v7109_v46  ;;  %5139 = vmatmul.msk.f32.gmra.mxu3 %vm269_vm1, %v2504_v63  ;;  %v2143_v3 = vadd.f32 %v2061_v60, %v5718_v42  ;;  %v3536_v36 = vsub.s32 %v6460_v2, %v3535_v59  ;;  %v6608_v31 = vmul.u32 14564, %v3572_v4  ;;  %v2816_v60 = vld [vmem:[#allocation2 + $0x116] sm:$0xff] }
 0x288   : > { %v3560_v55 = vadd.s32 %v3558_v56, %v3556_v12  ;;  %v4476_v19 = vsel %vm6562_vm6, %v3071_v29, 0.0  ;;  %5064 = vmatmul.msk.f32.gmra.mxu1 %vm269_vm1, %v6546_v9  ;;  %v3577_v45 = vmul.u32 58254, %v3572_v4  ;;  %v3578_v30 = vshll.u32 %v6603_v50, 16  ;;  %5178 = vmatmul.msk.f32.gmra.mxu0 %vm269_vm1, %v2815_v15 }
 0x289   : > { %v6616_v23 = vadd.s32 128, %v5830_v38  ;;  %v4523_v40 = vsel %vm4501_vm11, %v4476_v19, 0.0  ;;  %v4592_v42 = vmul.f32 %v4476_v19, %v4476_v19  ;;  %4706 = vst.msk [vmem:[%s6050_s22 + $0x58] sm:$0xff] %vm4501_vm11, %v4476_v19  ;;  %v2368_v2 = vpop.f32.mrf.mxu2  ;;  %vm4190_vm14 = vcmp.ne.s32.totalorder %v3536_v36, 0 }
 0x28a   : > { %vm4226_vm15 = vcmp.lt.s32.totalorder %v3536_v36, 0  ;;  %v4524_v14 = vadd.f32 %v4523_v40, %v4522_v43  ;;  %v2452_v27 = vadd.f32 %v2368_v2, %v6560_v41  ;;  %v2678_v9 = vpop.f32.mrf.mxu3  ;;  %v4298_v10 = vadd.s32 18, %v3536_v36 }
 0x28b   : > { %vm6623_vm0 = vmand %vm4226_vm15, %vm4190_vm14  ;;  %v3561_v28 = vadd.s32 %v3560_v55, %v3550_v39  ;;  %v4638_v32 = vsel %vm4501_vm11, %v4592_v42, 0.0  ;;  %v3579_v6 = vshrl.u32 %v6603_v50, 16  ;;  %v3580_v62 = vshll.u32 %v6608_v31, 16  ;;  %v6667_v42 = vld [vmem:[#allocation2 + $0x114] sm:$0xff] }
 0x28c   : > { %vm3582_vm2 = vc.u32 %v3574_v18, %v3578_v30  ;;  %v4639_v24 = vadd.f32 %v4638_v32, %v4637_v5  ;;  %v2762_v43 = vadd.f32 %v2678_v9, %v2452_v27  ;;  %v4334_v41 = vsel %vm6623_vm0, %v4298_v10, %v3536_v36 }
 0x28d   : > { %v3562_v52 = vadd.s32 %v3561_v28, %v3552_v37  ;;  %v2064_v44 = vpop.f32.mrf.mxu1  ;;  %v3581_v25 = vshrl.u32 %v6608_v31, 16  ;;  %v3583_v39 = vsel %vm3582_vm2, 1, %v7109_v46  ;;  %v3584_v34 = vadd.s32 %v3578_v30, %v3574_v18  ;;  %v6644_v54 = vpop.f32.mrf.mxu0  ;;  %v2506_v28 = vld [vmem:[#allocation2 + $0x115] sm:$0xff] }
 0x28e   : > { %v3600_v61 = vand.u32 65535, %v6616_v23  ;;  %v3072_v63 = vadd.f32 %v6566_v21, %v2762_v43  ;;  %5102 = vmatmul.msk.f32.gmra.mxu2 %vm269_vm1, %v6628_v26  ;;  %vm6640_vm3 = vcmp.lt.s32.totalorder %v4334_v41, 16  ;;  %v3585_v59 = vadd.s32 %v3583_v39, %v3577_v45 }
 0x28f   : > { %v3563_v4 = vshrl.u32 %v3562_v52, 4  ;;  %5140 = vmatmul.msk.f32.gmra.mxu3 %vm269_vm1, %v2505_v16  ;;  %v2144_v37 = vadd.f32 %v2064_v44, %v5725_v13  ;;  %vm3586_vm4 = vc.u32 %v3584_v34, %v3580_v62  ;;  %v3601_v21 = vshrl.u32 %v6616_v23, 16  ;;  %v2817_v16 = vld [vmem:[#allocation2 + $0x11e] sm:$0xff] }
 0x290   : > { %v6649_v12 = vmul.u32 58254, %v3600_v61  ;;  %v4477_v29 = vsel %vm6592_vm12, %v3072_v63, 0.0  ;;  %5065 = vmatmul.msk.f32.gmra.mxu1 %vm269_vm1, %v6588_v11  ;;  %v3587_v56 = vsel %vm3586_vm4, 1, %v7109_v46  ;;  %v3603_v18 = vmul.u32 14564, %v3600_v61  ;;  %5179 = vmatmul.msk.f32.gmra.mxu0 %vm269_vm1, %v2816_v60 }
 0x291   : > { %v3564_v15 = vmul.u32 18, %v3563_v4  ;;  %v4525_v50 = vsel %vm4501_vm11, %v4477_v29, 0.0  ;;  %v4593_v36 = vmul.f32 %v4477_v29, %v4477_v29  ;;  %4707 = vst.msk [vmem:[%s6050_s22 + $0x60] sm:$0xff] %vm4501_vm11, %v4477_v29  ;;  %v2371_v13 = vpop.f32.mrf.mxu2  ;;  %v3589_v55 = vadd.s32 %v3587_v56, %v3585_v59 }
 0x292   : > { %v6660_v31 = vmul.u32 14564, %v3601_v21  ;;  %v4526_v53 = vadd.f32 %v4525_v50, %v4524_v14  ;;  %v2453_v19 = vadd.f32 %v2371_v13, %v2143_v3  ;;  %v2681_v45 = vpop.f32.mrf.mxu3  ;;  %v6664_v30 = vadd.s32 136, %v5830_v38 }
 0x293   : > { %v3565_v11 = vsub.s32 %v6510_v0, %v3564_v15  ;;  %v4640_v40 = vsel %vm4501_vm11, %v4593_v36, 0.0  ;;  %v3590_v2 = vadd.s32 %v3589_v55, %v3579_v6  ;;  %v3606_v27 = vmul.u32 58254, %v3601_v21 }
 0x294   : > { %v3607_v9 = vshll.u32 %v6649_v12, 16  ;;  %v4641_v33 = vadd.f32 %v4640_v40, %v4639_v24  ;;  %v2763_v10 = vadd.f32 %v2681_v45, %v2453_v19  ;;  %v3608_v62 = vshrl.u32 %v6649_v12, 16  ;;  %v2507_v19 = vld [vmem:[#allocation2 + $0x11d] sm:$0xff] }
 0x295   : > { %vm4191_vm5 = vcmp.ne.s32.totalorder %v3565_v11, 0  ;;  %vm4227_vm6 = vcmp.lt.s32.totalorder %v3565_v11, 0  ;;  %v2067_v3 = vpop.f32.mrf.mxu1  ;;  %v4299_v0 = vadd.s32 18, %v3565_v11  ;;  %v3591_v32 = vadd.s32 %v3590_v2, %v3581_v25  ;;  %v6679_v24 = vpop.f32.mrf.mxu0 }
 0x296   : > { %vm6670_vm7 = vmand %vm4227_vm6, %vm4191_vm5  ;;  %v3609_v43 = vshll.u32 %v6660_v31, 16  ;;  %v3073_v6 = vadd.f32 %v6600_v22, %v2763_v10  ;;  %5103 = vmatmul.msk.f32.gmra.mxu2 %vm269_vm1, %v6667_v42  ;;  %v3610_v41 = vshrl.u32 %v6660_v31, 16  ;;  %vm3611_vm8 = vc.u32 %v3603_v18, %v3607_v9 }
 0x297   : > { %v3613_v52 = vadd.s32 %v3607_v9, %v3603_v18  ;;  %5141 = vmatmul.msk.f32.gmra.mxu3 %vm269_vm1, %v2506_v28  ;;  %v2145_v44 = vadd.f32 %v2067_v3, %v5732_v20  ;;  %v3592_v25 = vshrl.u32 %v3591_v32, 4  ;;  %v3612_v39 = vsel %vm3611_vm8, 1, %v7109_v46  ;;  %v6699_v18 = vld [vmem:[#allocation2 + $0x11c] sm:$0xff] }
 0x298   : > { %v3629_v22 = vand.u32 65535, %v6664_v30  ;;  %v4478_v34 = vsel %vm6640_vm3, %v3073_v6, 0.0  ;;  %v4335_v61 = vsel %vm6670_vm7, %v4299_v0, %v3565_v11  ;;  %5066 = vmatmul.msk.f32.gmra.mxu1 %vm269_vm1, %v6628_v26  ;;  %v3614_v63 = vadd.s32 %v3612_v39, %v3606_v27  ;;  %5180 = vmatmul.msk.f32.gmra.mxu0 %vm269_vm1, %v2817_v16 }
 0x299   : > { %vm3615_vm9 = vc.u32 %v3613_v52, %v3609_v43  ;;  %v4527_v4 = vsel %vm4501_vm11, %v4478_v34, 0.0  ;;  %v4594_v60 = vmul.f32 %v4478_v34, %v4478_v34  ;;  %4708 = vst.msk [vmem:[%s6050_s22 + $0x68] sm:$0xff] %vm4501_vm11, %v4478_v34  ;;  %v2374_v20 = vpop.f32.mrf.mxu2  ;;  %v3593_v59 = vmul.u32 18, %v3592_v25 }
 0x29a   : > { %v3616_v5 = vsel %vm3615_vm9, 1, %v7109_v46  ;;  %v4528_v21 = vadd.f32 %v4527_v4, %v4526_v53  ;;  %v2454_v12 = vadd.f32 %v2374_v20, %v2144_v37  ;;  %v2684_v29 = vpop.f32.mrf.mxu3  ;;  %v3630_v56 = vshrl.u32 %v6664_v30, 16 }
 0x29b   : > { %v3618_v15 = vadd.s32 %v3616_v5, %v3614_v63  ;;  %v4642_v26 = vsel %vm4501_vm11, %v4594_v60, 0.0  ;;  %v3594_v50 = vsub.s32 %v6518_v7, %v3593_v59  ;;  %v3632_v36 = vmul.u32 14564, %v3629_v22  ;;  %v6737_v63 = vld [vmem:[#allocation2 + $0x124] sm:$0xff] }
 0x29c   : > { %v6702_v13 = vmul.u32 58254, %v3629_v22  ;;  %v4643_v55 = vadd.f32 %v4642_v26, %v4641_v33  ;;  %v2764_v31 = vadd.f32 %v2684_v29, %v2454_v12  ;;  %v6704_v11 = vmul.u32 14564, %v3630_v56  ;;  %v2818_v33 = vld [vmem:[#allocation2 + $0x126] sm:$0xff] }
 0x29d   : > { %v3619_v45 = vadd.s32 %v3618_v15, %v3608_v62  ;;  %vm6706_vm10 = vcmp.lt.s32.totalorder %v4335_v61, 16  ;;  %v2070_v53 = vpop.f32.mrf.mxu1  ;;  %vm4192_vm12 = vcmp.ne.s32.totalorder %v3594_v50, 0  ;;  %vm4228_vm13 = vcmp.lt.s32.totalorder %v3594_v50, 0  ;;  %v6717_v27 = vpop.f32.mrf.mxu0  ;;  %v2508_v5 = vld [vmem:[#allocation2 + $0x125] sm:$0xff] }
 0x29e   : > { %v4300_v40 = vadd.s32 18, %v3594_v50  ;;  %v3074_v2 = vadd.f32 %v6644_v54, %v2764_v31  ;;  %5104 = vmatmul.msk.f32.gmra.mxu2 %vm269_vm1, %v6699_v18  ;;  %vm6713_vm14 = vmand %vm4228_vm13, %vm4192_vm12  ;;  %v3635_v10 = vmul.u32 58254, %v3630_v56  ;;  %v3636_v28 = vshll.u32 %v6702_v13, 16 }
 0x29f   : > { %v3620_v9 = vadd.s32 %v3619_v45, %v3610_v41  ;;  %5142 = vmatmul.msk.f32.gmra.mxu3 %vm269_vm1, %v2507_v19  ;;  %v2146_v3 = vadd.f32 %v2070_v53, %v5739_v57  ;;  %v3637_v14 = vshrl.u32 %v6702_v13, 16  ;;  %v3638_v0 = vshll.u32 %v6704_v11, 16 }
 0x2a0   : > { %v4336_v54 = vsel %vm6713_vm14, %v4300_v40, %v3594_v50  ;;  %v4479_v32 = vsel %vm6706_vm10, %v3074_v2, 0.0  ;;  %5067 = vmatmul.msk.f32.gmra.mxu1 %vm269_vm1, %v6667_v42  ;;  %v3639_v43 = vshrl.u32 %v6704_v11, 16  ;;  %vm3640_vm15 = vc.u32 %v3632_v36, %v3636_v28  ;;  %5181 = vmatmul.msk.f32.gmra.mxu0 %vm269_vm1, %v2818_v33 }
 0x2a1   : > { %v3621_v62 = vshrl.u32 %v3620_v9, 4  ;;  %v4529_v6 = vsel %vm4501_vm11, %v4479_v32, 0.0  ;;  %v4595_v57 = vmul.f32 %v4479_v32, %v4479_v32  ;;  %4709 = vst.msk [vmem:[%s6050_s22 + $0x70] sm:$0xff] %vm4501_vm11, %v4479_v32  ;;  %v2377_v16 = vpop.f32.mrf.mxu2  ;;  %v3641_v41 = vsel %vm3640_vm15, 1, %v7109_v46  ;;  %v2821_v32 = vld [vmem:[#allocation2 + $0x13e] sm:$0xff] }
 0x2a2   : > { %v3642_v52 = vadd.s32 %v3636_v28, %v3632_v36  ;;  %v4530_v25 = vadd.f32 %v4529_v6, %v4528_v21  ;;  %v2455_v39 = vadd.f32 %v2377_v16, %v2145_v44  ;;  %v2687_v22 = vpop.f32.mrf.mxu3  ;;  %v3643_v42 = vadd.s32 %v3641_v41, %v3635_v10  ;;  %v2819_v36 = vld [vmem:[#allocation2 + $0x12e] sm:$0xff] }
 0x2a3   : > { %v3622_v34 = vmul.u32 18, %v3621_v62  ;;  %v4644_v61 = vsel %vm4501_vm11, %v4595_v57, 0.0  ;;  %v6740_v4 = vadd.s32 144, %v5830_v38  ;;  %v6743_v60 = vadd.s32 152, %v5830_v38  ;;  %v6786_v62 = vld [vmem:[#allocation2 + $0x12c] sm:$0xff] }
 0x2a4   : > { %vm3644_vm0 = vc.u32 %v3642_v52, %v3638_v0  ;;  %v4645_v20 = vadd.f32 %v4644_v61, %v4643_v55  ;;  %v2765_v59 = vadd.f32 %v2687_v22, %v2455_v39  ;;  %vm6747_vm2 = vcmp.lt.s32.totalorder %v4336_v54, 16  ;;  %v2509_v41 = vld [vmem:[#allocation2 + $0x12d] sm:$0xff] }
 0x2a5   : > { %v3623_v21 = vsub.s32 %v6616_v23, %v3622_v34  ;;  %v3645_v44 = vsel %vm3644_vm0, 1, %v7109_v46  ;;  %v2073_v29 = vpop.f32.mrf.mxu1  ;;  %v3658_v56 = vand.u32 65535, %v6740_v4  ;;  %v3659_v26 = vshrl.u32 %v6740_v4, 16  ;;  %v6756_v23 = vpop.f32.mrf.mxu0 }
 0x2a6   : > { %v3647_v15 = vadd.s32 %v3645_v44, %v3643_v42  ;;  %v3075_v50 = vadd.f32 %v6679_v24, %v2765_v59  ;;  %5105 = vmatmul.msk.f32.gmra.mxu2 %vm269_vm1, %v6737_v63  ;;  %v3687_v13 = vand.u32 65535, %v6743_v60  ;;  %v2147_v55 = vadd.f32 %v2073_v29, %v5746_v17  ;;  %v2820_v59 = vld [vmem:[#allocation2 + $0x136] sm:$0xff] }
 0x2a7   : > { %vm4193_vm3 = vcmp.ne.s32.totalorder %v3623_v21, 0  ;;  %vm4229_vm4 = vcmp.lt.s32.totalorder %v3623_v21, 0  ;;  %5143 = vmatmul.msk.f32.gmra.mxu3 %vm269_vm1, %v2508_v5  ;;  %v4301_v24 = vadd.s32 18, %v3623_v21  ;;  %v6765_v45 = vmul.u32 58254, %v3658_v56 }
 0x2a8   : > { %vm6761_vm5 = vmand %vm4229_vm4, %vm4193_vm3  ;;  %v3648_v19 = vadd.s32 %v3647_v15, %v3637_v14  ;;  %v4480_v11 = vsel %vm6747_vm2, %v3075_v50, 0.0  ;;  %5068 = vmatmul.msk.f32.gmra.mxu1 %vm269_vm1, %v6699_v18  ;;  %v3661_v37 = vmul.u32 14564, %v3658_v56  ;;  %v6771_v53 = vmul.u32 14564, %v3659_v26  ;;  %5182 = vmatmul.msk.f32.gmra.mxu0 %vm269_vm1, %v2819_v36 }
 0x2a9   : > { %v3664_v40 = vmul.u32 58254, %v3659_v26  ;;  %v4531_v17 = vsel %vm4501_vm11, %v4480_v11, 0.0  ;;  %v4596_v2 = vmul.f32 %v4480_v11, %v4480_v11  ;;  %4710 = vst.msk [vmem:[%s6050_s22 + $0x78] sm:$0xff] %vm4501_vm11, %v4480_v11  ;;  %v2380_v7 = vpop.f32.mrf.mxu2  ;;  %v4337_v9 = vsel %vm6761_vm5, %v4301_v24, %v3623_v21 }
 0x2aa   : > { %v3649_v33 = vadd.s32 %v3648_v19, %v3639_v43  ;;  %v4532_v10 = vadd.f32 %v4531_v17, %v4530_v25  ;;  %v2456_v28 = vadd.f32 %v2380_v7, %v2146_v3  ;;  %v2690_v54 = vpop.f32.mrf.mxu3  ;;  %v3665_v18 = vshll.u32 %v6765_v45, 16 }
 0x2ab   : > { %v3688_v14 = vshrl.u32 %v6743_v60, 16  ;;  %v4646_v0 = vsel %vm4501_vm11, %v4596_v2, 0.0  ;;  %vm6782_vm6 = vcmp.lt.s32.totalorder %v4337_v9, 16  ;;  %v3667_v43 = vshll.u32 %v6771_v53, 16  ;;  %v2510_v2 = vld [vmem:[#allocation2 + $0x135] sm:$0xff] }
 0x2ac   : > { %v3650_v6 = vshrl.u32 %v3649_v33, 4  ;;  %v4647_v57 = vadd.f32 %v4646_v0, %v4645_v20  ;;  %v2766_v16 = vadd.f32 %v2690_v54, %v2456_v28  ;;  %v3666_v3 = vshrl.u32 %v6765_v45, 16  ;;  %v2200_v45 = vld [vmem:[#allocation2 + $0x134] sm:$0xff] }
 0x2ad   : > { %vm3669_vm7 = vc.u32 %v3661_v37, %v3665_v18  ;;  %v2076_v52 = vpop.f32.mrf.mxu1  ;;  %v3668_v39 = vshrl.u32 %v6771_v53, 16  ;;  %v3671_v34 = vadd.s32 %v3665_v18, %v3661_v37  ;;  %v6795_v61 = vpop.f32.mrf.mxu0  ;;  %v3690_v5 = vmul.u32 14564, %v3687_v13 }
 0x2ae   : > { %v3651_v25 = vmul.u32 18, %v3650_v6  ;;  %v3670_v22 = vsel %vm3669_vm7, 1, %v7109_v46  ;;  %v3076_v42 = vadd.f32 %v6717_v27, %v2766_v16  ;;  %5106 = vmatmul.msk.f32.gmra.mxu2 %vm269_vm1, %v6786_v62  ;;  %v6797_v21 = vmul.u32 58254, %v3687_v13 }
 0x2af   : > { %v3672_v20 = vadd.s32 %v3670_v22, %v3664_v40  ;;  %5144 = vmatmul.msk.f32.gmra.mxu3 %vm269_vm1, %v2509_v41  ;;  %v2148_v44 = vadd.f32 %v2076_v52, %v5753_v48  ;;  %vm3673_vm8 = vc.u32 %v3671_v34, %v3667_v43  ;;  %v6802_v29 = vmul.u32 14564, %v3688_v14 }
 0x2b0   : > { %v3652_v12 = vsub.s32 %v6664_v30, %v3651_v25  ;;  %v4481_v27 = vsel %vm6782_vm6, %v3076_v42, 0.0  ;;  %5069 = vmatmul.msk.f32.gmra.mxu1 %vm269_vm1, %v6737_v63  ;;  %v3674_v15 = vsel %vm3673_vm8, 1, %v7109_v46  ;;  %v3693_v56 = vmul.u32 58254, %v3688_v14  ;;  %5183 = vmatmul.msk.f32.gmra.mxu0 %vm269_vm1, %v2820_v59 }
 0x2b1   : > { %v3694_v26 = vshll.u32 %v6797_v21, 16  ;;  %v4533_v50 = vsel %vm4501_vm11, %v4481_v27, 0.0  ;;  %v4597_v36 = vmul.f32 %v4481_v27, %v4481_v27  ;;  %4711 = vst.msk [vmem:[%s6050_s22 + $0x80] sm:$0xff] %vm4501_vm11, %v4481_v27  ;;  %v2383_v48 = vpop.f32.mrf.mxu2  ;;  %v3676_v24 = vadd.s32 %v3674_v15, %v3672_v20 }
 0x2b2   : > { %vm4194_vm9 = vcmp.ne.s32.totalorder %v3652_v12, 0  ;;  %vm4230_vm10 = vcmp.lt.s32.totalorder %v3652_v12, 0  ;;  %v4534_v30 = vadd.f32 %v4533_v50, %v4532_v10  ;;  %v2457_v13 = vadd.f32 %v2383_v48, %v2147_v55  ;;  %v2693_v31 = vpop.f32.mrf.mxu3 }
 0x2b3   : > { %vm4266_vm12 = vmand %vm4230_vm10, %vm4194_vm9  ;;  %v4302_v63 = vadd.s32 18, %v3652_v12  ;;  %v4648_v19 = vsel %vm4501_vm11, %v4597_v36, 0.0  ;;  %v3695_v11 = vshrl.u32 %v6797_v21, 16  ;;  %v3696_v37 = vshll.u32 %v6802_v29, 16  ;;  %v2511_v36 = vld [vmem:[#allocation2 + $0x13d] sm:$0xff] }
 0x2b4   : > { %vm3698_vm13 = vc.u32 %v3690_v5, %v3694_v26  ;;  %v4649_v53 = vadd.f32 %v4648_v19, %v4647_v57  ;;  %v2767_v40 = vadd.f32 %v2693_v31, %v2457_v13  ;;  %v3677_v7 = vadd.s32 %v3676_v24, %v3666_v3 }
 0x2b5   : > { %v4338_v17 = vsel %vm4266_vm12, %v4302_v63, %v3652_v12  ;;  %v2079_v55 = vpop.f32.mrf.mxu1  ;;  %v3699_v33 = vsel %vm3698_vm13, 1, %v7109_v46  ;;  %v3700_v10 = vadd.s32 %v3694_v26, %v3690_v5  ;;  %v6823_v28 = vadd.s32 160, %v5830_v38  ;;  %v6830_v43 = vpop.f32.mrf.mxu0  ;;  %v2201_v12 = vld [vmem:[#allocation2 + $0x13c] sm:$0xff] }
 0x2b6   : > { %vm6817_vm14 = vcmp.lt.s32.totalorder %v4338_v17, 16  ;;  %v3077_v54 = vadd.f32 %v6756_v23, %v2767_v40  ;;  %5107 = vmatmul.msk.f32.gmra.mxu2 %vm269_vm1, %v2200_v45  ;;  %v3678_v18 = vadd.s32 %v3677_v7, %v3668_v39  ;;  %v3697_v14 = vshrl.u32 %v6802_v29, 16 }
 0x2b7   : > { %v3701_v0 = vadd.s32 %v3699_v33, %v3693_v56  ;;  %5145 = vmatmul.msk.f32.gmra.mxu3 %vm269_vm1, %v2510_v2  ;;  %v2149_v6 = vadd.f32 %v2079_v55, %v5760_v47  ;;  %vm3702_vm15 = vc.u32 %v3700_v10, %v3696_v37  ;;  %v3716_v57 = vand.u32 65535, %v6823_v28 }
 0x2b8   : > { %v3717_v16 = vshrl.u32 %v6823_v28, 16  ;;  %v4482_v23 = vsel %vm6817_vm14, %v3077_v54, 0.0  ;;  %v3679_v41 = vshrl.u32 %v3678_v18, 4  ;;  %5070 = vmatmul.msk.f32.gmra.mxu1 %vm269_vm1, %v6786_v62  ;;  %v3703_v3 = vsel %vm3702_vm15, 1, %v7109_v46  ;;  %5184 = vmatmul.msk.f32.gmra.mxu0 %vm269_vm1, %v2821_v32 }
 0x2b9   : > { %v6840_v52 = vadd.s32 168, %v5830_v38  ;;  %v4535_v47 = vsel %vm4501_vm11, %v4482_v23, 0.0  ;;  %v4598_v25 = vmul.f32 %v4482_v23, %v4482_v23  ;;  %4712 = vst.msk [vmem:[%s6050_s22 + $0x88] sm:$0xff] %vm4501_vm11, %v4482_v23  ;;  %v2386_v39 = vpop.f32.mrf.mxu2  ;;  %v3705_v22 = vadd.s32 %v3703_v3, %v3701_v0 }
 0x2ba   : > { %v6847_v34 = vadd.s32 176, %v5830_v38  ;;  %v4536_v42 = vadd.f32 %v4535_v47, %v4534_v30  ;;  %v2458_v20 = vadd.f32 %v2386_v39, %v2148_v44  ;;  %v2696_v62 = vpop.f32.mrf.mxu3  ;;  %v3680_v59 = vmul.u32 18, %v3679_v41 }
 0x2bb   : > { %v3720_v5 = vmul.u32 58254, %v3716_v57  ;;  %v4650_v21 = vsel %vm4501_vm11, %v4598_v25, 0.0  ;;  %v3706_v29 = vadd.s32 %v3705_v22, %v3695_v11  ;;  %v3719_v27 = vmul.u32 14564, %v3716_v57 }
 0x2bc   : > { %v3721_v15 = vmul.u32 14564, %v3717_v16  ;;  %v4651_v56 = vadd.f32 %v4650_v21, %v4649_v53  ;;  %v2768_v26 = vadd.f32 %v2696_v62, %v2458_v20  ;;  %v3681_v50 = vsub.s32 %v6740_v4, %v3680_v59 }
 0x2bd   : > { %v3723_v48 = vshll.u32 %v3720_v5, 16  ;;  %v2082_v13 = vpop.f32.mrf.mxu1  ;;  %v3707_v31 = vadd.s32 %v3706_v29, %v3697_v14  ;;  %v3722_v63 = vmul.u32 58254, %v3717_v16  ;;  %v3724_v30 = vshrl.u32 %v3720_v5, 16  ;;  %v3012_v7 = vpop.f32.mrf.mxu0 }
 0x2be   : > { %v3725_v44 = vshll.u32 %v3721_v15, 16  ;;  %v3078_v24 = vadd.f32 %v6795_v61, %v2768_v26  ;;  %vm4195_vm0 = vcmp.ne.s32.totalorder %v3681_v50, 0  ;;  %vm4231_vm2 = vcmp.lt.s32.totalorder %v3681_v50, 0  ;;  %5108 = vmatmul.msk.f32.gmra.mxu2 %vm269_vm1, %v2201_v12 }
 0x2bf   : > { %v4303_v19 = vadd.s32 18, %v3681_v50  ;;  %vm4267_vm3 = vmand %vm4231_vm2, %vm4195_vm0  ;;  %5146 = vmatmul.msk.f32.gmra.mxu3 %vm269_vm1, %v2511_v36  ;;  %v3708_v45 = vshrl.u32 %v3707_v31, 4  ;;  %v3726_v11 = vshrl.u32 %v3721_v15, 16  ;;  %vm3727_vm4 = vc.u32 %v3719_v27, %v3723_v48 }
 0x2c0   : > { %v3729_v4 = vadd.s32 %v3723_v48, %v3719_v27  ;;  %v3728_v53 = vsel %vm3727_vm4, 1, %v7109_v46  ;;  %v3745_v40 = vand.u32 65535, %v6840_v52  ;;  %v3746_v61 = vshrl.u32 %v6840_v52, 16 }
 0x2c1   : > { %v4339_v37 = vsel %vm4267_vm3, %v4303_v19, %v3681_v50  ;;  %v2389_v17 = vpop.f32.mrf.mxu2  ;;  %v3709_v2 = vmul.u32 18, %v3708_v45  ;;  %v3730_v9 = vadd.s32 %v3728_v53, %v3722_v63  ;;  %v2150_v22 = vadd.f32 %v2082_v13, %v5767_v35 }
 0x2c2   : > { %vm4375_vm5 = vcmp.lt.s32.totalorder %v4339_v37, 16  ;;  %vm3731_vm6 = vc.u32 %v3729_v4, %v3725_v44  ;;  %v2459_v33 = vadd.f32 %v2389_v17, %v2149_v6  ;;  %v2699_v10 = vpop.f32.mrf.mxu3  ;;  %v3748_v18 = vmul.u32 14564, %v3745_v40 }
 0x2c3   : > { %v4483_v55 = vsel %vm4375_vm5, %v3078_v24, 0.0  ;;  %v3732_v54 = vsel %vm3731_vm6, 1, %v7109_v46  ;;  %v3710_v32 = vsub.s32 %v6743_v60, %v3709_v2  ;;  %v3749_v41 = vmul.u32 58254, %v3745_v40 }
 0x2c4   : > { %v4537_v14 = vsel %vm4501_vm11, %v4483_v55, 0.0  ;;  %v4599_v0 = vmul.f32 %v4483_v55, %v4483_v55  ;;  %4713 = vst.msk [vmem:[%s6050_s22 + $0x90] sm:$0xff] %vm4501_vm11, %v4483_v55  ;;  %v3734_v57 = vadd.s32 %v3732_v54, %v3730_v9  ;;  %v2769_v23 = vadd.f32 %v2699_v10, %v2459_v33 }
 0x2c5   : > { %v4538_v16 = vadd.f32 %v4537_v14, %v4536_v42  ;;  %v6862_v3 = vmul.u32 14564, %v3746_v61  ;;  %vm4196_vm1 = vcmp.ne.s32.totalorder %v3710_v32, 0  ;;  %vm4232_vm7 = vcmp.lt.s32.totalorder %v3710_v32, 0  ;;  %v2085_v25 = vpop.f32.mrf.mxu1  ;;  %v3015_v13 = vpop.f32.mrf.mxu0 }
 0x2c6   : > { %v4652_v47 = vsel %vm4501_vm11, %v4599_v0, 0.0  ;;  %v4304_v6 = vadd.s32 18, %v3710_v32  ;;  %v3079_v20 = vadd.f32 %v6830_v43, %v2769_v23  ;;  %vm4268_vm8 = vmand %vm4232_vm7, %vm4196_vm1  ;;  %v3735_v62 = vadd.s32 %v3734_v57, %v3724_v30 }
 0x2c7   : > { %v4653_v39 = vadd.f32 %v4652_v47, %v4651_v56  ;;  %v2151_v42 = vadd.f32 %v2085_v25, %v5774_v49  ;;  %v3751_v59 = vmul.u32 58254, %v3746_v61  ;;  %v3752_v5 = vshll.u32 %v3749_v41, 16 }
 0x2c8   : > { %v4340_v60 = vsel %vm4268_vm8, %v4304_v6, %v3710_v32  ;;  %v3736_v21 = vadd.s32 %v3735_v62, %v3726_v11  ;;  %v3753_v12 = vshrl.u32 %v3749_v41, 16  ;;  %v3754_v29 = vshll.u32 %v6862_v3, 16 }
 0x2c9   : > { %vm4376_vm9 = vcmp.lt.s32.totalorder %v4340_v60, 16  ;;  %v2392_v15 = vpop.f32.mrf.mxu2  ;;  %vm3756_vm10 = vc.u32 %v3748_v18, %v3752_v5  ;;  %v3758_v56 = vadd.s32 %v3752_v5, %v3748_v18  ;;  %v3774_v35 = vand.u32 65535, %v6847_v34 }
 0x2ca   : > { %v4484_v27 = vsel %vm4376_vm9, %v3079_v20, 0.0  ;;  %v2460_v50 = vadd.f32 %v2392_v15, %v2150_v22  ;;  %v2702_v49 = vpop.f32.mrf.mxu3  ;;  %v3737_v36 = vshrl.u32 %v3736_v21, 4  ;;  %v3757_v31 = vsel %vm3756_vm10, 1, %v7109_v46 }
 0x2cb   : > { %v4539_v43 = vsel %vm4501_vm11, %v4484_v27, 0.0  ;;  %v4600_v26 = vmul.f32 %v4484_v27, %v4484_v27  ;;  %4714 = vst.msk [vmem:[%s6050_s22 + $0x98] sm:$0xff] %vm4501_vm11, %v4484_v27  ;;  %vm3760_vm12 = vc.u32 %v3758_v56, %v3754_v29  ;;  %v3775_v63 = vshrl.u32 %v6847_v34, 16 }
 0x2cc   : > { %v4540_v48 = vadd.f32 %v4539_v43, %v4538_v16  ;;  %v2770_v44 = vadd.f32 %v2702_v49, %v2460_v50  ;;  %v3738_v24 = vmul.u32 18, %v3737_v36  ;;  %v3759_v19 = vadd.s32 %v3757_v31, %v3751_v59 }
 0x2cd   : > { %v4654_v30 = vsel %vm4501_vm11, %v4600_v26, 0.0  ;;  %v2088_v11 = vpop.f32.mrf.mxu1  ;;  %v3761_v4 = vsel %vm3760_vm12, 1, %v7109_v46  ;;  %v3777_v37 = vmul.u32 14564, %v3774_v35  ;;  %v3778_v53 = vmul.u32 58254, %v3774_v35 }
 0x2ce   : > { %v4655_v45 = vadd.f32 %v4654_v30, %v4653_v39  ;;  %v3080_v40 = vadd.f32 %v3012_v7, %v2770_v44  ;;  %v3739_v61 = vsub.s32 %v6823_v28, %v3738_v24  ;;  %v3755_v17 = vshrl.u32 %v6862_v3, 16 }
 0x2cf   : > { %v3763_v2 = vadd.s32 %v3761_v4, %v3759_v19  ;;  %v3779_v9 = vmul.u32 14564, %v3775_v63  ;;  %v3780_v55 = vmul.u32 58254, %v3775_v63  ;;  %v3781_v33 = vshll.u32 %v3778_v53, 16 }
 0x2d0   : > { %v3782_v10 = vshrl.u32 %v3778_v53, 16  ;;  %vm4197_vm13 = vcmp.ne.s32.totalorder %v3739_v61, 0  ;;  %vm4233_vm14 = vcmp.lt.s32.totalorder %v3739_v61, 0  ;;  %v4305_v54 = vadd.s32 18, %v3739_v61 }
 0x2d1   : > { %v3764_v18 = vadd.s32 %v3763_v2, %v3753_v12  ;;  %vm4269_vm15 = vmand %vm4233_vm14, %vm4197_vm13  ;;  %v2395_v14 = vpop.f32.mrf.mxu2  ;;  %v3783_v0 = vshll.u32 %v3779_v9, 16  ;;  %v3784_v32 = vshrl.u32 %v3779_v9, 16  ;;  %vm3785_vm0 = vc.u32 %v3777_v37, %v3781_v33 }
 0x2d2   : > { %v3787_v57 = vadd.s32 %v3781_v33, %v3777_v37  ;;  %v4341_v7 = vsel %vm4269_vm15, %v4305_v54, %v3739_v61  ;;  %v2461_v28 = vadd.f32 %v2395_v14, %v2151_v42  ;;  %v2705_v16 = vpop.f32.mrf.mxu3  ;;  %v3786_v41 = vsel %vm3785_vm0, 1, %v7109_v46  ;;  %v3018_v42 = vpop.f32.mrf.mxu0 }
 0x2d3   : > { %v3765_v23 = vadd.s32 %v3764_v18, %v3755_v17  ;;  %vm4377_vm2 = vcmp.lt.s32.totalorder %v4341_v7, 16  ;;  %v3788_v3 = vadd.s32 %v3786_v41, %v3780_v55  ;;  %v6881_v47 = vadd.s32 184, %v5830_v38 }
 0x2d4   : > { %vm3789_vm3 = vc.u32 %v3787_v57, %v3783_v0  ;;  %v4485_v6 = vsel %vm4377_vm2, %v3080_v40, 0.0  ;;  %v2771_v25 = vadd.f32 %v2705_v16, %v2461_v28  ;;  %v2152_v27 = vadd.f32 %v2088_v11, %v5781_v51 }
 0x2d5   : > { %v3766_v39 = vshrl.u32 %v3765_v23, 4  ;;  %v3790_v22 = vsel %vm3789_vm3, 1, %v7109_v46  ;;  %v4541_v20 = vsel %vm4501_vm11, %v4485_v6, 0.0  ;;  %v4601_v62 = vmul.f32 %v4485_v6, %v4485_v6  ;;  %4715 = vst.msk [vmem:[%s6050_s22 + $0xa0] sm:$0xff] %vm4501_vm11, %v4485_v6  ;;  %v2091_v60 = vpop.f32.mrf.mxu1 }
 0x2d6   : > { %v3792_v59 = vadd.s32 %v3790_v22, %v3788_v3  ;;  %v3803_v5 = vand.u32 65535, %v6881_v47  ;;  %v4542_v21 = vadd.f32 %v4541_v20, %v4540_v48  ;;  %v3804_v56 = vshrl.u32 %v6881_v47, 16 }
 0x2d7   : > { %v3767_v12 = vmul.u32 18, %v3766_v39  ;;  %v4656_v29 = vsel %vm4501_vm11, %v4601_v62, 0.0  ;;  %v3081_v43 = vadd.f32 %v3015_v13, %v2771_v25  ;;  %v6895_v48 = vadd.s32 192, %v5830_v38 }
 0x2d8   : > { %v3793_v15 = vadd.s32 %v3792_v59, %v3782_v10  ;;  %v4657_v35 = vadd.f32 %v4656_v29, %v4655_v45  ;;  %v3807_v50 = vmul.u32 58254, %v3803_v5  ;;  %v3806_v31 = vmul.u32 14564, %v3803_v5 }
 0x2d9   : > { %v3768_v26 = vsub.s32 %v6840_v52, %v3767_v12  ;;  %v2398_v49 = vpop.f32.mrf.mxu2  ;;  %v6892_v63 = vmul.u32 14564, %v3804_v56  ;;  %v2153_v24 = vadd.f32 %v2091_v60, %v5788_v58  ;;  %v3809_v19 = vmul.u32 58254, %v3804_v56 }
 0x2da   : > { %v3794_v36 = vadd.s32 %v3793_v15, %v3784_v32  ;;  %v2462_v51 = vadd.f32 %v2398_v49, %v2152_v27  ;;  %v2708_v44 = vpop.f32.mrf.mxu3  ;;  %v3810_v52 = vshll.u32 %v3807_v50, 16  ;;  %v3811_v4 = vshrl.u32 %v3807_v50, 16  ;;  %v3021_v54 = vpop.f32.mrf.mxu0 }
 0x2db   : > { %vm4198_vm4 = vcmp.ne.s32.totalorder %v3768_v26, 0  ;;  %vm4234_vm5 = vcmp.lt.s32.totalorder %v3768_v26, 0  ;;  %v4306_v30 = vadd.s32 18, %v3768_v26  ;;  %v3812_v37 = vshll.u32 %v6892_v63, 16 }
 0x2dc   : > { %vm4270_vm6 = vmand %vm4234_vm5, %vm4198_vm4  ;;  %v3795_v13 = vshrl.u32 %v3794_v36, 4  ;;  %v2772_v11 = vadd.f32 %v2708_v44, %v2462_v51  ;;  %vm3814_vm7 = vc.u32 %v3806_v31, %v3810_v52  ;;  %v3816_v61 = vadd.s32 %v3810_v52, %v3806_v31 }
 0x2dd   : > { %v4342_v45 = vsel %vm4270_vm6, %v4306_v30, %v3768_v26  ;;  %v2094_v40 = vpop.f32.mrf.mxu1  ;;  %v3813_v2 = vshrl.u32 %v6892_v63, 16  ;;  %v3815_v9 = vsel %vm3814_vm7, 1, %v7109_v46  ;;  %v3832_v58 = vand.u32 65535, %v6895_v48 }
 0x2de   : > { %vm4378_vm1 = vcmp.lt.s32.totalorder %v4342_v45, 16  ;;  %v3796_v53 = vmul.u32 18, %v3795_v13  ;;  %v3817_v18 = vadd.s32 %v3815_v9, %v3809_v19  ;;  %v3082_v0 = vadd.f32 %v3018_v42, %v2772_v11 }
 0x2df   : > { %v4486_v17 = vsel %vm4378_vm1, %v3081_v43, 0.0  ;;  %vm3818_vm8 = vc.u32 %v3816_v61, %v3812_v37  ;;  %v3833_v32 = vshrl.u32 %v6895_v48, 16  ;;  %v3835_v39 = vmul.u32 14564, %v3832_v58 }
 0x2e0   : > { %v4543_v55 = vsel %vm4501_vm11, %v4486_v17, 0.0  ;;  %v4602_v33 = vmul.f32 %v4486_v17, %v4486_v17  ;;  %4716 = vst.msk [vmem:[%s6050_s22 + $0xa8] sm:$0xff] %vm4501_vm11, %v4486_v17  ;;  %v3797_v10 = vsub.s32 %v6847_v34, %v3796_v53  ;;  %v3819_v3 = vsel %vm3818_vm8, 1, %v7109_v46 }
 0x2e1   : > { %v4544_v14 = vadd.f32 %v4543_v55, %v4542_v21  ;;  %v2401_v28 = vpop.f32.mrf.mxu2  ;;  %v3836_v34 = vmul.u32 58254, %v3832_v58  ;;  %v3821_v25 = vadd.s32 %v3819_v3, %v3817_v18  ;;  %v3837_v22 = vmul.u32 14564, %v3833_v32 }
 0x2e2   : > { %v4658_v57 = vsel %vm4501_vm11, %v4602_v33, 0.0  ;;  %vm4199_vm9 = vcmp.ne.s32.totalorder %v3797_v10, 0  ;;  %vm4235_vm10 = vcmp.lt.s32.totalorder %v3797_v10, 0  ;;  %v4307_v7 = vadd.s32 18, %v3797_v10  ;;  %v2711_v41 = vpop.f32.mrf.mxu3  ;;  %v3024_v51 = vpop.f32.mrf.mxu0 }
 0x2e3   : > { %v4659_v16 = vadd.f32 %v4658_v57, %v4657_v35  ;;  %vm4271_vm12 = vmand %vm4235_vm10, %vm4199_vm9  ;;  %v2463_v23 = vadd.f32 %v2401_v28, %v2153_v24  ;;  %v3839_v20 = vshll.u32 %v3836_v34, 16  ;;  %v6910_v62 = vadd.s32 200, %v5830_v38 }
 0x2e4   : > { %v4343_v6 = vsel %vm4271_vm12, %v4307_v7, %v3797_v10  ;;  %v3822_v42 = vadd.s32 %v3821_v25, %v3811_v4  ;;  %v3838_v5 = vmul.u32 58254, %v3833_v32  ;;  %v3841_v21 = vshll.u32 %v3837_v22, 16 }
 0x2e5   : > { %vm4379_vm13 = vcmp.lt.s32.totalorder %v4343_v6, 16  ;;  %v2097_v59 = vpop.f32.mrf.mxu1  ;;  %v2773_v27 = vadd.f32 %v2711_v41, %v2463_v23  ;;  %v3840_v15 = vshrl.u32 %v3836_v34, 16  ;;  %vm3843_vm14 = vc.u32 %v3835_v39, %v3839_v20 }
 0x2e6   : > { %v4487_v60 = vsel %vm4379_vm13, %v3082_v0, 0.0  ;;  %v3823_v35 = vadd.s32 %v3822_v42, %v3813_v2  ;;  %v3845_v43 = vadd.s32 %v3839_v20, %v3835_v39  ;;  %v3844_v50 = vsel %vm3843_vm14, 1, %v7109_v46 }
 0x2e7   : > { %v4545_v12 = vsel %vm4501_vm11, %v4487_v60, 0.0  ;;  %v4603_v29 = vmul.f32 %v4487_v60, %v4487_v60  ;;  %4717 = vst.msk [vmem:[%s6050_s22 + $0xb0] sm:$0xff] %vm4501_vm11, %v4487_v60  ;;  %v3861_v49 = vand.u32 65535, %v6910_v62  ;;  %v3862_v36 = vshrl.u32 %v6910_v62, 16 }
 0x2e8   : > { %v6915_v56 = vadd.f32 %v4545_v12, %v4544_v14  ;;  %v3824_v63 = vshrl.u32 %v3823_v35, 4  ;;  %v3846_v44 = vadd.s32 %v3844_v50, %v3838_v5  ;;  %vm3847_vm15 = vc.u32 %v3845_v43, %v3841_v21  ;;  %v7186_v50 = vld [vmem:[#allocation3_spill] sm:$0xff] }
 0x2e9   : > { %v4660_v26 = vsel %vm4501_vm11, %v4603_v29, 0.0  ;;  %v2404_v30 = vpop.f32.mrf.mxu2  ;;  %v2154_v24 = vadd.f32 %v2094_v40, %v5795_v1  ;;  %v3848_v19 = vsel %vm3847_vm15, 1, %v7109_v46  ;;  %v3864_v52 = vmul.u32 14564, %v3861_v49 }
 0x2ea   : > { %v6921_v31 = vadd.f32 %v4660_v26, %v4659_v16  ;;  %v2714_v13 = vpop.f32.mrf.mxu3  ;;  %v3865_v45 = vmul.u32 58254, %v3861_v49  ;;  %v3825_v11 = vmul.u32 18, %v3824_v63  ;;  %v3842_v4 = vshrl.u32 %v3837_v22, 16  ;;  %v3027_v20 = vpop.f32.mrf.mxu0 }
 0x2eb   : > { %v3850_v37 = vadd.s32 %v3848_v19, %v3846_v44  ;;  %v3866_v53 = vmul.u32 14564, %v3862_v36  ;;  %v3083_v61 = vadd.f32 %v3021_v54, %v2773_v27  ;;  %v2155_v17 = vadd.f32 %v2097_v59, %v5802_v8 }
 0x2ec   : > { %v3868_v2 = vshll.u32 %v3865_v45, 16  ;;  %v6927_v9 = vadd.s32 208, %v5830_v38  ;;  %v3826_v58 = vsub.s32 %v6881_v47, %v3825_v11  ;;  %v3867_v40 = vmul.u32 58254, %v3862_v36 }
 0x2ed   : > { %v3851_v55 = vadd.s32 %v3850_v37, %v3840_v15  ;;  %v2100_v1 = vpop.f32.mrf.mxu1  ;;  %v3870_v33 = vshll.u32 %v3866_v53, 16  ;;  %v2464_v10 = vadd.f32 %v2404_v30, %v2154_v24  ;;  %v3869_v18 = vshrl.u32 %v3865_v45, 16 }
 0x2ee   : > { %vm3872_vm0 = vc.u32 %v3864_v52, %v3868_v2  ;;  %v3874_v14 = vadd.s32 %v3868_v2, %v3864_v52  ;;  %vm4200_vm2 = vcmp.ne.s32.totalorder %v3826_v58, 0  ;;  %vm4236_vm3 = vcmp.lt.s32.totalorder %v3826_v58, 0 }
 0x2ef   : > { %v4308_v0 = vadd.s32 18, %v3826_v58  ;;  %v3852_v54 = vadd.s32 %v3851_v55, %v3842_v4  ;;  %vm4272_vm4 = vmand %vm4236_vm3, %vm4200_vm2  ;;  %v3873_v8 = vsel %vm3872_vm0, 1, %v7109_v46  ;;  %v3890_v32 = vand.u32 65535, %v6927_v9 }
 0x2f0   : > { %vm3876_vm5 = vc.u32 %v3874_v14, %v3870_v33  ;;  %v3891_v47 = vshrl.u32 %v6927_v9, 16  ;;  %v3875_v16 = vadd.s32 %v3873_v8, %v3867_v40  ;;  %v2774_v41 = vadd.f32 %v2714_v13, %v2464_v10 }
 0x2f1   : > { %v4344_v57 = vsel %vm4272_vm4, %v4308_v0, %v3826_v58  ;;  %v3853_v7 = vshrl.u32 %v3852_v54, 4  ;;  %v2407_v28 = vpop.f32.mrf.mxu2  ;;  %v3877_v23 = vsel %vm3876_vm5, 1, %v7109_v46  ;;  %v3871_v34 = vshrl.u32 %v3866_v53, 16 }
 0x2f2   : > { %vm4380_vm6 = vcmp.lt.s32.totalorder %v4344_v57, 16  ;;  %v2717_v3 = vpop.f32.mrf.mxu3  ;;  %v6934_v6 = vmul.u32 58254, %v3890_v32  ;;  %v2465_v22 = vadd.f32 %v2407_v28, %v2155_v17  ;;  %v3879_v60 = vadd.s32 %v3877_v23, %v3875_v16  ;;  %v3030_v40 = vpop.f32.mrf.mxu0 }
 0x2f3   : > { %v4488_v25 = vsel %vm4380_vm6, %v3083_v61, 0.0  ;;  %v3854_v39 = vmul.u32 18, %v3853_v7  ;;  %v3893_v5 = vmul.u32 14564, %v3890_v32  ;;  %v6939_v21 = vmul.u32 14564, %v3891_v47 }
 0x2f4   : > { %v4547_v42 = vsel %vm4501_vm11, %v4488_v25, 0.0  ;;  %v4604_v59 = vmul.f32 %v4488_v25, %v4488_v25  ;;  %4718 = vst.msk [vmem:[%s6050_s22 + $0xb8] sm:$0xff] %vm4501_vm11, %v4488_v25  ;;  %v3880_v27 = vadd.s32 %v3879_v60, %v3869_v18  ;;  %v3897_v35 = vshll.u32 %v6934_v6, 16 }
 0x2f5   : > { %v4548_v12 = vadd.f32 %v4547_v42, %v6915_v56  ;;  %v3855_v29 = vsub.s32 %v6895_v48, %v3854_v39  ;;  %v2103_v15 = vpop.f32.mrf.mxu1  ;;  %v3084_v26 = vadd.f32 %v3024_v51, %v2774_v41  ;;  %v2156_v49 = vadd.f32 %v2100_v1, %v7186_v50  ;;  %v7187_v41 = vld [vmem:[#allocation4_spill] sm:$0xff] }
 0x2f6   : > { %v4662_v43 = vsel %vm4501_vm11, %v4604_v59, 0.0  ;;  %v3896_v36 = vmul.u32 58254, %v3891_v47  ;;  %v2775_v44 = vadd.f32 %v2717_v3, %v2465_v22  ;;  %v3881_v56 = vadd.s32 %v3880_v27, %v3871_v34 }
 0x2f7   : > { %v4663_v63 = vadd.f32 %v4662_v43, %v6921_v31  ;;  %vm4201_vm1 = vcmp.ne.s32.totalorder %v3855_v29, 0  ;;  %vm4237_vm7 = vcmp.lt.s32.totalorder %v3855_v29, 0  ;;  %v4309_v30 = vadd.s32 18, %v3855_v29 }
 0x2f8   : > { %vm4273_vm8 = vmand %vm4237_vm7, %vm4201_vm1  ;;  %v3899_v48 = vshll.u32 %v6939_v21, 16  ;;  %vm3901_vm9 = vc.u32 %v3893_v5, %v3897_v35  ;;  %v3903_v51 = vadd.s32 %v3897_v35, %v3893_v5  ;;  %v6950_v52 = vadd.s32 216, %v5830_v38 }
 0x2f9   : > { %v4345_v24 = vsel %vm4273_vm8, %v4309_v30, %v3855_v29  ;;  %v2410_v13 = vpop.f32.mrf.mxu2  ;;  %v3902_v19 = vsel %vm3901_vm9, 1, %v7109_v46  ;;  %v3882_v31 = vshrl.u32 %v3881_v56, 4  ;;  %v3898_v55 = vshrl.u32 %v6934_v6, 16 }
 0x2fa   : > { %vm4381_vm10 = vcmp.lt.s32.totalorder %v4345_v24, 16  ;;  %v2466_v45 = vadd.f32 %v2410_v13, %v2156_v49  ;;  %v2720_v11 = vpop.f32.mrf.mxu3  ;;  %v3904_v4 = vadd.s32 %v3902_v19, %v3896_v36  ;;  %vm3905_vm12 = vc.u32 %v3903_v51, %v3899_v48  ;;  %v7188_v51 = vld [vmem:[#allocation5_spill] sm:$0xff] }
 0x2fb   : > { %v4489_v37 = vsel %vm4381_vm10, %v3084_v26, 0.0  ;;  %v3919_v53 = vand.u32 65535, %v6950_v52  ;;  %v3920_v61 = vshrl.u32 %v6950_v52, 16  ;;  %v3883_v58 = vmul.u32 18, %v3882_v31 }
 0x2fc   : > { %v4549_v17 = vsel %vm4501_vm11, %v4489_v37, 0.0  ;;  %v4605_v2 = vmul.f32 %v4489_v37, %v4489_v37  ;;  %4719 = vst.msk [vmem:[%s6050_s22 + $0xc0] sm:$0xff] %vm4501_vm11, %v4489_v37  ;;  %v3900_v33 = vshrl.u32 %v6939_v21, 16  ;;  %v3906_v10 = vsel %vm3905_vm12, 1, %v7109_v46 }
 0x2fd   : > { %v4550_v1 = vadd.f32 %v4549_v17, %v4548_v12  ;;  %v2106_v18 = vpop.f32.mrf.mxu1  ;;  %v3923_v14 = vmul.u32 58254, %v3919_v53  ;;  %v3884_v54 = vsub.s32 %v6910_v62, %v3883_v58  ;;  %v2776_v8 = vadd.f32 %v2720_v11, %v2466_v45 }
 0x2fe   : > { %v4664_v0 = vsel %vm4501_vm11, %v4605_v2, 0.0  ;;  %v3908_v32 = vadd.s32 %v3906_v10, %v3904_v4  ;;  %v3085_v57 = vadd.f32 %v3027_v20, %v2775_v44  ;;  %v3922_v7 = vmul.u32 14564, %v3919_v53  ;;  %v3033_v44 = vpop.f32.mrf.mxu0  ;;  %v7189_v53 = vld [vmem:[#allocation6_spill] sm:$0xff] }
 0x2ff   : > { %v4665_v47 = vadd.f32 %v4664_v0, %v4663_v63  ;;  %v3924_v28 = vmul.u32 14564, %v3920_v61  ;;  %vm4202_vm13 = vcmp.ne.s32.totalorder %v3884_v54, 0  ;;  %vm4238_vm14 = vcmp.lt.s32.totalorder %v3884_v54, 0 }
 0x300   : > { %v4310_v16 = vadd.s32 18, %v3884_v54  ;;  %v3909_v23 = vadd.s32 %v3908_v32, %v3898_v55  ;;  %vm4274_vm15 = vmand %vm4238_vm14, %vm4202_vm13  ;;  %v2157_v3 = vadd.f32 %v2103_v15, %v7187_v41  ;;  %v3925_v6 = vmul.u32 58254, %v3920_v61 }
 0x301   : > { %v2413_v34 = vpop.f32.mrf.mxu2  ;;  %v3926_v25 = vshll.u32 %v3923_v14, 16  ;;  %v3928_v39 = vshll.u32 %v3924_v28, 16  ;;  %v3086_v62 = vadd.f32 %v3030_v40, %v2776_v8  ;;  %v3927_v59 = vshrl.u32 %v3923_v14, 16 }
 0x302   : > { %v4346_v22 = vsel %vm4274_vm15, %v4310_v16, %v3884_v54  ;;  %v3910_v60 = vadd.s32 %v3909_v23, %v3900_v33  ;;  %v2723_v42 = vpop.f32.mrf.mxu3  ;;  %v6964_v5 = vadd.s32 224, %v5830_v38  ;;  %v2467_v29 = vadd.f32 %v2413_v34, %v2157_v3 }
 0x303   : > { %vm4382_vm0 = vcmp.lt.s32.totalorder %v4346_v22, 16  ;;  %vm3930_vm2 = vc.u32 %v3922_v7, %v3926_v25  ;;  %v3932_v20 = vadd.s32 %v3926_v25, %v3922_v7  ;;  %v3929_v49 = vshrl.u32 %v3924_v28, 16 }
 0x304   : > { %v4490_v21 = vsel %vm4382_vm0, %v3085_v57, 0.0  ;;  %v3911_v12 = vshrl.u32 %v3910_v60, 4  ;;  %v3931_v27 = vsel %vm3930_vm2, 1, %v7109_v46  ;;  %v3948_v48 = vand.u32 65535, %v6964_v5 }
 0x305   : > { %v4551_v15 = vsel %vm4501_vm11, %v4490_v21, 0.0  ;;  %v4606_v35 = vmul.f32 %v4490_v21, %v4490_v21  ;;  %4720 = vst.msk [vmem:[%s6050_s22 + $0xc8] sm:$0xff] %vm4501_vm11, %v4490_v21  ;;  %v3933_v43 = vadd.s32 %v3931_v27, %v3925_v6  ;;  %vm3934_vm3 = vc.u32 %v3932_v20, %v3928_v39  ;;  %v2109_v63 = vpop.f32.mrf.mxu1 }
 0x306   : > { %v4552_v26 = vadd.f32 %v4551_v15, %v4550_v1  ;;  %v3912_v50 = vmul.u32 18, %v3911_v12  ;;  %v3935_v36 = vsel %vm3934_vm3, 1, %v7109_v46  ;;  %v6974_v24 = vadd.s32 232, %v5830_v38  ;;  %v3036_v22 = vpop.f32.mrf.mxu0 }
 0x307   : > { %v4666_v30 = vsel %vm4501_vm11, %v4606_v35, 0.0  ;;  %v3937_v56 = vadd.s32 %v3935_v36, %v3933_v43  ;;  %v2158_v31 = vadd.f32 %v2106_v18, %v7188_v51  ;;  %v3949_v45 = vshrl.u32 %v6964_v5, 16 }
 0x308   : > { %v4667_v13 = vadd.f32 %v4666_v30, %v4665_v47  ;;  %v3913_v19 = vsub.s32 %v6927_v9, %v3912_v50  ;;  %v2777_v11 = vadd.f32 %v2723_v42, %v2467_v29  ;;  %v2159_v61 = vadd.f32 %v2109_v63, %v7189_v53 }
 0x309   : > { %v3938_v4 = vadd.s32 %v3937_v56, %v3927_v59  ;;  %v2416_v37 = vpop.f32.mrf.mxu2  ;;  %v3952_v17 = vmul.u32 58254, %v3948_v48  ;;  %v3951_v55 = vmul.u32 14564, %v3948_v48  ;;  %v3953_v40 = vmul.u32 14564, %v3949_v45 }
 0x30a   : > { %vm4203_vm4 = vcmp.ne.s32.totalorder %v3913_v19, 0  ;;  %vm4239_vm5 = vcmp.lt.s32.totalorder %v3913_v19, 0  ;;  %v4311_v2 = vadd.s32 18, %v3913_v19  ;;  %v2726_v58 = vpop.f32.mrf.mxu3  ;;  %v3977_v9 = vand.u32 65535, %v6974_v24 }
 0x30b   : > { %vm4275_vm6 = vmand %vm4239_vm5, %vm4203_vm4  ;;  %v3939_v1 = vadd.s32 %v3938_v4, %v3929_v49  ;;  %v3955_v33 = vshll.u32 %v3952_v17, 16  ;;  %v2468_v18 = vadd.f32 %v2416_v37, %v2158_v31  ;;  %v3954_v14 = vmul.u32 58254, %v3949_v45 }
 0x30c   : > { %v4347_v10 = vsel %vm4275_vm6, %v4311_v2, %v3913_v19  ;;  %v3978_v0 = vshrl.u32 %v6974_v24, 16  ;;  %v3956_v8 = vshrl.u32 %v3952_v17, 16  ;;  %v3957_v32 = vshll.u32 %v3953_v40, 16 }
 0x30d   : > { %vm4383_vm1 = vcmp.lt.s32.totalorder %v4347_v10, 16  ;;  %v3940_v54 = vshrl.u32 %v3939_v1, 4  ;;  %vm3959_vm7 = vc.u32 %v3951_v55, %v3955_v33  ;;  %v3961_v57 = vadd.s32 %v3955_v33, %v3951_v55  ;;  %v2112_v4 = vpop.f32.mrf.mxu1 }
 0x30e   : > { %v4491_v47 = vsel %vm4383_vm1, %v3086_v62, 0.0  ;;  %v3980_v7 = vmul.u32 14564, %v3977_v9  ;;  %v3960_v41 = vsel %vm3959_vm7, 1, %v7109_v46  ;;  %v3958_v34 = vshrl.u32 %v3953_v40, 16  ;;  %v3039_v1 = vpop.f32.mrf.mxu0 }
 0x30f   : > { %v4553_v28 = vsel %vm4501_vm11, %v4491_v47, 0.0  ;;  %v4607_v16 = vmul.f32 %v4491_v47, %v4491_v47  ;;  %4721 = vst.msk [vmem:[%s6050_s22 + $0xd0] sm:$0xff] %vm4501_vm11, %v4491_v47  ;;  %v3941_v23 = vmul.u32 18, %v3940_v54  ;;  %v3962_v6 = vadd.s32 %v3960_v41, %v3954_v14 }
 0x310   : > { %v4554_v3 = vadd.f32 %v4553_v28, %v4552_v26  ;;  %vm3963_vm8 = vc.u32 %v3961_v57, %v3957_v32  ;;  %v3981_v42 = vmul.u32 58254, %v3977_v9  ;;  %v3982_v12 = vmul.u32 14564, %v3978_v0 }
 0x311   : > { %v4668_v25 = vsel %vm4501_vm11, %v4607_v16, 0.0  ;;  %v3942_v39 = vsub.s32 %v6950_v52, %v3941_v23  ;;  %v3964_v62 = vsel %vm3963_vm8, 1, %v7109_v46  ;;  %v2419_v60 = vpop.f32.mrf.mxu2  ;;  %v3087_v29 = vadd.f32 %v3033_v44, %v2777_v11 }
 0x312   : > { %v4669_v59 = vadd.f32 %v4668_v25, %v4667_v13  ;;  %v3966_v20 = vadd.s32 %v3964_v62, %v3962_v6  ;;  %v2469_v21 = vadd.f32 %v2419_v60, %v2159_v61  ;;  %v2729_v15 = vpop.f32.mrf.mxu3  ;;  %v3983_v43 = vmul.u32 58254, %v3978_v0 }
 0x313   : > { %vm4204_vm9 = vcmp.ne.s32.totalorder %v3942_v39, 0  ;;  %vm4240_vm10 = vcmp.lt.s32.totalorder %v3942_v39, 0  ;;  %v4312_v27 = vadd.s32 18, %v3942_v39  ;;  %v3984_v26 = vshll.u32 %v3981_v42, 16 }
 0x314   : > { %vm4276_vm12 = vmand %vm4240_vm10, %vm4204_vm9  ;;  %v3967_v35 = vadd.s32 %v3966_v20, %v3956_v8  ;;  %v2778_v50 = vadd.f32 %v2726_v58, %v2468_v18  ;;  %v3986_v49 = vshll.u32 %v3982_v12, 16  ;;  %v6990_v36 = vadd.s32 240, %v5830_v38 }
 0x315   : > { %v4348_v52 = vsel %vm4276_vm12, %v4312_v27, %v3942_v39  ;;  %v2779_v30 = vadd.f32 %v2729_v15, %v2469_v21  ;;  %vm3988_vm14 = vc.u32 %v3980_v7, %v3984_v26  ;;  %v3985_v56 = vshrl.u32 %v3981_v42, 16 }
 0x316   : > { %vm4384_vm13 = vcmp.lt.s32.totalorder %v4348_v52, 16  ;;  %v3968_v63 = vadd.s32 %v3967_v35, %v3958_v34  ;;  %v3989_v48 = vsel %vm3988_vm14, 1, %v7109_v46  ;;  %v3990_v13 = vadd.s32 %v3984_v26, %v3980_v7  ;;  %v7190_v7 = vld [vmem:[#allocation7_spill] sm:$0xff] }
 0x317   : > { %v4492_v44 = vsel %vm4384_vm13, %v3087_v29, 0.0  ;;  %v3991_v45 = vadd.s32 %v3989_v48, %v3983_v43  ;;  %v4006_v37 = vand.u32 65535, %v6990_v36  ;;  %v4007_v53 = vshrl.u32 %v6990_v36, 16  ;;  %v2115_v29 = vpop.f32.mrf.mxu1 }
 0x318   : > { %v4555_v19 = vsel %vm4501_vm11, %v4492_v44, 0.0  ;;  %v4608_v51 = vmul.f32 %v4492_v44, %v4492_v44  ;;  %4722 = vst.msk [vmem:[%s6050_s22 + $0xd8] sm:$0xff] %vm4501_vm11, %v4492_v44  ;;  %v3969_v31 = vshrl.u32 %v3968_v63, 4  ;;  %vm3992_vm15 = vc.u32 %v3990_v13, %v3986_v49  ;;  %v3042_v49 = vpop.f32.mrf.mxu0 }
 0x319   : > { %v4556_v11 = vadd.f32 %v4555_v19, %v4554_v3  ;;  %v3987_v2 = vshrl.u32 %v3982_v12, 16  ;;  %v3993_v58 = vsel %vm3992_vm15, 1, %v7109_v46  ;;  %v4009_v33 = vmul.u32 14564, %v4006_v37  ;;  %v2422_v14 = vpop.f32.mrf.mxu2 }
 0x31a   : > { %v4670_v61 = vsel %vm4501_vm11, %v4608_v51, 0.0  ;;  %v3970_v17 = vmul.u32 18, %v3969_v31  ;;  %v3995_v40 = vadd.s32 %v3993_v58, %v3991_v45  ;;  %v4010_v9 = vmul.u32 58254, %v4006_v37  ;;  %v2732_v39 = vpop.f32.mrf.mxu3 }
 0x31b   : > { %v4671_v55 = vadd.f32 %v4670_v61, %v4669_v59  ;;  %v3088_v10 = vadd.f32 %v3036_v22, %v2778_v50  ;;  %v4011_v0 = vmul.u32 14564, %v4007_v53  ;;  %v4012_v8 = vmul.u32 58254, %v4007_v53 }
 0x31c   : > { %v3971_v18 = vsub.s32 %v6964_v5, %v3970_v17  ;;  %v3996_v54 = vadd.s32 %v3995_v40, %v3985_v56  ;;  %v4013_v32 = vshll.u32 %v4010_v9, 16  ;;  %v7002_v47 = vadd.s32 248, %v5830_v38  ;;  %v7191_v56 = vld [vmem:[#allocation8_spill] sm:$0xff] }
 0x31d   : > { %v2160_v28 = vadd.f32 %v2112_v4, %v7190_v7  ;;  %v3089_v16 = vadd.f32 %v3039_v1, %v2779_v30  ;;  %v4015_v41 = vshll.u32 %v4011_v0, 16  ;;  %v4014_v42 = vshrl.u32 %v4010_v9, 16 }
 0x31e   : > { %vm4205_vm0 = vcmp.ne.s32.totalorder %v3971_v18, 0  ;;  %vm4241_vm2 = vcmp.lt.s32.totalorder %v3971_v18, 0  ;;  %v4313_v57 = vadd.s32 18, %v3971_v18  ;;  %v3997_v23 = vadd.s32 %v3996_v54, %v3987_v2 }
 0x31f   : > { %vm4277_vm3 = vmand %vm4241_vm2, %vm4205_vm0  ;;  %vm4017_vm4 = vc.u32 %v4009_v33, %v4013_v32  ;;  %v2470_v3 = vadd.f32 %v2422_v14, %v2160_v28  ;;  %v4019_v6 = vadd.s32 %v4013_v32, %v4009_v33  ;;  %v4035_v62 = vand.u32 65535, %v7002_v47  ;;  %v2118_v28 = vpop.f32.mrf.mxu1 }
 0x320   : > { %v4349_v5 = vsel %vm4277_vm3, %v4313_v57, %v3971_v18  ;;  %v4018_v34 = vsel %vm4017_vm4, 1, %v7109_v46  ;;  %v3998_v25 = vshrl.u32 %v3997_v23, 4  ;;  %v4036_v59 = vshrl.u32 %v7002_v47, 16 }
 0x321   : > { %vm4385_vm5 = vcmp.lt.s32.totalorder %v4349_v5, 16  ;;  %v4020_v22 = vadd.s32 %v4018_v34, %v4012_v8  ;;  %vm4021_vm6 = vc.u32 %v4019_v6, %v4015_v41  ;;  %v4016_v35 = vshrl.u32 %v4011_v0, 16  ;;  %v2425_v19 = vpop.f32.mrf.mxu2 }
 0x322   : > { %v4493_v60 = vsel %vm4385_vm5, %v3088_v10, 0.0  ;;  %v3999_v12 = vmul.u32 18, %v3998_v25  ;;  %v4022_v27 = vsel %vm4021_vm6, 1, %v7109_v46  ;;  %v4038_v26 = vmul.u32 14564, %v4035_v62  ;;  %v2735_v1 = vpop.f32.mrf.mxu3 }
 0x323   : > { %v4557_v20 = vsel %vm4501_vm11, %v4493_v60, 0.0  ;;  %v4609_v21 = vmul.f32 %v4493_v60, %v4493_v60  ;;  %4723 = vst.msk [vmem:[%s6050_s22 + $0xe0] sm:$0xff] %vm4501_vm11, %v4493_v60  ;;  %v4024_v43 = vadd.s32 %v4022_v27, %v4020_v22  ;;  %v4039_v63 = vmul.u32 58254, %v4035_v62  ;;  %v7192_v62 = vld [vmem:[#allocation9_spill] sm:$0xff] }
 0x324   : > { %v4558_v15 = vadd.f32 %v4557_v20, %v4556_v11  ;;  %v4000_v50 = vsub.s32 %v6974_v24, %v3999_v12  ;;  %v4040_v30 = vmul.u32 14564, %v4036_v59  ;;  %v2161_v48 = vadd.f32 %v2115_v29, %v7191_v56 }
 0x325   : > { %v4672_v52 = vsel %vm4501_vm11, %v4609_v21, 0.0  ;;  %v4025_v13 = vadd.s32 %v4024_v43, %v4014_v42  ;;  %v4041_v51 = vmul.u32 58254, %v4036_v59  ;;  %v4042_v45 = vshll.u32 %v4039_v63, 16 }
 0x326   : > { %v4673_v44 = vadd.f32 %v4672_v52, %v4671_v55  ;;  %vm4206_vm1 = vcmp.ne.s32.totalorder %v4000_v50, 0  ;;  %vm4242_vm7 = vcmp.lt.s32.totalorder %v4000_v50, 0  ;;  %v4314_v31 = vadd.s32 18, %v4000_v50 }
 0x327   : > { %vm4278_vm8 = vmand %vm4242_vm7, %vm4206_vm1  ;;  %v2780_v11 = vadd.f32 %v2732_v39, %v2470_v3  ;;  %v4026_v4 = vadd.s32 %v4025_v13, %v4016_v35  ;;  %v4044_v37 = vshll.u32 %v4040_v30, 16  ;;  %v2471_v24 = vadd.f32 %v2425_v19, %v2161_v48  ;;  %v3045_v3 = vpop.f32.mrf.mxu0 }
 0x328   : > { %v4350_v53 = vsel %vm4278_vm8, %v4314_v31, %v4000_v50  ;;  %vm4046_vm9 = vc.u32 %v4038_v26, %v4042_v45  ;;  %v4048_v61 = vadd.s32 %v4042_v45, %v4038_v26  ;;  %v4043_v2 = vshrl.u32 %v4039_v63, 16 }
 0x329   : > { %vm4386_vm10 = vcmp.lt.s32.totalorder %v4350_v53, 16  ;;  %v4027_v17 = vshrl.u32 %v4026_v4, 4  ;;  %v4047_v58 = vsel %vm4046_vm9, 1, %v7109_v46  ;;  %v7017_v33 = vadd.s32 256, %v5830_v38  ;;  %v2428_v39 = vpop.f32.mrf.mxu2 }
 0x32a   : > { %v4494_v55 = vsel %vm4386_vm10, %v3089_v16, 0.0  ;;  %v4049_v40 = vadd.s32 %v4047_v58, %v4041_v51  ;;  %vm4050_vm12 = vc.u32 %v4048_v61, %v4044_v37  ;;  %v4045_v54 = vshrl.u32 %v4040_v30, 16 }
 0x32b   : > { %v4559_v9 = vsel %vm4501_vm11, %v4494_v55, 0.0  ;;  %v4610_v10 = vmul.f32 %v4494_v55, %v4494_v55  ;;  %4724 = vst.msk [vmem:[%s6050_s22 + $0xe8] sm:$0xff] %vm4501_vm11, %v4494_v55  ;;  %v4028_v18 = vmul.u32 18, %v4027_v17  ;;  %v4051_v14 = vsel %vm4050_vm12, 1, %v7109_v46 }
 0x32c   : > { %v4560_v0 = vadd.f32 %v4559_v9, %v4558_v15  ;;  %v4053_v8 = vadd.s32 %v4051_v14, %v4049_v40  ;;  %v4064_v32 = vand.u32 65535, %v7017_v33  ;;  %v2781_v16 = vadd.f32 %v2735_v1, %v2471_v24  ;;  %v7193_v9 = vld [vmem:[#allocation10_spill] sm:$0xff] }
 0x32d   : > { %v4674_v57 = vsel %vm4501_vm11, %v4610_v10, 0.0  ;;  %v4029_v7 = vsub.s32 %v6990_v36, %v4028_v18  ;;  %v4065_v23 = vshrl.u32 %v7017_v33, 16  ;;  %v3090_v5 = vadd.f32 %v3042_v49, %v2780_v11  ;;  %v2121_v11 = vpop.f32.mrf.mxu1 }
 0x32e   : > { %v4675_v41 = vadd.f32 %v4674_v57, %v4673_v44  ;;  %v4054_v34 = vadd.s32 %v4053_v8, %v4043_v2  ;;  %v4067_v6 = vmul.u32 14564, %v4064_v32  ;;  %v4068_v22 = vmul.u32 58254, %v4064_v32  ;;  %v2738_v44 = vpop.f32.mrf.mxu3 }
 0x32f   : > { %vm4207_vm13 = vcmp.ne.s32.totalorder %v4029_v7, 0  ;;  %vm4243_vm14 = vcmp.lt.s32.totalorder %v4029_v7, 0  ;;  %v4315_v25 = vadd.s32 18, %v4029_v7  ;;  %v2162_v60 = vadd.f32 %v2118_v28, %v7192_v62  ;;  %v3048_v17 = vpop.f32.mrf.mxu0 }
 0x330   : > { %vm4279_vm15 = vmand %vm4243_vm14, %vm4207_vm13  ;;  %v4055_v42 = vadd.s32 %v4054_v34, %v4045_v54  ;;  %v4069_v36 = vmul.u32 14564, %v4065_v23  ;;  %v3091_v20 = vadd.f32 %v3045_v3, %v2781_v16  ;;  %v4070_v21 = vmul.u32 58254, %v4065_v23 }
 0x331   : > { %v4351_v59 = vsel %vm4279_vm15, %v4315_v25, %v4029_v7  ;;  %v4071_v12 = vshll.u32 %v4068_v22, 16  ;;  %v7029_v15 = vadd.s32 264, %v5830_v38  ;;  %v2472_v43 = vadd.f32 %v2428_v39, %v2162_v60  ;;  %v2431_v58 = vpop.f32.mrf.mxu2 }
 0x332   : > { %vm4387_vm0 = vcmp.lt.s32.totalorder %v4351_v59, 16  ;;  %v4056_v29 = vshrl.u32 %v4055_v42, 4  ;;  %v4073_v27 = vshll.u32 %v4069_v36, 16  ;;  %v4072_v56 = vshrl.u32 %v4068_v22, 16 }
 0x333   : > { %v4495_v35 = vsel %vm4387_vm0, %v3090_v5, 0.0  ;;  %vm4075_vm2 = vc.u32 %v4067_v6, %v4071_v12  ;;  %v4077_v26 = vadd.s32 %v4071_v12, %v4067_v6  ;;  %v4093_v31 = vand.u32 65535, %v7029_v15 }
 0x334   : > { %v4561_v52 = vsel %vm4501_vm11, %v4495_v35, 0.0  ;;  %v4611_v50 = vmul.f32 %v4495_v35, %v4495_v35  ;;  %4725 = vst.msk [vmem:[%s6050_s22 + $0xf0] sm:$0xff] %vm4501_vm11, %v4495_v35  ;;  %v4057_v49 = vmul.u32 18, %v4056_v29  ;;  %v4076_v63 = vsel %vm4075_vm2, 1, %v7109_v46 }
 0x335   : > { %v4562_v30 = vadd.f32 %v4561_v52, %v4560_v0  ;;  %v4078_v48 = vadd.s32 %v4076_v63, %v4070_v21  ;;  %vm4079_vm3 = vc.u32 %v4077_v26, %v4073_v27  ;;  %v4074_v4 = vshrl.u32 %v4069_v36, 16 }
 0x336   : > { %v4676_v13 = vsel %vm4501_vm11, %v4611_v50, 0.0  ;;  %v4058_v19 = vsub.s32 %v7002_v47, %v4057_v49  ;;  %v4080_v51 = vsel %vm4079_vm3, 1, %v7109_v46  ;;  %v4094_v53 = vshrl.u32 %v7029_v15, 16  ;;  %v2741_v59 = vpop.f32.mrf.mxu3 }
 0x337   : > { %v4677_v45 = vadd.f32 %v4676_v13, %v4675_v41  ;;  %v4082_v37 = vadd.s32 %v4080_v51, %v4078_v48  ;;  %v2782_v61 = vadd.f32 %v2738_v44, %v2472_v43  ;;  %v4096_v55 = vmul.u32 14564, %v4093_v31  ;;  %v2124_v51 = vpop.f32.mrf.mxu1 }
 0x338   : > { %vm4208_vm4 = vcmp.ne.s32.totalorder %v4058_v19, 0  ;;  %vm4244_vm5 = vcmp.lt.s32.totalorder %v4058_v19, 0  ;;  %v4316_v24 = vadd.s32 18, %v4058_v19  ;;  %v4097_v47 = vmul.u32 58254, %v4093_v31  ;;  %v3051_v31 = vpop.f32.mrf.mxu0 }
 0x339   : > { %vm4280_vm6 = vmand %vm4244_vm5, %vm4208_vm4  ;;  %v4083_v2 = vadd.s32 %v4082_v37, %v4072_v56  ;;  %v4098_v1 = vmul.u32 14564, %v4094_v53  ;;  %v2163_v10 = vadd.f32 %v2121_v11, %v7193_v9  ;;  %v4099_v18 = vmul.u32 58254, %v4094_v53 }
 0x33a   : > { %v4352_v40 = vsel %vm4280_vm6, %v4316_v24, %v4058_v19  ;;  %v4100_v0 = vshll.u32 %v4097_v47, 16  ;;  %v7042_v54 = vadd.s32 272, %v5830_v38  ;;  %v3092_v32 = vadd.f32 %v3048_v17, %v2782_v61  ;;  %v2434_v17 = vpop.f32.mrf.mxu2 }
 0x33b   : > { %vm4388_vm1 = vcmp.lt.s32.totalorder %v4352_v40, 16  ;;  %v4084_v14 = vadd.s32 %v4083_v2, %v4074_v4  ;;  %v2473_v57 = vadd.f32 %v2431_v58, %v2163_v10  ;;  %v4102_v7 = vshll.u32 %v4098_v1, 16 }
 0x33c   : > { %v4496_v8 = vsel %vm4388_vm1, %v3091_v20, 0.0  ;;  %vm4104_vm7 = vc.u32 %v4096_v55, %v4100_v0  ;;  %v4106_v3 = vadd.s32 %v4100_v0, %v4096_v55  ;;  %v7049_v34 = vadd.s32 280, %v5830_v38 }
 0x33d   : > { %v4563_v28 = vsel %vm4501_vm11, %v4496_v8, 0.0  ;;  %v4612_v16 = vmul.f32 %v4496_v8, %v4496_v8  ;;  %4726 = vst.msk [vmem:[%s6050_s22 + $0xf8] sm:$0xff] %vm4501_vm11, %v4496_v8  ;;  %v4085_v23 = vshrl.u32 %v4084_v14, 4  ;;  %v4105_v5 = vsel %vm4104_vm7, 1, %v7109_v46 }
 0x33e   : > { %v4564_v41 = vadd.f32 %v4563_v28, %v4562_v30  ;;  %v4107_v39 = vadd.s32 %v4105_v5, %v4099_v18  ;;  %v4122_v22 = vand.u32 65535, %v7042_v54  ;;  %v4101_v60 = vshrl.u32 %v4097_v47, 16 }
 0x33f   : > { %v4678_v6 = vsel %vm4501_vm11, %v4612_v16, 0.0  ;;  %v4086_v25 = vmul.u32 18, %v4085_v23  ;;  %vm4108_vm8 = vc.u32 %v4106_v3, %v4102_v7  ;;  %v4123_v42 = vshrl.u32 %v7042_v54, 16  ;;  %v2744_v16 = vpop.f32.mrf.mxu3 }
 0x340   : > { %v4679_v62 = vadd.f32 %v4678_v6, %v4677_v45  ;;  %v4109_v20 = vsel %vm4108_vm8, 1, %v7109_v46  ;;  %v4125_v21 = vmul.u32 14564, %v4122_v22  ;;  %v4126_v12 = vmul.u32 58254, %v4122_v22 }
 0x341   : > { %v4087_v36 = vsub.s32 %v7017_v33, %v4086_v25  ;;  %v4103_v38 = vshrl.u32 %v4098_v1, 16  ;;  %v4111_v29 = vadd.s32 %v4109_v20, %v4107_v39  ;;  %v4127_v27 = vmul.u32 14564, %v4123_v42  ;;  %v7194_v1 = vld [vmem:[#allocation11_spill] sm:$0xff] }
 0x342   : > { %v4128_v35 = vmul.u32 58254, %v4123_v42  ;;  %v4129_v26 = vshll.u32 %v4126_v12, 16  ;;  %v2783_v52 = vadd.f32 %v2741_v59, %v2473_v57  ;;  %v4151_v63 = vand.u32 65535, %v7049_v34  ;;  %v3054_v42 = vpop.f32.mrf.mxu0 }
 0x343   : > { %vm4209_vm9 = vcmp.ne.s32.totalorder %v4087_v36, 0  ;;  %vm4245_vm10 = vcmp.lt.s32.totalorder %v4087_v36, 0  ;;  %v4317_v43 = vadd.s32 18, %v4087_v36  ;;  %v4112_v50 = vadd.s32 %v4111_v29, %v4101_v60  ;;  %v2127_v60 = vpop.f32.mrf.mxu1 }
 0x344   : > { %vm4281_vm12 = vmand %vm4245_vm10, %vm4209_vm9  ;;  %v4131_v49 = vshll.u32 %v4127_v27, 16  ;;  %v4130_v30 = vshrl.u32 %v4126_v12, 16  ;;  %vm4133_vm13 = vc.u32 %v4125_v21, %v4129_v26  ;;  %v4135_v44 = vadd.s32 %v4129_v26, %v4125_v21  ;;  %v7195_v26 = vld [vmem:[#allocation12_spill] sm:$0xff] }
 0x345   : > { %v4353_v33 = vsel %vm4281_vm12, %v4317_v43, %v4087_v36  ;;  %v4113_v56 = vadd.s32 %v4112_v50, %v4103_v38  ;;  %v4134_v48 = vsel %vm4133_vm13, 1, %v7109_v46  ;;  %v4152_v13 = vshrl.u32 %v7049_v34, 16 }
 0x346   : > { %vm4389_vm14 = vcmp.lt.s32.totalorder %v4353_v33, 16  ;;  %v4132_v45 = vshrl.u32 %v4127_v27, 16  ;;  %v4136_v11 = vadd.s32 %v4134_v48, %v4128_v35  ;;  %vm4137_vm15 = vc.u32 %v4135_v44, %v4131_v49  ;;  %v2437_v27 = vpop.f32.mrf.mxu2 }
 0x347   : > { %v4497_v19 = vsel %vm4389_vm14, %v3092_v32, 0.0  ;;  %v4114_v53 = vshrl.u32 %v4113_v56, 4  ;;  %v4138_v24 = vsel %vm4137_vm15, 1, %v7109_v46  ;;  %v4154_v58 = vmul.u32 14564, %v4151_v63  ;;  %v2747_v56 = vpop.f32.mrf.mxu3 }
 0x348   : > { %v4565_v4 = vsel %vm4501_vm11, %v4497_v19, 0.0  ;;  %v4613_v37 = vmul.f32 %v4497_v19, %v4497_v19  ;;  %4727 = vst.msk [vmem:[%s6050_s22 + $0x100] sm:$0xff] %vm4501_vm11, %v4497_v19  ;;  %v4140_v2 = vadd.s32 %v4138_v24, %v4136_v11  ;;  %v4155_v55 = vmul.u32 58254, %v4151_v63 }
 0x349   : > { %v4566_v61 = vadd.f32 %v4565_v4, %v4564_v41  ;;  %v2164_v40 = vadd.f32 %v2124_v51, %v7194_v1  ;;  %v4115_v9 = vmul.u32 18, %v4114_v53  ;;  %v4156_v10 = vmul.u32 14564, %v4152_v13 }
 0x34a   : > { %v4680_v47 = vsel %vm4501_vm11, %v4613_v37, 0.0  ;;  %v4141_v14 = vadd.s32 %v4140_v2, %v4130_v30  ;;  %v4157_v0 = vmul.u32 58254, %v4152_v13  ;;  %v4158_v8 = vshll.u32 %v4155_v55, 16  ;;  %v3057_v11 = vpop.f32.mrf.mxu0 }
 0x34b   : > { %v4681_v18 = vadd.f32 %v4680_v47, %v4679_v62  ;;  %v4116_v32 = vsub.s32 %v7029_v15, %v4115_v9  ;;  %v2474_v57 = vadd.f32 %v2434_v17, %v2164_v40  ;;  %v4160_v7 = vshll.u32 %v4156_v10, 16 }
 0x34c   : > { %v3093_v28 = vadd.f32 %v3051_v31, %v2783_v52  ;;  %v4142_v23 = vadd.s32 %v4141_v14, %v4132_v45  ;;  %vm4162_vm0 = vc.u32 %v4154_v58, %v4158_v8  ;;  %v4164_v41 = vadd.s32 %v4158_v8, %v4154_v58 }
 0x34d   : > { %vm4210_vm2 = vcmp.ne.s32.totalorder %v4116_v32, 0  ;;  %vm4246_vm3 = vcmp.lt.s32.totalorder %v4116_v32, 0  ;;  %v4318_v5 = vadd.s32 18, %v4116_v32  ;;  %v4163_v3 = vsel %vm4162_vm0, 1, %v7109_v46 }
 0x34e   : > { %vm4282_vm4 = vmand %vm4246_vm3, %vm4210_vm2  ;;  %v4143_v6 = vshrl.u32 %v4142_v23, 4  ;;  %v4159_v25 = vshrl.u32 %v4155_v55, 16  ;;  %v4165_v39 = vadd.s32 %v4163_v3, %v4157_v0  ;;  %vm4166_vm5 = vc.u32 %v4164_v41, %v4160_v7 }
 0x34f   : > { %v4354_v22 = vsel %vm4282_vm4, %v4318_v5, %v4116_v32  ;;  %v2784_v15 = vadd.f32 %v2744_v16, %v2474_v57  ;;  %v4167_v62 = vsel %vm4166_vm5, 1, %v7109_v46  ;;  %v4161_v21 = vshrl.u32 %v4156_v10, 16 }
 0x350   : > { %vm4390_vm6 = vcmp.lt.s32.totalorder %v4354_v22, 16  ;;  %v4144_v36 = vmul.u32 18, %v4143_v6  ;;  %v4169_v59 = vadd.s32 %v4167_v62, %v4165_v39  ;;  %v2165_v52 = vadd.f32 %v2127_v60, %v7195_v26 }
 0x351   : > { %v4498_v20 = vsel %vm4390_vm6, %v3093_v28, 0.0  ;;  %v3094_v46 = vadd.f32 %v3054_v42, %v2784_v15  ;;  %vm4579_vm15 = vcmask 57344  }
 0x352   : > { %v4567_v12 = vsel %vm4501_vm11, %v4498_v20, 0.0  ;;  %v4614_v38 = vmul.f32 %v4498_v20, %v4498_v20  ;;  %4728 = vst.msk [vmem:[%s6050_s22 + $0x108] sm:$0xff] %vm4501_vm11, %v4498_v20  ;;  %v4145_v29 = vsub.s32 %v7042_v54, %v4144_v36  ;;  %v4170_v35 = vadd.s32 %v4169_v59, %v4159_v25 }
 0x353   : > { %v4568_v43 = vadd.f32 %v4567_v12, %v4566_v61  ;;  %v2475_v33 = vadd.f32 %v2437_v27, %v2165_v52 }
 0x354   : > { %v4682_v50 = vsel %vm4501_vm11, %v4614_v38, 0.0  ;;  %vm4211_vm1 = vcmp.ne.s32.totalorder %v4145_v29, 0  ;;  %vm4247_vm7 = vcmp.lt.s32.totalorder %v4145_v29, 0  ;;  %v4319_v49 = vadd.s32 18, %v4145_v29 }
 0x355   : > { %v4683_v63 = vadd.f32 %v4682_v50, %v4681_v18  ;;  %vm4283_vm8 = vmand %vm4247_vm7, %vm4211_vm1  ;;  %v4171_v30 = vadd.s32 %v4170_v35, %v4161_v21  ;;  %v2785_v51 = vadd.f32 %v2747_v56, %v2475_v33 }
 0x356   : > { %v4355_v44 = vsel %vm4283_vm8, %v4319_v49, %v4145_v29 }
 0x357   : > { %vm4391_vm9 = vcmp.lt.s32.totalorder %v4355_v44, 16  ;;  %v4172_v54 = vshrl.u32 %v4171_v30, 4  ;;  %v3095_v24 = vadd.f32 %v3057_v11, %v2785_v51 }
 0x358   : > { %v4499_v48 = vsel %vm4391_vm9, %v3094_v46, 0.0 }
 0x359   : > { %v4569_v13 = vsel %vm4501_vm11, %v4499_v48, 0.0  ;;  %v4615_v19 = vmul.f32 %v4499_v48, %v4499_v48  ;;  %4729 = vst.msk [vmem:[%s6050_s22 + $0x110] sm:$0xff] %vm4501_vm11, %v4499_v48  ;;  %v4173_v31 = vmul.u32 18, %v4172_v54 }
 0x35a   : > { %v4570_v45 = vadd.f32 %v4569_v13, %v4568_v43 }
 0x35b   : > { %v4684_v4 = vsel %vm4501_vm11, %v4615_v19, 0.0  ;;  %v4174_v37 = vsub.s32 %v7049_v34, %v4173_v31 }
 0x35c   : > { %v4685_v53 = vadd.f32 %v4684_v4, %v4683_v63 }
 0x35d   : > { %vm4212_vm10 = vcmp.ne.s32.totalorder %v4174_v37, 0  ;;  %vm4248_vm12 = vcmp.lt.s32.totalorder %v4174_v37, 0  ;;  %v4320_v61 = vadd.s32 18, %v4174_v37 }
 0x35e   : > { %vm4284_vm13 = vmand %vm4248_vm12, %vm4212_vm10 }
 0x35f   : > { %v4356_v17 = vsel %vm4284_vm13, %v4320_v61, %v4174_v37 }
 0x360   : > { %vm4392_vm14 = vcmp.lt.s32.totalorder %v4356_v17, 16 }
 0x361   : > { %v4500_v2 = vsel %vm4392_vm14, %v3095_v24, 0.0 }
 0x362   : > { %v4571_v58 = vsel %vm4501_vm11, %v4500_v2, 0.0  ;;  %v4616_v55 = vmul.f32 %v4500_v2, %v4500_v2  ;;  %4730 = vst.msk [vmem:[%s6050_s22 + $0x118] sm:$0xff] %vm4501_vm11, %v4500_v2 }
 0x363   : > { %v4572_v47 = vadd.f32 %v4571_v58, %v4570_v45 }
 0x364   : > { %v4686_v1 = vsel %vm4501_vm11, %v4616_v55, 0.0 }
 0x365   : > { %v4573_v34 = vrot.slane %v4572_v47, 4  ;;  %v4687_v40 = vadd.f32 %v4686_v1, %v4685_v53 }
 0x367   : > { %v4574_v9 = vadd.f32 %v4573_v34, %v4572_v47  ;;  %v4688_v10 = vrot.slane %v4687_v40, 4 }
 0x369   : > { %v4575_v18 = vrot.slane %v4574_v9, 2  ;;  %v4689_v14 = vadd.f32 %v4688_v10, %v4687_v40 }
 0x36b   : > { %v4576_v0 = vadd.f32 %v4575_v18, %v4574_v9  ;;  %v4690_v8 = vrot.slane %v4689_v14, 2 }
 0x36d   : > { %v4577_v32 = vrot.slane %v4576_v0, 1  ;;  %v4691_v57 = vadd.f32 %v4690_v8, %v4689_v14 }
 0x36f   : > { %v4578_v7 = vadd.f32 %v4577_v32, %v4576_v0  ;;  %v4692_v28 = vrot.slane %v4691_v57, 1 }
 0x371   : > { %4580 = vst.msk [vmem:[%s265_s25] sm:$0x1] %vm4579_vm15, %v4578_v7  ;;  %v4693_v16 = vadd.f32 %v4692_v28, %v4691_v57 }
 0x373   : > { %4694 = vst.msk [vmem:[%s268_s28] sm:$0x1] %vm4579_vm15, %v4693_v16 }
 0x374 PF: > { %s17_s21 = sadd.s32 1, %s5208_s21  }
 0x375   : > { %p14_p4 = scmp.ge.s32.totalorder %s17_s21, 4  }
 0x377   :  { %16 = sbr.rel (!%p14_p4) target bundleno = 1 (0x1), region = 98 }

// kernel: double_conv.4
= control target key start
LH: loop header
LB: loop body
LE: loop exit
PB: predicated region body
PF: predicated region fallthrough
CT: control target
= control target key end

     0   :  { %s5315_s21 = smov 0   ;;  %s7200_s0 = inlined_call_operand.vmem [shape: f32[2,288,8], index: 0, kind: input, shape index: {}]   ;;  %s7201_s1 = inlined_call_operand.vmem [shape: f32[9,8,8], index: 1, kind: input, shape index: {}]   ;;  %s7202_s2 = inlined_call_operand.vmem [shape: f32[1,8], index: 2, kind: input, shape index: {}]   ;;  %s7203_s3 = inlined_call_operand.vmem [shape: f32[1,8], index: 3, kind: input, shape index: {}]   ;;  %s7204_s4 = inlined_call_operand.vmem [shape: f32[2,288,8], index: 4, kind: output, shape index: {0}]   ;;  %s7205_s5 = inlined_call_operand.vmem [shape: f32[2,1,8], index: 5, kind: output, shape index: {1}]   ;;  %s7206_s6 = inlined_call_operand.vmem [shape: f32[2,1,8], index: 6, kind: output, shape index: {2}]  }
   0x1 LB: > { %s4911_s22 = sadd.s32 4294967295, %s5276_s21   ;;  %p4915_p0 = scmp.ge.s32.totalorder %s5276_s21, 1  ;;  %s5276_s21 = sphi %s5315_s21, %s17_s21  }
   0x2   : > { %p217_p1 = scmp.lt.s32.totalorder %s5276_s21, 3 }
   0x4   : > { %p218_p2 = pnand %p4915_p0, %p217_p1 }
   0x6   : > { %221 = sbr.rel (%p218_p2) target bundleno = 884 (0x374), region = 36 }
   0xb   : > { %v4918_v0 = vld [vmem:[%s7201_s1 + $0x8] sm:$0xff]  ;;  %p253_p3 = scmp.lt.s32.totalorder %s4911_s22, 1  ;;  %vm269_vm0 = vcmask 64512   ;;  %v5278_v1 = vmov 0.0   ;;  %v5338_v2 = vld [vmem:[%s7202_s2] ss:$0 sm:$0xff] }
   0xc   : > { %5252 = vmatpush.msra.mxu1 %v4918_v0  ;;  %5253 = vmatpush.msra.mxu2 %v4918_v0  ;;  %279 = vst.msk [vmem:[#allocation2 + $0x48] sm:$0xff] %vm269_vm0, %v5278_v1  ;;  %v5354_v3 = vld [vmem:[%s7203_s3] ss:$0 sm:$0xff]  ;;  %v4991_v8 = vld [vmem:[%s7201_s1 + $0x10] sm:$0xff]  ;;  %v5028_v10 = vld [vmem:[%s7201_s1 + $0x18] sm:$0xff] }
   0xd   : > { %s7303_s22 = smov (!%p253_p3, %s4911_s22), 1  ;;  %280 = vst.msk [vmem:[#allocation2 + $0x50] sm:$0xff] %vm269_vm0, %v5278_v1  ;;  %5254 = vmatpush.msra.mxu3 %v4918_v0  ;;  %680 = vmatpush.msra.mxu0 %v4918_v0  ;;  %v518_v11 = vld [vmem:[%s7201_s1] sm:$0xff] }
   0xe   : > { %270 = vst.msk [vmem:[#allocation2] sm:$0xff] %vm269_vm0, %v5278_v1  ;;  %s5255_s25 = smul.u32 288, %s7303_s22  ;;  %1184 = vmatpush.msrb.mxu2 %v4991_v8  ;;  %913 = vmatpush.msrb.mxu1 %v518_v11  ;;  %v5065_v14 = vld [vmem:[%s7201_s1 + $0x20] sm:$0xff]  ;;  %s265_s12 = scalar_lea.vmem %s7205_s5, %s7303_s22 }
   0xf   : > { %271 = vst.msk [vmem:[#allocation2 + $0x8] sm:$0xff] %vm269_vm0, %v5278_v1  ;;  %1491 = vmatpush.msrb.mxu3 %v5028_v10  ;;  %1798 = vmatpush.msrb.mxu0 %v5065_v14  ;;  %s268_s15 = scalar_lea.vmem %s7206_s6, %s7303_s22 }
  0x10   : > { %272 = vst.msk [vmem:[#allocation2 + $0x10] sm:$0xff] %vm269_vm0, %v5278_v1  ;;  %s5349_s30 = scalar_lea.vmem %s7200_s0, %s5255_s25  ;;  %s6151_s10 = scalar_lea.vmem %s7204_s4, %s5255_s25 }
  0x11   : > { %273 = vst.msk [vmem:[#allocation2 + $0x18] sm:$0xff] %vm269_vm0, %v5278_v1  ;;  %v352_v4 = vld [vmem:[%s5349_s30 + $0x36] sm:$0xff]  ;;  %v392_v13 = vld [vmem:[%s5349_s30 + $0x7e] sm:$0xff]  ;;  %v432_v15 = vld [vmem:[%s5349_s30 + $0xc6] sm:$0xff] }
  0x12   : > { %274 = vst.msk [vmem:[#allocation2 + $0x20] sm:$0xff] %vm269_vm0, %v5278_v1  ;;  %v354_v5 = vmul.f32 %v5338_v2, %v352_v4  ;;  %v353_v16 = vld [vmem:[%s5349_s30 + $0x3e] sm:$0xff]  ;;  %v394_v17 = vmul.f32 %v5338_v2, %v392_v13  ;;  %v393_v18 = vld [vmem:[%s5349_s30 + $0x86] sm:$0xff]  ;;  %v434_v19 = vmul.f32 %v5338_v2, %v432_v15  ;;  %v433_v21 = vld [vmem:[%s5349_s30 + $0xce] sm:$0xff] }
  0x13   : > { %275 = vst.msk [vmem:[#allocation2 + $0x28] sm:$0xff] %vm269_vm0, %v5278_v1  ;;  %v355_v20 = vmul.f32 %v5338_v2, %v353_v16  ;;  %v395_v22 = vmul.f32 %v5338_v2, %v393_v18  ;;  %v362_v23 = vld [vmem:[%s5349_s30 + $0x48] sm:$0xff]  ;;  %v402_v25 = vld [vmem:[%s5349_s30 + $0x90] sm:$0xff]  ;;  %v435_v28 = vmul.f32 %v5338_v2, %v433_v21  ;;  %v442_v29 = vld [vmem:[%s5349_s30 + $0xd8] sm:$0xff] }
  0x14   : > { %276 = vst.msk [vmem:[#allocation2 + $0x30] sm:$0xff] %vm269_vm0, %v5278_v1  ;;  %v356_v6 = vadd.f32 %v5354_v3, %v354_v5  ;;  %v396_v24 = vadd.f32 %v5354_v3, %v394_v17  ;;  %v436_v27 = vadd.f32 %v5354_v3, %v434_v19  ;;  %v364_v31 = vmul.f32 %v5338_v2, %v362_v23  ;;  %v363_v32 = vld [vmem:[%s5349_s30 + $0x50] sm:$0xff]  ;;  %v403_v35 = vld [vmem:[%s5349_s30 + $0x98] sm:$0xff]  ;;  %v316_v38 = vld [vmem:[%s5349_s30] sm:$0xff] }
  0x15   : > { %277 = vst.msk [vmem:[#allocation2 + $0x38] sm:$0xff] %vm269_vm0, %v5278_v1  ;;  %v357_v30 = vadd.f32 %v5354_v3, %v355_v20  ;;  %v397_v33 = vadd.f32 %v5354_v3, %v395_v22  ;;  %v404_v34 = vmul.f32 %v5338_v2, %v402_v25  ;;  %v444_v37 = vmul.f32 %v5338_v2, %v442_v29  ;;  %v443_v42 = vld [vmem:[%s5349_s30 + $0xe0] sm:$0xff]  ;;  %v317_v53 = vld [vmem:[%s5349_s30 + $0x8] sm:$0xff]  ;;  %v453_v11 = vld [vmem:[%s5349_s30 + $0xf2] sm:$0xff] }
  0x16   : > { %278 = vst.msk [vmem:[#allocation2 + $0x40] sm:$0xff] %vm269_vm0, %v5278_v1  ;;  %v358_v7 = vmax.f32 %v356_v6, 0.0  ;;  %v519_v12 = vld [vmem:[#allocation2 + $0x1] sm:$0xff]  ;;  %v398_v36 = vmax.f32 %v396_v24, 0.0  ;;  %v438_v39 = vmax.f32 %v436_v27, 0.0  ;;  %v437_v40 = vadd.f32 %v5354_v3, %v435_v28  ;;  %v452_v57 = vld [vmem:[%s5349_s30 + $0xea] sm:$0xff] }
  0x17   : > { %281 = vst.msk [vmem:[#allocation2 + $0x58] sm:$0xff] %vm269_vm0, %v5278_v1  ;;  %4919 = vmatmul.msk.f32.vlgmr.msra.gmra.mxu0 %vm269_vm0, %v519_v12  ;;  %v520_v26 = vld [vmem:[#allocation2 + $0x9] sm:$0xff]  ;;  %v365_v41 = vmul.f32 %v5338_v2, %v363_v32  ;;  %v359_v43 = vmax.f32 %v357_v30, 0.0  ;;  %v366_v44 = vadd.f32 %v5354_v3, %v364_v31  ;;  %v405_v45 = vmul.f32 %v5338_v2, %v403_v35  ;;  %v372_v46 = vld [vmem:[%s5349_s30 + $0x5a] sm:$0xff] }
  0x18   : > { %282 = vst.msk [vmem:[#allocation2 + $0x60] sm:$0xff] %vm269_vm0, %v5278_v1  ;;  %v399_v47 = vmax.f32 %v397_v33, 0.0  ;;  %v406_v48 = vadd.f32 %v5354_v3, %v404_v34  ;;  %v321_v49 = vmul.f32 %v5338_v2, %v316_v38  ;;  %v412_v50 = vld [vmem:[%s5349_s30 + $0xa2] sm:$0xff]  ;;  %v446_v51 = vadd.f32 %v5354_v3, %v444_v37  ;;  %v422_v27 = vld [vmem:[%s5349_s30 + $0xb4] sm:$0xff] }
  0x19   : > { %360 = vst.msk [vmem:[#allocation2 + $0x49] sm:$0xff] %vm269_vm0, %v358_v7  ;;  %v445_v52 = vmul.f32 %v5338_v2, %v443_v42  ;;  %v439_v54 = vmax.f32 %v437_v40, 0.0  ;;  %v367_v55 = vadd.f32 %v5354_v3, %v365_v41  ;;  %v374_v56 = vmul.f32 %v5338_v2, %v372_v46  ;;  %v373_v61 = vld [vmem:[%s5349_s30 + $0x62] sm:$0xff]  ;;  %v332_v7 = vld [vmem:[%s5349_s30 + $0x12] sm:$0xff]  ;;  %v333_v34 = vld [vmem:[%s5349_s30 + $0x1a] sm:$0xff] }
  0x1a   : > { %283 = vst.msk [vmem:[#allocation2 + $0x68] sm:$0xff] %vm269_vm0, %v5278_v1  ;;  %v368_v58 = vmax.f32 %v366_v44, 0.0  ;;  %v407_v59 = vadd.f32 %v5354_v3, %v405_v45  ;;  %v414_v60 = vmul.f32 %v5338_v2, %v412_v50  ;;  %v408_v62 = vmax.f32 %v406_v48, 0.0  ;;  %v462_v35 = vld [vmem:[%s5349_s30 + $0xfc] sm:$0xff] }
  0x1b   : > { %284 = vst.msk [vmem:[#allocation2 + $0x70] sm:$0xff] %vm269_vm0, %v5278_v1  ;;  %v326_v63 = vadd.f32 %v5354_v3, %v321_v49  ;;  %v322_v0 = vmul.f32 %v5338_v2, %v317_v53  ;;  %v448_v4 = vmax.f32 %v446_v51, 0.0  ;;  %v447_v5 = vadd.f32 %v5354_v3, %v445_v52  ;;  %v383_v52 = vld [vmem:[%s5349_s30 + $0x74] sm:$0xff]  ;;  %v423_v53 = vld [vmem:[%s5349_s30 + $0xbc] sm:$0xff] }
  0x1c   : > { %285 = vst.msk [vmem:[#allocation2 + $0x78] sm:$0xff] %vm269_vm0, %v5278_v1  ;;  %v454_v6 = vmul.f32 %v5338_v2, %v452_v57  ;;  %v369_v8 = vmax.f32 %v367_v55, 0.0  ;;  %v375_v10 = vmul.f32 %v5338_v2, %v373_v61  ;;  %v409_v12 = vmax.f32 %v407_v59, 0.0  ;;  %v463_v61 = vld [vmem:[%s5349_s30 + $0x104] sm:$0xff] }
  0x1d   : > { %286 = vst.msk [vmem:[#allocation2 + $0x80] sm:$0xff] %vm269_vm0, %v5278_v1  ;;  %v416_v13 = vadd.f32 %v5354_v3, %v414_v60  ;;  %v328_v16 = vmax.f32 %v326_v63, 0.0  ;;  %v327_v17 = vadd.f32 %v5354_v3, %v322_v0  ;;  %v334_v18 = vmul.f32 %v5338_v2, %v332_v7  ;;  %v342_v60 = vld [vmem:[%s5349_s30 + $0x24] sm:$0xff] }
  0x1e   : > { %287 = vst.msk [vmem:[#allocation2 + $0x88] sm:$0xff] %vm269_vm0, %v5278_v1  ;;  %v449_v20 = vmax.f32 %v447_v5, 0.0  ;;  %v456_v21 = vadd.f32 %v5354_v3, %v454_v6  ;;  %v455_v22 = vmul.f32 %v5338_v2, %v453_v11  ;;  %v377_v25 = vadd.f32 %v5354_v3, %v375_v10 }
  0x1f   : > { %288 = vst.msk [vmem:[#allocation2 + $0x90] sm:$0xff] %vm269_vm0, %v5278_v1  ;;  %4920 = vmatmul.msk.f32.gmra.mxu0 %vm269_vm0, %v520_v26  ;;  %v382_v26 = vld [vmem:[%s5349_s30 + $0x6c] sm:$0xff]  ;;  %v418_v28 = vmax.f32 %v416_v13, 0.0  ;;  %v424_v31 = vmul.f32 %v5338_v2, %v422_v27  ;;  %v329_v32 = vmax.f32 %v327_v17, 0.0  ;;  %v336_v33 = vadd.f32 %v5354_v3, %v334_v18 }
  0x20   : > { %v528_v9 = vld [vmem:[#allocation2 + $0x49] sm:$0xff]  ;;  %289 = vst.msk [vmem:[#allocation2 + $0x98] sm:$0xff] %vm269_vm0, %v5278_v1  ;;  %v384_v30 = vmul.f32 %v5338_v2, %v382_v26  ;;  %v457_v37 = vadd.f32 %v5354_v3, %v455_v22  ;;  %v335_v38 = vmul.f32 %v5338_v2, %v333_v34  ;;  %v379_v41 = vmax.f32 %v377_v25, 0.0 }
  0x21   : > { %4928 = vmatmul.msk.f32.vlgmr.msra.gmra.mxu1 %vm269_vm0, %v528_v9  ;;  %290 = vst.msk [vmem:[#allocation2 + $0xa0] sm:$0xff] %vm269_vm0, %v5278_v1  ;;  %v376_v9 = vadd.f32 %v5354_v3, %v374_v56  ;;  %v426_v45 = vadd.f32 %v5354_v3, %v424_v31  ;;  %v385_v56 = vmul.f32 %v5338_v2, %v383_v52 }
  0x22   : > { %291 = vst.msk [vmem:[#allocation2 + $0xa8] sm:$0xff] %vm269_vm0, %v5278_v1  ;;  %v386_v42 = vadd.f32 %v5354_v3, %v384_v30  ;;  %v337_v48 = vadd.f32 %v5354_v3, %v335_v38  ;;  %v459_v50 = vmax.f32 %v457_v37, 0.0  ;;  %v425_v57 = vmul.f32 %v5338_v2, %v423_v53  ;;  %v5102_v30 = vld [vmem:[%s7201_s1 + $0x28] sm:$0xff] }
  0x23   : > { %292 = vst.msk [vmem:[#allocation2 + $0xb0] sm:$0xff] %vm269_vm0, %v5278_v1  ;;  %v378_v24 = vmax.f32 %v376_v9, 0.0  ;;  %v428_v55 = vmax.f32 %v426_v45, 0.0  ;;  %v344_v0 = vmul.f32 %v5338_v2, %v342_v60  ;;  %2105 = vmatpush.msra.mxu1 %v5102_v30 }
  0x24   : > { %293 = vst.msk [vmem:[#allocation2 + $0xb8] sm:$0xff] %vm269_vm0, %v5278_v1  ;;  %v388_v51 = vmax.f32 %v386_v42, 0.0  ;;  %v427_v63 = vadd.f32 %v5354_v3, %v425_v57  ;;  %v482_v42 = vld [vmem:[#allocation2] sm:$0xff] }
  0x25   : > { %294 = vst.msk [vmem:[#allocation2 + $0xc0] sm:$0xff] %vm269_vm0, %v5278_v1 }
  0x26   : > { %295 = vst.msk [vmem:[#allocation2 + $0xc8] sm:$0xff] %vm269_vm0, %v5278_v1  ;;  %v429_v7 = vmax.f32 %v427_v63, 0.0 }
  0x27   : > { %296 = vst.msk [vmem:[#allocation2 + $0xd0] sm:$0xff] %vm269_vm0, %v5278_v1 }
  0x28   : > { %297 = vst.msk [vmem:[#allocation2 + $0xd8] sm:$0xff] %vm269_vm0, %v5278_v1 }
  0x29   : > { %298 = vst.msk [vmem:[#allocation2 + $0xe0] sm:$0xff] %vm269_vm0, %v5278_v1 }
  0x2a   : > { %299 = vst.msk [vmem:[#allocation2 + $0xe8] sm:$0xff] %vm269_vm0, %v5278_v1 }
  0x2b   : > { %300 = vst.msk [vmem:[#allocation2 + $0xf0] sm:$0xff] %vm269_vm0, %v5278_v1 }
  0x2c   : > { %301 = vst.msk [vmem:[#allocation2 + $0xf8] sm:$0xff] %vm269_vm0, %v5278_v1 }
  0x2d   : > { %302 = vst.msk [vmem:[#allocation2 + $0x100] sm:$0xff] %vm269_vm0, %v5278_v1 }
  0x2e   : > { %303 = vst.msk [vmem:[#allocation2 + $0x108] sm:$0xff] %vm269_vm0, %v5278_v1 }
  0x2f   : > { %304 = vst.msk [vmem:[#allocation2 + $0x110] sm:$0xff] %vm269_vm0, %v5278_v1 }
  0x30   : > { %305 = vst.msk [vmem:[#allocation2 + $0x118] sm:$0xff] %vm269_vm0, %v5278_v1 }
  0x31   : > { %306 = vst.msk [vmem:[#allocation2 + $0x120] sm:$0xff] %vm269_vm0, %v5278_v1 }
  0x32   : > { %307 = vst.msk [vmem:[#allocation2 + $0x128] sm:$0xff] %vm269_vm0, %v5278_v1 }
  0x33   : > { %308 = vst.msk [vmem:[#allocation2 + $0x130] sm:$0xff] %vm269_vm0, %v5278_v1 }
  0x34   : > { %309 = vst.msk [vmem:[#allocation2 + $0x138] sm:$0xff] %vm269_vm0, %v5278_v1 }
  0x35   : > { %310 = vst.msk [vmem:[#allocation2 + $0x140] sm:$0xff] %vm269_vm0, %v5278_v1  ;;  %v413_v1 = vld [vmem:[%s5349_s30 + $0xaa] sm:$0xff] }
  0x36   : > { %400 = vst.msk [vmem:[#allocation2 + $0x91] sm:$0xff] %vm269_vm0, %v398_v36  ;;  %v415_v14 = vmul.f32 %v5338_v2, %v413_v1  ;;  %v458_v36 = vmax.f32 %v456_v21, 0.0  ;;  %v465_v1 = vmul.f32 %v5338_v2, %v463_v61 }
  0x37   : > { %440 = vst.msk [vmem:[#allocation2 + $0xd9] sm:$0xff] %vm269_vm0, %v438_v39  ;;  %v464_v39 = vmul.f32 %v5338_v2, %v462_v35  ;;  %v5213_v35 = vld [vmem:[%s7201_s1 + $0x40] sm:$0xff] }
  0x38   : > { %361 = vst.msk [vmem:[#allocation2 + $0x51] sm:$0xff] %vm269_vm0, %v359_v43  ;;  %v417_v29 = vadd.f32 %v5354_v3, %v415_v14  ;;  %v467_v9 = vadd.f32 %v5354_v3, %v465_v1  ;;  %v343_v14 = vld [vmem:[%s5349_s30 + $0x2c] sm:$0xff]  ;;  %3026 = vmatpush.msra.mxu0 %v5213_v35 }
  0x39   : > { %401 = vst.msk [vmem:[#allocation2 + $0x99] sm:$0xff] %vm269_vm0, %v399_v47  ;;  %v338_v47 = vmax.f32 %v336_v33, 0.0  ;;  %v466_v49 = vadd.f32 %v5354_v3, %v464_v39 }
  0x3a   : > { %441 = vst.msk [vmem:[#allocation2 + $0xe1] sm:$0xff] %vm269_vm0, %v439_v54  ;;  %v419_v44 = vmax.f32 %v417_v29, 0.0  ;;  %v469_v13 = vmax.f32 %v467_v9, 0.0  ;;  %v5176_v29 = vld [vmem:[%s7201_s1 + $0x38] sm:$0xff] }
  0x3b   : > { %370 = vst.msk [vmem:[#allocation2 + $0x5b] sm:$0xff] %vm269_vm0, %v368_v58  ;;  %v339_v58 = vmax.f32 %v337_v48, 0.0  ;;  %v468_v59 = vmax.f32 %v466_v49, 0.0  ;;  %v1024_v48 = vld [vmem:[#allocation2 + $0xa] sm:$0xff] }
  0x3c   : > { %410 = vst.msk [vmem:[#allocation2 + $0xa3] sm:$0xff] %vm269_vm0, %v408_v62  ;;  %v387_v62 = vadd.f32 %v5354_v3, %v385_v56 }
  0x3d   : > { %v537_v15 = vld [vmem:[#allocation2 + $0x91] sm:$0xff]  ;;  %450 = vst.msk [vmem:[#allocation2 + $0xeb] sm:$0xff] %vm269_vm0, %v448_v4 }
  0x3e   : > { %4937 = vmatmul.msk.f32.vlgmr.msra.gmra.mxu2 %vm269_vm0, %v537_v15  ;;  %v546_v19 = vld [vmem:[#allocation2 + $0xd9] sm:$0xff]  ;;  %371 = vst.msk [vmem:[#allocation2 + $0x63] sm:$0xff] %vm269_vm0, %v369_v8  ;;  %v389_v6 = vmax.f32 %v387_v62, 0.0  ;;  %v346_v8 = vadd.f32 %v5354_v3, %v344_v0  ;;  %v345_v15 = vmul.f32 %v5338_v2, %v343_v14 }
  0x3f   : > { %4946 = vmatmul.msk.f32.vlgmr.msra.gmra.mxu3 %vm269_vm0, %v546_v19  ;;  %v529_v23 = vld [vmem:[#allocation2 + $0x51] sm:$0xff]  ;;  %411 = vst.msk [vmem:[#allocation2 + $0xab] sm:$0xff] %vm269_vm0, %v409_v12 }
  0x40   : > { %4929 = vmatmul.msk.f32.gmra.mxu1 %vm269_vm0, %v529_v23  ;;  %330 = vst.msk [vmem:[#allocation2 + $0x13] sm:$0xff] %vm269_vm0, %v328_v16  ;;  %v538_v40 = vld [vmem:[#allocation2 + $0x99] sm:$0xff]  ;;  %v348_v12 = vmax.f32 %v346_v8, 0.0  ;;  %v347_v18 = vadd.f32 %v5354_v3, %v345_v15  ;;  %2719 = vmatpush.msra.mxu3 %v5176_v29 }
  0x41   : > { %451 = vst.msk [vmem:[#allocation2 + $0xf3] sm:$0xff] %vm269_vm0, %v449_v20  ;;  %v547_v43 = vld [vmem:[#allocation2 + $0xe1] sm:$0xff]  ;;  %v1338_v14 = vld [vmem:[#allocation2 + $0x52] sm:$0xff] }
  0x42   : > { %380 = vst.msk [vmem:[#allocation2 + $0x6d] sm:$0xff] %vm269_vm0, %v378_v24  ;;  %v530_v46 = vld [vmem:[#allocation2 + $0x59] sm:$0xff]  ;;  %v349_v21 = vmax.f32 %v347_v18, 0.0 }
  0x43   : > { %420 = vst.msk [vmem:[#allocation2 + $0xb5] sm:$0xff] %vm269_vm0, %v418_v28  ;;  %v539_v4 = vld [vmem:[#allocation2 + $0xa1] sm:$0xff]  ;;  %v5139_v28 = vld [vmem:[%s7201_s1 + $0x30] sm:$0xff] }
  0x44   : > { %331 = vst.msk [vmem:[#allocation2 + $0x1b] sm:$0xff] %vm269_vm0, %v329_v32  ;;  %v548_v5 = vld [vmem:[#allocation2 + $0xe9] sm:$0xff]  ;;  %2412 = vmatpush.msra.mxu2 %v5139_v28  ;;  %v1646_v18 = vld [vmem:[#allocation2 + $0x5b] sm:$0xff] }
  0x45   : > { %460 = vst.msk [vmem:[#allocation2 + $0xfd] sm:$0xff] %vm269_vm0, %v458_v36  ;;  %v531_v10 = vld [vmem:[#allocation2 + $0x61] sm:$0xff]  ;;  %v493_v28 = vld [vmem:[#allocation2 + $0x58] sm:$0xff] }
  0x46   : > { %4938 = vmatmul.msk.f32.gmra.mxu2 %vm269_vm0, %v538_v40  ;;  %381 = vst.msk [vmem:[#allocation2 + $0x75] sm:$0xff] %vm269_vm0, %v379_v41  ;;  %v540_v16 = vld [vmem:[#allocation2 + $0xa9] sm:$0xff]  ;;  %v494_v35 = vld [vmem:[#allocation2 + $0x60] sm:$0xff] }
  0x47   : > { %4947 = vmatmul.msk.f32.gmra.mxu3 %vm269_vm0, %v547_v43  ;;  %v521_v54 = vld [vmem:[#allocation2 + $0x11] sm:$0xff]  ;;  %421 = vst.msk [vmem:[#allocation2 + $0xbd] sm:$0xff] %vm269_vm0, %v419_v44  ;;  %v1023_v44 = vld [vmem:[#allocation2 + $0x2] sm:$0xff] }
  0x48   : > { %4930 = vmatmul.msk.f32.gmra.mxu1 %vm269_vm0, %v530_v46  ;;  %4921 = vmatmul.msk.f32.gmra.mxu0 %vm269_vm0, %v521_v54  ;;  %340 = vst.msk [vmem:[#allocation2 + $0x25] sm:$0xff] %vm269_vm0, %v338_v47  ;;  %v549_v17 = vld [vmem:[#allocation2 + $0xf1] sm:$0xff]  ;;  %v483_v46 = vld [vmem:[#allocation2 + $0x8] sm:$0xff] }
  0x49   : > { %461 = vst.msk [vmem:[#allocation2 + $0x105] sm:$0xff] %vm269_vm0, %v459_v50  ;;  %v532_v19 = vld [vmem:[#allocation2 + $0x69] sm:$0xff]  ;;  %v1637_v43 = vld [vmem:[#allocation2 + $0x13] sm:$0xff] }
  0x4a   : > { %390 = vst.msk [vmem:[#allocation2 + $0x7f] sm:$0xff] %vm269_vm0, %v388_v51  ;;  %v541_v22 = vld [vmem:[#allocation2 + $0xb1] sm:$0xff] }
  0x4b   : > { %430 = vst.msk [vmem:[#allocation2 + $0xc7] sm:$0xff] %vm269_vm0, %v428_v55  ;;  %v522_v11 = vld [vmem:[#allocation2 + $0x19] sm:$0xff]  ;;  %v484_v50 = vld [vmem:[#allocation2 + $0x10] sm:$0xff] }
  0x4c   : > { %341 = vst.msk [vmem:[#allocation2 + $0x2d] sm:$0xff] %vm269_vm0, %v339_v58  ;;  %v550_v23 = vld [vmem:[#allocation2 + $0xf9] sm:$0xff]  ;;  %v1648_v30 = vld [vmem:[#allocation2 + $0x6b] sm:$0xff] }
  0x4d   : > { %470 = vst.msk [vmem:[#allocation2 + $0x10f] sm:$0xff] %vm269_vm0, %v468_v59  ;;  %v533_v2 = vld [vmem:[#allocation2 + $0x71] sm:$0xff]  ;;  %v1638_v47 = vld [vmem:[#allocation2 + $0x1b] sm:$0xff] }
  0x4e   : > { %4939 = vmatmul.msk.f32.gmra.mxu2 %vm269_vm0, %v539_v4  ;;  %391 = vst.msk [vmem:[#allocation2 + $0x87] sm:$0xff] %vm269_vm0, %v389_v6  ;;  %v542_v3 = vld [vmem:[#allocation2 + $0xb9] sm:$0xff]  ;;  %v1644_v6 = vld [vmem:[#allocation2 + $0x4b] sm:$0xff] }
  0x4f   : > { %4948 = vmatmul.msk.f32.gmra.mxu3 %vm269_vm0, %v548_v5  ;;  %431 = vst.msk [vmem:[#allocation2 + $0xcf] sm:$0xff] %vm269_vm0, %v429_v7  ;;  %v523_v20 = vld [vmem:[#allocation2 + $0x21] sm:$0xff]  ;;  %v1330_v45 = vld [vmem:[#allocation2 + $0x12] sm:$0xff]  ;;  %v1337_v7 = vld [vmem:[#allocation2 + $0x4a] sm:$0xff] }
  0x50   : > { %4931 = vmatmul.msk.f32.gmra.mxu1 %vm269_vm0, %v531_v10  ;;  %4922 = vmatmul.msk.f32.gmra.mxu0 %vm269_vm0, %v522_v11  ;;  %350 = vst.msk [vmem:[#allocation2 + $0x37] sm:$0xff] %vm269_vm0, %v348_v12  ;;  %v551_v25 = vld [vmem:[#allocation2 + $0x101] sm:$0xff]  ;;  %v485_v53 = vld [vmem:[#allocation2 + $0x18] sm:$0xff] }
  0x51   : > { %471 = vst.msk [vmem:[#allocation2 + $0x117] sm:$0xff] %vm269_vm0, %v469_v13  ;;  %v534_v26 = vld [vmem:[#allocation2 + $0x79] sm:$0xff]  ;;  %v1639_v51 = vld [vmem:[#allocation2 + $0x23] sm:$0xff] }
  0x52   : > { %351 = vst.msk [vmem:[#allocation2 + $0x3f] sm:$0xff] %vm269_vm0, %v349_v21  ;;  %v543_v31 = vld [vmem:[#allocation2 + $0xc1] sm:$0xff]  ;;  %v1645_v11 = vld [vmem:[#allocation2 + $0x53] sm:$0xff] }
  0x53   : > { %v524_v24 = vld [vmem:[#allocation2 + $0x29] sm:$0xff]  ;;  %v1331_v49 = vld [vmem:[#allocation2 + $0x1a] sm:$0xff] }
  0x54   : > { %v552_v32 = vld [vmem:[#allocation2 + $0x109] sm:$0xff]  ;;  %v486_v56 = vld [vmem:[#allocation2 + $0x20] sm:$0xff] }
  0x55   : > { %v535_v33 = vld [vmem:[#allocation2 + $0x81] sm:$0xff]  ;;  %v536_v38 = vld [vmem:[#allocation2 + $0x89] sm:$0xff] }
  0x56   : > { %4940 = vmatmul.msk.f32.gmra.mxu2 %vm269_vm0, %v540_v16  ;;  %v544_v36 = vld [vmem:[#allocation2 + $0xc9] sm:$0xff]  ;;  %v545_v40 = vld [vmem:[#allocation2 + $0xd1] sm:$0xff]  ;;  %v1339_v21 = vld [vmem:[#allocation2 + $0x5a] sm:$0xff] }
  0x57   : > { %4949 = vmatmul.msk.f32.gmra.mxu3 %vm269_vm0, %v549_v17  ;;  %v525_v27 = vld [vmem:[#allocation2 + $0x31] sm:$0xff]  ;;  %v1332_v52 = vld [vmem:[#allocation2 + $0x22] sm:$0xff] }
  0x58   : > { %4932 = vmatmul.msk.f32.gmra.mxu1 %vm269_vm0, %v532_v19  ;;  %4923 = vmatmul.msk.f32.gmra.mxu0 %vm269_vm0, %v523_v20  ;;  %v553_v37 = vld [vmem:[#allocation2 + $0x111] sm:$0xff]  ;;  %v554_v41 = vld [vmem:[#allocation2 + $0x119] sm:$0xff]  ;;  %v487_v59 = vld [vmem:[#allocation2 + $0x28] sm:$0xff] }
  0x59   : > { %v526_v34 = vld [vmem:[#allocation2 + $0x39] sm:$0xff]  ;;  %v527_v39 = vld [vmem:[#allocation2 + $0x41] sm:$0xff]  ;;  %v1640_v54 = vld [vmem:[#allocation2 + $0x2b] sm:$0xff] }
  0x5a   : > { %v1333_v55 = vld [vmem:[#allocation2 + $0x2a] sm:$0xff]  ;;  %v1641_v57 = vld [vmem:[#allocation2 + $0x33] sm:$0xff]  ;;  %v1642_v60 = vld [vmem:[#allocation2 + $0x3b] sm:$0xff] }
  0x5b   : > { %v1334_v58 = vld [vmem:[#allocation2 + $0x32] sm:$0xff]  ;;  %v1335_v61 = vld [vmem:[#allocation2 + $0x3a] sm:$0xff]  ;;  %v1643_v63 = vld [vmem:[#allocation2 + $0x43] sm:$0xff] }
  0x5c   : > { %v488_v62 = vld [vmem:[#allocation2 + $0x30] sm:$0xff]  ;;  %v1336_v4 = vld [vmem:[#allocation2 + $0x42] sm:$0xff]  ;;  %v489_v5 = vld [vmem:[#allocation2 + $0x38] sm:$0xff] }
  0x5d   : > { %v490_v10 = vld [vmem:[#allocation2 + $0x40] sm:$0xff]  ;;  %v491_v16 = vld [vmem:[#allocation2 + $0x48] sm:$0xff] }
  0x5e   : > { %4941 = vmatmul.msk.f32.gmra.mxu2 %vm269_vm0, %v541_v22 }
  0x5f   : > { %4950 = vmatmul.msk.f32.gmra.mxu3 %vm269_vm0, %v550_v23  ;;  %v492_v23 = vld [vmem:[#allocation2 + $0x50] sm:$0xff] }
  0x60   : > { %4933 = vmatmul.msk.f32.gmra.mxu1 %vm269_vm0, %v533_v2  ;;  %4924 = vmatmul.msk.f32.gmra.mxu0 %vm269_vm0, %v524_v24  ;;  %v1647_v24 = vld [vmem:[#allocation2 + $0x63] sm:$0xff] }
  0x66   : > { %4942 = vmatmul.msk.f32.gmra.mxu2 %vm269_vm0, %v542_v3 }
  0x67   : > { %4951 = vmatmul.msk.f32.gmra.mxu3 %vm269_vm0, %v551_v25 }
  0x68   : > { %4934 = vmatmul.msk.f32.gmra.mxu1 %vm269_vm0, %v534_v26  ;;  %4925 = vmatmul.msk.f32.gmra.mxu0 %vm269_vm0, %v525_v27  ;;  %v1340_v26 = vld [vmem:[#allocation2 + $0x62] sm:$0xff] }
  0x6e   : > { %4943 = vmatmul.msk.f32.gmra.mxu2 %vm269_vm0, %v543_v31 }
  0x6f   : > { %4952 = vmatmul.msk.f32.gmra.mxu3 %vm269_vm0, %v552_v32 }
  0x70   : > { %4935 = vmatmul.msk.f32.gmra.mxu1 %vm269_vm0, %v535_v33  ;;  %4926 = vmatmul.msk.f32.gmra.mxu0 %vm269_vm0, %v526_v34  ;;  %v1341_v33 = vld [vmem:[#allocation2 + $0x6a] sm:$0xff] }
  0x76   : > { %4944 = vmatmul.msk.f32.gmra.mxu2 %vm269_vm0, %v544_v36 }
  0x77   : > { %4953 = vmatmul.msk.f32.gmra.mxu3 %vm269_vm0, %v553_v37  ;;  %v1649_v37 = vld [vmem:[#allocation2 + $0x73] sm:$0xff] }
  0x78   : > { %4936 = vmatmul.msk.f32.gmra.mxu1 %vm269_vm0, %v536_v38  ;;  %4927 = vmatmul.msk.f32.gmra.mxu0 %vm269_vm0, %v527_v39 }
  0x7e   : > { %4945 = vmatmul.msk.f32.gmra.mxu2 %vm269_vm0, %v545_v40  ;;  %v1342_v40 = vld [vmem:[#allocation2 + $0x72] sm:$0xff] }
  0x7f   : > { %4954 = vmatmul.msk.f32.gmra.mxu3 %vm269_vm0, %v554_v41 }
  0x80   : > { %4955 = vmatmul.msk.f32.vlgmr.msrb.gmra.mxu1 %vm269_vm0, %v482_v42  ;;  %5066 = vmatmul.msk.f32.vlgmr.msrb.gmra.mxu0 %vm269_vm0, %v1637_v43  ;;  %v495_v42 = vld [vmem:[#allocation2 + $0x68] sm:$0xff] }
  0x86   : > { %4992 = vmatmul.msk.f32.vlgmr.msrb.gmra.mxu2 %vm269_vm0, %v1023_v44  ;;  %v1650_v44 = vld [vmem:[#allocation2 + $0x7b] sm:$0xff] }
  0x87   : > { %5029 = vmatmul.msk.f32.vlgmr.msrb.gmra.mxu3 %vm269_vm0, %v1330_v45 }
  0x88   : > { %4956 = vmatmul.msk.f32.gmra.mxu1 %vm269_vm0, %v483_v46  ;;  %5067 = vmatmul.msk.f32.gmra.mxu0 %vm269_vm0, %v1638_v47  ;;  %v1343_v47 = vld [vmem:[#allocation2 + $0x7a] sm:$0xff] }
  0x8e   : > { %4993 = vmatmul.msk.f32.gmra.mxu2 %vm269_vm0, %v1024_v48 }
  0x8f   : > { %5030 = vmatmul.msk.f32.gmra.mxu3 %vm269_vm0, %v1331_v49 }
  0x90   : > { %4957 = vmatmul.msk.f32.gmra.mxu1 %vm269_vm0, %v484_v50  ;;  %5068 = vmatmul.msk.f32.gmra.mxu0 %vm269_vm0, %v1639_v51  ;;  %v1651_v51 = vld [vmem:[#allocation2 + $0x83] sm:$0xff] }
  0x94   : > { %v5634_v0 = vpop.f32.mrf.mxu0 }
  0x96   : > { %4994 = vmatmul.msk.f32.gmra.mxu2 %vm269_vm0, %v1330_v45 }
  0x97   : > { %5031 = vmatmul.msk.f32.gmra.mxu3 %vm269_vm0, %v1332_v52 }
  0x98   : > { %4958 = vmatmul.msk.f32.gmra.mxu1 %vm269_vm0, %v485_v53  ;;  %5069 = vmatmul.msk.f32.gmra.mxu0 %vm269_vm0, %v1640_v54  ;;  %v1344_v54 = vld [vmem:[#allocation2 + $0x82] sm:$0xff] }
  0x9c   : > { %v5642_v8 = vpop.f32.mrf.mxu0 }
  0x9e   : > { %4995 = vmatmul.msk.f32.gmra.mxu2 %vm269_vm0, %v1331_v49  ;;  %v5636_v1 = vpop.f32.mrf.mxu1  ;;  %v496_v49 = vld [vmem:[#allocation2 + $0x70] sm:$0xff] }
  0x9f   : > { %5032 = vmatmul.msk.f32.gmra.mxu3 %vm269_vm0, %v1333_v55 }
  0xa0   : > { %4959 = vmatmul.msk.f32.gmra.mxu1 %vm269_vm0, %v486_v56  ;;  %5070 = vmatmul.msk.f32.gmra.mxu0 %vm269_vm0, %v1641_v57  ;;  %v497_v56 = vld [vmem:[#allocation2 + $0x78] sm:$0xff] }
  0xa6   : > { %4996 = vmatmul.msk.f32.gmra.mxu2 %vm269_vm0, %v1332_v52 }
  0xa7   : > { %5033 = vmatmul.msk.f32.gmra.mxu3 %vm269_vm0, %v1334_v58 }
  0xa8   : > { %4960 = vmatmul.msk.f32.gmra.mxu1 %vm269_vm0, %v487_v59  ;;  %5071 = vmatmul.msk.f32.gmra.mxu0 %vm269_vm0, %v1642_v60 }
  0xae   : > { %4997 = vmatmul.msk.f32.gmra.mxu2 %vm269_vm0, %v1333_v55 }
  0xaf   : > { %5034 = vmatmul.msk.f32.gmra.mxu3 %vm269_vm0, %v1335_v61 }
  0xb0   : > { %4961 = vmatmul.msk.f32.gmra.mxu1 %vm269_vm0, %v488_v62  ;;  %5072 = vmatmul.msk.f32.gmra.mxu0 %vm269_vm0, %v1643_v63  ;;  %v498_v63 = vld [vmem:[#allocation2 + $0x80] sm:$0xff] }
  0xb6   : > { %4998 = vmatmul.msk.f32.gmra.mxu2 %vm269_vm0, %v1334_v58  ;;  %v1652_v58 = vld [vmem:[#allocation2 + $0x8b] sm:$0xff] }
  0xb7   : > { %5035 = vmatmul.msk.f32.gmra.mxu3 %vm269_vm0, %v1336_v4 }
  0xb8   : > { %4962 = vmatmul.msk.f32.gmra.mxu1 %vm269_vm0, %v489_v5  ;;  %5073 = vmatmul.msk.f32.gmra.mxu0 %vm269_vm0, %v1644_v6  ;;  %v1653_v5 = vld [vmem:[#allocation2 + $0x93] sm:$0xff] }
  0xbd   : > { %v5644_v9 = vpop.f32.mrf.mxu1 }
  0xbe   : > { %4999 = vmatmul.msk.f32.gmra.mxu2 %vm269_vm0, %v1335_v61  ;;  %v1345_v61 = vld [vmem:[#allocation2 + $0x8a] sm:$0xff] }
  0xbf   : > { %5036 = vmatmul.msk.f32.gmra.mxu3 %vm269_vm0, %v1337_v7 }
  0xc0   : > { %4963 = vmatmul.msk.f32.gmra.mxu1 %vm269_vm0, %v490_v10  ;;  %5074 = vmatmul.msk.f32.gmra.mxu0 %vm269_vm0, %v1645_v11  ;;  %v1346_v10 = vld [vmem:[#allocation2 + $0x92] sm:$0xff] }
  0xc1   : > { %v5649_v12 = vpop.f32.mrf.mxu2 }
  0xc2   : > { %v5652_v13 = vpop.f32.mrf.mxu3 }
  0xc5   : > { %v5654_v15 = vpop.f32.mrf.mxu1  ;;  %v5657_v17 = vpop.f32.mrf.mxu0 }
  0xc6   : > { %5000 = vmatmul.msk.f32.gmra.mxu2 %vm269_vm0, %v1336_v4 }
  0xc7   : > { %5037 = vmatmul.msk.f32.gmra.mxu3 %vm269_vm0, %v1338_v14 }
  0xc8   : > { %4964 = vmatmul.msk.f32.gmra.mxu1 %vm269_vm0, %v491_v16  ;;  %5075 = vmatmul.msk.f32.gmra.mxu0 %vm269_vm0, %v1646_v18  ;;  %v1654_v18 = vld [vmem:[#allocation2 + $0x9b] sm:$0xff] }
  0xc9   : > { %v5661_v19 = vpop.f32.mrf.mxu2 }
  0xca   : > { %v5664_v20 = vpop.f32.mrf.mxu3 }
  0xcd   : > { %v5666_v22 = vpop.f32.mrf.mxu1  ;;  %v5669_v2 = vpop.f32.mrf.mxu0 }
  0xce   : > { %5001 = vmatmul.msk.f32.gmra.mxu2 %vm269_vm0, %v1337_v7 }
  0xcf   : > { %5038 = vmatmul.msk.f32.gmra.mxu3 %vm269_vm0, %v1339_v21 }
  0xd0   : > { %4965 = vmatmul.msk.f32.gmra.mxu1 %vm269_vm0, %v492_v23  ;;  %5076 = vmatmul.msk.f32.gmra.mxu0 %vm269_vm0, %v1647_v24 }
  0xd1   : > { %v5673_v3 = vpop.f32.mrf.mxu2 }
  0xd2   : > { %v5676_v25 = vpop.f32.mrf.mxu3 }
  0xd5   : > { %v5678_v27 = vpop.f32.mrf.mxu1  ;;  %v5681_v29 = vpop.f32.mrf.mxu0 }
  0xd6   : > { %5002 = vmatmul.msk.f32.gmra.mxu2 %vm269_vm0, %v1338_v14  ;;  %v499_v14 = vld [vmem:[#allocation2 + $0x88] sm:$0xff] }
  0xd7   : > { %5039 = vmatmul.msk.f32.gmra.mxu3 %vm269_vm0, %v1340_v26 }
  0xd8   : > { %4966 = vmatmul.msk.f32.gmra.mxu1 %vm269_vm0, %v493_v28  ;;  %5077 = vmatmul.msk.f32.gmra.mxu0 %vm269_vm0, %v1648_v30  ;;  %v1347_v30 = vld [vmem:[#allocation2 + $0x9a] sm:$0xff] }
  0xd9   : > { %v5685_v31 = vpop.f32.mrf.mxu2 }
  0xda   : > { %v5688_v32 = vpop.f32.mrf.mxu3 }
  0xdd   : > { %v5690_v34 = vpop.f32.mrf.mxu1  ;;  %v5693_v36 = vpop.f32.mrf.mxu0 }
  0xde   : > { %5003 = vmatmul.msk.f32.gmra.mxu2 %vm269_vm0, %v1339_v21 }
  0xdf   : > { %5040 = vmatmul.msk.f32.gmra.mxu3 %vm269_vm0, %v1341_v33 }
  0xe0   : > { %4967 = vmatmul.msk.f32.gmra.mxu1 %vm269_vm0, %v494_v35  ;;  %5078 = vmatmul.msk.f32.gmra.mxu0 %vm269_vm0, %v1649_v37  ;;  %v500_v35 = vld [vmem:[#allocation2 + $0x90] sm:$0xff] }
  0xe1   : > { %v5697_v38 = vpop.f32.mrf.mxu2 }
  0xe2   : > { %v5700_v39 = vpop.f32.mrf.mxu3 }
  0xe5   : > { %v5702_v41 = vpop.f32.mrf.mxu1  ;;  %v5705_v43 = vpop.f32.mrf.mxu0 }
  0xe6   : > { %5004 = vmatmul.msk.f32.gmra.mxu2 %vm269_vm0, %v1340_v26 }
  0xe7   : > { %5041 = vmatmul.msk.f32.gmra.mxu3 %vm269_vm0, %v1342_v40 }
  0xe8   : > { %4968 = vmatmul.msk.f32.gmra.mxu1 %vm269_vm0, %v495_v42  ;;  %5079 = vmatmul.msk.f32.gmra.mxu0 %vm269_vm0, %v1650_v44  ;;  %v1655_v42 = vld [vmem:[#allocation2 + $0xa3] sm:$0xff] }
  0xe9   : > { %v5709_v45 = vpop.f32.mrf.mxu2 }
  0xea   : > { %v5712_v46 = vpop.f32.mrf.mxu3 }
  0xed   : > { %v5714_v48 = vpop.f32.mrf.mxu1  ;;  %v5717_v50 = vpop.f32.mrf.mxu0 }
  0xee   : > { %5005 = vmatmul.msk.f32.gmra.mxu2 %vm269_vm0, %v1341_v33 }
  0xef   : > { %5042 = vmatmul.msk.f32.gmra.mxu3 %vm269_vm0, %v1343_v47 }
  0xf0   : > { %4969 = vmatmul.msk.f32.gmra.mxu1 %vm269_vm0, %v496_v49  ;;  %5080 = vmatmul.msk.f32.gmra.mxu0 %vm269_vm0, %v1651_v51 }
  0xf1   : > { %v5721_v52 = vpop.f32.mrf.mxu2 }
  0xf2   : > { %v5724_v53 = vpop.f32.mrf.mxu3 }
  0xf5   : > { %v5726_v55 = vpop.f32.mrf.mxu1  ;;  %v5729_v57 = vpop.f32.mrf.mxu0 }
  0xf6   : > { %5006 = vmatmul.msk.f32.gmra.mxu2 %vm269_vm0, %v1342_v40 }
  0xf7   : > { %5043 = vmatmul.msk.f32.gmra.mxu3 %vm269_vm0, %v1344_v54 }
  0xf8   : > { %4970 = vmatmul.msk.f32.gmra.mxu1 %vm269_vm0, %v497_v56  ;;  %5081 = vmatmul.msk.f32.gmra.mxu0 %vm269_vm0, %v1652_v58  ;;  %v501_v58 = vld [vmem:[#allocation2 + $0x98] sm:$0xff] }
  0xf9   : > { %v5733_v59 = vpop.f32.mrf.mxu2 }
  0xfa   : > { %v5736_v60 = vpop.f32.mrf.mxu3 }
  0xfd   : > { %v915_v62 = vpop.f32.mrf.mxu1  ;;  %v1800_v4 = vpop.f32.mrf.mxu0 }
  0xfe   : > { %5007 = vmatmul.msk.f32.gmra.mxu2 %vm269_vm0, %v1343_v47  ;;  %v916_v21 = vadd.f32 %v915_v62, %v5634_v0 }
  0xff   : > { %5044 = vmatmul.msk.f32.gmra.mxu3 %vm269_vm0, %v1345_v61 }
 0x100   : > { %4971 = vmatmul.msk.f32.gmra.mxu1 %vm269_vm0, %v498_v63  ;;  %5082 = vmatmul.msk.f32.gmra.mxu0 %vm269_vm0, %v1653_v5  ;;  %v1656_v63 = vld [vmem:[#allocation2 + $0xab] sm:$0xff] }
 0x101   : > { %v5741_v6 = vpop.f32.mrf.mxu2 }
 0x102   : > { %v5744_v7 = vpop.f32.mrf.mxu3 }
 0x105   : > { %v918_v11 = vpop.f32.mrf.mxu1  ;;  %v1803_v16 = vpop.f32.mrf.mxu0 }
 0x106   : > { %5008 = vmatmul.msk.f32.gmra.mxu2 %vm269_vm0, %v1344_v54  ;;  %v919_v0 = vadd.f32 %v918_v11, %v5642_v8  ;;  %v1348_v54 = vld [vmem:[#allocation2 + $0xa2] sm:$0xff] }
 0x107   : > { %5045 = vmatmul.msk.f32.gmra.mxu3 %vm269_vm0, %v1346_v10 }
 0x108   : > { %4972 = vmatmul.msk.f32.gmra.mxu1 %vm269_vm0, %v499_v14  ;;  %5083 = vmatmul.msk.f32.gmra.mxu0 %vm269_vm0, %v1654_v18  ;;  %v1349_v18 = vld [vmem:[#allocation2 + $0xaa] sm:$0xff] }
 0x109   : > { %v1186_v23 = vpop.f32.mrf.mxu2 }
 0x10a   : > { %v1294_v24 = vadd.f32 %v1186_v23, %v916_v21  ;;  %v1493_v26 = vpop.f32.mrf.mxu3 }
 0x10c   : > { %v1601_v28 = vadd.f32 %v1493_v26, %v1294_v24  ;;  %v1657_v24 = vld [vmem:[#allocation2 + $0xb3] sm:$0xff] }
 0x10d   : > { %v921_v33 = vpop.f32.mrf.mxu1  ;;  %v1806_v40 = vpop.f32.mrf.mxu0 }
 0x10e   : > { %v5751_v37 = vadd.f32 %v1800_v4, %v1601_v28  ;;  %5009 = vmatmul.msk.f32.gmra.mxu2 %vm269_vm0, %v1345_v61  ;;  %v922_v8 = vadd.f32 %v921_v33, %v5657_v17 }
 0x10f   : > { %5046 = vmatmul.msk.f32.gmra.mxu3 %vm269_vm0, %v1347_v30 }
 0x110   : > { %4973 = vmatmul.msk.f32.gmra.mxu1 %vm269_vm0, %v500_v35  ;;  %5084 = vmatmul.msk.f32.gmra.mxu0 %vm269_vm0, %v1655_v42  ;;  %v1350_v42 = vld [vmem:[#allocation2 + $0xb2] sm:$0xff] }
 0x111   : > { %v1189_v44 = vpop.f32.mrf.mxu2 }
 0x112   : > { %v1295_v47 = vadd.f32 %v1189_v44, %v919_v0  ;;  %v1496_v49 = vpop.f32.mrf.mxu3 }
 0x114   : > { %v1602_v51 = vadd.f32 %v1496_v49, %v1295_v47  ;;  %v1658_v47 = vld [vmem:[#allocation2 + $0xbb] sm:$0xff] }
 0x115   : > { %v924_v56 = vpop.f32.mrf.mxu1  ;;  %v1809_v61 = vpop.f32.mrf.mxu0 }
 0x116   : > { %v5758_v62 = vadd.f32 %v1803_v16, %v1602_v51  ;;  %5010 = vmatmul.msk.f32.gmra.mxu2 %vm269_vm0, %v1346_v10  ;;  %v502_v16 = vld [vmem:[#allocation2 + $0xa0] sm:$0xff]  ;;  %v925_v17 = vadd.f32 %v924_v56, %v5669_v2 }
 0x117   : > { %5047 = vmatmul.msk.f32.gmra.mxu3 %vm269_vm0, %v1348_v54 }
 0x118   : > { %4974 = vmatmul.msk.f32.gmra.mxu1 %vm269_vm0, %v501_v58  ;;  %5085 = vmatmul.msk.f32.gmra.mxu0 %vm269_vm0, %v1656_v63  ;;  %v1351_v63 = vld [vmem:[#allocation2 + $0xba] sm:$0xff] }
 0x119   : > { %v1192_v4 = vpop.f32.mrf.mxu2 }
 0x11a   : > { %v1296_v5 = vadd.f32 %v1192_v4, %v922_v8  ;;  %v1499_v11 = vpop.f32.mrf.mxu3 }
 0x11c   : > { %v1603_v14 = vadd.f32 %v1499_v11, %v1296_v5  ;;  %v1659_v5 = vld [vmem:[#allocation2 + $0xc3] sm:$0xff] }
 0x11d   : > { %v927_v21 = vpop.f32.mrf.mxu1  ;;  %v1812_v10 = vpop.f32.mrf.mxu0 }
 0x11e   : > { %v5765_v23 = vadd.f32 %v1806_v40, %v1603_v14  ;;  %5011 = vmatmul.msk.f32.gmra.mxu2 %vm269_vm0, %v1347_v30  ;;  %v503_v40 = vld [vmem:[#allocation2 + $0xa8] sm:$0xff]  ;;  %v928_v2 = vadd.f32 %v927_v21, %v5681_v29 }
 0x11f   : > { %5048 = vmatmul.msk.f32.gmra.mxu3 %vm269_vm0, %v1349_v18 }
 0x120   : > { %4975 = vmatmul.msk.f32.gmra.mxu1 %vm269_vm0, %v502_v16  ;;  %5086 = vmatmul.msk.f32.gmra.mxu0 %vm269_vm0, %v1657_v24  ;;  %v1352_v24 = vld [vmem:[#allocation2 + $0xc2] sm:$0xff] }
 0x121   : > { %v1195_v26 = vpop.f32.mrf.mxu2 }
 0x122   : > { %v1297_v28 = vadd.f32 %v1195_v26, %v925_v17  ;;  %v1502_v33 = vpop.f32.mrf.mxu3 }
 0x124   : > { %v1604_v35 = vadd.f32 %v1502_v33, %v1297_v28  ;;  %v1660_v28 = vld [vmem:[#allocation2 + $0xcb] sm:$0xff] }
 0x125   : > { %v930_v0 = vpop.f32.mrf.mxu1  ;;  %v1815_v30 = vpop.f32.mrf.mxu0 }
 0x126   : > { %v5772_v44 = vadd.f32 %v1809_v61, %v1604_v35  ;;  %5012 = vmatmul.msk.f32.gmra.mxu2 %vm269_vm0, %v1348_v54  ;;  %v504_v61 = vld [vmem:[#allocation2 + $0xb0] sm:$0xff]  ;;  %v931_v29 = vadd.f32 %v930_v0, %v5693_v36 }
 0x127   : > { %5049 = vmatmul.msk.f32.gmra.mxu3 %vm269_vm0, %v1350_v42 }
 0x128   : > { %4976 = vmatmul.msk.f32.gmra.mxu1 %vm269_vm0, %v503_v40  ;;  %5087 = vmatmul.msk.f32.gmra.mxu0 %vm269_vm0, %v1658_v47  ;;  %v1353_v47 = vld [vmem:[#allocation2 + $0xca] sm:$0xff] }
 0x129   : > { %v1198_v49 = vpop.f32.mrf.mxu2 }
 0x12a   : > { %v1298_v51 = vadd.f32 %v1198_v49, %v928_v2  ;;  %v1505_v56 = vpop.f32.mrf.mxu3 }
 0x12c   : > { %v1605_v58 = vadd.f32 %v1505_v56, %v1298_v51  ;;  %v1661_v51 = vld [vmem:[#allocation2 + $0xd3] sm:$0xff] }
 0x12d   : > { %v933_v8 = vpop.f32.mrf.mxu1  ;;  %v1818_v54 = vpop.f32.mrf.mxu0 }
 0x12e   : > { %v5779_v4 = vadd.f32 %v1812_v10, %v1605_v58  ;;  %5013 = vmatmul.msk.f32.gmra.mxu2 %vm269_vm0, %v1349_v18  ;;  %v505_v10 = vld [vmem:[#allocation2 + $0xb8] sm:$0xff]  ;;  %v934_v36 = vadd.f32 %v933_v8, %v5705_v43 }
 0x12f   : > { %5050 = vmatmul.msk.f32.gmra.mxu3 %vm269_vm0, %v1351_v63 }
 0x130   : > { %4977 = vmatmul.msk.f32.gmra.mxu1 %vm269_vm0, %v504_v61  ;;  %5088 = vmatmul.msk.f32.gmra.mxu0 %vm269_vm0, %v1659_v5  ;;  %v1354_v5 = vld [vmem:[#allocation2 + $0xd2] sm:$0xff] }
 0x131   : > { %v1201_v11 = vpop.f32.mrf.mxu2 }
 0x132   : > { %v1299_v14 = vadd.f32 %v1201_v11, %v931_v29  ;;  %v1508_v21 = vpop.f32.mrf.mxu3 }
 0x134   : > { %v1606_v16 = vadd.f32 %v1508_v21, %v1299_v14  ;;  %v1662_v14 = vld [vmem:[#allocation2 + $0xdb] sm:$0xff] }
 0x135   : > { %v936_v17 = vpop.f32.mrf.mxu1  ;;  %v1821_v18 = vpop.f32.mrf.mxu0 }
 0x136   : > { %v5786_v26 = vadd.f32 %v1815_v30, %v1606_v16  ;;  %5014 = vmatmul.msk.f32.gmra.mxu2 %vm269_vm0, %v1350_v42  ;;  %v506_v30 = vld [vmem:[#allocation2 + $0xc0] sm:$0xff]  ;;  %v937_v43 = vadd.f32 %v936_v17, %v5717_v50 }
 0x137   : > { %5051 = vmatmul.msk.f32.gmra.mxu3 %vm269_vm0, %v1352_v24 }
 0x138   : > { %4978 = vmatmul.msk.f32.gmra.mxu1 %vm269_vm0, %v505_v10  ;;  %5089 = vmatmul.msk.f32.gmra.mxu0 %vm269_vm0, %v1660_v28  ;;  %v1355_v28 = vld [vmem:[#allocation2 + $0xda] sm:$0xff] }
 0x139   : > { %v1204_v33 = vpop.f32.mrf.mxu2 }
 0x13a   : > { %v1300_v35 = vadd.f32 %v1204_v33, %v934_v36  ;;  %v1511_v0 = vpop.f32.mrf.mxu3 }
 0x13c   : > { %v1607_v40 = vadd.f32 %v1511_v0, %v1300_v35  ;;  %v1663_v35 = vld [vmem:[#allocation2 + $0xe3] sm:$0xff] }
 0x13d   : > { %v939_v2 = vpop.f32.mrf.mxu1  ;;  %v1824_v42 = vpop.f32.mrf.mxu0 }
 0x13e   : > { %v5793_v49 = vadd.f32 %v1818_v54, %v1607_v40  ;;  %5015 = vmatmul.msk.f32.gmra.mxu2 %vm269_vm0, %v1351_v63  ;;  %v507_v54 = vld [vmem:[#allocation2 + $0xc8] sm:$0xff]  ;;  %v940_v50 = vadd.f32 %v939_v2, %v5729_v57 }
 0x13f   : > { %5052 = vmatmul.msk.f32.gmra.mxu3 %vm269_vm0, %v1353_v47 }
 0x140   : > { %4979 = vmatmul.msk.f32.gmra.mxu1 %vm269_vm0, %v506_v30  ;;  %5090 = vmatmul.msk.f32.gmra.mxu0 %vm269_vm0, %v1661_v51  ;;  %v1356_v51 = vld [vmem:[#allocation2 + $0xe2] sm:$0xff] }
 0x141   : > { %v1207_v56 = vpop.f32.mrf.mxu2 }
 0x142   : > { %v1301_v58 = vadd.f32 %v1207_v56, %v937_v43  ;;  %v1514_v8 = vpop.f32.mrf.mxu3 }
 0x144   : > { %v1608_v61 = vadd.f32 %v1514_v8, %v1301_v58  ;;  %v1664_v58 = vld [vmem:[#allocation2 + $0xeb] sm:$0xff] }
 0x145   : > { %v942_v29 = vpop.f32.mrf.mxu1  ;;  %v1827_v63 = vpop.f32.mrf.mxu0 }
 0x146   : > { %v5800_v11 = vadd.f32 %v1821_v18, %v1608_v61  ;;  %5016 = vmatmul.msk.f32.gmra.mxu2 %vm269_vm0, %v1352_v24  ;;  %v508_v18 = vld [vmem:[#allocation2 + $0xd0] sm:$0xff]  ;;  %v943_v57 = vadd.f32 %v942_v29, %v5636_v1 }
 0x147   : > { %5053 = vmatmul.msk.f32.gmra.mxu3 %vm269_vm0, %v1354_v5 }
 0x148   : > { %4980 = vmatmul.msk.f32.gmra.mxu1 %vm269_vm0, %v507_v54  ;;  %5091 = vmatmul.msk.f32.gmra.mxu0 %vm269_vm0, %v1662_v14  ;;  %v1357_v14 = vld [vmem:[#allocation2 + $0xea] sm:$0xff] }
 0x149   : > { %v1210_v21 = vpop.f32.mrf.mxu2 }
 0x14a   : > { %v1302_v16 = vadd.f32 %v1210_v21, %v940_v50  ;;  %v1517_v17 = vpop.f32.mrf.mxu3  ;;  %v510_v50 = vld [vmem:[#allocation2 + $0xe0] sm:$0xff] }
 0x14c   : > { %v1609_v10 = vadd.f32 %v1517_v17, %v1302_v16  ;;  %v1665_v16 = vld [vmem:[#allocation2 + $0xf3] sm:$0xff] }
 0x14d   : > { %v945_v36 = vpop.f32.mrf.mxu1  ;;  %v1830_v24 = vpop.f32.mrf.mxu0 }
 0x14e   : > { %v5807_v33 = vadd.f32 %v1824_v42, %v1609_v10  ;;  %5017 = vmatmul.msk.f32.gmra.mxu2 %vm269_vm0, %v1353_v47  ;;  %v509_v42 = vld [vmem:[#allocation2 + $0xd8] sm:$0xff]  ;;  %v946_v1 = vadd.f32 %v945_v36, %v5644_v9  ;;  %v472_v10 = vld [vmem:[%s5349_s30 + $0x10e] sm:$0xff] }
 0x14f   : > { %5054 = vmatmul.msk.f32.gmra.mxu3 %vm269_vm0, %v1355_v28 }
 0x150   : > { %4981 = vmatmul.msk.f32.gmra.mxu1 %vm269_vm0, %v508_v18  ;;  %5092 = vmatmul.msk.f32.gmra.mxu0 %vm269_vm0, %v1663_v35 }
 0x151   : > { %v1213_v0 = vpop.f32.mrf.mxu2 }
 0x152   : > { %v1303_v40 = vadd.f32 %v1213_v0, %v943_v57  ;;  %v1520_v2 = vpop.f32.mrf.mxu3  ;;  %v1358_v57 = vld [vmem:[#allocation2 + $0xf2] sm:$0xff] }
 0x154   : > { %v1610_v30 = vadd.f32 %v1520_v2, %v1303_v40  ;;  %v511_v2 = vld [vmem:[#allocation2 + $0xe8] sm:$0xff] }
 0x155   : > { %v948_v43 = vpop.f32.mrf.mxu1  ;;  %v1833_v47 = vpop.f32.mrf.mxu0 }
 0x156   : > { %v5814_v56 = vadd.f32 %v1827_v63, %v1610_v30  ;;  %5018 = vmatmul.msk.f32.gmra.mxu2 %vm269_vm0, %v1354_v5  ;;  %v949_v9 = vadd.f32 %v948_v43, %v5654_v15  ;;  %v5269_v15 = vld [vmem:[%s7203_s3] ss:$0 sm:$0xff] }
 0x157   : > { %5055 = vmatmul.msk.f32.gmra.mxu3 %vm269_vm0, %v1356_v51 }
 0x158   : > { %4982 = vmatmul.msk.f32.gmra.mxu1 %vm269_vm0, %v509_v42  ;;  %5093 = vmatmul.msk.f32.gmra.mxu0 %vm269_vm0, %v1664_v58  ;;  %v1666_v42 = vld [vmem:[#allocation2 + $0xfb] sm:$0xff] }
 0x159   : > { %v1216_v8 = vpop.f32.mrf.mxu2 }
 0x15a   : > { %v1304_v61 = vadd.f32 %v1216_v8, %v946_v1  ;;  %v1523_v29 = vpop.f32.mrf.mxu3 }
 0x15c   : > { %v1611_v54 = vadd.f32 %v1523_v29, %v1304_v61  ;;  %v473_v61 = vld [vmem:[%s5349_s30 + $0x116] sm:$0xff] }
 0x15d   : > { %v951_v63 = vpop.f32.mrf.mxu1  ;;  %v1836_v5 = vpop.f32.mrf.mxu0 }
 0x15e   : > { %v5821_v21 = vadd.f32 %v1830_v24, %v1611_v54  ;;  %5019 = vmatmul.msk.f32.gmra.mxu2 %vm269_vm0, %v1355_v28  ;;  %v5268_v24 = vld [vmem:[%s7202_s2] ss:$0 sm:$0xff]  ;;  %v952_v1 = vadd.f32 %v951_v63, %v5666_v22  ;;  %v1667_v63 = vld [vmem:[#allocation2 + $0x103] sm:$0xff] }
 0x15f   : > { %5056 = vmatmul.msk.f32.gmra.mxu3 %vm269_vm0, %v1357_v14  ;;  %v474_v35 = vmul.f32 %v5268_v24, %v472_v10  ;;  %v475_v54 = vmul.f32 %v5268_v24, %v473_v61 }
 0x160   : > { %4983 = vmatmul.msk.f32.gmra.mxu1 %vm269_vm0, %v510_v50  ;;  %5094 = vmatmul.msk.f32.gmra.mxu0 %vm269_vm0, %v1665_v16 }
 0x161   : > { %v1219_v17 = vpop.f32.mrf.mxu2  ;;  %v476_v0 = vadd.f32 %v5269_v15, %v474_v35  ;;  %v477_v16 = vadd.f32 %v5269_v15, %v475_v54  ;;  %v1360_v15 = vld [vmem:[#allocation2 + $0x102] sm:$0xff] }
 0x162   : > { %v1305_v36 = vadd.f32 %v1219_v17, %v949_v9  ;;  %v1526_v18 = vpop.f32.mrf.mxu3  ;;  %v512_v17 = vld [vmem:[#allocation2 + $0xf0] sm:$0xff] }
 0x163   : > { %v478_v58 = vmax.f32 %v476_v0, 0.0 }
 0x164   : > { %v1612_v28 = vadd.f32 %v1526_v18, %v1305_v36  ;;  %v479_v36 = vmax.f32 %v477_v16, 0.0 }
 0x165   : > { %v954_v40 = vpop.f32.mrf.mxu1  ;;  %v1839_v43 = vpop.f32.mrf.mxu0  ;;  %480 = vst.msk [vmem:[#allocation2 + $0x121] sm:$0xff] %vm269_vm0, %v478_v58  ;;  %v1668_v58 = vld [vmem:[#allocation2 + $0x10b] sm:$0xff] }
 0x166   : > { %v5835_v30 = vadd.f32 %v1833_v47, %v1612_v28  ;;  %5020 = vmatmul.msk.f32.gmra.mxu2 %vm269_vm0, %v1356_v51  ;;  %v1359_v51 = vld [vmem:[#allocation2 + $0xfa] sm:$0xff]  ;;  %v955_v18 = vadd.f32 %v954_v40, %v5678_v27  ;;  %481 = vst.msk [vmem:[#allocation2 + $0x129] sm:$0xff] %vm269_vm0, %v479_v36  ;;  %v1362_v36 = vld [vmem:[#allocation2 + $0x112] sm:$0xff] }
 0x167   : > { %5057 = vmatmul.msk.f32.gmra.mxu3 %vm269_vm0, %v1358_v57 }
 0x168   : > { %4984 = vmatmul.msk.f32.gmra.mxu1 %vm269_vm0, %v511_v2  ;;  %5095 = vmatmul.msk.f32.gmra.mxu0 %vm269_vm0, %v1666_v42 }
 0x169   : > { %v1222_v8 = vpop.f32.mrf.mxu2 }
 0x16a   : > { %v1306_v29 = vadd.f32 %v1222_v8, %v952_v1  ;;  %v1529_v47 = vpop.f32.mrf.mxu3 }
 0x16c   : > { %v1613_v50 = vadd.f32 %v1529_v47, %v1306_v29  ;;  %v1361_v29 = vld [vmem:[#allocation2 + $0x10a] sm:$0xff] }
 0x16d   : > { %v957_v9 = vpop.f32.mrf.mxu1  ;;  %v1842_v22 = vpop.f32.mrf.mxu0 }
 0x16e   : > { %v5844_v10 = vadd.f32 %v1836_v5, %v1613_v50  ;;  %5021 = vmatmul.msk.f32.gmra.mxu2 %vm269_vm0, %v1357_v14  ;;  %v513_v14 = vld [vmem:[#allocation2 + $0xf8] sm:$0xff]  ;;  %v958_v27 = vadd.f32 %v957_v9, %v5690_v34 }
 0x16f   : > { %5058 = vmatmul.msk.f32.gmra.mxu3 %vm269_vm0, %v1359_v51  ;;  %v1669_v50 = vld [vmem:[#allocation2 + $0x113] sm:$0xff] }
 0x170   : > { %4985 = vmatmul.msk.f32.gmra.mxu1 %vm269_vm0, %v512_v17  ;;  %5096 = vmatmul.msk.f32.gmra.mxu0 %vm269_vm0, %v1667_v63 }
 0x171   : > { %v1225_v24 = vpop.f32.mrf.mxu2 }
 0x172   : > { %v1307_v35 = vadd.f32 %v1225_v24, %v955_v18  ;;  %v1532_v28 = vpop.f32.mrf.mxu3 }
 0x174   : > { %v1614_v5 = vadd.f32 %v1532_v28, %v1307_v35  ;;  %v1670_v35 = vld [vmem:[#allocation2 + $0x11b] sm:$0xff] }
 0x175   : > { %v960_v0 = vpop.f32.mrf.mxu1  ;;  %v1845_v42 = vpop.f32.mrf.mxu0 }
 0x176   : > { %v5852_v2 = vadd.f32 %v1839_v43, %v1614_v5  ;;  %5022 = vmatmul.msk.f32.gmra.mxu2 %vm269_vm0, %v1358_v57  ;;  %v514_v43 = vld [vmem:[#allocation2 + $0x100] sm:$0xff]  ;;  %v961_v34 = vadd.f32 %v960_v0, %v5702_v41 }
 0x177   : > { %5059 = vmatmul.msk.f32.gmra.mxu3 %vm269_vm0, %v1360_v15 }
 0x178   : > { %4986 = vmatmul.msk.f32.gmra.mxu1 %vm269_vm0, %v513_v14  ;;  %5097 = vmatmul.msk.f32.gmra.mxu0 %vm269_vm0, %v1668_v58  ;;  %v1363_v58 = vld [vmem:[#allocation2 + $0x11a] sm:$0xff] }
 0x179   : > { %v1228_v40 = vpop.f32.mrf.mxu2 }
 0x17a   : > { %v1308_v1 = vadd.f32 %v1228_v40, %v958_v27  ;;  %v1535_v8 = vpop.f32.mrf.mxu3 }
 0x17c   : > { %v1615_v61 = vadd.f32 %v1535_v8, %v1308_v1  ;;  %v1671_v1 = vld [vmem:[#allocation2 + $0x123] sm:$0xff] }
 0x17d   : > { %v963_v47 = vpop.f32.mrf.mxu1  ;;  %v1848_v57 = vpop.f32.mrf.mxu0 }
 0x17e   : > { %v5859_v54 = vadd.f32 %v1842_v22, %v1615_v61  ;;  %5023 = vmatmul.msk.f32.gmra.mxu2 %vm269_vm0, %v1359_v51  ;;  %v515_v22 = vld [vmem:[#allocation2 + $0x108] sm:$0xff]  ;;  %v964_v41 = vadd.f32 %v963_v47, %v5714_v48 }
 0x17f   : > { %5060 = vmatmul.msk.f32.gmra.mxu3 %vm269_vm0, %v1361_v29 }
 0x180   : > { %4987 = vmatmul.msk.f32.gmra.mxu1 %vm269_vm0, %v514_v43  ;;  %5098 = vmatmul.msk.f32.gmra.mxu0 %vm269_vm0, %v1669_v50  ;;  %v1364_v50 = vld [vmem:[#allocation2 + $0x122] sm:$0xff] }
 0x181   : > { %v1231_v16 = vpop.f32.mrf.mxu2 }
 0x182   : > { %v1309_v9 = vadd.f32 %v1231_v16, %v961_v34  ;;  %v1538_v17 = vpop.f32.mrf.mxu3 }
 0x184   : > { %v1616_v63 = vadd.f32 %v1538_v17, %v1309_v9  ;;  %v1672_v9 = vld [vmem:[#allocation2 + $0x12b] sm:$0xff] }
 0x185   : > { %v966_v18 = vpop.f32.mrf.mxu1  ;;  %v1851_v51 = vpop.f32.mrf.mxu0 }
 0x186   : > { %v5866_v24 = vadd.f32 %v1845_v42, %v1616_v63  ;;  %5024 = vmatmul.msk.f32.gmra.mxu2 %vm269_vm0, %v1360_v15  ;;  %v516_v42 = vld [vmem:[#allocation2 + $0x110] sm:$0xff]  ;;  %v967_v48 = vadd.f32 %v966_v18, %v5726_v55 }
 0x187   : > { %5061 = vmatmul.msk.f32.gmra.mxu3 %vm269_vm0, %v1362_v36 }
 0x188   : > { %4988 = vmatmul.msk.f32.gmra.mxu1 %vm269_vm0, %v515_v22  ;;  %5099 = vmatmul.msk.f32.gmra.mxu0 %vm269_vm0, %v1670_v35  ;;  %v1365_v35 = vld [vmem:[#allocation2 + $0x12a] sm:$0xff] }
 0x189   : > { %v1234_v28 = vpop.f32.mrf.mxu2 }
 0x18a   : > { %v1310_v5 = vadd.f32 %v1234_v28, %v964_v41  ;;  %v1541_v0 = vpop.f32.mrf.mxu3 }
 0x18c   : > { %v1617_v14 = vadd.f32 %v1541_v0, %v1310_v5  ;;  %v2865_v5 = vld [vmem:[#allocation2 + $0x26] sm:$0xff] }
 0x18d   : > { %v969_v27 = vpop.f32.mrf.mxu1  ;;  %v1854_v15 = vpop.f32.mrf.mxu0 }
 0x18e   : > { %v5873_v40 = vadd.f32 %v1848_v57, %v1617_v14  ;;  %5025 = vmatmul.msk.f32.gmra.mxu2 %vm269_vm0, %v1361_v29  ;;  %v517_v57 = vld [vmem:[#allocation2 + $0x118] sm:$0xff]  ;;  %v970_v55 = vadd.f32 %v969_v27, %v5649_v12 }
 0x18f   : > { %5062 = vmatmul.msk.f32.gmra.mxu3 %vm269_vm0, %v1363_v58 }
 0x190   : > { %4989 = vmatmul.msk.f32.gmra.mxu1 %vm269_vm0, %v516_v42  ;;  %5100 = vmatmul.msk.f32.gmra.mxu0 %vm269_vm0, %v1671_v1  ;;  %v2251_v42 = vld [vmem:[#allocation2 + $0x24] sm:$0xff] }
 0x191   : > { %v1237_v8 = vpop.f32.mrf.mxu2 }
 0x192   : > { %v1311_v61 = vadd.f32 %v1237_v8, %v967_v48  ;;  %v1544_v47 = vpop.f32.mrf.mxu3  ;;  %v2558_v48 = vld [vmem:[#allocation2 + $0x25] sm:$0xff]  ;;  %v1945_v8 = vld [vmem:[#allocation2 + $0x1c] sm:$0xff] }
 0x194   : > { %v1618_v43 = vadd.f32 %v1544_v47, %v1311_v61  ;;  %v2866_v47 = vld [vmem:[#allocation2 + $0x2e] sm:$0xff] }
 0x195   : > { %v972_v34 = vpop.f32.mrf.mxu1  ;;  %v1857_v29 = vpop.f32.mrf.mxu0 }
 0x196   : > { %v5880_v16 = vadd.f32 %v1851_v51, %v1618_v43  ;;  %5026 = vmatmul.msk.f32.gmra.mxu2 %vm269_vm0, %v1362_v36  ;;  %v1944_v51 = vld [vmem:[#allocation2 + $0x14] sm:$0xff]  ;;  %v973_v12 = vadd.f32 %v972_v34, %v5661_v19 }
 0x197   : > { %5063 = vmatmul.msk.f32.gmra.mxu3 %vm269_vm0, %v1364_v50 }
 0x198   : > { %4990 = vmatmul.msk.f32.gmra.mxu1 %vm269_vm0, %v517_v57  ;;  %5101 = vmatmul.msk.f32.gmra.mxu0 %vm269_vm0, %v1672_v9  ;;  %v2252_v57 = vld [vmem:[#allocation2 + $0x2c] sm:$0xff] }
 0x199   : > { %v1240_v17 = vpop.f32.mrf.mxu2 }
 0x19a   : > { %v1312_v63 = vadd.f32 %v1240_v17, %v970_v55  ;;  %v1547_v18 = vpop.f32.mrf.mxu3  ;;  %v2559_v55 = vld [vmem:[#allocation2 + $0x2d] sm:$0xff] }
 0x19c   : > { %v1619_v22 = vadd.f32 %v1547_v18, %v1312_v63  ;;  %v2867_v18 = vld [vmem:[#allocation2 + $0x36] sm:$0xff] }
 0x19d   : > { %v975_v41 = vpop.f32.mrf.mxu1  ;;  %v1860_v36 = vpop.f32.mrf.mxu0 }
 0x19e   : > { %v5887_v28 = vadd.f32 %v1854_v15, %v1619_v22  ;;  %5027 = vmatmul.msk.f32.gmra.mxu2 %vm269_vm0, %v1363_v58  ;;  %v976_v19 = vadd.f32 %v975_v41, %v5673_v3 }
 0x19f   : > { %5064 = vmatmul.msk.f32.gmra.mxu3 %vm269_vm0, %v1365_v35 }
 0x1a0   : > { %5103 = vmatmul.msk.f32.vlgmr.msra.gmra.mxu1 %vm269_vm0, %v1944_v51  ;;  %5214 = vmatmul.msk.f32.vlgmr.msra.gmra.mxu0 %vm269_vm0, %v2865_v5  ;;  %v2253_v51 = vld [vmem:[#allocation2 + $0x34] sm:$0xff] }
 0x1a1   : > { %v1243_v0 = vpop.f32.mrf.mxu2 }
 0x1a2   : > { %v1313_v14 = vadd.f32 %v1243_v0, %v973_v12  ;;  %v1550_v27 = vpop.f32.mrf.mxu3  ;;  %v2560_v12 = vld [vmem:[#allocation2 + $0x35] sm:$0xff] }
 0x1a4   : > { %v1620_v1 = vadd.f32 %v1550_v27, %v1313_v14  ;;  %v2868_v27 = vld [vmem:[#allocation2 + $0x3e] sm:$0xff] }
 0x1a5   : > { %v978_v15 = vpop.f32.mrf.mxu1  ;;  %v1863_v58 = vpop.f32.mrf.mxu0 }
 0x1a6   : > { %v5894_v61 = vadd.f32 %v1857_v29, %v1620_v1  ;;  %5140 = vmatmul.msk.f32.vlgmr.msra.gmra.mxu2 %vm269_vm0, %v2251_v42  ;;  %v979_v3 = vadd.f32 %v978_v15, %v5685_v31  ;;  %v2254_v15 = vld [vmem:[#allocation2 + $0x3c] sm:$0xff] }
 0x1a7   : > { %5177 = vmatmul.msk.f32.vlgmr.msra.gmra.mxu3 %vm269_vm0, %v2558_v48 }
 0x1a8   : > { %5104 = vmatmul.msk.f32.gmra.mxu1 %vm269_vm0, %v1945_v8  ;;  %5215 = vmatmul.msk.f32.gmra.mxu0 %vm269_vm0, %v2866_v47  ;;  %v2561_v47 = vld [vmem:[#allocation2 + $0x3d] sm:$0xff] }
 0x1a9   : > { %v1246_v43 = vpop.f32.mrf.mxu2 }
 0x1aa   : > { %v1314_v50 = vadd.f32 %v1246_v43, %v976_v19  ;;  %v1553_v34 = vpop.f32.mrf.mxu3 }
 0x1ac   : > { %v1621_v9 = vadd.f32 %v1553_v34, %v1314_v50  ;;  %v2869_v50 = vld [vmem:[#allocation2 + $0x46] sm:$0xff] }
 0x1ad   : > { %v981_v29 = vpop.f32.mrf.mxu1  ;;  %v1866_v63 = vpop.f32.mrf.mxu0 }
 0x1ae   : > { %v5901_v17 = vadd.f32 %v1860_v36, %v1621_v9  ;;  %5141 = vmatmul.msk.f32.gmra.mxu2 %vm269_vm0, %v2252_v57  ;;  %v982_v31 = vadd.f32 %v981_v29, %v5697_v38 }
 0x1af   : > { %5178 = vmatmul.msk.f32.gmra.mxu3 %vm269_vm0, %v2559_v55  ;;  %v2255_v55 = vld [vmem:[#allocation2 + $0x44] sm:$0xff] }
 0x1b0   : > { %5105 = vmatmul.msk.f32.gmra.mxu1 %vm269_vm0, %v2251_v42  ;;  %5216 = vmatmul.msk.f32.gmra.mxu0 %vm269_vm0, %v2867_v18  ;;  %v2562_v18 = vld [vmem:[#allocation2 + $0x45] sm:$0xff] }
 0x1b1   : > { %v1249_v22 = vpop.f32.mrf.mxu2 }
 0x1b2   : > { %v1315_v35 = vadd.f32 %v1249_v22, %v979_v3  ;;  %v1556_v41 = vpop.f32.mrf.mxu3 }
 0x1b4   : > { %v1622_v5 = vadd.f32 %v1556_v41, %v1315_v35  ;;  %v2870_v35 = vld [vmem:[#allocation2 + $0x4e] sm:$0xff] }
 0x1b5   : > { %v984_v36 = vpop.f32.mrf.mxu1  ;;  %v1869_v14 = vpop.f32.mrf.mxu0 }
 0x1b6   : > { %v5908_v0 = vadd.f32 %v1863_v58, %v1622_v5  ;;  %5142 = vmatmul.msk.f32.gmra.mxu2 %vm269_vm0, %v2253_v51  ;;  %v985_v38 = vadd.f32 %v984_v36, %v5709_v45 }
 0x1b7   : > { %5179 = vmatmul.msk.f32.gmra.mxu3 %vm269_vm0, %v2560_v12  ;;  %v2256_v12 = vld [vmem:[#allocation2 + $0x4c] sm:$0xff] }
 0x1b8   : > { %5106 = vmatmul.msk.f32.gmra.mxu1 %vm269_vm0, %v2252_v57  ;;  %5217 = vmatmul.msk.f32.gmra.mxu0 %vm269_vm0, %v2868_v27  ;;  %v2563_v27 = vld [vmem:[#allocation2 + $0x4d] sm:$0xff] }
 0x1b9   : > { %v1252_v42 = vpop.f32.mrf.mxu2 }
 0x1ba   : > { %v1316_v1 = vadd.f32 %v1252_v42, %v982_v31  ;;  %v1559_v48 = vpop.f32.mrf.mxu3 }
 0x1bc   : > { %v1623_v8 = vadd.f32 %v1559_v48, %v1316_v1  ;;  %v2871_v1 = vld [vmem:[#allocation2 + $0x56] sm:$0xff] }
 0x1bd   : > { %v987_v58 = vpop.f32.mrf.mxu1  ;;  %v1872_v43 = vpop.f32.mrf.mxu0 }
 0x1be   : > { %v5915_v19 = vadd.f32 %v1866_v63, %v1623_v8  ;;  %5143 = vmatmul.msk.f32.gmra.mxu2 %vm269_vm0, %v2254_v15  ;;  %v988_v45 = vadd.f32 %v987_v58, %v5721_v52 }
 0x1bf   : > { %5180 = vmatmul.msk.f32.gmra.mxu3 %vm269_vm0, %v2561_v47  ;;  %v2257_v47 = vld [vmem:[#allocation2 + $0x54] sm:$0xff] }
 0x1c0   : > { %5107 = vmatmul.msk.f32.gmra.mxu1 %vm269_vm0, %v2253_v51  ;;  %5218 = vmatmul.msk.f32.gmra.mxu0 %vm269_vm0, %v2869_v50  ;;  %v2564_v50 = vld [vmem:[#allocation2 + $0x55] sm:$0xff] }
 0x1c1   : > { %v1255_v34 = vpop.f32.mrf.mxu2 }
 0x1c2   : > { %v1317_v57 = vadd.f32 %v1255_v34, %v985_v38  ;;  %v1562_v9 = vpop.f32.mrf.mxu3 }
 0x1c4   : > { %v1624_v29 = vadd.f32 %v1562_v9, %v1317_v57  ;;  %v2872_v57 = vld [vmem:[#allocation2 + $0x5e] sm:$0xff] }
 0x1c5   : > { %v990_v63 = vpop.f32.mrf.mxu1  ;;  %v1875_v22 = vpop.f32.mrf.mxu0 }
 0x1c6   : > { %v5922_v3 = vadd.f32 %v1869_v14, %v1624_v29  ;;  %5144 = vmatmul.msk.f32.gmra.mxu2 %vm269_vm0, %v2255_v55  ;;  %v991_v52 = vadd.f32 %v990_v63, %v5733_v59 }
 0x1c7   : > { %5181 = vmatmul.msk.f32.gmra.mxu3 %vm269_vm0, %v2562_v18  ;;  %v2258_v18 = vld [vmem:[#allocation2 + $0x5c] sm:$0xff] }
 0x1c8   : > { %5108 = vmatmul.msk.f32.gmra.mxu1 %vm269_vm0, %v2254_v15  ;;  %5219 = vmatmul.msk.f32.gmra.mxu0 %vm269_vm0, %v2870_v35  ;;  %v2565_v35 = vld [vmem:[#allocation2 + $0x5d] sm:$0xff] }
 0x1c9   : > { %v1258_v41 = vpop.f32.mrf.mxu2 }
 0x1ca   : > { %v1318_v51 = vadd.f32 %v1258_v41, %v988_v45  ;;  %v1565_v5 = vpop.f32.mrf.mxu3 }
 0x1cc   : > { %v1625_v36 = vadd.f32 %v1565_v5, %v1318_v51  ;;  %v2873_v51 = vld [vmem:[#allocation2 + $0x66] sm:$0xff] }
 0x1cd   : > { %v993_v14 = vpop.f32.mrf.mxu1  ;;  %v1878_v42 = vpop.f32.mrf.mxu0 }
 0x1ce   : > { %v5929_v31 = vadd.f32 %v1872_v43, %v1625_v36  ;;  %5145 = vmatmul.msk.f32.gmra.mxu2 %vm269_vm0, %v2256_v12  ;;  %v994_v59 = vadd.f32 %v993_v14, %v5741_v6 }
 0x1cf   : > { %5182 = vmatmul.msk.f32.gmra.mxu3 %vm269_vm0, %v2563_v27  ;;  %v2259_v27 = vld [vmem:[#allocation2 + $0x64] sm:$0xff] }
 0x1d0   : > { %5109 = vmatmul.msk.f32.gmra.mxu1 %vm269_vm0, %v2255_v55  ;;  %5220 = vmatmul.msk.f32.gmra.mxu0 %vm269_vm0, %v2871_v1  ;;  %v2566_v1 = vld [vmem:[#allocation2 + $0x65] sm:$0xff] }
 0x1d1   : > { %v1261_v48 = vpop.f32.mrf.mxu2 }
 0x1d2   : > { %v1319_v15 = vadd.f32 %v1261_v48, %v991_v52  ;;  %v1568_v8 = vpop.f32.mrf.mxu3 }
 0x1d4   : > { %v1626_v58 = vadd.f32 %v1568_v8, %v1319_v15  ;;  %v2874_v15 = vld [vmem:[#allocation2 + $0x6e] sm:$0xff] }
 0x1d5   : > { %v996_v43 = vpop.f32.mrf.mxu1  ;;  %v1881_v34 = vpop.f32.mrf.mxu0 }
 0x1d6   : > { %v5936_v38 = vadd.f32 %v1875_v22, %v1626_v58  ;;  %5146 = vmatmul.msk.f32.gmra.mxu2 %vm269_vm0, %v2257_v47  ;;  %v997_v6 = vadd.f32 %v996_v43, %v5652_v13 }
 0x1d7   : > { %5183 = vmatmul.msk.f32.gmra.mxu3 %vm269_vm0, %v2564_v50  ;;  %v2260_v50 = vld [vmem:[#allocation2 + $0x6c] sm:$0xff] }
 0x1d8   : > { %5110 = vmatmul.msk.f32.gmra.mxu1 %vm269_vm0, %v2256_v12  ;;  %5221 = vmatmul.msk.f32.gmra.mxu0 %vm269_vm0, %v2872_v57  ;;  %v2567_v57 = vld [vmem:[#allocation2 + $0x6d] sm:$0xff] }
 0x1d9   : > { %v1264_v9 = vpop.f32.mrf.mxu2 }
 0x1da   : > { %v1320_v55 = vadd.f32 %v1264_v9, %v994_v59  ;;  %v1571_v29 = vpop.f32.mrf.mxu3 }
 0x1dc   : > { %v1627_v63 = vadd.f32 %v1571_v29, %v1320_v55  ;;  %v2875_v55 = vld [vmem:[#allocation2 + $0x76] sm:$0xff] }
 0x1dd   : > { %v999_v22 = vpop.f32.mrf.mxu1  ;;  %v1884_v41 = vpop.f32.mrf.mxu0 }
 0x1de   : > { %v5943_v45 = vadd.f32 %v1878_v42, %v1627_v63  ;;  %5147 = vmatmul.msk.f32.gmra.mxu2 %vm269_vm0, %v2258_v18  ;;  %v1000_v13 = vadd.f32 %v999_v22, %v5664_v20  ;;  %v2261_v22 = vld [vmem:[#allocation2 + $0x74] sm:$0xff] }
 0x1df   : > { %5184 = vmatmul.msk.f32.gmra.mxu3 %vm269_vm0, %v2565_v35  ;;  %v3172_v35 = vlaneseq }
 0x1e0   : > { %7209 = vst [vmem:[#allocation3_spill] sm:$0xff] %v5943_v45  ;;  %5111 = vmatmul.msk.f32.gmra.mxu1 %vm269_vm0, %v2257_v47  ;;  %5222 = vmatmul.msk.f32.gmra.mxu0 %vm269_vm0, %v2873_v51 }
 0x1e1   : > { %v1267_v5 = vpop.f32.mrf.mxu2 }
 0x1e2   : > { %v1321_v12 = vadd.f32 %v1267_v5, %v997_v6  ;;  %v1574_v36 = vpop.f32.mrf.mxu3  ;;  %v5964_v6 = vshrl.u32 %v3172_v35, 7  ;;  %v2877_v35 = vld [vmem:[#allocation2 + $0x86] sm:$0xff] }
 0x1e4   : > { %v1628_v14 = vadd.f32 %v1574_v36, %v1321_v12 }
 0x1e5   : > { %v1002_v42 = vpop.f32.mrf.mxu1  ;;  %v1887_v48 = vpop.f32.mrf.mxu0 }
 0x1e6   : > { %v5950_v52 = vadd.f32 %v1881_v34, %v1628_v14  ;;  %5148 = vmatmul.msk.f32.gmra.mxu2 %vm269_vm0, %v2259_v27  ;;  %v1003_v20 = vadd.f32 %v1002_v42, %v5676_v25  ;;  %v2876_v25 = vld [vmem:[#allocation2 + $0x7e] sm:$0xff] }
 0x1e7   : > { %5185 = vmatmul.msk.f32.gmra.mxu3 %vm269_vm0, %v2566_v1  ;;  %v3213_v1 = vshrl.u32 %v5964_v6, 16 }
 0x1e8   : > { %7210 = vst [vmem:[#allocation4_spill] sm:$0xff] %v5950_v52  ;;  %5112 = vmatmul.msk.f32.gmra.mxu1 %vm269_vm0, %v2258_v18  ;;  %5223 = vmatmul.msk.f32.gmra.mxu0 %vm269_vm0, %v2874_v15  ;;  %v6008_v52 = vadd.s32 24, %v5964_v6 }
 0x1e9   : > { %v1270_v8 = vpop.f32.mrf.mxu2 }
 0x1ea   : > { %v1322_v47 = vadd.f32 %v1270_v8, %v1000_v13  ;;  %v1577_v58 = vpop.f32.mrf.mxu3 }
 0x1ec   : > { %v1629_v43 = vadd.f32 %v1577_v58, %v1322_v47  ;;  %v3217_v47 = vmul.u32 14564, %v3213_v1 }
 0x1ed   : > { %v1005_v34 = vpop.f32.mrf.mxu1  ;;  %v1890_v9 = vpop.f32.mrf.mxu0 }
 0x1ee   : > { %v5957_v59 = vadd.f32 %v1884_v41, %v1629_v43  ;;  %5149 = vmatmul.msk.f32.gmra.mxu2 %vm269_vm0, %v2260_v50  ;;  %v2568_v41 = vld [vmem:[#allocation2 + $0x75] sm:$0xff]  ;;  %v1006_v14 = vadd.f32 %v1005_v34, %v5688_v32 }
 0x1ef   : > { %5186 = vmatmul.msk.f32.gmra.mxu3 %vm269_vm0, %v2567_v57  ;;  %v2262_v43 = vld [vmem:[#allocation2 + $0x7c] sm:$0xff] }
 0x1f0   : > { %7211 = vst [vmem:[#allocation5_spill] sm:$0xff] %v5957_v59  ;;  %5113 = vmatmul.msk.f32.gmra.mxu1 %vm269_vm0, %v2259_v27  ;;  %5224 = vmatmul.msk.f32.gmra.mxu0 %vm269_vm0, %v2875_v55  ;;  %v3212_v27 = vand.u32 65535, %v5964_v6  ;;  %v2569_v55 = vld [vmem:[#allocation2 + $0x7d] sm:$0xff] }
 0x1f1   : > { %v1273_v29 = vpop.f32.mrf.mxu2 }
 0x1f2   : > { %v1323_v18 = vadd.f32 %v1273_v29, %v1003_v20  ;;  %v1580_v63 = vpop.f32.mrf.mxu3  ;;  %v3216_v42 = vmul.u32 58254, %v3212_v27  ;;  %v3215_v8 = vmul.u32 14564, %v3212_v27  ;;  %v3218_v20 = vmul.u32 58254, %v3213_v1 }
 0x1f3   : > { %v3221_v29 = vshll.u32 %v3217_v47, 16 }
 0x1f4   : > { %v1630_v51 = vadd.f32 %v1580_v63, %v1323_v18  ;;  %v3219_v58 = vshll.u32 %v3216_v42, 16 }
 0x1f5   : > { %v1008_v5 = vpop.f32.mrf.mxu1  ;;  %v1893_v36 = vpop.f32.mrf.mxu0 }
 0x1f6   : > { %v5966_v12 = vadd.f32 %v1887_v48, %v1630_v51  ;;  %5150 = vmatmul.msk.f32.gmra.mxu2 %vm269_vm0, %v2261_v22  ;;  %vm3223_vm1 = vc.u32 %v3215_v8, %v3219_v58  ;;  %v3225_v34 = vadd.s32 %v3219_v58, %v3215_v8  ;;  %v7207_v51 = vmov 0  }
 0x1f7   : > { %5187 = vmatmul.msk.f32.gmra.mxu3 %vm269_vm0, %v2568_v41  ;;  %v3224_v41 = vsel %vm3223_vm1, 1, %v7207_v51 }
 0x1f8   : > { %7212 = vst [vmem:[#allocation6_spill] sm:$0xff] %v5966_v12  ;;  %5114 = vmatmul.msk.f32.gmra.mxu1 %vm269_vm0, %v2260_v50  ;;  %5225 = vmatmul.msk.f32.gmra.mxu0 %vm269_vm0, %v2876_v25  ;;  %v5976_v50 = vadd.s32 8, %v5964_v6  ;;  %v3226_v25 = vadd.s32 %v3224_v41, %v3218_v20  ;;  %vm3227_vm2 = vc.u32 %v3225_v34, %v3221_v29  ;;  %v2263_v29 = vld [vmem:[#allocation2 + $0x84] sm:$0xff]  ;;  %v3222_v34 = vshrl.u32 %v3217_v47, 16 }
 0x1f9   : > { %v1276_v15 = vpop.f32.mrf.mxu2  ;;  %v3228_v1 = vsel %vm3227_vm2, 1, %v7207_v51  ;;  %v5992_v51 = vadd.s32 16, %v5964_v6  ;;  %v7215_v47 = vmov 0  }
 0x1fa   : > { %v1324_v48 = vadd.f32 %v1276_v15, %v1006_v14  ;;  %v1583_v13 = vpop.f32.mrf.mxu3  ;;  %v3241_v27 = vand.u32 65535, %v5976_v50  ;;  %v1009_v14 = vadd.f32 %v1008_v5, %v5700_v39  ;;  %v3242_v15 = vshrl.u32 %v5976_v50, 16 }
 0x1fc   : > { %v1631_v57 = vadd.f32 %v1583_v13, %v1324_v48  ;;  %v3230_v13 = vadd.s32 %v3228_v1, %v3226_v25  ;;  %v3245_v8 = vmul.u32 58254, %v3241_v27  ;;  %v3246_v20 = vmul.u32 14564, %v3242_v15 }
 0x1fd   : > { %v1011_v32 = vpop.f32.mrf.mxu1  ;;  %v5981_v63 = vpop.f32.mrf.mxu0  ;;  %v3270_v1 = vand.u32 65535, %v5992_v51 }
 0x1fe   : > { %v5978_v18 = vadd.f32 %v1890_v9, %v1631_v57  ;;  %5151 = vmatmul.msk.f32.gmra.mxu2 %vm269_vm0, %v2262_v43  ;;  %v3220_v9 = vshrl.u32 %v3216_v42, 16  ;;  %v3248_v39 = vshll.u32 %v3245_v8, 16  ;;  %v3247_v42 = vmul.u32 58254, %v3242_v15 }
 0x1ff   : > { %5188 = vmatmul.msk.f32.gmra.mxu3 %vm269_vm0, %v2569_v55  ;;  %v3244_v55 = vmul.u32 14564, %v3241_v27  ;;  %v1012_v15 = vadd.f32 %v1011_v32, %v5712_v46  ;;  %v3273_v46 = vmul.u32 14564, %v3270_v1 }
 0x200   : > { %7213 = vst [vmem:[#allocation7_spill] sm:$0xff] %v5978_v18  ;;  %5115 = vmatmul.msk.f32.gmra.mxu1 %vm269_vm0, %v2261_v22  ;;  %5226 = vmatmul.msk.f32.gmra.mxu0 %vm269_vm0, %v2877_v35  ;;  %v3231_v41 = vadd.s32 %v3230_v13, %v3220_v9  ;;  %v2570_v22 = vld [vmem:[#allocation2 + $0x85] sm:$0xff]  ;;  %v3250_v18 = vshll.u32 %v3246_v20, 16 }
 0x201   : > { %v1279_v48 = vpop.f32.mrf.mxu2  ;;  %vm3252_vm3 = vc.u32 %v3244_v55, %v3248_v39  ;;  %v3254_v35 = vadd.s32 %v3248_v39, %v3244_v55  ;;  %v3274_v55 = vmul.u32 58254, %v3270_v1 }
 0x202   : > { %v1325_v58 = vadd.f32 %v1279_v48, %v1009_v14  ;;  %v1586_v57 = vpop.f32.mrf.mxu3  ;;  %v2878_v14 = vld [vmem:[#allocation2 + $0x8e] sm:$0xff]  ;;  %v3253_v9 = vsel %vm3252_vm3, 1, %v7215_v47  ;;  %v3232_v48 = vadd.s32 %v3231_v41, %v3222_v34  ;;  %v3251_v41 = vshrl.u32 %v3246_v20, 16 }
 0x203   : > { %v3255_v13 = vadd.s32 %v3253_v9, %v3247_v42  ;;  %vm3256_vm4 = vc.u32 %v3254_v35, %v3250_v18  ;;  %v3277_v42 = vshll.u32 %v3274_v55, 16 }
 0x204   : > { %v1632_v5 = vadd.f32 %v1586_v57, %v1325_v58  ;;  %v3257_v58 = vsel %vm3256_vm4, 1, %v7215_v47  ;;  %v3271_v57 = vshrl.u32 %v5992_v51, 16  ;;  %v3233_v34 = vshrl.u32 %v3232_v48, 4 }
 0x205   : > { %v1014_v12 = vpop.f32.mrf.mxu1  ;;  %v5997_v27 = vpop.f32.mrf.mxu0  ;;  %vm3281_vm5 = vc.u32 %v3273_v46, %v3277_v42  ;;  %v3283_v20 = vadd.s32 %v3277_v42, %v3273_v46 }
 0x206   : > { %v5994_v25 = vadd.f32 %v1893_v36, %v1632_v5  ;;  %5152 = vmatmul.msk.f32.gmra.mxu2 %vm269_vm0, %v2263_v29  ;;  %v3249_v36 = vshrl.u32 %v3245_v8, 16  ;;  %v3259_v5 = vadd.s32 %v3257_v58, %v3255_v13  ;;  %v3275_v32 = vmul.u32 14564, %v3271_v57  ;;  %v2571_v8 = vld [vmem:[#allocation2 + $0x8d] sm:$0xff] }
 0x207   : > { %5189 = vmatmul.msk.f32.gmra.mxu3 %vm269_vm0, %v2570_v22  ;;  %v2264_v22 = vld [vmem:[#allocation2 + $0x8c] sm:$0xff]  ;;  %v3276_v35 = vmul.u32 58254, %v3271_v57  ;;  %v3282_v48 = vsel %vm3281_vm5, 1, %v7215_v47  ;;  %v3299_v13 = vand.u32 65535, %v6008_v52 }
 0x208   : > { %7214 = vst [vmem:[#allocation8_spill] sm:$0xff] %v5994_v25  ;;  %5116 = vmatmul.msk.f32.gmra.mxu1 %vm269_vm0, %v2262_v43  ;;  %5227 = vmatmul.msk.f32.gmra.mxu0 %vm269_vm0, %v2878_v14  ;;  %v3260_v18 = vadd.s32 %v3259_v5, %v3249_v36  ;;  %v3279_v9 = vshll.u32 %v3275_v32, 16  ;;  %v1015_v36 = vadd.f32 %v1014_v12, %v5724_v53  ;;  %v3300_v5 = vshrl.u32 %v6008_v52, 16 }
 0x209   : > { %v1282_v39 = vpop.f32.mrf.mxu2  ;;  %v3284_v58 = vadd.s32 %v3282_v48, %v3276_v35  ;;  %v3303_v46 = vmul.u32 58254, %v3299_v13  ;;  %v6030_v48 = vadd.s32 32, %v5964_v6 }
 0x20a   : > { %v1326_v25 = vadd.f32 %v1282_v39, %v1012_v15  ;;  %v1589_v59 = vpop.f32.mrf.mxu3  ;;  %v2879_v15 = vld [vmem:[#allocation2 + $0x96] sm:$0xff]  ;;  %vm3285_vm6 = vc.u32 %v3283_v20, %v3279_v9  ;;  %v3305_v20 = vmul.u32 58254, %v3300_v5 }
 0x20b   : > { %v3286_v39 = vsel %vm3285_vm6, 1, %v7215_v47  ;;  %v2572_v9 = vld [vmem:[#allocation2 + $0x95] sm:$0xff] }
 0x20c   : > { %v1633_v43 = vadd.f32 %v1589_v59, %v1326_v25  ;;  %v3234_v59 = vmul.u32 18, %v3233_v34  ;;  %v3261_v25 = vadd.s32 %v3260_v18, %v3251_v41  ;;  %v3280_v18 = vshrl.u32 %v3275_v32, 16 }
 0x20d   : > { %v1017_v45 = vpop.f32.mrf.mxu1  ;;  %v6014_v1 = vpop.f32.mrf.mxu0  ;;  %v3288_v42 = vadd.s32 %v3286_v39, %v3284_v58  ;;  %v3328_v39 = vand.u32 65535, %v6030_v48 }
 0x20e   : > { %v6011_v14 = vadd.f32 %v5981_v63, %v1633_v43  ;;  %5153 = vmatmul.msk.f32.gmra.mxu2 %vm269_vm0, %v2264_v22  ;;  %v3278_v63 = vshrl.u32 %v3274_v55, 16  ;;  %v3302_v43 = vmul.u32 14564, %v3299_v13  ;;  %v6027_v53 = vsub.s32 %v5964_v6, %v3234_v59 }
 0x20f   : > { %5190 = vmatmul.msk.f32.gmra.mxu3 %vm269_vm0, %v2571_v8  ;;  %v6024_v8 = vld [vmem:[#allocation2 + $0x94] sm:$0xff]  ;;  %v3262_v12 = vshrl.u32 %v3261_v25, 4  ;;  %v3306_v55 = vshll.u32 %v3303_v46, 16  ;;  %v2880_v25 = vld [vmem:[#allocation2 + $0x9e] sm:$0xff] }
 0x210   : > { %7216 = vst [vmem:[#allocation9_spill] sm:$0xff] %v6011_v14  ;;  %5117 = vmatmul.msk.f32.gmra.mxu1 %vm269_vm0, %v2263_v29  ;;  %5228 = vmatmul.msk.f32.gmra.mxu0 %vm269_vm0, %v2879_v15  ;;  %v3304_v29 = vmul.u32 14564, %v3300_v5  ;;  %v3289_v15 = vadd.s32 %v3288_v42, %v3278_v63  ;;  %v1018_v5 = vadd.f32 %v1017_v45, %v5736_v60  ;;  %vm4253_vm8 = vcmp.ne.s32.totalorder %v6027_v53, 0  ;;  %v6048_v45 = vld [vmem:[#allocation2 + $0x9c] sm:$0xff] }
 0x211   : > { %v1285_v57 = vpop.f32.mrf.mxu2  ;;  %vm3310_vm7 = vc.u32 %v3302_v43, %v3306_v55  ;;  %v3312_v58 = vadd.s32 %v3306_v55, %v3302_v43  ;;  %v3329_v42 = vshrl.u32 %v6030_v48, 16  ;;  %v2573_v14 = vld [vmem:[#allocation2 + $0x9d] sm:$0xff]  ;;  %vm4289_vm10 = vcmp.lt.s32.totalorder %v6027_v53, 0 }
 0x212   : > { %v1327_v34 = vadd.f32 %v1285_v57, %v1015_v36  ;;  %v1592_v41 = vpop.f32.mrf.mxu3  ;;  %v3308_v57 = vshll.u32 %v3304_v29, 16  ;;  %v3290_v13 = vadd.s32 %v3289_v15, %v3280_v18  ;;  %v3311_v63 = vsel %vm3310_vm7, 1, %v7215_v47  ;;  %vm6071_vm12 = vmand %vm4289_vm10, %vm4253_vm8 }
 0x213   : > { %v3307_v18 = vshrl.u32 %v3303_v46, 16  ;;  %v3309_v15 = vshrl.u32 %v3304_v29, 16  ;;  %v3334_v46 = vmul.u32 58254, %v3329_v42 }
 0x214   : > { %v1634_v35 = vadd.f32 %v1592_v41, %v1327_v34  ;;  %v3313_v34 = vadd.s32 %v3311_v63, %v3305_v20  ;;  %vm3314_vm9 = vc.u32 %v3312_v58, %v3308_v57  ;;  %v3291_v55 = vshrl.u32 %v3290_v13, 4 }
 0x215   : > { %v1020_v36 = vpop.f32.mrf.mxu1  ;;  %v6037_v59 = vpop.f32.mrf.mxu0  ;;  %v3315_v60 = vsel %vm3314_vm9, 1, %v7215_v47  ;;  %v6052_v57 = vadd.s32 40, %v5964_v6 }
 0x216   : > { %v6033_v32 = vadd.f32 %v5997_v27, %v1634_v35  ;;  %5154 = vmatmul.msk.f32.gmra.mxu2 %vm269_vm0, %v6024_v8  ;;  %v3263_v27 = vmul.u32 18, %v3262_v12  ;;  %v3332_v35 = vmul.u32 58254, %v3328_v39  ;;  %v3333_v12 = vmul.u32 14564, %v3329_v42  ;;  %v2881_v42 = vld [vmem:[#allocation2 + $0xa6] sm:$0xff] }
 0x217   : > { %5191 = vmatmul.msk.f32.gmra.mxu3 %vm269_vm0, %v2572_v9 }
 0x218   : > { %7217 = vst [vmem:[#allocation10_spill] sm:$0xff] %v6033_v32  ;;  %5118 = vmatmul.msk.f32.gmra.mxu1 %vm269_vm0, %v2264_v22  ;;  %5229 = vmatmul.msk.f32.gmra.mxu0 %vm269_vm0, %v2880_v25  ;;  %v3317_v22 = vadd.s32 %v3315_v60, %v3313_v34  ;;  %v3331_v32 = vmul.u32 14564, %v3328_v39  ;;  %v3335_v20 = vshll.u32 %v3332_v35, 16  ;;  %v3337_v13 = vshll.u32 %v3333_v12, 16 }
 0x219   : > { %v1288_v41 = vpop.f32.mrf.mxu2 }
 0x21a   : > { %v1328_v9 = vadd.f32 %v1288_v41, %v1018_v5  ;;  %v1595_v43 = vpop.f32.mrf.mxu3  ;;  %v3318_v58 = vadd.s32 %v3317_v22, %v3307_v18  ;;  %vm3339_vm11 = vc.u32 %v3331_v32, %v3335_v20  ;;  %v3341_v29 = vadd.s32 %v3335_v20, %v3331_v32 }
 0x21b   : > { %v1021_v5 = vadd.f32 %v1020_v36, %v5744_v7  ;;  %v4361_v41 = vadd.s32 18, %v6027_v53  ;;  %v3340_v32 = vsel %vm3339_vm11, 1, %v7215_v47  ;;  %v3357_v18 = vand.u32 65535, %v6052_v57 }
 0x21c   : > { %v1635_v63 = vadd.f32 %v1595_v43, %v1328_v9  ;;  %v6064_v9 = vsub.s32 %v5976_v50, %v3263_v27  ;;  %v3319_v36 = vadd.s32 %v3318_v58, %v3309_v15  ;;  %vm3343_vm13 = vc.u32 %v3341_v29, %v3337_v13 }
 0x21d   : > { %v2107_v25 = vpop.f32.mrf.mxu1  ;;  %v6060_v39 = vpop.f32.mrf.mxu0  ;;  %v3336_v50 = vshrl.u32 %v3332_v35, 16  ;;  %v3342_v27 = vadd.s32 %v3340_v32, %v3334_v46  ;;  %v3358_v22 = vshrl.u32 %v6052_v57, 16  ;;  %v4397_v20 = vsel %vm6071_vm12, %v4361_v41, %v6027_v53  ;;  %v6085_v35 = vld [vmem:[#allocation2 + $0xa4] sm:$0xff] }
 0x21e   : > { %v6056_v34 = vadd.f32 %v6014_v1, %v1635_v63  ;;  %5155 = vmatmul.msk.f32.gmra.mxu2 %vm269_vm0, %v6048_v45  ;;  %v3292_v1 = vmul.u32 18, %v3291_v55  ;;  %v3320_v60 = vshrl.u32 %v3319_v36, 4  ;;  %v3338_v63 = vshrl.u32 %v3333_v12, 16 }
 0x21f   : > { %5192 = vmatmul.msk.f32.gmra.mxu3 %vm269_vm0, %v2573_v14  ;;  %v3344_v14 = vsel %vm3343_vm13, 1, %v7215_v47  ;;  %vm4254_vm14 = vcmp.ne.s32.totalorder %v6064_v9, 0  ;;  %v3360_v58 = vmul.u32 14564, %v3357_v18  ;;  %v6091_v13 = vmul.u32 58254, %v3357_v18  ;;  %v2882_v18 = vld [vmem:[#allocation2 + $0xae] sm:$0xff] }
 0x220   : > { %7218 = vst [vmem:[#allocation11_spill] sm:$0xff] %v6056_v34  ;;  %5119 = vmatmul.msk.f32.gmra.mxu1 %vm269_vm0, %v6024_v8  ;;  %5230 = vmatmul.msk.f32.gmra.mxu0 %vm269_vm0, %v2881_v42  ;;  %v3346_v8 = vadd.s32 %v3344_v14, %v3342_v27  ;;  %v6089_v46 = vsub.s32 %v5992_v51, %v3292_v1  ;;  %v6093_v29 = vmul.u32 14564, %v3358_v22  ;;  %v2574_v42 = vld [vmem:[#allocation2 + $0xa5] sm:$0xff]  ;;  %vm4290_vm15 = vcmp.lt.s32.totalorder %v6064_v9, 0 }
 0x221   : > { %v1291_v43 = vpop.f32.mrf.mxu2  ;;  %v6097_v53 = vadd.s32 48, %v5964_v6  ;;  %vm6099_vm1 = vcmp.lt.s32.totalorder %v4397_v20, 16  ;;  %v6104_v51 = vadd.s32 18, %v6064_v9  ;;  %v3321_v1 = vmul.u32 18, %v3320_v60  ;;  %v6135_v34 = vld [vmem:[#allocation2 + $0xac] sm:$0xff]  ;;  %vm6160_vm7 = vmand %vm4290_vm15, %vm4254_vm14 }
 0x222   : > { %v1329_v55 = vadd.f32 %v1291_v43, %v1021_v5  ;;  %v1598_v15 = vpop.f32.mrf.mxu3  ;;  %v3347_v7 = vadd.s32 %v3346_v8, %v3336_v50  ;;  %v3363_v36 = vmul.u32 58254, %v3358_v22  ;;  %v3364_v32 = vshll.u32 %v6091_v13, 16 }
 0x223   : > { %v2215_v27 = vadd.f32 %v2107_v25, %v5751_v37  ;;  %vm4255_vm2 = vcmp.ne.s32.totalorder %v6089_v46, 0  ;;  %vm4291_vm3 = vcmp.lt.s32.totalorder %v6089_v46, 0  ;;  %v3366_v37 = vshll.u32 %v6093_v29, 16 }
 0x224   : > { %v1636_v5 = vadd.f32 %v1598_v15, %v1329_v55  ;;  %v3348_v43 = vadd.s32 %v3347_v7, %v3338_v63  ;;  %v3386_v55 = vand.u32 65535, %v6097_v53  ;;  %vm3368_vm4 = vc.u32 %v3360_v58, %v3364_v32  ;;  %vm6173_vm10 = vmand %vm4291_vm3, %vm4255_vm2 }
 0x225   : > { %v2110_v12 = vpop.f32.mrf.mxu1  ;;  %v6113_v50 = vpop.f32.mrf.mxu0  ;;  %v3369_v60 = vsel %vm3368_vm4, 1, %v7215_v47  ;;  %v3370_v22 = vadd.s32 %v3364_v32, %v3360_v58  ;;  %v6128_v20 = vsub.s32 %v6008_v52, %v3321_v1  ;;  %v3387_v8 = vshrl.u32 %v6097_v53, 16 }
 0x226   : > { %v6109_v14 = vadd.f32 %v6037_v59, %v1636_v5  ;;  %5156 = vmatmul.msk.f32.gmra.mxu2 %vm269_vm0, %v6085_v35  ;;  %v6123_v59 = vadd.s32 18, %v6089_v46  ;;  %v3349_v25 = vshrl.u32 %v3348_v43, 4  ;;  %v3371_v63 = vadd.s32 %v3369_v60, %v3363_v36  ;;  %v2575_v36 = vld [vmem:[#allocation2 + $0xad] sm:$0xff] }
 0x227   : > { %5193 = vmatmul.msk.f32.gmra.mxu3 %vm269_vm0, %v2574_v42  ;;  %v6131_v5 = vmul.u32 58254, %v3386_v55  ;;  %v3367_v43 = vshrl.u32 %v6093_v29, 16  ;;  %vm3372_vm5 = vc.u32 %v3370_v22, %v3366_v37  ;;  %v3389_v58 = vmul.u32 14564, %v3386_v55 }
 0x228   : > { %7223 = vst [vmem:[#allocation12_spill] sm:$0xff] %v6109_v14  ;;  %5120 = vmatmul.msk.f32.gmra.mxu1 %vm269_vm0, %v6048_v45  ;;  %5231 = vmatmul.msk.f32.gmra.mxu0 %vm269_vm0, %v2882_v18  ;;  %v3350_v7 = vmul.u32 18, %v3349_v25  ;;  %v3365_v14 = vshrl.u32 %v6091_v13, 16  ;;  %v6137_v32 = vmul.u32 14564, %v3387_v8  ;;  %v3392_v25 = vmul.u32 58254, %v3387_v8 }
 0x229   : > { %v2414_v15 = vpop.f32.mrf.mxu2  ;;  %v3393_v52 = vshll.u32 %v6131_v5, 16  ;;  %v2216_v55 = vadd.f32 %v2110_v12, %v5758_v62  ;;  %v2883_v12 = vld [vmem:[#allocation2 + $0xb6] sm:$0xff]  ;;  %vm4256_vm8 = vcmp.ne.s32.totalorder %v6128_v20, 0  ;;  %vm4292_vm9 = vcmp.lt.s32.totalorder %v6128_v20, 0 }
 0x22a   : > { %v2522_v42 = vadd.f32 %v2414_v15, %v2215_v27  ;;  %v2721_v45 = vpop.f32.mrf.mxu3  ;;  %v6141_v18 = vsub.s32 %v6030_v48, %v3350_v7  ;;  %v3373_v27 = vsel %vm3372_vm5, 1, %v7215_v47  ;;  %v3395_v29 = vshll.u32 %v6137_v32, 16  ;;  %vm6198_vm12 = vmand %vm4292_vm9, %vm4256_vm8 }
 0x22b   : > { %v3375_v60 = vadd.s32 %v3373_v27, %v3371_v63  ;;  %vm3397_vm6 = vc.u32 %v3389_v58, %v3393_v52  ;;  %v3399_v15 = vadd.s32 %v3393_v52, %v3389_v58  ;;  %v6178_v22 = vadd.s32 18, %v6128_v20  ;;  %v6209_v27 = vld [vmem:[#allocation2 + $0xb4] sm:$0xff] }
 0x22c   : > { %v2829_v1 = vadd.f32 %v2721_v45, %v2522_v42  ;;  %v3398_v8 = vsel %vm3397_vm6, 1, %v7215_v47  ;;  %v3394_v45 = vshrl.u32 %v6131_v5, 16  ;;  %vm4257_vm13 = vcmp.ne.s32.totalorder %v6141_v18, 0 }
 0x22d   : > { %v2113_v13 = vpop.f32.mrf.mxu1  ;;  %v6164_v62 = vpop.f32.mrf.mxu0  ;;  %v3376_v63 = vadd.s32 %v3375_v60, %v3365_v14  ;;  %vm3401_vm11 = vc.u32 %v3399_v15, %v3395_v29  ;;  %v3400_v7 = vadd.s32 %v3398_v8, %v3392_v25  ;;  %v4398_v14 = vsel %vm6160_vm7, %v6104_v51, %v6064_v9 }
 0x22e   : > { %v3136_v48 = vadd.f32 %v6060_v39, %v2829_v1  ;;  %5157 = vmatmul.msk.f32.gmra.mxu2 %vm269_vm0, %v6135_v34  ;;  %v3402_v58 = vsel %vm3401_vm11, 1, %v7215_v47  ;;  %vm4293_vm14 = vcmp.lt.s32.totalorder %v6141_v18, 0  ;;  %v4399_v9 = vsel %vm6173_vm10, %v6123_v59, %v6089_v46 }
 0x22f   : > { %5194 = vmatmul.msk.f32.gmra.mxu3 %vm269_vm0, %v2575_v36  ;;  %v3377_v41 = vadd.s32 %v3376_v63, %v3367_v43  ;;  %v3396_v51 = vshrl.u32 %v6137_v32, 16  ;;  %v3404_v36 = vadd.s32 %v3402_v58, %v3400_v7  ;;  %v6212_v25 = vadd.s32 18, %v6141_v18 }
 0x230   : > { %v4541_v42 = vsel %vm6099_vm1, %v3136_v48, 0.0  ;;  %5121 = vmatmul.msk.f32.gmra.mxu1 %vm269_vm0, %v6085_v35  ;;  %5232 = vmatmul.msk.f32.gmra.mxu0 %vm269_vm0, %v2883_v12  ;;  %v6215_v29 = vadd.s32 56, %v5964_v6  ;;  %vm6217_vm15 = vcmp.lt.s32.totalorder %v4398_v14, 16  ;;  %v4400_v46 = vsel %vm6198_vm12, %v6178_v22, %v6128_v20  ;;  %vm6229_vm1 = vmand %vm4293_vm14, %vm4257_vm13 }
 0x231   : > { %4770 = vst.msk [vmem:[%s6151_s10] sm:$0xff] %vm269_vm0, %v4541_v42  ;;  %v2417_v52 = vpop.f32.mrf.mxu2  ;;  %v3378_v60 = vshrl.u32 %v3377_v41, 4  ;;  %v3405_v32 = vadd.s32 %v3404_v36, %v3394_v45  ;;  %v2217_v48 = vadd.f32 %v2113_v13, %v5765_v23  ;;  %vm6234_vm2 = vcmp.lt.s32.totalorder %v4399_v9, 16  ;;  %v2884_v13 = vld [vmem:[#allocation2 + $0xbe] sm:$0xff] }
 0x232   : > { %v2523_v5 = vadd.f32 %v2417_v52, %v2216_v55  ;;  %v2724_v1 = vpop.f32.mrf.mxu3  ;;  %v2576_v55 = vld [vmem:[#allocation2 + $0xb5] sm:$0xff]  ;;  %v3415_v63 = vand.u32 65535, %v6215_v29  ;;  %v3416_v20 = vshrl.u32 %v6215_v29, 16  ;;  %v4577_v22 = vsel %vm269_vm0, %v4541_v42, 0.0 }
 0x233   : > { %v3379_v39 = vmul.u32 18, %v3378_v60  ;;  %v4656_v8 = vmul.f32 %v4541_v42, %v4541_v42  ;;  %v3406_v45 = vadd.s32 %v3405_v32, %v3396_v51  ;;  %v6276_v32 = vld [vmem:[#allocation2 + $0xbc] sm:$0xff]  ;;  %vm6286_vm6 = vcmp.lt.s32.totalorder %v4400_v46, 16 }
 0x234   : > { %v2830_v43 = vadd.f32 %v2724_v1, %v2523_v5  ;;  %v6254_v42 = vmul.u32 58254, %v3415_v63  ;;  %v3418_v41 = vmul.u32 14564, %v3415_v63  ;;  %v6263_v5 = vadd.s32 64, %v5964_v6 }
 0x235   : > { %v2116_v37 = vpop.f32.mrf.mxu1  ;;  %v6244_v23 = vpop.f32.mrf.mxu0  ;;  %v6252_v52 = vsub.s32 %v6052_v57, %v3379_v39  ;;  %v3407_v35 = vshrl.u32 %v3406_v45, 4  ;;  %v4692_v15 = vsel %vm269_vm0, %v4656_v8, 0.0  ;;  %v3421_v45 = vmul.u32 58254, %v3416_v20 }
 0x236   : > { %v3137_v7 = vadd.f32 %v6113_v50, %v2830_v43  ;;  %5158 = vmatmul.msk.f32.gmra.mxu2 %vm269_vm0, %v6209_v27  ;;  %v6256_v50 = vmul.u32 14564, %v3416_v20  ;;  %v3422_v63 = vshll.u32 %v6254_v42, 16  ;;  %v2218_v8 = vadd.f32 %v2116_v37, %v5772_v44  ;;  %v2885_v20 = vld [vmem:[#allocation2 + $0xc6] sm:$0xff] }
 0x237   : > { %5195 = vmatmul.msk.f32.gmra.mxu3 %vm269_vm0, %v2576_v55  ;;  %vm4258_vm3 = vcmp.ne.s32.totalorder %v6252_v52, 0  ;;  %vm4294_vm4 = vcmp.lt.s32.totalorder %v6252_v52, 0  ;;  %v6272_v60 = vadd.s32 18, %v6252_v52  ;;  %v3408_v43 = vmul.u32 18, %v3407_v35 }
 0x238   : > { %v4542_v14 = vsel %vm6217_vm15, %v3137_v7, 0.0  ;;  %5122 = vmatmul.msk.f32.gmra.mxu1 %vm269_vm0, %v6135_v34  ;;  %5233 = vmatmul.msk.f32.gmra.mxu0 %vm269_vm0, %v2884_v13  ;;  %vm6278_vm5 = vmand %vm4294_vm4, %vm4258_vm3  ;;  %v2577_v13 = vld [vmem:[#allocation2 + $0xbd] sm:$0xff]  ;;  %vm3426_vm7 = vc.u32 %v3418_v41, %v3422_v63  ;;  %v3423_v37 = vshrl.u32 %v6254_v42, 16 }
 0x239   : > { %v4578_v1 = vsel %vm269_vm0, %v4542_v14, 0.0  ;;  %v4657_v9 = vmul.f32 %v4542_v14, %v4542_v14  ;;  %4771 = vst.msk [vmem:[%s6151_s10 + $0x8] sm:$0xff] %vm269_vm0, %v4542_v14  ;;  %v2420_v57 = vpop.f32.mrf.mxu2  ;;  %v3444_v14 = vand.u32 65535, %v6263_v5  ;;  %v6301_v46 = vsub.s32 %v6097_v53, %v3408_v43 }
 0x23a   : > { %v4579_v51 = vadd.f32 %v4578_v1, %v4577_v22  ;;  %v2524_v36 = vadd.f32 %v2420_v57, %v2217_v48  ;;  %v2727_v34 = vpop.f32.mrf.mxu3  ;;  %v3424_v22 = vshll.u32 %v6256_v50, 16  ;;  %v3445_v57 = vshrl.u32 %v6263_v5, 16 }
 0x23b   : > { %v4693_v55 = vsel %vm269_vm0, %v4657_v9, 0.0  ;;  %v3428_v9 = vadd.s32 %v3422_v63, %v3418_v41  ;;  %v3425_v41 = vshrl.u32 %v6256_v50, 16  ;;  %v3448_v43 = vmul.u32 58254, %v3444_v14 }
 0x23c   : > { %v4694_v48 = vadd.f32 %v4693_v55, %v4692_v15  ;;  %v2831_v7 = vadd.f32 %v2727_v34, %v2524_v36  ;;  %v3427_v34 = vsel %vm3426_vm7, 1, %v7215_v47  ;;  %v3447_v50 = vmul.u32 14564, %v3444_v14 }
 0x23d   : > { %v2119_v35 = vpop.f32.mrf.mxu1  ;;  %v6294_v36 = vpop.f32.mrf.mxu0  ;;  %vm3430_vm8 = vc.u32 %v3428_v9, %v3424_v22  ;;  %v3429_v55 = vadd.s32 %v3427_v34, %v3421_v45  ;;  %v6317_v22 = vmul.u32 14564, %v3445_v57  ;;  %vm4259_vm9 = vcmp.ne.s32.totalorder %v6301_v46, 0  ;;  %v6321_v45 = vld [vmem:[#allocation2 + $0xc4] sm:$0xff] }
 0x23e   : > { %v3138_v58 = vadd.f32 %v6164_v62, %v2831_v7  ;;  %5159 = vmatmul.msk.f32.gmra.mxu2 %vm269_vm0, %v6276_v32  ;;  %v2219_v62 = vadd.f32 %v2119_v35, %v5779_v4  ;;  %v3431_v53 = vsel %vm3430_vm8, 1, %v7215_v47  ;;  %vm4295_vm10 = vcmp.lt.s32.totalorder %v6301_v46, 0 }
 0x23f   : > { %5196 = vmatmul.msk.f32.gmra.mxu3 %vm269_vm0, %v2577_v13  ;;  %v3450_v35 = vmul.u32 58254, %v3445_v57  ;;  %v3451_v9 = vshll.u32 %v3448_v43, 16  ;;  %v3453_v44 = vshll.u32 %v6317_v22, 16  ;;  %v2886_v57 = vld [vmem:[#allocation2 + $0xce] sm:$0xff]  ;;  %v6351_v1 = vadd.s32 80, %v5964_v6  ;;  %vm6357_vm13 = vmand %vm4295_vm10, %vm4259_vm9 }
 0x240   : > { %v4543_v15 = vsel %vm6234_vm2, %v3138_v58, 0.0  ;;  %5123 = vmatmul.msk.f32.gmra.mxu1 %vm269_vm0, %v6209_v27  ;;  %5234 = vmatmul.msk.f32.gmra.mxu0 %vm269_vm0, %v2885_v20  ;;  %v3433_v27 = vadd.s32 %v3431_v53, %v3429_v55  ;;  %v2578_v20 = vld [vmem:[#allocation2 + $0xc5] sm:$0xff]  ;;  %v6329_v53 = vadd.s32 72, %v5964_v6 }
 0x241   : > { %v4580_v42 = vsel %vm269_vm0, %v4543_v15, 0.0  ;;  %v4658_v63 = vmul.f32 %v4543_v15, %v4543_v15  ;;  %4772 = vst.msk [vmem:[%s6151_s10 + $0x10] sm:$0xff] %vm269_vm0, %v4543_v15  ;;  %v2423_v4 = vpop.f32.mrf.mxu2  ;;  %vm3455_vm11 = vc.u32 %v3447_v50, %v3451_v9  ;;  %v3457_v55 = vadd.s32 %v3451_v9, %v3447_v50 }
 0x242   : > { %v4581_v12 = vadd.f32 %v4580_v42, %v4579_v51  ;;  %v2525_v58 = vadd.f32 %v2423_v4, %v2218_v8  ;;  %v2730_v7 = vpop.f32.mrf.mxu3  ;;  %v3434_v14 = vadd.s32 %v3433_v27, %v3423_v37  ;;  %v6326_v8 = vadd.s32 18, %v6301_v46 }
 0x243   : > { %v4695_v13 = vsel %vm269_vm0, %v4658_v63, 0.0  ;;  %v3452_v63 = vshrl.u32 %v3448_v43, 16  ;;  %v3456_v4 = vsel %vm3455_vm11, 1, %v7215_v47  ;;  %vm3459_vm12 = vc.u32 %v3457_v55, %v3453_v44 }
 0x244   : > { %v4696_v34 = vadd.f32 %v4695_v13, %v4694_v48  ;;  %v2832_v15 = vadd.f32 %v2730_v7, %v2525_v58  ;;  %v3435_v37 = vadd.s32 %v3434_v14, %v3425_v41  ;;  %v3458_v58 = vadd.s32 %v3456_v4, %v3450_v35 }
 0x245   : > { %v2122_v51 = vpop.f32.mrf.mxu1  ;;  %v6334_v48 = vpop.f32.mrf.mxu0  ;;  %v3473_v50 = vand.u32 65535, %v6329_v53  ;;  %v3474_v7 = vshrl.u32 %v6329_v53, 16  ;;  %v3454_v41 = vshrl.u32 %v6317_v22, 16  ;;  %v3460_v43 = vsel %vm3459_vm12, 1, %v7215_v47 }
 0x246   : > { %v3139_v42 = vadd.f32 %v6244_v23, %v2832_v15  ;;  %5160 = vmatmul.msk.f32.gmra.mxu2 %vm269_vm0, %v6321_v45  ;;  %v3436_v27 = vshrl.u32 %v3435_v37, 4  ;;  %v3462_v35 = vadd.s32 %v3460_v43, %v3458_v58  ;;  %v4403_v59 = vsel %vm6357_vm13, %v6326_v8, %v6301_v46 }
 0x247   : > { %5197 = vmatmul.msk.f32.gmra.mxu3 %vm269_vm0, %v2578_v20  ;;  %v6361_v55 = vmul.u32 58254, %v3473_v50  ;;  %v3476_v4 = vmul.u32 14564, %v3473_v50 }
 0x248   : > { %v4544_v23 = vsel %vm6286_vm6, %v3139_v42, 0.0  ;;  %5124 = vmatmul.msk.f32.gmra.mxu1 %vm269_vm0, %v6276_v32  ;;  %5235 = vmatmul.msk.f32.gmra.mxu0 %vm269_vm0, %v2886_v57  ;;  %v3437_v14 = vmul.u32 18, %v3436_v27  ;;  %v6364_v57 = vld [vmem:[#allocation2 + $0xcc] sm:$0xff]  ;;  %v3463_v37 = vadd.s32 %v3462_v35, %v3452_v63  ;;  %v7242_v27 = vsel %vm6229_vm1, %v6212_v25, %v6141_v18 }
 0x249   : > { %v4582_v13 = vsel %vm269_vm0, %v4544_v23, 0.0  ;;  %v4659_v9 = vmul.f32 %v4544_v23, %v4544_v23  ;;  %4773 = vst.msk [vmem:[%s6151_s10 + $0x18] sm:$0xff] %vm269_vm0, %v4544_v23  ;;  %v2426_v44 = vpop.f32.mrf.mxu2  ;;  %v2579_v23 = vld [vmem:[#allocation2 + $0xcd] sm:$0xff]  ;;  %vm6377_vm14 = vcmp.lt.s32.totalorder %v7242_v27, 16  ;;  %v2220_v25 = vadd.f32 %v2122_v51, %v5786_v26 }
 0x24a   : > { %v4583_v15 = vadd.f32 %v4582_v13, %v4581_v12  ;;  %v2526_v20 = vadd.f32 %v2426_v44, %v2219_v62  ;;  %v2733_v32 = vpop.f32.mrf.mxu3  ;;  %v6366_v12 = vmul.u32 14564, %v3474_v7  ;;  %v6369_v43 = vsub.s32 %v6215_v29, %v3437_v14 }
 0x24b   : > { %v4697_v42 = vsel %vm269_vm0, %v4659_v9, 0.0  ;;  %v3480_v13 = vshll.u32 %v6361_v55, 16  ;;  %v3464_v18 = vadd.s32 %v3463_v37, %v3454_v41  ;;  %v3502_v51 = vand.u32 65535, %v6351_v1 }
 0x24c   : > { %v4698_v62 = vadd.f32 %v4697_v42, %v4696_v34  ;;  %v2833_v58 = vadd.f32 %v2733_v32, %v2526_v20  ;;  %v7245_v34 = vsel %vm6278_vm5, %v6272_v60, %v6252_v52  ;;  %v2887_v52 = vld [vmem:[#allocation2 + $0xd6] sm:$0xff]  ;;  %v3479_v60 = vmul.u32 58254, %v3474_v7 }
 0x24d   : > { %v2125_v63 = vpop.f32.mrf.mxu1  ;;  %vm6386_vm15 = vcmp.lt.s32.totalorder %v7245_v34, 16  ;;  %v6398_v39 = vpop.f32.mrf.mxu0  ;;  %v3482_v44 = vshll.u32 %v6366_v12, 16  ;;  %vm4260_vm1 = vcmp.ne.s32.totalorder %v6369_v43, 0  ;;  %v3465_v46 = vshrl.u32 %v3464_v18, 4  ;;  %v2580_v34 = vld [vmem:[#allocation2 + $0xd5] sm:$0xff] }
 0x24e   : > { %v3140_v50 = vadd.f32 %v6294_v36, %v2833_v58  ;;  %5161 = vmatmul.msk.f32.gmra.mxu2 %vm269_vm0, %v6364_v57  ;;  %vm3484_vm2 = vc.u32 %v3476_v4, %v3480_v13  ;;  %v3486_v8 = vadd.s32 %v3480_v13, %v3476_v4  ;;  %vm4296_vm3 = vcmp.lt.s32.totalorder %v6369_v43, 0  ;;  %v6419_v58 = vld [vmem:[#allocation2 + $0xd4] sm:$0xff] }
 0x24f   : > { %5198 = vmatmul.msk.f32.gmra.mxu3 %vm269_vm0, %v2579_v23  ;;  %v3485_v36 = vsel %vm3484_vm2, 1, %v7215_v47  ;;  %v6415_v20 = vadd.s32 18, %v6369_v43  ;;  %v3466_v32 = vmul.u32 18, %v3465_v46  ;;  %v3503_v37 = vshrl.u32 %v6351_v1, 16  ;;  %vm6425_vm4 = vmand %vm4296_vm3, %vm4260_vm1 }
 0x250   : > { %v4545_v26 = vsel %vm6377_vm14, %v3140_v50, 0.0  ;;  %5125 = vmatmul.msk.f32.gmra.mxu1 %vm269_vm0, %v6321_v45  ;;  %5236 = vmatmul.msk.f32.gmra.mxu0 %vm269_vm0, %v2887_v52  ;;  %v3487_v42 = vadd.s32 %v3485_v36, %v3479_v60  ;;  %vm3488_vm5 = vc.u32 %v3486_v8, %v3482_v44  ;;  %v2221_v50 = vadd.f32 %v2125_v63, %v5793_v49  ;;  %v2888_v63 = vld [vmem:[#allocation2 + $0xde] sm:$0xff] }
 0x251   : > { %v4584_v7 = vsel %vm269_vm0, %v4545_v26, 0.0  ;;  %v4660_v41 = vmul.f32 %v4545_v26, %v4545_v26  ;;  %4774 = vst.msk [vmem:[%s6151_s10 + $0x20] sm:$0xff] %vm269_vm0, %v4545_v26  ;;  %v2429_v35 = vpop.f32.mrf.mxu2  ;;  %v6430_v13 = vsub.s32 %v6263_v5, %v3466_v32  ;;  %v3489_v18 = vsel %vm3488_vm5, 1, %v7215_v47 }
 0x252   : > { %v4585_v22 = vadd.f32 %v4584_v7, %v4583_v15  ;;  %v2527_v45 = vadd.f32 %v2429_v35, %v2220_v25  ;;  %v2736_v14 = vpop.f32.mrf.mxu3  ;;  %v3481_v15 = vshrl.u32 %v6361_v55, 16  ;;  %v6434_v25 = vmul.u32 58254, %v3502_v51 }
 0x253   : > { %v4699_v4 = vsel %vm269_vm0, %v4660_v41, 0.0  ;;  %vm6437_vm6 = vcmp.lt.s32.totalorder %v4403_v59, 16  ;;  %v3483_v5 = vshrl.u32 %v6366_v12, 16  ;;  %v3491_v46 = vadd.s32 %v3489_v18, %v3487_v42  ;;  %v2581_v18 = vld [vmem:[#allocation2 + $0xdd] sm:$0xff] }
 0x254   : > { %v4700_v27 = vadd.f32 %v4699_v4, %v4698_v62  ;;  %v2834_v9 = vadd.f32 %v2736_v14, %v2527_v45  ;;  %v3505_v26 = vmul.u32 14564, %v3502_v51  ;;  %v4404_v49 = vsel %vm6425_vm4, %v6415_v20, %v6369_v43 }
 0x255   : > { %v2128_v52 = vpop.f32.mrf.mxu1  ;;  %v6445_v62 = vpop.f32.mrf.mxu0  ;;  %vm4261_vm7 = vcmp.ne.s32.totalorder %v6430_v13, 0  ;;  %v6452_v59 = vmul.u32 14564, %v3503_v37  ;;  %vm4297_vm8 = vcmp.lt.s32.totalorder %v6430_v13, 0  ;;  %v3508_v12 = vmul.u32 58254, %v3503_v37  ;;  %v6472_v37 = vld [vmem:[#allocation2 + $0xdc] sm:$0xff] }
 0x256   : > { %v3141_v55 = vadd.f32 %v6334_v48, %v2834_v9  ;;  %5162 = vmatmul.msk.f32.gmra.mxu2 %vm269_vm0, %v6419_v58  ;;  %v3492_v48 = vadd.s32 %v3491_v46, %v3481_v15  ;;  %v3509_v44 = vshll.u32 %v6434_v25, 16  ;;  %v6462_v43 = vadd.s32 18, %v6430_v13  ;;  %vm6481_vm10 = vmand %vm4297_vm8, %vm4261_vm7 }
 0x257   : > { %5199 = vmatmul.msk.f32.gmra.mxu3 %vm269_vm0, %v2580_v34  ;;  %v3510_v36 = vshrl.u32 %v6434_v25, 16  ;;  %v3511_v51 = vshll.u32 %v6452_v59, 16  ;;  %v6475_v15 = vadd.s32 88, %v5964_v6  ;;  %v6486_v25 = vadd.s32 96, %v5964_v6 }
 0x258   : > { %v4546_v8 = vsel %vm6386_vm15, %v3141_v55, 0.0  ;;  %5126 = vmatmul.msk.f32.gmra.mxu1 %vm269_vm0, %v6364_v57  ;;  %5237 = vmatmul.msk.f32.gmra.mxu0 %vm269_vm0, %v2888_v63  ;;  %v3493_v29 = vadd.s32 %v3492_v48, %v3483_v5  ;;  %vm3513_vm9 = vc.u32 %v3505_v26, %v3509_v44  ;;  %v3515_v14 = vadd.s32 %v3509_v44, %v3505_v26 }
 0x259   : > { %v4586_v7 = vsel %vm269_vm0, %v4546_v8, 0.0  ;;  %v4661_v41 = vmul.f32 %v4546_v8, %v4546_v8  ;;  %4775 = vst.msk [vmem:[%s6151_s10 + $0x28] sm:$0xff] %vm269_vm0, %v4546_v8  ;;  %v2432_v35 = vpop.f32.mrf.mxu2  ;;  %v3514_v45 = vsel %vm3513_vm9, 1, %v7215_v47  ;;  %vm6488_vm12 = vcmp.lt.s32.totalorder %v4404_v49, 16  ;;  %v2889_v49 = vld [vmem:[#allocation2 + $0xe6] sm:$0xff] }
 0x25a   : > { %v4587_v20 = vadd.f32 %v4586_v7, %v4585_v22  ;;  %v2528_v32 = vadd.f32 %v2432_v35, %v2221_v50  ;;  %v2739_v57 = vpop.f32.mrf.mxu3  ;;  %v3494_v4 = vshrl.u32 %v3493_v29, 4  ;;  %v3516_v23 = vadd.s32 %v3514_v45, %v3508_v12 }
 0x25b   : > { %v4701_v42 = vsel %vm269_vm0, %v4661_v41, 0.0  ;;  %vm3517_vm11 = vc.u32 %v3515_v14, %v3511_v51  ;;  %v3531_v26 = vand.u32 65535, %v6475_v15  ;;  %v3532_v55 = vshrl.u32 %v6475_v15, 16 }
 0x25c   : > { %v4702_v9 = vadd.f32 %v4701_v42, %v4700_v27  ;;  %v2835_v34 = vadd.f32 %v2739_v57, %v2528_v32  ;;  %v3495_v27 = vmul.u32 18, %v3494_v4  ;;  %v3518_v46 = vsel %vm3517_vm11, 1, %v7215_v47  ;;  %v6527_v42 = vld [vmem:[#allocation2 + $0xe4] sm:$0xff] }
 0x25d   : > { %v2131_v50 = vpop.f32.mrf.mxu1  ;;  %v2222_v63 = vadd.f32 %v2128_v52, %v5800_v11  ;;  %v6499_v12 = vpop.f32.mrf.mxu0  ;;  %v3512_v44 = vshrl.u32 %v6452_v59, 16  ;;  %v3520_v8 = vadd.s32 %v3518_v46, %v3516_v23  ;;  %v4405_v51 = vsel %vm6481_vm10, %v6462_v43, %v6430_v13 }
 0x25e   : > { %v3142_v48 = vadd.f32 %v6398_v39, %v2835_v34  ;;  %5163 = vmatmul.msk.f32.gmra.mxu2 %vm269_vm0, %v6472_v37  ;;  %v6508_v11 = vsub.s32 %v6329_v53, %v3495_v27  ;;  %v6510_v39 = vmul.u32 58254, %v3531_v26  ;;  %v6512_v52 = vmul.u32 14564, %v3532_v55 }
 0x25f   : > { %5200 = vmatmul.msk.f32.gmra.mxu3 %vm269_vm0, %v2581_v18  ;;  %v3521_v59 = vadd.s32 %v3520_v8, %v3510_v36  ;;  %v3534_v41 = vmul.u32 14564, %v3531_v26  ;;  %v3560_v35 = vand.u32 65535, %v6486_v25  ;;  %v3537_v23 = vmul.u32 58254, %v3532_v55  ;;  %v2582_v26 = vld [vmem:[#allocation2 + $0xe5] sm:$0xff] }
 0x260   : > { %v4547_v7 = vsel %vm6437_vm6, %v3142_v48, 0.0  ;;  %5127 = vmatmul.msk.f32.gmra.mxu1 %vm269_vm0, %v6419_v58  ;;  %5238 = vmatmul.msk.f32.gmra.mxu0 %vm269_vm0, %v2889_v49  ;;  %vm4262_vm13 = vcmp.ne.s32.totalorder %v6508_v11, 0  ;;  %vm4298_vm14 = vcmp.lt.s32.totalorder %v6508_v11, 0  ;;  %v4370_v58 = vadd.s32 18, %v6508_v11 }
 0x261   : > { %v4588_v29 = vsel %vm269_vm0, %v4547_v7, 0.0  ;;  %v4662_v32 = vmul.f32 %v4547_v7, %v4547_v7  ;;  %4776 = vst.msk [vmem:[%s6151_s10 + $0x30] sm:$0xff] %vm269_vm0, %v4547_v7  ;;  %v2435_v53 = vpop.f32.mrf.mxu2  ;;  %v3522_v36 = vadd.s32 %v3521_v59, %v3512_v44  ;;  %vm6529_vm15 = vmand %vm4298_vm14, %vm4262_vm13  ;;  %v3538_v34 = vshll.u32 %v6510_v39, 16 }
 0x262   : > { %v4589_v60 = vadd.f32 %v4588_v29, %v4587_v20  ;;  %v2529_v57 = vadd.f32 %v2435_v53, %v2222_v63  ;;  %v2742_v45 = vpop.f32.mrf.mxu3  ;;  %v3540_v18 = vshll.u32 %v6512_v52, 16  ;;  %v2223_v20 = vadd.f32 %v2131_v50, %v5807_v33 }
 0x263   : > { %v4703_v14 = vsel %vm269_vm0, %v4662_v32, 0.0  ;;  %v3523_v63 = vshrl.u32 %v3522_v36, 4  ;;  %v3539_v49 = vshrl.u32 %v6510_v39, 16  ;;  %vm3542_vm1 = vc.u32 %v3534_v41, %v3538_v34 }
 0x264   : > { %v4704_v27 = vadd.f32 %v4703_v14, %v4702_v9  ;;  %v2836_v46 = vadd.f32 %v2742_v45, %v2529_v57  ;;  %v3544_v44 = vadd.s32 %v3538_v34, %v3534_v41  ;;  %v3561_v8 = vshrl.u32 %v6486_v25, 16  ;;  %v2890_v9 = vld [vmem:[#allocation2 + $0xee] sm:$0xff] }
 0x265   : > { %v2134_v48 = vpop.f32.mrf.mxu1  ;;  %v6541_v55 = vpop.f32.mrf.mxu0  ;;  %v4406_v33 = vsel %vm6529_vm15, %v4370_v58, %v6508_v11  ;;  %v3524_v50 = vmul.u32 18, %v3523_v63  ;;  %v3543_v39 = vsel %vm3542_vm1, 1, %v7215_v47  ;;  %v3541_v59 = vshrl.u32 %v6512_v52, 16 }
 0x266   : > { %v3143_v7 = vadd.f32 %v6445_v62, %v2836_v46  ;;  %5164 = vmatmul.msk.f32.gmra.mxu2 %vm269_vm0, %v6527_v42  ;;  %v3545_v41 = vadd.s32 %v3543_v39, %v3537_v23  ;;  %vm3546_vm2 = vc.u32 %v3544_v44, %v3540_v18  ;;  %v6549_v62 = vmul.u32 58254, %v3560_v35 }
 0x267   : > { %5201 = vmatmul.msk.f32.gmra.mxu3 %vm269_vm0, %v2582_v26  ;;  %v6556_v11 = vsub.s32 %v6351_v1, %v3524_v50  ;;  %v3547_v32 = vsel %vm3546_vm2, 1, %v7215_v47  ;;  %v3563_v53 = vmul.u32 14564, %v3560_v35  ;;  %v6563_v5 = vmul.u32 14564, %v3561_v8  ;;  %v6568_v35 = vld [vmem:[#allocation2 + $0xec] sm:$0xff] }
 0x268   : > { %v4548_v29 = vsel %vm6488_vm12, %v3143_v7, 0.0  ;;  %5128 = vmatmul.msk.f32.gmra.mxu1 %vm269_vm0, %v6472_v37  ;;  %5239 = vmatmul.msk.f32.gmra.mxu0 %vm269_vm0, %v2890_v9  ;;  %v3549_v58 = vadd.s32 %v3547_v32, %v3545_v41  ;;  %v3566_v23 = vmul.u32 58254, %v3561_v8  ;;  %v3567_v34 = vshll.u32 %v6549_v62, 16  ;;  %v2891_v8 = vld [vmem:[#allocation2 + $0xf6] sm:$0xff] }
 0x269   : > { %v4590_v57 = vsel %vm269_vm0, %v4548_v29, 0.0  ;;  %v4663_v45 = vmul.f32 %v4548_v29, %v4548_v29  ;;  %4777 = vst.msk [vmem:[%s6151_s10 + $0x38] sm:$0xff] %vm269_vm0, %v4548_v29  ;;  %v2438_v52 = vpop.f32.mrf.mxu2  ;;  %vm4263_vm3 = vcmp.ne.s32.totalorder %v6556_v11, 0  ;;  %vm4299_vm4 = vcmp.lt.s32.totalorder %v6556_v11, 0 }
 0x26a   : > { %v4591_v36 = vadd.f32 %v4590_v57, %v4589_v60  ;;  %v2530_v14 = vadd.f32 %v2438_v52, %v2223_v20  ;;  %v2745_v37 = vpop.f32.mrf.mxu3  ;;  %v3550_v4 = vadd.s32 %v3549_v58, %v3539_v49  ;;  %vm6576_vm5 = vcmp.lt.s32.totalorder %v4405_v51, 16  ;;  %v2583_v20 = vld [vmem:[#allocation2 + $0xed] sm:$0xff]  ;;  %vm6585_vm7 = vmand %vm4299_vm4, %vm4263_vm3 }
 0x26b   : > { %v4705_v1 = vsel %vm269_vm0, %v4663_v45, 0.0  ;;  %v4371_v26 = vadd.s32 18, %v6556_v11  ;;  %vm6581_vm6 = vcmp.lt.s32.totalorder %v4406_v33, 16  ;;  %v3569_v44 = vshll.u32 %v6563_v5, 16  ;;  %v6618_v58 = vld [vmem:[#allocation2 + $0xf4] sm:$0xff] }
 0x26c   : > { %v4706_v18 = vadd.f32 %v4705_v1, %v4704_v27  ;;  %v2837_v46 = vadd.f32 %v2745_v37, %v2530_v14  ;;  %v3551_v22 = vadd.s32 %v3550_v4, %v3541_v59  ;;  %vm3571_vm8 = vc.u32 %v3563_v53, %v3567_v34  ;;  %v2892_v27 = vld [vmem:[#allocation2 + $0xfe] sm:$0xff] }
 0x26d   : > { %v2137_v63 = vpop.f32.mrf.mxu1  ;;  %v2224_v13 = vadd.f32 %v2134_v48, %v5814_v56  ;;  %v6594_v51 = vpop.f32.mrf.mxu0  ;;  %v3568_v7 = vshrl.u32 %v6549_v62, 16  ;;  %v3572_v33 = vsel %vm3571_vm8, 1, %v7215_v47  ;;  %v3573_v50 = vadd.s32 %v3567_v34, %v3563_v53 }
 0x26e   : > { %v3144_v43 = vadd.f32 %v6499_v12, %v2837_v46  ;;  %5165 = vmatmul.msk.f32.gmra.mxu2 %vm269_vm0, %v6568_v35  ;;  %v3552_v9 = vshrl.u32 %v3551_v22, 4  ;;  %v3574_v39 = vadd.s32 %v3572_v33, %v3566_v23  ;;  %v6600_v56 = vadd.s32 104, %v5964_v6  ;;  %v2584_v23 = vld [vmem:[#allocation2 + $0xf5] sm:$0xff] }
 0x26f   : > { %5202 = vmatmul.msk.f32.gmra.mxu3 %vm269_vm0, %v2583_v20  ;;  %v2225_v48 = vadd.f32 %v2137_v63, %v5821_v21  ;;  %v4407_v59 = vsel %vm6585_vm7, %v4371_v26, %v6556_v11  ;;  %v3570_v41 = vshrl.u32 %v6563_v5, 16  ;;  %vm3575_vm9 = vc.u32 %v3573_v50, %v3569_v44 }
 0x270   : > { %v4549_v12 = vsel %vm6576_vm5, %v3144_v43, 0.0  ;;  %5129 = vmatmul.msk.f32.gmra.mxu1 %vm269_vm0, %v6527_v42  ;;  %5240 = vmatmul.msk.f32.gmra.mxu0 %vm269_vm0, %v2891_v8  ;;  %v3553_v53 = vmul.u32 18, %v3552_v9  ;;  %v3576_v42 = vsel %vm3575_vm9, 1, %v7215_v47  ;;  %v3589_v52 = vand.u32 65535, %v6600_v56 }
 0x271   : > { %v4592_v62 = vsel %vm269_vm0, %v4549_v12, 0.0  ;;  %v4664_v29 = vmul.f32 %v4549_v12, %v4549_v12  ;;  %4778 = vst.msk [vmem:[%s6151_s10 + $0x40] sm:$0xff] %vm269_vm0, %v4549_v12  ;;  %v2441_v32 = vpop.f32.mrf.mxu2  ;;  %v3578_v14 = vadd.s32 %v3576_v42, %v3574_v39  ;;  %v3590_v37 = vshrl.u32 %v6600_v56, 16 }
 0x272   : > { %v4593_v21 = vadd.f32 %v4592_v62, %v4591_v36  ;;  %v2531_v57 = vadd.f32 %v2441_v32, %v2224_v13  ;;  %v2748_v45 = vpop.f32.mrf.mxu3  ;;  %v3554_v5 = vsub.s32 %v6475_v15, %v3553_v53  ;;  %v3592_v34 = vmul.u32 14564, %v3589_v52 }
 0x273   : > { %v4707_v11 = vsel %vm269_vm0, %v4664_v29, 0.0  ;;  %v6622_v36 = vmul.u32 58254, %v3589_v52  ;;  %vm6624_vm10 = vcmp.lt.s32.totalorder %v4407_v59, 16  ;;  %v3579_v26 = vadd.s32 %v3578_v14, %v3568_v7  ;;  %v2585_v14 = vld [vmem:[#allocation2 + $0xfd] sm:$0xff] }
 0x274   : > { %v4708_v1 = vadd.f32 %v4707_v11, %v4706_v18  ;;  %v2838_v4 = vadd.f32 %v2748_v45, %v2531_v57  ;;  %vm4264_vm11 = vcmp.ne.s32.totalorder %v3554_v5, 0  ;;  %vm4300_vm12 = vcmp.lt.s32.totalorder %v3554_v5, 0  ;;  %v6662_v57 = vld [vmem:[#allocation2 + $0xfc] sm:$0xff] }
 0x275   : > { %v2140_v46 = vpop.f32.mrf.mxu1  ;;  %v4372_v20 = vadd.s32 18, %v3554_v5  ;;  %v6631_v18 = vpop.f32.mrf.mxu0  ;;  %vm6633_vm13 = vmand %vm4300_vm12, %vm4264_vm11  ;;  %v6637_v22 = vmul.u32 14564, %v3590_v37  ;;  %v6640_v44 = vadd.s32 112, %v5964_v6  ;;  %v6643_v13 = vadd.s32 120, %v5964_v6 }
 0x276   : > { %v3145_v15 = vadd.f32 %v6541_v55, %v2838_v4  ;;  %5166 = vmatmul.msk.f32.gmra.mxu2 %vm269_vm0, %v6618_v58  ;;  %v2226_v55 = vadd.f32 %v2140_v46, %v5835_v30  ;;  %v3580_v43 = vadd.s32 %v3579_v26, %v3570_v41  ;;  %v3595_v8 = vmul.u32 58254, %v3590_v37  ;;  %v2893_v46 = vld [vmem:[#allocation2 + $0x106] sm:$0xff] }
 0x277   : > { %5203 = vmatmul.msk.f32.gmra.mxu3 %vm269_vm0, %v2584_v23  ;;  %v3596_v7 = vshll.u32 %v6622_v36, 16  ;;  %v4408_v9 = vsel %vm6633_vm13, %v4372_v20, %v3554_v5  ;;  %v3597_v50 = vshrl.u32 %v6622_v36, 16  ;;  %v3598_v39 = vshll.u32 %v6637_v22, 16 }
 0x278   : > { %v4550_v33 = vsel %vm6581_vm6, %v3145_v15, 0.0  ;;  %5130 = vmatmul.msk.f32.gmra.mxu1 %vm269_vm0, %v6568_v35  ;;  %5241 = vmatmul.msk.f32.gmra.mxu0 %vm269_vm0, %v2892_v27  ;;  %v3581_v49 = vshrl.u32 %v3580_v43, 4  ;;  %v3618_v52 = vand.u32 65535, %v6640_v44  ;;  %v3619_v37 = vshrl.u32 %v6640_v44, 16 }
 0x279   : > { %v4594_v12 = vsel %vm269_vm0, %v4550_v33, 0.0  ;;  %v4665_v30 = vmul.f32 %v4550_v33, %v4550_v33  ;;  %4779 = vst.msk [vmem:[%s6151_s10 + $0x48] sm:$0xff] %vm269_vm0, %v4550_v33  ;;  %v2444_v59 = vpop.f32.mrf.mxu2  ;;  %vm3600_vm14 = vc.u32 %v3592_v34, %v3596_v7  ;;  %v3602_v32 = vadd.s32 %v3596_v7, %v3592_v34 }
 0x27a   : > { %v4595_v41 = vadd.f32 %v4594_v12, %v4593_v21  ;;  %v2532_v62 = vadd.f32 %v2444_v59, %v2225_v48  ;;  %v2751_v35 = vpop.f32.mrf.mxu3  ;;  %v3601_v29 = vsel %vm3600_vm14, 1, %v7215_v47  ;;  %v3582_v45 = vmul.u32 18, %v3581_v49  ;;  %v6701_v49 = vld [vmem:[#allocation2 + $0x104] sm:$0xff] }
 0x27b   : > { %v4709_v53 = vsel %vm269_vm0, %v4665_v30, 0.0  ;;  %v3603_v42 = vadd.s32 %v3601_v29, %v3595_v8  ;;  %vm3604_vm15 = vc.u32 %v3602_v32, %v3598_v39  ;;  %vm6666_vm1 = vcmp.lt.s32.totalorder %v4408_v9, 16 }
 0x27c   : > { %v4710_v11 = vadd.f32 %v4709_v53, %v4708_v1  ;;  %v2839_v5 = vadd.f32 %v2751_v35, %v2532_v62  ;;  %v3583_v4 = vsub.s32 %v6486_v25, %v3582_v45  ;;  %v3605_v23 = vsel %vm3604_vm15, 1, %v7215_v47  ;;  %v2586_v53 = vld [vmem:[#allocation2 + $0x105] sm:$0xff] }
 0x27d   : > { %v2143_v21 = vpop.f32.mrf.mxu1  ;;  %v6672_v34 = vmul.u32 58254, %v3618_v52  ;;  %v6677_v1 = vpop.f32.mrf.mxu0  ;;  %v3599_v20 = vshrl.u32 %v6637_v22, 16  ;;  %v3607_v26 = vadd.s32 %v3605_v23, %v3603_v42  ;;  %v6680_v15 = vmul.u32 14564, %v3619_v37 }
 0x27e   : > { %v3146_v36 = vadd.f32 %v6594_v51, %v2839_v5  ;;  %5167 = vmatmul.msk.f32.gmra.mxu2 %vm269_vm0, %v6662_v57  ;;  %vm4265_vm2 = vcmp.ne.s32.totalorder %v3583_v4, 0  ;;  %vm4301_vm3 = vcmp.lt.s32.totalorder %v3583_v4, 0  ;;  %v4373_v25 = vadd.s32 18, %v3583_v4 }
 0x27f   : > { %5204 = vmatmul.msk.f32.gmra.mxu3 %vm269_vm0, %v2585_v14  ;;  %v3621_v63 = vmul.u32 14564, %v3618_v52  ;;  %v2227_v27 = vadd.f32 %v2143_v21, %v5844_v10  ;;  %vm6688_vm4 = vmand %vm4301_vm3, %vm4265_vm2  ;;  %v3608_v43 = vadd.s32 %v3607_v26, %v3597_v50  ;;  %v3625_v8 = vshll.u32 %v6672_v34, 16 }
 0x280   : > { %v4551_v51 = vsel %vm6624_vm10, %v3146_v36, 0.0  ;;  %5131 = vmatmul.msk.f32.gmra.mxu1 %vm269_vm0, %v6618_v58  ;;  %5242 = vmatmul.msk.f32.gmra.mxu0 %vm269_vm0, %v2893_v46  ;;  %v3624_v60 = vmul.u32 58254, %v3619_v37  ;;  %v3627_v10 = vshll.u32 %v6680_v15, 16  ;;  %v4409_v30 = vsel %vm6688_vm4, %v4373_v25, %v3583_v4  ;;  %v2894_v4 = vld [vmem:[#allocation2 + $0x10e] sm:$0xff] }
 0x281   : > { %v4596_v7 = vsel %vm269_vm0, %v4551_v51, 0.0  ;;  %v4666_v33 = vmul.f32 %v4551_v51, %v4551_v51  ;;  %4780 = vst.msk [vmem:[%s6151_s10 + $0x50] sm:$0xff] %vm269_vm0, %v4551_v51  ;;  %v2447_v9 = vpop.f32.mrf.mxu2  ;;  %v3609_v50 = vadd.s32 %v3608_v43, %v3599_v20  ;;  %v3626_v62 = vshrl.u32 %v6672_v34, 16 }
 0x282   : > { %v4597_v39 = vadd.f32 %v4596_v7, %v4595_v41  ;;  %v2533_v58 = vadd.f32 %v2447_v9, %v2226_v55  ;;  %v2754_v12 = vpop.f32.mrf.mxu3  ;;  %vm3629_vm5 = vc.u32 %v3621_v63, %v3625_v8  ;;  %v3631_v35 = vadd.s32 %v3625_v8, %v3621_v63 }
 0x283   : > { %v4711_v59 = vsel %vm269_vm0, %v4666_v33, 0.0  ;;  %v3610_v45 = vshrl.u32 %v3609_v50, 4  ;;  %v3630_v41 = vsel %vm3629_vm5, 1, %v7215_v47  ;;  %vm6705_vm6 = vcmp.lt.s32.totalorder %v4409_v30, 16  ;;  %v6739_v33 = vld [vmem:[#allocation2 + $0x10c] sm:$0xff] }
 0x284   : > { %v4712_v29 = vadd.f32 %v4711_v59, %v4710_v11  ;;  %v2840_v32 = vadd.f32 %v2754_v12, %v2533_v58  ;;  %v3632_v52 = vadd.s32 %v3630_v41, %v3624_v60  ;;  %vm3633_vm7 = vc.u32 %v3631_v35, %v3627_v10  ;;  %v2587_v12 = vld [vmem:[#allocation2 + $0x10d] sm:$0xff] }
 0x285   : > { %v2146_v55 = vpop.f32.mrf.mxu1  ;;  %v3647_v5 = vand.u32 65535, %v6643_v13  ;;  %v3648_v14 = vshrl.u32 %v6643_v13, 16  ;;  %v6714_v11 = vpop.f32.mrf.mxu0  ;;  %v3611_v21 = vmul.u32 18, %v3610_v45  ;;  %v3628_v23 = vshrl.u32 %v6680_v15, 16 }
 0x286   : > { %v3147_v37 = vadd.f32 %v6631_v18, %v2840_v32  ;;  %5168 = vmatmul.msk.f32.gmra.mxu2 %vm269_vm0, %v6701_v49  ;;  %v3634_v34 = vsel %vm3633_vm7, 1, %v7215_v47  ;;  %v2228_v36 = vadd.f32 %v2146_v55, %v5852_v2  ;;  %v6747_v58 = vadd.s32 128, %v5964_v6  ;;  %v2895_v55 = vld [vmem:[#allocation2 + $0x116] sm:$0xff] }
 0x287   : > { %5205 = vmatmul.msk.f32.gmra.mxu3 %vm269_vm0, %v2586_v53  ;;  %v3636_v46 = vadd.s32 %v3634_v34, %v3632_v52  ;;  %v3650_v20 = vmul.u32 14564, %v3647_v5  ;;  %v6720_v26 = vmul.u32 58254, %v3647_v5  ;;  %v6727_v25 = vsub.s32 %v6600_v56, %v3611_v21 }
 0x288   : > { %v4552_v18 = vsel %vm6666_vm1, %v3147_v37, 0.0  ;;  %5132 = vmatmul.msk.f32.gmra.mxu1 %vm269_vm0, %v6662_v57  ;;  %v6729_v15 = vmul.u32 14564, %v3648_v14  ;;  %v3653_v63 = vmul.u32 58254, %v3648_v14  ;;  %5243 = vmatmul.msk.f32.gmra.mxu0 %vm269_vm0, %v2894_v4  ;;  %v3676_v14 = vand.u32 65535, %v6747_v58 }
 0x289   : > { %v4598_v51 = vsel %vm269_vm0, %v4552_v18, 0.0  ;;  %v4667_v22 = vmul.f32 %v4552_v18, %v4552_v18  ;;  %4781 = vst.msk [vmem:[%s6151_s10 + $0x58] sm:$0xff] %vm269_vm0, %v4552_v18  ;;  %v2450_v2 = vpop.f32.mrf.mxu2  ;;  %v3637_v43 = vadd.s32 %v3636_v46, %v3626_v62  ;;  %v3654_v48 = vshll.u32 %v6720_v26, 16 }
 0x28a   : > { %v4599_v8 = vadd.f32 %v4598_v51, %v4597_v39  ;;  %v2534_v7 = vadd.f32 %v2450_v2, %v2227_v27  ;;  %v2757_v57 = vpop.f32.mrf.mxu3  ;;  %vm4266_vm8 = vcmp.ne.s32.totalorder %v6727_v25, 0  ;;  %vm4302_vm9 = vcmp.lt.s32.totalorder %v6727_v25, 0  ;;  %v6781_v51 = vld [vmem:[#allocation2 + $0x114] sm:$0xff] }
 0x28b   : > { %v4713_v56 = vsel %vm269_vm0, %v4667_v22, 0.0  ;;  %vm6741_vm10 = vmand %vm4302_vm9, %vm4266_vm8  ;;  %v4374_v60 = vadd.s32 18, %v6727_v25  ;;  %v3638_v10 = vadd.s32 %v3637_v43, %v3628_v23  ;;  %v3655_v30 = vshrl.u32 %v6720_v26, 16 }
 0x28c   : > { %v4714_v27 = vadd.f32 %v4713_v56, %v4712_v29  ;;  %v2841_v39 = vadd.f32 %v2757_v57, %v2534_v7  ;;  %v3656_v50 = vshll.u32 %v6729_v15, 16  ;;  %v3657_v35 = vshrl.u32 %v6729_v15, 16 }
 0x28d   : > { %v2149_v59 = vpop.f32.mrf.mxu1  ;;  %v3639_v62 = vshrl.u32 %v3638_v10, 4  ;;  %vm3658_vm11 = vc.u32 %v3650_v20, %v3654_v48  ;;  %v3660_v32 = vadd.s32 %v3654_v48, %v3650_v20  ;;  %v4410_v29 = vsel %vm6741_vm10, %v4374_v60, %v6727_v25  ;;  %v6761_v41 = vpop.f32.mrf.mxu0  ;;  %v2588_v48 = vld [vmem:[#allocation2 + $0x115] sm:$0xff] }
 0x28e   : > { %v3148_v53 = vadd.f32 %v6677_v1, %v2841_v39  ;;  %5169 = vmatmul.msk.f32.gmra.mxu2 %vm269_vm0, %v6739_v33  ;;  %v6756_v45 = vadd.f32 %v2149_v59, %v5859_v54  ;;  %v3659_v52 = vsel %vm3658_vm11, 1, %v7215_v47  ;;  %v3677_v21 = vshrl.u32 %v6747_v58, 16 }
 0x28f   : > { %5206 = vmatmul.msk.f32.gmra.mxu3 %vm269_vm0, %v2587_v12  ;;  %v3640_v5 = vmul.u32 18, %v3639_v62  ;;  %v3661_v1 = vadd.s32 %v3659_v52, %v3653_v63  ;;  %vm3662_vm12 = vc.u32 %v3660_v32, %v3656_v50  ;;  %v6773_v4 = vadd.s32 136, %v5964_v6 }
 0x290   : > { %v4553_v54 = vsel %vm6705_vm6, %v3148_v53, 0.0  ;;  %5133 = vmatmul.msk.f32.gmra.mxu1 %vm269_vm0, %v6701_v49  ;;  %v3663_v37 = vsel %vm3662_vm12, 1, %v7215_v47  ;;  %5244 = vmatmul.msk.f32.gmra.mxu0 %vm269_vm0, %v2895_v55  ;;  %v3679_v25 = vmul.u32 14564, %v3676_v14  ;;  %v3680_v15 = vmul.u32 58254, %v3676_v14 }
 0x291   : > { %v4600_v23 = vsel %vm269_vm0, %v4553_v54, 0.0  ;;  %v4668_v34 = vmul.f32 %v4553_v54, %v4553_v54  ;;  %4782 = vst.msk [vmem:[%s6151_s10 + $0x60] sm:$0xff] %vm269_vm0, %v4553_v54  ;;  %v2453_v46 = vpop.f32.mrf.mxu2  ;;  %v3641_v20 = vsub.s32 %v6640_v44, %v3640_v5  ;;  %v3665_v42 = vadd.s32 %v3663_v37, %v3661_v1 }
 0x292   : > { %v4601_v26 = vadd.f32 %v4600_v23, %v4599_v8  ;;  %v2535_v49 = vadd.f32 %v2453_v46, %v2228_v36  ;;  %v2760_v18 = vpop.f32.mrf.mxu3  ;;  %v3681_v8 = vmul.u32 14564, %v3677_v21  ;;  %vm6787_vm1 = vcmp.lt.s32.totalorder %v4410_v29, 16  ;;  %v6819_v23 = vld [vmem:[#allocation2 + $0x11c] sm:$0xff] }
 0x293   : > { %v4715_v63 = vsel %vm269_vm0, %v4668_v34, 0.0  ;;  %vm4267_vm13 = vcmp.ne.s32.totalorder %v3641_v20, 0  ;;  %vm4303_vm14 = vcmp.lt.s32.totalorder %v3641_v20, 0  ;;  %v4375_v22 = vadd.s32 18, %v3641_v20 }
 0x294   : > { %v4716_v2 = vadd.f32 %v4715_v63, %v4714_v27  ;;  %v2842_v43 = vadd.f32 %v2760_v18, %v2535_v49  ;;  %vm6783_vm15 = vmand %vm4303_vm14, %vm4267_vm13  ;;  %v3666_v7 = vadd.s32 %v3665_v42, %v3655_v30  ;;  %v3682_v9 = vmul.u32 58254, %v3677_v21  ;;  %v2896_v30 = vld [vmem:[#allocation2 + $0x11e] sm:$0xff] }
 0x295   : > { %v2152_v57 = vpop.f32.mrf.mxu1  ;;  %v4411_v56 = vsel %vm6783_vm15, %v4375_v22, %v3641_v20  ;;  %v3683_v60 = vshll.u32 %v3680_v15, 16  ;;  %v6799_v39 = vpop.f32.mrf.mxu0  ;;  %v3684_v50 = vshrl.u32 %v3680_v15, 16  ;;  %v3685_v62 = vshll.u32 %v3681_v8, 16  ;;  %v2589_v18 = vld [vmem:[#allocation2 + $0x11d] sm:$0xff] }
 0x296   : > { %v3149_v10 = vadd.f32 %v6714_v11, %v2842_v43  ;;  %5170 = vmatmul.msk.f32.gmra.mxu2 %vm269_vm0, %v6781_v51  ;;  %v6797_v27 = vadd.f32 %v2152_v57, %v5866_v24  ;;  %v3667_v12 = vadd.s32 %v3666_v7, %v3657_v35  ;;  %vm6802_vm2 = vcmp.lt.s32.totalorder %v4411_v56, 16 }
 0x297   : > { %5207 = vmatmul.msk.f32.gmra.mxu3 %vm269_vm0, %v2588_v48  ;;  %vm3687_vm3 = vc.u32 %v3679_v25, %v3683_v60  ;;  %v3689_v11 = vadd.s32 %v3683_v60, %v3679_v25  ;;  %v3705_v53 = vand.u32 65535, %v6773_v4  ;;  %v3686_v34 = vshrl.u32 %v3681_v8, 16 }
 0x298   : > { %v4554_v32 = vsel %vm6787_vm1, %v3149_v10, 0.0  ;;  %5134 = vmatmul.msk.f32.gmra.mxu1 %vm269_vm0, %v6739_v33  ;;  %v3668_v24 = vshrl.u32 %v3667_v12, 4  ;;  %v3688_v35 = vsel %vm3687_vm3, 1, %v7215_v47  ;;  %5245 = vmatmul.msk.f32.gmra.mxu0 %vm269_vm0, %v2896_v30  ;;  %v3706_v20 = vshrl.u32 %v6773_v4, 16 }
 0x299   : > { %v4602_v29 = vsel %vm269_vm0, %v4554_v32, 0.0  ;;  %v4669_v55 = vmul.f32 %v4554_v32, %v4554_v32  ;;  %4783 = vst.msk [vmem:[%s6151_s10 + $0x68] sm:$0xff] %vm269_vm0, %v4554_v32  ;;  %v2456_v52 = vpop.f32.mrf.mxu2  ;;  %v3690_v5 = vadd.s32 %v3688_v35, %v3682_v9  ;;  %vm3691_vm4 = vc.u32 %v3689_v11, %v3685_v62  ;;  %v6860_v35 = vld [vmem:[#allocation2 + $0x124] sm:$0xff] }
 0x29a   : > { %v4603_v1 = vadd.f32 %v4602_v29, %v4601_v26  ;;  %v2536_v14 = vadd.f32 %v2456_v52, %v6756_v45  ;;  %v2763_v54 = vpop.f32.mrf.mxu3  ;;  %v3669_v33 = vmul.u32 18, %v3668_v24  ;;  %v3692_v37 = vsel %vm3691_vm4, 1, %v7215_v47 }
 0x29b   : > { %v4717_v21 = vsel %vm269_vm0, %v4669_v55, 0.0  ;;  %v3694_v46 = vadd.s32 %v3692_v37, %v3690_v5  ;;  %v6823_v26 = vmul.u32 58254, %v3705_v53  ;;  %v3708_v63 = vmul.u32 14564, %v3705_v53 }
 0x29c   : > { %v4718_v42 = vadd.f32 %v4717_v21, %v4716_v2  ;;  %v2843_v49 = vadd.f32 %v2763_v54, %v2536_v14  ;;  %v3670_v25 = vsub.s32 %v6643_v13, %v3669_v33  ;;  %v6825_v22 = vmul.u32 14564, %v3706_v20  ;;  %v2897_v13 = vld [vmem:[#allocation2 + $0x126] sm:$0xff] }
 0x29d   : > { %v2155_v45 = vpop.f32.mrf.mxu1  ;;  %v3695_v15 = vadd.s32 %v3694_v46, %v3684_v50  ;;  %v6828_v43 = vadd.s32 144, %v5964_v6  ;;  %v6833_v2 = vpop.f32.mrf.mxu0  ;;  %v3711_v44 = vmul.u32 58254, %v3706_v20  ;;  %v3712_v57 = vshll.u32 %v6823_v26, 16  ;;  %v2590_v14 = vld [vmem:[#allocation2 + $0x125] sm:$0xff] }
 0x29e   : > { %v3150_v48 = vadd.f32 %v6761_v41, %v2843_v49  ;;  %5171 = vmatmul.msk.f32.gmra.mxu2 %vm269_vm0, %v6819_v23  ;;  %vm4268_vm5 = vcmp.ne.s32.totalorder %v3670_v25, 0  ;;  %vm4304_vm6 = vcmp.lt.s32.totalorder %v3670_v25, 0  ;;  %v6837_v7 = vadd.f32 %v2155_v45, %v5873_v40 }
 0x29f   : > { %5208 = vmatmul.msk.f32.gmra.mxu3 %vm269_vm0, %v2589_v18  ;;  %vm6839_vm7 = vmand %vm4304_vm6, %vm4268_vm5  ;;  %v4376_v41 = vadd.s32 18, %v3670_v25  ;;  %v3696_v36 = vadd.s32 %v3695_v15, %v3686_v34  ;;  %v3713_v9 = vshrl.u32 %v6823_v26, 16  ;;  %v3714_v60 = vshll.u32 %v6825_v22, 16 }
 0x2a0   : > { %v4555_v56 = vsel %vm6802_vm2, %v3150_v48, 0.0  ;;  %5135 = vmatmul.msk.f32.gmra.mxu1 %vm269_vm0, %v6781_v51  ;;  %v3715_v40 = vshrl.u32 %v6825_v22, 16  ;;  %5246 = vmatmul.msk.f32.gmra.mxu0 %vm269_vm0, %v2897_v13  ;;  %v3734_v59 = vand.u32 65535, %v6828_v43  ;;  %vm3716_vm8 = vc.u32 %v3708_v63, %v3712_v57 }
 0x2a1   : > { %v4604_v10 = vsel %vm269_vm0, %v4555_v56, 0.0  ;;  %v4670_v12 = vmul.f32 %v4555_v56, %v4555_v56  ;;  %4784 = vst.msk [vmem:[%s6151_s10 + $0x70] sm:$0xff] %vm269_vm0, %v4555_v56  ;;  %v2459_v30 = vpop.f32.mrf.mxu2  ;;  %v3697_v50 = vshrl.u32 %v3696_v36, 4  ;;  %v4412_v32 = vsel %vm6839_vm7, %v4376_v41, %v3670_v25 }
 0x2a2   : > { %v4605_v62 = vadd.f32 %v4604_v10, %v4603_v1  ;;  %v2537_v51 = vadd.f32 %v2459_v30, %v6797_v27  ;;  %v2766_v11 = vpop.f32.mrf.mxu3  ;;  %v3717_v29 = vsel %vm3716_vm8, 1, %v7215_v47  ;;  %v3718_v55 = vadd.s32 %v3712_v57, %v3708_v63  ;;  %v6904_v10 = vld [vmem:[#allocation2 + $0x12c] sm:$0xff] }
 0x2a3   : > { %v4719_v24 = vsel %vm269_vm0, %v4670_v12, 0.0  ;;  %v3698_v53 = vmul.u32 18, %v3697_v50  ;;  %v3719_v54 = vadd.s32 %v3717_v29, %v3711_v44  ;;  %v3735_v1 = vshrl.u32 %v6828_v43, 16  ;;  %v2591_v50 = vld [vmem:[#allocation2 + $0x12d] sm:$0xff] }
 0x2a4   : > { %v4720_v52 = vadd.f32 %v4719_v24, %v4718_v42  ;;  %v2844_v5 = vadd.f32 %v2766_v11, %v2537_v51  ;;  %vm6864_vm9 = vcmp.lt.s32.totalorder %v4412_v32, 16  ;;  %vm3720_vm10 = vc.u32 %v3718_v55, %v3714_v60  ;;  %v2898_v42 = vld [vmem:[#allocation2 + $0x12e] sm:$0xff] }
 0x2a5   : > { %v2158_v33 = vpop.f32.mrf.mxu1  ;;  %v3699_v37 = vsub.s32 %v6747_v58, %v3698_v53  ;;  %v6869_v21 = vmul.u32 58254, %v3734_v59  ;;  %v6874_v46 = vpop.f32.mrf.mxu0  ;;  %v3721_v20 = vsel %vm3720_vm10, 1, %v7215_v47  ;;  %v3737_v49 = vmul.u32 14564, %v3734_v59 }
 0x2a6   : > { %v3151_v34 = vadd.f32 %v6799_v39, %v2844_v5  ;;  %5172 = vmatmul.msk.f32.gmra.mxu2 %vm269_vm0, %v6860_v35  ;;  %v6877_v18 = vmul.u32 14564, %v3735_v1  ;;  %v3723_v25 = vadd.s32 %v3721_v20, %v3719_v54  ;;  %v2232_v26 = vadd.f32 %v2158_v33, %v5880_v16 }
 0x2a7   : > { %5209 = vmatmul.msk.f32.gmra.mxu3 %vm269_vm0, %v2590_v14  ;;  %vm4269_vm11 = vcmp.ne.s32.totalorder %v3699_v37, 0  ;;  %vm4305_vm12 = vcmp.lt.s32.totalorder %v3699_v37, 0  ;;  %v4377_v58 = vadd.s32 18, %v3699_v37  ;;  %v3740_v15 = vmul.u32 58254, %v3735_v1 }
 0x2a8   : > { %v4556_v39 = vsel %vm6864_vm9, %v3151_v34, 0.0  ;;  %vm6883_vm13 = vmand %vm4305_vm12, %vm4269_vm11  ;;  %5136 = vmatmul.msk.f32.gmra.mxu1 %vm269_vm0, %v6819_v23  ;;  %v3741_v63 = vshll.u32 %v6869_v21, 16  ;;  %v3724_v16 = vadd.s32 %v3723_v25, %v3713_v9  ;;  %5247 = vmatmul.msk.f32.gmra.mxu0 %vm269_vm0, %v2898_v42  ;;  %v3742_v23 = vshrl.u32 %v6869_v21, 16 }
 0x2a9   : > { %v4606_v22 = vsel %vm269_vm0, %v4556_v39, 0.0  ;;  %v4671_v48 = vmul.f32 %v4556_v39, %v4556_v39  ;;  %4785 = vst.msk [vmem:[%s6151_s10 + $0x78] sm:$0xff] %vm269_vm0, %v4556_v39  ;;  %v2462_v13 = vpop.f32.mrf.mxu2  ;;  %v4413_v44 = vsel %vm6883_vm13, %v4377_v58, %v3699_v37  ;;  %v3743_v57 = vshll.u32 %v6877_v18, 16 }
 0x2aa   : > { %v4607_v8 = vadd.f32 %v4606_v22, %v4605_v62  ;;  %v2538_v41 = vadd.f32 %v2462_v13, %v6837_v7  ;;  %v2769_v36 = vpop.f32.mrf.mxu3  ;;  %vm6900_vm14 = vcmp.lt.s32.totalorder %v4413_v44, 16  ;;  %v3725_v12 = vadd.s32 %v3724_v16, %v3715_v40 }
 0x2ab   : > { %v4721_v56 = vsel %vm269_vm0, %v4671_v48, 0.0  ;;  %vm3745_vm15 = vc.u32 %v3737_v49, %v3741_v63  ;;  %v3747_v59 = vadd.s32 %v3741_v63, %v3737_v49  ;;  %v6908_v32 = vadd.s32 152, %v5964_v6  ;;  %v2592_v48 = vld [vmem:[#allocation2 + $0x135] sm:$0xff] }
 0x2ac   : > { %v4722_v9 = vadd.f32 %v4721_v56, %v4720_v52  ;;  %v2845_v30 = vadd.f32 %v2769_v36, %v2538_v41  ;;  %v3746_v7 = vsel %vm3745_vm15, 1, %v7215_v47  ;;  %v3726_v51 = vshrl.u32 %v3725_v12, 4  ;;  %v2899_v52 = vld [vmem:[#allocation2 + $0x136] sm:$0xff]  ;;  %v2900_v56 = vld [vmem:[#allocation2 + $0x13e] sm:$0xff] }
 0x2ad   : > { %v2161_v62 = vpop.f32.mrf.mxu1  ;;  %v3748_v11 = vadd.s32 %v3746_v7, %v3740_v15  ;;  %v6911_v24 = vadd.s32 160, %v5964_v6  ;;  %v6919_v29 = vpop.f32.mrf.mxu0  ;;  %v3744_v55 = vshrl.u32 %v6877_v18, 16  ;;  %vm3749_vm1 = vc.u32 %v3747_v59, %v3743_v57  ;;  %v2285_v15 = vld [vmem:[#allocation2 + $0x134] sm:$0xff] }
 0x2ae   : > { %v3152_v53 = vadd.f32 %v6833_v2, %v2845_v30  ;;  %5173 = vmatmul.msk.f32.gmra.mxu2 %vm269_vm0, %v6904_v10  ;;  %v6917_v40 = vadd.f32 %v2161_v62, %v5887_v28  ;;  %v3727_v5 = vmul.u32 18, %v3726_v51  ;;  %v3750_v14 = vsel %vm3749_vm1, 1, %v7215_v47 }
 0x2af   : > { %5210 = vmatmul.msk.f32.gmra.mxu3 %vm269_vm0, %v2591_v50  ;;  %v3763_v2 = vand.u32 65535, %v6908_v32  ;;  %v6926_v54 = vadd.s32 168, %v5964_v6  ;;  %v3752_v1 = vadd.s32 %v3750_v14, %v3748_v11  ;;  %v3764_v27 = vshrl.u32 %v6908_v32, 16 }
 0x2b0   : > { %v4557_v28 = vsel %vm6900_vm14, %v3152_v53, 0.0  ;;  %5137 = vmatmul.msk.f32.gmra.mxu1 %vm269_vm0, %v6860_v35  ;;  %v3792_v33 = vand.u32 65535, %v6911_v24  ;;  %v3728_v20 = vsub.s32 %v6773_v4, %v3727_v5  ;;  %5248 = vmatmul.msk.f32.gmra.mxu0 %vm269_vm0, %v2899_v52 }
 0x2b1   : > { %v4608_v37 = vsel %vm269_vm0, %v4557_v28, 0.0  ;;  %v4672_v21 = vmul.f32 %v4557_v28, %v4557_v28  ;;  %4786 = vst.msk [vmem:[%s6151_s10 + $0x80] sm:$0xff] %vm269_vm0, %v4557_v28  ;;  %v2465_v34 = vpop.f32.mrf.mxu2  ;;  %v3766_v42 = vmul.u32 14564, %v3763_v2  ;;  %v3753_v35 = vadd.s32 %v3752_v1, %v3742_v23  ;;  %v2286_v28 = vld [vmem:[#allocation2 + $0x13c] sm:$0xff] }
 0x2b2   : > { %v4609_v49 = vadd.f32 %v4608_v37, %v4607_v8  ;;  %v2539_v18 = vadd.f32 %v2465_v34, %v2232_v26  ;;  %v2772_v58 = vpop.f32.mrf.mxu3  ;;  %v3767_v25 = vmul.u32 58254, %v3763_v2  ;;  %vm4270_vm2 = vcmp.ne.s32.totalorder %v3728_v20, 0 }
 0x2b3   : > { %v4723_v39 = vsel %vm269_vm0, %v4672_v21, 0.0  ;;  %vm4306_vm3 = vcmp.lt.s32.totalorder %v3728_v20, 0  ;;  %v4378_v45 = vadd.s32 18, %v3728_v20  ;;  %v3754_v13 = vadd.s32 %v3753_v35, %v3744_v55 }
 0x2b4   : > { %v4724_v63 = vadd.f32 %v4723_v39, %v4722_v9  ;;  %v2846_v22 = vadd.f32 %v2772_v58, %v2539_v18  ;;  %vm4342_vm4 = vmand %vm4306_vm3, %vm4270_vm2  ;;  %v3768_v4 = vmul.u32 14564, %v3764_v27  ;;  %v3769_v41 = vmul.u32 58254, %v3764_v27 }
 0x2b5   : > { %v4414_v44 = vsel %vm4342_vm4, %v4378_v45, %v3728_v20  ;;  %v2164_v16 = vpop.f32.mrf.mxu1  ;;  %v3770_v8 = vshll.u32 %v3767_v25, 16  ;;  %v3793_v26 = vshrl.u32 %v6911_v24, 16  ;;  %v3755_v23 = vshrl.u32 %v3754_v13, 4  ;;  %v6946_v7 = vpop.f32.mrf.mxu0  ;;  %v2593_v20 = vld [vmem:[#allocation2 + $0x13d] sm:$0xff] }
 0x2b6   : > { %v3153_v36 = vadd.f32 %v6874_v46, %v2846_v22  ;;  %vm4450_vm5 = vcmp.lt.s32.totalorder %v4414_v44, 16  ;;  %5174 = vmatmul.msk.f32.gmra.mxu2 %vm269_vm0, %v2285_v15  ;;  %v3771_v57 = vshrl.u32 %v3767_v25, 16  ;;  %v3772_v60 = vshll.u32 %v3768_v4, 16 }
 0x2b7   : > { %5211 = vmatmul.msk.f32.gmra.mxu3 %vm269_vm0, %v2592_v48  ;;  %v3773_v12 = vshrl.u32 %v3768_v4, 16  ;;  %vm3774_vm6 = vc.u32 %v3766_v42, %v3770_v8  ;;  %v3776_v9 = vadd.s32 %v3770_v8, %v3766_v42  ;;  %v3756_v50 = vmul.u32 18, %v3755_v23 }
 0x2b8   : > { %v4558_v30 = vsel %vm4450_vm5, %v3153_v36, 0.0  ;;  %5138 = vmatmul.msk.f32.gmra.mxu1 %vm269_vm0, %v6904_v10  ;;  %v3775_v46 = vsel %vm3774_vm6, 1, %v7215_v47  ;;  %v3795_v59 = vmul.u32 14564, %v3792_v33  ;;  %5249 = vmatmul.msk.f32.gmra.mxu0 %vm269_vm0, %v2900_v56  ;;  %v3796_v27 = vmul.u32 58254, %v3792_v33 }
 0x2b9   : > { %v4610_v62 = vsel %vm269_vm0, %v4558_v30, 0.0  ;;  %v4673_v51 = vmul.f32 %v4558_v30, %v4558_v30  ;;  %4787 = vst.msk [vmem:[%s6151_s10 + $0x88] sm:$0xff] %vm269_vm0, %v4558_v30  ;;  %v2468_v11 = vpop.f32.mrf.mxu2  ;;  %v3777_v53 = vadd.s32 %v3775_v46, %v3769_v41  ;;  %vm3778_vm7 = vc.u32 %v3776_v9, %v3772_v60 }
 0x2ba   : > { %v4611_v55 = vadd.f32 %v4610_v62, %v4609_v49  ;;  %v2540_v52 = vadd.f32 %v2468_v11, %v6917_v40  ;;  %v2775_v5 = vpop.f32.mrf.mxu3  ;;  %v3757_v10 = vsub.s32 %v6828_v43, %v3756_v50  ;;  %v3779_v14 = vsel %vm3778_vm7, 1, %v7215_v47 }
 0x2bb   : > { %v4725_v2 = vsel %vm269_vm0, %v4673_v51, 0.0  ;;  %v3781_v1 = vadd.s32 %v3779_v14, %v3777_v53  ;;  %v3797_v37 = vmul.u32 14564, %v3793_v26  ;;  %v3798_v18 = vmul.u32 58254, %v3793_v26 }
 0x2bc   : > { %v4726_v21 = vadd.f32 %v4725_v2, %v4724_v63  ;;  %v2847_v34 = vadd.f32 %v2775_v5, %v2540_v52  ;;  %vm4271_vm8 = vcmp.ne.s32.totalorder %v3757_v10, 0  ;;  %vm4307_vm9 = vcmp.lt.s32.totalorder %v3757_v10, 0 }
 0x2bd   : > { %vm6957_vm10 = vmand %vm4307_vm9, %vm4271_vm8  ;;  %v4379_v40 = vadd.s32 18, %v3757_v10  ;;  %v2167_v49 = vpop.f32.mrf.mxu1  ;;  %v3782_v43 = vadd.s32 %v3781_v1, %v3771_v57  ;;  %v3799_v58 = vshll.u32 %v3796_v27, 16  ;;  %v2234_v35 = vadd.f32 %v2164_v16, %v5894_v61  ;;  %v3088_v23 = vpop.f32.mrf.mxu0 }
 0x2be   : > { %v3154_v25 = vadd.f32 %v6919_v29, %v2847_v34  ;;  %5175 = vmatmul.msk.f32.gmra.mxu2 %vm269_vm0, %v2286_v28  ;;  %v3800_v33 = vshrl.u32 %v3796_v27, 16  ;;  %v3801_v39 = vshll.u32 %v3797_v37, 16  ;;  %v3802_v63 = vshrl.u32 %v3797_v37, 16 }
 0x2bf   : > { %v4415_v45 = vsel %vm6957_vm10, %v4379_v40, %v3757_v10  ;;  %5212 = vmatmul.msk.f32.gmra.mxu3 %vm269_vm0, %v2593_v20  ;;  %v3783_v15 = vadd.s32 %v3782_v43, %v3773_v12  ;;  %vm3803_vm11 = vc.u32 %v3795_v59, %v3799_v58  ;;  %v3805_v48 = vadd.s32 %v3799_v58, %v3795_v59 }
 0x2c0   : > { %vm4451_vm12 = vcmp.lt.s32.totalorder %v4415_v45, 16  ;;  %v3804_v22 = vsel %vm3803_vm11, 1, %v7215_v47  ;;  %v3821_v61 = vand.u32 65535, %v6926_v54  ;;  %v3822_v16 = vshrl.u32 %v6926_v54, 16 }
 0x2c1   : > { %v4559_v29 = vsel %vm4451_vm12, %v3154_v25, 0.0  ;;  %v2471_v13 = vpop.f32.mrf.mxu2  ;;  %v3784_v4 = vshrl.u32 %v3783_v15, 4  ;;  %v3806_v44 = vadd.s32 %v3804_v22, %v3798_v18  ;;  %vm3807_vm13 = vc.u32 %v3805_v48, %v3801_v39 }
 0x2c2   : > { %v4612_v41 = vsel %vm269_vm0, %v4559_v29, 0.0  ;;  %v4674_v8 = vmul.f32 %v4559_v29, %v4559_v29  ;;  %4788 = vst.msk [vmem:[%s6151_s10 + $0x90] sm:$0xff] %vm269_vm0, %v4559_v29  ;;  %v2541_v26 = vadd.f32 %v2471_v13, %v2234_v35  ;;  %v2778_v36 = vpop.f32.mrf.mxu3  ;;  %v3808_v60 = vsel %vm3807_vm13, 1, %v7215_v47 }
 0x2c3   : > { %v4613_v57 = vadd.f32 %v4612_v41, %v4611_v55  ;;  %v3785_v56 = vmul.u32 18, %v3784_v4  ;;  %v3824_v12 = vmul.u32 14564, %v3821_v61  ;;  %v3810_v50 = vadd.s32 %v3808_v60, %v3806_v44 }
 0x2c4   : > { %v4727_v9 = vsel %vm269_vm0, %v4674_v8, 0.0  ;;  %v2848_v30 = vadd.f32 %v2778_v36, %v2541_v26  ;;  %v3825_v46 = vmul.u32 58254, %v3821_v61  ;;  %v2235_v62 = vadd.f32 %v2167_v49, %v5901_v17 }
 0x2c5   : > { %v4728_v59 = vadd.f32 %v4727_v9, %v4726_v21  ;;  %v3786_v51 = vsub.s32 %v6908_v32, %v3785_v56  ;;  %v2170_v11 = vpop.f32.mrf.mxu1  ;;  %v6977_v53 = vmul.u32 14564, %v3822_v16  ;;  %v3811_v55 = vadd.s32 %v3810_v50, %v3800_v33  ;;  %v3091_v33 = vpop.f32.mrf.mxu0 }
 0x2c6   : > { %v3155_v52 = vadd.f32 %v6946_v7, %v2848_v30  ;;  %v3827_v5 = vmul.u32 58254, %v3822_v16  ;;  %v3828_v10 = vshll.u32 %v3825_v46, 16  ;;  %v2236_v2 = vadd.f32 %v2170_v11, %v5908_v0 }
 0x2c7   : > { %vm4272_vm14 = vcmp.ne.s32.totalorder %v3786_v51, 0  ;;  %vm4308_vm15 = vcmp.lt.s32.totalorder %v3786_v51, 0  ;;  %v4380_v14 = vadd.s32 18, %v3786_v51  ;;  %v3812_v28 = vadd.s32 %v3811_v55, %v3802_v63 }
 0x2c8   : > { %vm4344_vm1 = vmand %vm4308_vm15, %vm4272_vm14  ;;  %v3829_v1 = vshrl.u32 %v3825_v46, 16  ;;  %v3830_v17 = vshll.u32 %v6977_v53, 16  ;;  %vm3832_vm2 = vc.u32 %v3824_v12, %v3828_v10  ;;  %v3834_v7 = vadd.s32 %v3828_v10, %v3824_v12 }
 0x2c9   : > { %v4416_v32 = vsel %vm4344_vm1, %v4380_v14, %v3786_v51  ;;  %v2474_v27 = vpop.f32.mrf.mxu2  ;;  %v3833_v37 = vsel %vm3832_vm2, 1, %v7215_v47  ;;  %v6984_v21 = vadd.s32 176, %v5964_v6  ;;  %v3813_v42 = vshrl.u32 %v3812_v28, 4 }
 0x2ca   : > { %vm4452_vm3 = vcmp.lt.s32.totalorder %v4416_v32, 16  ;;  %v2542_v34 = vadd.f32 %v2474_v27, %v2235_v62  ;;  %v2781_v20 = vpop.f32.mrf.mxu3  ;;  %v3835_v0 = vadd.s32 %v3833_v37, %v3827_v5  ;;  %vm3836_vm4 = vc.u32 %v3834_v7, %v3830_v17 }
 0x2cb   : > { %v4560_v40 = vsel %vm4452_vm3, %v3155_v52, 0.0  ;;  %v3850_v49 = vand.u32 65535, %v6984_v21  ;;  %v3851_v43 = vshrl.u32 %v6984_v21, 16  ;;  %v3814_v25 = vmul.u32 18, %v3813_v42 }
 0x2cc   : > { %v4614_v18 = vsel %vm269_vm0, %v4560_v40, 0.0  ;;  %v4675_v58 = vmul.f32 %v4560_v40, %v4560_v40  ;;  %4789 = vst.msk [vmem:[%s6151_s10 + $0x98] sm:$0xff] %vm269_vm0, %v4560_v40  ;;  %v2849_v35 = vadd.f32 %v2781_v20, %v2542_v34  ;;  %v3831_v15 = vshrl.u32 %v6977_v53, 16 }
 0x2cd   : > { %v4615_v39 = vadd.f32 %v4614_v18, %v4613_v57  ;;  %v2173_v45 = vpop.f32.mrf.mxu1  ;;  %v3837_v63 = vsel %vm3836_vm4, 1, %v7215_v47  ;;  %v3854_v22 = vmul.u32 58254, %v3850_v49  ;;  %v3815_v29 = vsub.s32 %v6911_v24, %v3814_v25 }
 0x2ce   : > { %v4729_v48 = vsel %vm269_vm0, %v4675_v58, 0.0  ;;  %v3156_v61 = vadd.f32 %v3088_v23, %v2849_v35  ;;  %v3853_v13 = vmul.u32 14564, %v3850_v49  ;;  %v3839_v44 = vadd.s32 %v3837_v63, %v3835_v0 }
 0x2cf   : > { %v4730_v4 = vadd.f32 %v4729_v48, %v4728_v59  ;;  %v3855_v16 = vmul.u32 14564, %v3851_v43  ;;  %v3856_v41 = vmul.u32 58254, %v3851_v43  ;;  %vm4273_vm5 = vcmp.ne.s32.totalorder %v3815_v29, 0 }
 0x2d0   : > { %vm4309_vm6 = vcmp.lt.s32.totalorder %v3815_v29, 0  ;;  %v4381_v8 = vadd.s32 18, %v3815_v29  ;;  %v3857_v26 = vshll.u32 %v3854_v22, 16  ;;  %v3840_v57 = vadd.s32 %v3839_v44, %v3829_v1 }
 0x2d1   : > { %vm4345_vm7 = vmand %vm4309_vm6, %vm4273_vm5  ;;  %v2477_v36 = vpop.f32.mrf.mxu2  ;;  %v3858_v56 = vshrl.u32 %v3854_v22, 16  ;;  %v3859_v60 = vshll.u32 %v3855_v16, 16  ;;  %v6997_v46 = vadd.s32 184, %v5964_v6  ;;  %v2237_v14 = vadd.f32 %v2173_v45, %v5915_v19 }
 0x2d2   : > { %v4417_v12 = vsel %vm4345_vm7, %v4381_v8, %v3815_v29  ;;  %v2543_v9 = vadd.f32 %v2477_v36, %v2236_v2  ;;  %v2784_v23 = vpop.f32.mrf.mxu3  ;;  %vm3861_vm8 = vc.u32 %v3853_v13, %v3857_v26  ;;  %v3863_v24 = vadd.s32 %v3857_v26, %v3853_v13  ;;  %v3094_v2 = vpop.f32.mrf.mxu0 }
 0x2d3   : > { %vm4453_vm9 = vcmp.lt.s32.totalorder %v4417_v12, 16  ;;  %v3841_v30 = vadd.s32 %v3840_v57, %v3831_v15  ;;  %v3862_v50 = vsel %vm3861_vm8, 1, %v7215_v47  ;;  %v3860_v28 = vshrl.u32 %v3855_v16, 16 }
 0x2d4   : > { %v4561_v59 = vsel %vm4453_vm9, %v3156_v61, 0.0  ;;  %v2850_v62 = vadd.f32 %v2784_v23, %v2543_v9  ;;  %v3864_v51 = vadd.s32 %v3862_v50, %v3856_v41  ;;  %vm3865_vm10 = vc.u32 %v3863_v24, %v3859_v60 }
 0x2d5   : > { %v4616_v11 = vsel %vm269_vm0, %v4561_v59, 0.0  ;;  %v4676_v53 = vmul.f32 %v4561_v59, %v4561_v59  ;;  %4790 = vst.msk [vmem:[%s6151_s10 + $0xa0] sm:$0xff] %vm269_vm0, %v4561_v59  ;;  %v3842_v52 = vshrl.u32 %v3841_v30, 4  ;;  %v2176_v55 = vpop.f32.mrf.mxu1  ;;  %v3866_v5 = vsel %vm3865_vm10, 1, %v7215_v47 }
 0x2d6   : > { %v4617_v10 = vadd.f32 %v4616_v11, %v4615_v39  ;;  %v3868_v1 = vadd.s32 %v3866_v5, %v3864_v51  ;;  %v3879_v27 = vand.u32 65535, %v6997_v46  ;;  %v3880_v37 = vshrl.u32 %v6997_v46, 16 }
 0x2d7   : > { %v4731_v17 = vsel %vm269_vm0, %v4676_v53, 0.0  ;;  %v3843_v32 = vmul.u32 18, %v3842_v52  ;;  %v3157_v34 = vadd.f32 %v3091_v33, %v2850_v62  ;;  %v7008_v42 = vadd.s32 192, %v5964_v6 }
 0x2d8   : > { %v4732_v7 = vadd.f32 %v4731_v17, %v4730_v4  ;;  %v3869_v20 = vadd.s32 %v3868_v1, %v3858_v56  ;;  %v3882_v19 = vmul.u32 14564, %v3879_v27  ;;  %v3883_v49 = vmul.u32 58254, %v3879_v27 }
 0x2d9   : > { %v3844_v0 = vsub.s32 %v6926_v54, %v3843_v32  ;;  %v2480_v40 = vpop.f32.mrf.mxu2  ;;  %v7011_v43 = vmul.u32 14564, %v3880_v37  ;;  %v2238_v58 = vadd.f32 %v2176_v55, %v5922_v3  ;;  %v3885_v39 = vmul.u32 58254, %v3880_v37 }
 0x2da   : > { %v2544_v18 = vadd.f32 %v2480_v40, %v2237_v14  ;;  %v2787_v35 = vpop.f32.mrf.mxu3  ;;  %v3870_v25 = vadd.s32 %v3869_v20, %v3860_v28  ;;  %v3886_v45 = vshll.u32 %v3883_v49, 16  ;;  %v3908_v22 = vand.u32 65535, %v7008_v42  ;;  %v3097_v56 = vpop.f32.mrf.mxu0 }
 0x2db   : > { %vm4274_vm11 = vcmp.ne.s32.totalorder %v3844_v0, 0  ;;  %vm4310_vm12 = vcmp.lt.s32.totalorder %v3844_v0, 0  ;;  %v4382_v33 = vadd.s32 18, %v3844_v0  ;;  %v3888_v54 = vshll.u32 %v7011_v43, 16 }
 0x2dc   : > { %vm4346_vm13 = vmand %vm4310_vm12, %vm4274_vm11  ;;  %v2851_v15 = vadd.f32 %v2787_v35, %v2544_v18  ;;  %v3871_v63 = vshrl.u32 %v3870_v25, 4  ;;  %v3887_v29 = vshrl.u32 %v3883_v49, 16  ;;  %vm3890_vm14 = vc.u32 %v3882_v19, %v3886_v45 }
 0x2dd   : > { %v4418_v48 = vsel %vm4346_vm13, %v4382_v33, %v3844_v0  ;;  %v2179_v61 = vpop.f32.mrf.mxu1  ;;  %v3892_v3 = vadd.s32 %v3886_v45, %v3882_v19  ;;  %v3889_v44 = vshrl.u32 %v7011_v43, 16  ;;  %v3891_v41 = vsel %vm3890_vm14, 1, %v7215_v47 }
 0x2de   : > { %vm4454_vm15 = vcmp.lt.s32.totalorder %v4418_v48, 16  ;;  %v3158_v13 = vadd.f32 %v3094_v2, %v2851_v15  ;;  %v3872_v4 = vmul.u32 18, %v3871_v63  ;;  %v3909_v8 = vshrl.u32 %v7008_v42, 16 }
 0x2df   : > { %v4562_v16 = vsel %vm4454_vm15, %v3157_v34, 0.0  ;;  %vm3894_vm1 = vc.u32 %v3892_v3, %v3888_v54  ;;  %v3893_v60 = vadd.s32 %v3891_v41, %v3885_v39  ;;  %v3911_v24 = vmul.u32 14564, %v3908_v22 }
 0x2e0   : > { %v4618_v26 = vsel %vm269_vm0, %v4562_v16, 0.0  ;;  %v4677_v36 = vmul.f32 %v4562_v16, %v4562_v16  ;;  %4791 = vst.msk [vmem:[%s6151_s10 + $0xa8] sm:$0xff] %vm269_vm0, %v4562_v16  ;;  %v3873_v57 = vsub.s32 %v6984_v21, %v3872_v4  ;;  %v3895_v23 = vsel %vm3894_vm1, 1, %v7215_v47 }
 0x2e1   : > { %v4619_v12 = vadd.f32 %v4618_v26, %v4617_v10  ;;  %v2483_v9 = vpop.f32.mrf.mxu2  ;;  %v3912_v30 = vmul.u32 58254, %v3908_v22  ;;  %v3897_v53 = vadd.s32 %v3895_v23, %v3893_v60  ;;  %v3913_v21 = vmul.u32 14564, %v3909_v8 }
 0x2e2   : > { %v4733_v50 = vsel %vm269_vm0, %v4677_v36, 0.0  ;;  %vm4275_vm2 = vcmp.ne.s32.totalorder %v3873_v57, 0  ;;  %vm4311_vm3 = vcmp.lt.s32.totalorder %v3873_v57, 0  ;;  %v4383_v59 = vadd.s32 18, %v3873_v57  ;;  %v2790_v62 = vpop.f32.mrf.mxu3  ;;  %v3100_v33 = vpop.f32.mrf.mxu0 }
 0x2e3   : > { %v4734_v51 = vadd.f32 %v4733_v50, %v4732_v7  ;;  %vm4347_vm4 = vmand %vm4311_vm3, %vm4275_vm2  ;;  %v2545_v11 = vadd.f32 %v2483_v9, %v2238_v58  ;;  %v3915_v55 = vshll.u32 %v3912_v30, 16  ;;  %v7026_v5 = vadd.s32 200, %v5964_v6 }
 0x2e4   : > { %v4419_v52 = vsel %vm4347_vm4, %v4383_v59, %v3873_v57  ;;  %v2239_v10 = vadd.f32 %v2179_v61, %v5929_v31  ;;  %v3898_v14 = vadd.s32 %v3897_v53, %v3887_v29  ;;  %v3914_v28 = vmul.u32 58254, %v3909_v8  ;;  %v7292_v53 = vld [vmem:[#allocation3_spill] sm:$0xff] }
 0x2e5   : > { %vm4455_vm5 = vcmp.lt.s32.totalorder %v4419_v52, 16  ;;  %v2182_v2 = vpop.f32.mrf.mxu1  ;;  %v3916_v17 = vshrl.u32 %v3912_v30, 16  ;;  %v3917_v32 = vshll.u32 %v3913_v21, 16  ;;  %vm3919_vm6 = vc.u32 %v3911_v24, %v3915_v55 }
 0x2e6   : > { %v4563_v1 = vsel %vm4455_vm5, %v3158_v13, 0.0  ;;  %v2852_v7 = vadd.f32 %v2790_v62, %v2545_v11  ;;  %v3899_v34 = vadd.s32 %v3898_v14, %v3889_v44  ;;  %v3920_v0 = vsel %vm3919_vm6, 1, %v7215_v47 }
 0x2e7   : > { %v4620_v27 = vsel %vm269_vm0, %v4563_v1, 0.0  ;;  %v4678_v37 = vmul.f32 %v4563_v1, %v4563_v1  ;;  %4792 = vst.msk [vmem:[%s6151_s10 + $0xb0] sm:$0xff] %vm269_vm0, %v4563_v1  ;;  %v3921_v40 = vadd.s32 %v3915_v55, %v3911_v24  ;;  %v3937_v31 = vand.u32 65535, %v7026_v5 }
 0x2e8   : > { %v4621_v20 = vadd.f32 %v4620_v27, %v4619_v12  ;;  %v3900_v49 = vshrl.u32 %v3899_v34, 4  ;;  %v3922_v18 = vadd.s32 %v3920_v0, %v3914_v28  ;;  %v3938_v58 = vshrl.u32 %v7026_v5, 16 }
 0x2e9   : > { %v4735_v19 = vsel %vm269_vm0, %v4678_v37, 0.0  ;;  %v2486_v43 = vpop.f32.mrf.mxu2  ;;  %vm3923_vm7 = vc.u32 %v3921_v40, %v3917_v32  ;;  %v3940_v45 = vmul.u32 14564, %v3937_v31  ;;  %v3941_v54 = vmul.u32 58254, %v3937_v31 }
 0x2ea   : > { %v4736_v35 = vadd.f32 %v4735_v19, %v4734_v51  ;;  %v2546_v25 = vadd.f32 %v2486_v43, %v2239_v10  ;;  %v2793_v39 = vpop.f32.mrf.mxu3  ;;  %v3901_v15 = vmul.u32 18, %v3900_v49  ;;  %v3924_v63 = vsel %vm3923_vm7, 1, %v7215_v47  ;;  %v3103_v28 = vpop.f32.mrf.mxu0 }
 0x2eb   : > { %v3942_v22 = vmul.u32 14564, %v3938_v58  ;;  %v2240_v48 = vadd.f32 %v2182_v2, %v5936_v38  ;;  %v3918_v61 = vshrl.u32 %v3913_v21, 16  ;;  %v3926_v29 = vadd.s32 %v3924_v63, %v3922_v18 }
 0x2ec   : > { %v7039_v3 = vadd.s32 208, %v5964_v6  ;;  %v3902_v13 = vsub.s32 %v6997_v46, %v3901_v15  ;;  %v2853_v4 = vadd.f32 %v2793_v39, %v2546_v25  ;;  %v3943_v16 = vmul.u32 58254, %v3938_v58 }
 0x2ed   : > { %v2185_v44 = vpop.f32.mrf.mxu1  ;;  %v3944_v41 = vshll.u32 %v3941_v54, 16  ;;  %v3159_v8 = vadd.f32 %v3097_v56, %v2852_v7  ;;  %v3927_v26 = vadd.s32 %v3926_v29, %v3916_v17  ;;  %v3945_v36 = vshrl.u32 %v3941_v54, 16 }
 0x2ee   : > { %v3946_v57 = vshll.u32 %v3942_v22, 16  ;;  %vm4276_vm8 = vcmp.ne.s32.totalorder %v3902_v13, 0  ;;  %vm4312_vm9 = vcmp.lt.s32.totalorder %v3902_v13, 0  ;;  %v4384_v60 = vadd.s32 18, %v3902_v13 }
 0x2ef   : > { %vm3948_vm10 = vc.u32 %v3940_v45, %v3944_v41  ;;  %vm4348_vm11 = vmand %vm4312_vm9, %vm4276_vm8  ;;  %v3928_v38 = vadd.s32 %v3927_v26, %v3918_v61  ;;  %v3950_v9 = vadd.s32 %v3944_v41, %v3940_v45  ;;  %v3966_v23 = vand.u32 65535, %v7039_v3 }
 0x2f0   : > { %v3949_v12 = vsel %vm3948_vm10, 1, %v7215_v47  ;;  %v4420_v46 = vsel %vm4348_vm11, %v4384_v60, %v3902_v13  ;;  %v3160_v24 = vadd.f32 %v3100_v33, %v2853_v4  ;;  %v3967_v56 = vshrl.u32 %v7039_v3, 16 }
 0x2f1   : > { %v2489_v30 = vpop.f32.mrf.mxu2  ;;  %v3951_v50 = vadd.s32 %v3949_v12, %v3943_v16  ;;  %vm4456_vm12 = vcmp.lt.s32.totalorder %v4420_v46, 16  ;;  %v3929_v59 = vshrl.u32 %v3928_v38, 4  ;;  %vm3952_vm13 = vc.u32 %v3950_v9, %v3946_v57 }
 0x2f2   : > { %v2547_v62 = vadd.f32 %v2489_v30, %v2240_v48  ;;  %v2796_v51 = vpop.f32.mrf.mxu3  ;;  %v4564_v11 = vsel %vm4456_vm12, %v3159_v8, 0.0  ;;  %v2241_v21 = vadd.f32 %v2185_v44, %v7292_v53  ;;  %v3953_v52 = vsel %vm3952_vm13, 1, %v7215_v47  ;;  %v3106_v60 = vpop.f32.mrf.mxu0 }
 0x2f3   : > { %v3970_v55 = vmul.u32 58254, %v3966_v23  ;;  %v4622_v10 = vsel %vm269_vm0, %v4564_v11, 0.0  ;;  %v4679_v14 = vmul.f32 %v4564_v11, %v4564_v11  ;;  %4793 = vst.msk [vmem:[%s6151_s10 + $0xb8] sm:$0xff] %vm269_vm0, %v4564_v11  ;;  %v3930_v2 = vmul.u32 18, %v3929_v59  ;;  %v7293_v11 = vld [vmem:[#allocation4_spill] sm:$0xff] }
 0x2f4   : > { %v3947_v1 = vshrl.u32 %v3942_v22, 16  ;;  %v4623_v17 = vadd.f32 %v4622_v10, %v4621_v20  ;;  %v3955_v32 = vadd.s32 %v3953_v52, %v3951_v50  ;;  %v3969_v27 = vmul.u32 14564, %v3966_v23 }
 0x2f5   : > { %v3971_v37 = vmul.u32 14564, %v3967_v56  ;;  %v4737_v7 = vsel %vm269_vm0, %v4679_v14, 0.0  ;;  %v3931_v34 = vsub.s32 %v7008_v42, %v3930_v2  ;;  %v2854_v0 = vadd.f32 %v2796_v51, %v2547_v62  ;;  %v2188_v40 = vpop.f32.mrf.mxu1  ;;  %v7294_v2 = vld [vmem:[#allocation5_spill] sm:$0xff] }
 0x2f6   : > { %v7053_v31 = vadd.s32 216, %v5964_v6  ;;  %v4738_v19 = vadd.f32 %v4737_v7, %v4736_v35  ;;  %v3956_v49 = vadd.s32 %v3955_v32, %v3945_v36  ;;  %v3972_v43 = vmul.u32 58254, %v3967_v56 }
 0x2f7   : > { %v3973_v18 = vshll.u32 %v3970_v55, 16  ;;  %vm4277_vm14 = vcmp.ne.s32.totalorder %v3931_v34, 0  ;;  %vm4313_vm15 = vcmp.lt.s32.totalorder %v3931_v34, 0  ;;  %v4385_v58 = vadd.s32 18, %v3931_v34 }
 0x2f8   : > { %v3975_v20 = vshll.u32 %v3971_v37, 16  ;;  %vm4349_vm1 = vmand %vm4313_vm15, %vm4277_vm14  ;;  %v3957_v25 = vadd.s32 %v3956_v49, %v3947_v1  ;;  %v3974_v33 = vshrl.u32 %v3970_v55, 16  ;;  %v3995_v35 = vand.u32 65535, %v7053_v31 }
 0x2f9   : > { %v2492_v39 = vpop.f32.mrf.mxu2  ;;  %vm3977_vm2 = vc.u32 %v3969_v27, %v3973_v18  ;;  %v3979_v45 = vadd.s32 %v3973_v18, %v3969_v27  ;;  %v4421_v42 = vsel %vm4349_vm1, %v4385_v58, %v3931_v34  ;;  %v3976_v29 = vshrl.u32 %v3971_v37, 16 }
 0x2fa   : > { %v2548_v15 = vadd.f32 %v2492_v39, %v2241_v21  ;;  %v2799_v63 = vpop.f32.mrf.mxu3  ;;  %v3978_v54 = vsel %vm3977_vm2, 1, %v7215_v47  ;;  %vm4457_vm3 = vcmp.lt.s32.totalorder %v4421_v42, 16  ;;  %v3958_v22 = vshrl.u32 %v3957_v25, 4  ;;  %v3109_v25 = vpop.f32.mrf.mxu0 }
 0x2fb   : > { %v3980_v48 = vadd.s32 %v3978_v54, %v3972_v43  ;;  %vm3981_vm4 = vc.u32 %v3979_v45, %v3975_v20  ;;  %v4565_v61 = vsel %vm4457_vm3, %v3160_v24, 0.0  ;;  %v3996_v4 = vshrl.u32 %v7053_v31, 16 }
 0x2fc   : > { %v3982_v13 = vsel %vm3981_vm4, 1, %v7215_v47  ;;  %v4624_v44 = vsel %vm269_vm0, %v4565_v61, 0.0  ;;  %v4680_v16 = vmul.f32 %v4565_v61, %v4565_v61  ;;  %4794 = vst.msk [vmem:[%s6151_s10 + $0xc0] sm:$0xff] %vm269_vm0, %v4565_v61  ;;  %v3959_v41 = vmul.u32 18, %v3958_v22 }
 0x2fd   : > { %v3984_v8 = vadd.s32 %v3982_v13, %v3980_v48  ;;  %v4625_v26 = vadd.f32 %v4624_v44, %v4623_v17  ;;  %v3161_v36 = vadd.f32 %v3103_v28, %v2854_v0  ;;  %v2855_v57 = vadd.f32 %v2799_v63, %v2548_v15  ;;  %v2191_v24 = vpop.f32.mrf.mxu1 }
 0x2fe   : > { %v4739_v38 = vsel %vm269_vm0, %v4680_v16, 0.0  ;;  %v3960_v12 = vsub.s32 %v7026_v5, %v3959_v41  ;;  %v3999_v23 = vmul.u32 58254, %v3995_v35  ;;  %v3998_v30 = vmul.u32 14564, %v3995_v35 }
 0x2ff   : > { %v3985_v9 = vadd.s32 %v3984_v8, %v3974_v33  ;;  %v4740_v46 = vadd.f32 %v4739_v38, %v4738_v19  ;;  %v7064_v50 = vmul.u32 14564, %v3996_v4  ;;  %v7067_v56 = vadd.s32 224, %v5964_v6 }
 0x300   : > { %vm4278_vm5 = vcmp.ne.s32.totalorder %v3960_v12, 0  ;;  %vm4314_vm6 = vcmp.lt.s32.totalorder %v3960_v12, 0  ;;  %v4386_v59 = vadd.s32 18, %v3960_v12  ;;  %v2242_v53 = vadd.f32 %v2188_v40, %v7293_v11 }
 0x301   : > { %v3986_v62 = vadd.s32 %v3985_v9, %v3976_v29  ;;  %v2495_v51 = vpop.f32.mrf.mxu2  ;;  %vm4350_vm7 = vmand %vm4314_vm6, %vm4278_vm5  ;;  %v3162_v21 = vadd.f32 %v3106_v60, %v2855_v57  ;;  %v4001_v52 = vmul.u32 58254, %v3996_v4  ;;  %v4002_v55 = vshll.u32 %v3999_v23, 16 }
 0x302   : > { %v2802_v5 = vpop.f32.mrf.mxu3  ;;  %v4422_v10 = vsel %vm4350_vm7, %v4386_v59, %v3960_v12  ;;  %v2243_v28 = vadd.f32 %v2191_v24, %v7294_v2  ;;  %v4004_v1 = vshll.u32 %v7064_v50, 16  ;;  %v4024_v32 = vand.u32 65535, %v7067_v56  ;;  %v7295_v12 = vld [vmem:[#allocation6_spill] sm:$0xff] }
 0x303   : > { %v3987_v14 = vshrl.u32 %v3986_v62, 4  ;;  %vm4458_vm8 = vcmp.lt.s32.totalorder %v4422_v10, 16  ;;  %vm4006_vm9 = vc.u32 %v3998_v30, %v4002_v55  ;;  %v4008_v17 = vadd.s32 %v4002_v55, %v3998_v30  ;;  %v3112_v55 = vpop.f32.mrf.mxu0 }
 0x304   : > { %v4566_v27 = vsel %vm4458_vm8, %v3161_v36, 0.0  ;;  %v2549_v7 = vadd.f32 %v2495_v51, %v2242_v53  ;;  %v4007_v34 = vsel %vm4006_vm9, 1, %v7215_v47  ;;  %v4025_v49 = vshrl.u32 %v7067_v56, 16 }
 0x305   : > { %v3988_v37 = vmul.u32 18, %v3987_v14  ;;  %v4626_v0 = vsel %vm269_vm0, %v4566_v27, 0.0  ;;  %v4681_v40 = vmul.f32 %v4566_v27, %v4566_v27  ;;  %4795 = vst.msk [vmem:[%s6151_s10 + $0xc8] sm:$0xff] %vm269_vm0, %v4566_v27  ;;  %v4009_v19 = vadd.s32 %v4007_v34, %v4001_v52  ;;  %v2194_v13 = vpop.f32.mrf.mxu1 }
 0x306   : > { %v4627_v43 = vadd.f32 %v4626_v0, %v4625_v26  ;;  %v4003_v58 = vshrl.u32 %v3999_v23, 16  ;;  %vm4010_vm10 = vc.u32 %v4008_v17, %v4004_v1  ;;  %v4027_v33 = vmul.u32 14564, %v4024_v32 }
 0x307   : > { %v3989_v18 = vsub.s32 %v7039_v3, %v3988_v37  ;;  %v4741_v20 = vsel %vm269_vm0, %v4681_v40, 0.0  ;;  %v4011_v39 = vsel %vm4010_vm10, 1, %v7215_v47  ;;  %v4028_v45 = vmul.u32 58254, %v4024_v32 }
 0x308   : > { %v4742_v42 = vadd.f32 %v4741_v20, %v4740_v46  ;;  %v4005_v54 = vshrl.u32 %v7064_v50, 16  ;;  %v4013_v35 = vadd.s32 %v4011_v39, %v4009_v19  ;;  %v4029_v3 = vmul.u32 14564, %v4025_v49 }
 0x309   : > { %vm4279_vm11 = vcmp.ne.s32.totalorder %v3989_v18, 0  ;;  %vm4315_vm12 = vcmp.lt.s32.totalorder %v3989_v18, 0  ;;  %v4387_v15 = vadd.s32 18, %v3989_v18  ;;  %v2498_v63 = vpop.f32.mrf.mxu2  ;;  %v2856_v61 = vadd.f32 %v2802_v5, %v2549_v7 }
 0x30a   : > { %vm4351_vm13 = vmand %vm4315_vm12, %vm4279_vm11  ;;  %v2805_v22 = vpop.f32.mrf.mxu3  ;;  %v2550_v29 = vadd.f32 %v2498_v63, %v2243_v28  ;;  %v4031_v4 = vshll.u32 %v4028_v45, 16  ;;  %v4014_v44 = vadd.s32 %v4013_v35, %v4003_v58  ;;  %v4030_v16 = vmul.u32 58254, %v4025_v49 }
 0x30b   : > { %v4423_v48 = vsel %vm4351_vm13, %v4387_v15, %v3989_v18  ;;  %v4033_v41 = vshll.u32 %v4029_v3, 16  ;;  %v7083_v36 = vadd.s32 232, %v5964_v6  ;;  %v2244_v9 = vadd.f32 %v2194_v13, %v7295_v12 }
 0x30c   : > { %vm4459_vm14 = vcmp.lt.s32.totalorder %v4423_v48, 16  ;;  %vm4035_vm15 = vc.u32 %v4027_v33, %v4031_v4  ;;  %v4037_v26 = vadd.s32 %v4031_v4, %v4027_v33  ;;  %v4015_v38 = vadd.s32 %v4014_v44, %v4005_v54 }
 0x30d   : > { %v4567_v8 = vsel %vm4459_vm14, %v3162_v21, 0.0  ;;  %v4032_v46 = vshrl.u32 %v4028_v45, 16  ;;  %v4036_v24 = vsel %vm4035_vm15, 1, %v7215_v47  ;;  %v2857_v11 = vadd.f32 %v2805_v22, %v2550_v29 }
 0x30e   : > { %v4628_v57 = vsel %vm269_vm0, %v4567_v8, 0.0  ;;  %v4682_v60 = vmul.f32 %v4567_v8, %v4567_v8  ;;  %4796 = vst.msk [vmem:[%s6151_s10 + $0xd0] sm:$0xff] %vm269_vm0, %v4567_v8  ;;  %vm4039_vm1 = vc.u32 %v4037_v26, %v4033_v41  ;;  %v4016_v50 = vshrl.u32 %v4015_v38, 4 }
 0x30f   : > { %v4629_v23 = vadd.f32 %v4628_v57, %v4627_v43  ;;  %v4038_v59 = vadd.s32 %v4036_v24, %v4030_v16  ;;  %v4040_v62 = vsel %vm4039_vm1, 1, %v7215_v47  ;;  %v4053_v21 = vand.u32 65535, %v7083_v36  ;;  %v3115_v16 = vpop.f32.mrf.mxu0  ;;  %v7296_v24 = vld [vmem:[#allocation7_spill] sm:$0xff] }
 0x310   : > { %v4743_v30 = vsel %vm269_vm0, %v4682_v60, 0.0  ;;  %v4054_v5 = vshrl.u32 %v7083_v36, 16  ;;  %v4017_v52 = vmul.u32 18, %v4016_v50  ;;  %v4034_v10 = vshrl.u32 %v4029_v3, 16 }
 0x311   : > { %v4744_v51 = vadd.f32 %v4743_v30, %v4742_v42  ;;  %v2501_v53 = vpop.f32.mrf.mxu2  ;;  %v4042_v14 = vadd.s32 %v4040_v62, %v4038_v59  ;;  %v7095_v2 = vadd.s32 240, %v5964_v6  ;;  %v4056_v1 = vmul.u32 14564, %v4053_v21  ;;  %v2197_v42 = vpop.f32.mrf.mxu1 }
 0x312   : > { %v2551_v28 = vadd.f32 %v2501_v53, %v2244_v9  ;;  %v4057_v17 = vmul.u32 58254, %v4053_v21  ;;  %v4058_v32 = vmul.u32 14564, %v4054_v5  ;;  %v3163_v27 = vadd.f32 %v3109_v25, %v2856_v61  ;;  %v2808_v34 = vpop.f32.mrf.mxu3 }
 0x313   : > { %v4018_v37 = vsub.s32 %v7053_v31, %v4017_v52  ;;  %v4043_v7 = vadd.s32 %v4042_v14, %v4032_v46  ;;  %v3164_v0 = vadd.f32 %v3112_v55, %v2857_v11  ;;  %v4059_v40 = vmul.u32 58254, %v4054_v5 }
 0x314   : > { %v4060_v19 = vshll.u32 %v4057_v17, 16  ;;  %v4062_v49 = vshll.u32 %v4058_v32, 16  ;;  %v2858_v58 = vadd.f32 %v2808_v34, %v2551_v28  ;;  %v4082_v39 = vand.u32 65535, %v7095_v2 }
 0x315   : > { %vm4280_vm2 = vcmp.ne.s32.totalorder %v4018_v37, 0  ;;  %vm4316_vm3 = vcmp.lt.s32.totalorder %v4018_v37, 0  ;;  %v4388_v43 = vadd.s32 18, %v4018_v37  ;;  %v4044_v18 = vadd.s32 %v4043_v7, %v4034_v10 }
 0x316   : > { %vm4352_vm4 = vmand %vm4316_vm3, %vm4280_vm2  ;;  %vm4064_vm5 = vc.u32 %v4056_v1, %v4060_v19  ;;  %v4066_v20 = vadd.s32 %v4060_v19, %v4056_v1  ;;  %v4083_v45 = vshrl.u32 %v7095_v2, 16  ;;  %v4061_v15 = vshrl.u32 %v4057_v17, 16 }
 0x317   : > { %v4424_v25 = vsel %vm4352_vm4, %v4388_v43, %v4018_v37  ;;  %v4045_v33 = vshrl.u32 %v4044_v18, 4  ;;  %v4065_v31 = vsel %vm4064_vm5, 1, %v7215_v47  ;;  %v4063_v22 = vshrl.u32 %v4058_v32, 16  ;;  %v3118_v18 = vpop.f32.mrf.mxu0 }
 0x318   : > { %vm4460_vm6 = vcmp.lt.s32.totalorder %v4424_v25, 16  ;;  %v4067_v63 = vadd.s32 %v4065_v31, %v4059_v40  ;;  %vm4068_vm7 = vc.u32 %v4066_v20, %v4062_v49  ;;  %v4086_v13 = vmul.u32 58254, %v4082_v39 }
 0x319   : > { %v4568_v54 = vsel %vm4460_vm6, %v3163_v27, 0.0  ;;  %v4046_v35 = vmul.u32 18, %v4045_v33  ;;  %v4069_v3 = vsel %vm4068_vm7, 1, %v7215_v47  ;;  %v4085_v41 = vmul.u32 14564, %v4082_v39  ;;  %v2504_v60 = vpop.f32.mrf.mxu2  ;;  %v2200_v17 = vpop.f32.mrf.mxu1 }
 0x31a   : > { %v4630_v48 = vsel %vm269_vm0, %v4568_v54, 0.0  ;;  %v4683_v61 = vmul.f32 %v4568_v54, %v4568_v54  ;;  %4797 = vst.msk [vmem:[%s6151_s10 + $0xd8] sm:$0xff] %vm269_vm0, %v4568_v54  ;;  %v4071_v29 = vadd.s32 %v4069_v3, %v4067_v63  ;;  %v4087_v8 = vmul.u32 14564, %v4083_v45  ;;  %v2811_v52 = vpop.f32.mrf.mxu3 }
 0x31b   : > { %v4631_v4 = vadd.f32 %v4630_v48, %v4629_v23  ;;  %v4047_v44 = vsub.s32 %v7067_v56, %v4046_v35  ;;  %v4088_v38 = vmul.u32 58254, %v4083_v45  ;;  %v4089_v12 = vshll.u32 %v4086_v13, 16  ;;  %v7297_v45 = vld [vmem:[#allocation8_spill] sm:$0xff] }
 0x31c   : > { %v4745_v26 = vsel %vm269_vm0, %v4683_v61, 0.0  ;;  %v4072_v57 = vadd.s32 %v4071_v29, %v4061_v15  ;;  %v2245_v30 = vadd.f32 %v2197_v42, %v7296_v24  ;;  %v4091_v23 = vshll.u32 %v4087_v8, 16 }
 0x31d   : > { %v4746_v9 = vadd.f32 %v4745_v26, %v4744_v51  ;;  %vm4281_vm8 = vcmp.ne.s32.totalorder %v4047_v44, 0  ;;  %vm4317_vm9 = vcmp.lt.s32.totalorder %v4047_v44, 0  ;;  %v4389_v46 = vadd.s32 18, %v4047_v44 }
 0x31e   : > { %vm4353_vm10 = vmand %vm4317_vm9, %vm4281_vm8  ;;  %v4073_v50 = vadd.s32 %v4072_v57, %v4063_v22  ;;  %v7109_v56 = vadd.s32 248, %v5964_v6  ;;  %v3165_v62 = vadd.f32 %v3115_v16, %v2858_v58  ;;  %vm4093_vm11 = vc.u32 %v4085_v41, %v4089_v12 }
 0x31f   : > { %v4425_v59 = vsel %vm4353_vm10, %v4389_v46, %v4047_v44  ;;  %v4095_v11 = vadd.s32 %v4089_v12, %v4085_v41  ;;  %v2552_v21 = vadd.f32 %v2504_v60, %v2245_v30  ;;  %v4094_v51 = vsel %vm4093_vm11, 1, %v7215_v47 }
 0x320   : > { %vm4461_vm12 = vcmp.lt.s32.totalorder %v4425_v59, 16  ;;  %v4074_v53 = vshrl.u32 %v4073_v50, 4  ;;  %v4090_v55 = vshrl.u32 %v4086_v13, 16  ;;  %v4096_v10 = vadd.s32 %v4094_v51, %v4088_v38 }
 0x321   : > { %v4569_v5 = vsel %vm4461_vm12, %v3164_v0, 0.0  ;;  %vm4097_vm13 = vc.u32 %v4095_v11, %v4091_v23  ;;  %v4092_v37 = vshrl.u32 %v4087_v8, 16  ;;  %v4111_v34 = vand.u32 65535, %v7109_v56  ;;  %v2507_v33 = vpop.f32.mrf.mxu2  ;;  %v2203_v60 = vpop.f32.mrf.mxu1 }
 0x322   : > { %v4632_v14 = vsel %vm269_vm0, %v4569_v5, 0.0  ;;  %v4684_v28 = vmul.f32 %v4569_v5, %v4569_v5  ;;  %4798 = vst.msk [vmem:[%s6151_s10 + $0xe0] sm:$0xff] %vm269_vm0, %v4569_v5  ;;  %v4075_v1 = vmul.u32 18, %v4074_v53  ;;  %v4098_v32 = vsel %vm4097_vm13, 1, %v7215_v47  ;;  %v2814_v8 = vpop.f32.mrf.mxu3  ;;  %v3121_v53 = vpop.f32.mrf.mxu0 }
 0x323   : > { %v4633_v27 = vadd.f32 %v4632_v14, %v4631_v4  ;;  %v4100_v7 = vadd.s32 %v4098_v32, %v4096_v10  ;;  %v2859_v19 = vadd.f32 %v2811_v52, %v2552_v21  ;;  %v4112_v49 = vshrl.u32 %v7109_v56, 16 }
 0x324   : > { %v4747_v0 = vsel %vm269_vm0, %v4684_v28, 0.0  ;;  %v4076_v40 = vsub.s32 %v7083_v36, %v4075_v1  ;;  %v4114_v20 = vmul.u32 14564, %v4111_v34  ;;  %v7121_v39 = vadd.s32 256, %v5964_v6 }
 0x325   : > { %v4748_v43 = vadd.f32 %v4747_v0, %v4746_v9  ;;  %v4101_v58 = vadd.s32 %v4100_v7, %v4090_v55  ;;  %v4115_v31 = vmul.u32 58254, %v4111_v34  ;;  %v2246_v42 = vadd.f32 %v2200_v17, %v7297_v45 }
 0x326   : > { %vm4282_vm14 = vcmp.ne.s32.totalorder %v4076_v40, 0  ;;  %vm4318_vm15 = vcmp.lt.s32.totalorder %v4076_v40, 0  ;;  %v4390_v25 = vadd.s32 18, %v4076_v40  ;;  %v4116_v36 = vmul.u32 14564, %v4112_v49 }
 0x327   : > { %vm4354_vm1 = vmand %vm4318_vm15, %vm4282_vm14  ;;  %v4102_v15 = vadd.s32 %v4101_v58, %v4092_v37  ;;  %v3166_v54 = vadd.f32 %v3118_v18, %v2859_v19  ;;  %v4117_v35 = vmul.u32 58254, %v4112_v49  ;;  %v4118_v22 = vshll.u32 %v4115_v31, 16 }
 0x328   : > { %v4426_v63 = vsel %vm4354_vm1, %v4390_v25, %v4076_v40  ;;  %v2553_v48 = vadd.f32 %v2507_v33, %v2246_v42  ;;  %v4120_v61 = vshll.u32 %v4116_v36, 16  ;;  %v4140_v4 = vand.u32 65535, %v7121_v39 }
 0x329   : > { %vm4462_vm2 = vcmp.lt.s32.totalorder %v4426_v63, 16  ;;  %v4103_v3 = vshrl.u32 %v4102_v15, 4  ;;  %vm4122_vm3 = vc.u32 %v4114_v20, %v4118_v22  ;;  %v4124_v13 = vadd.s32 %v4118_v22, %v4114_v20  ;;  %v2510_v5 = vpop.f32.mrf.mxu2  ;;  %v2206_v33 = vpop.f32.mrf.mxu1 }
 0x32a   : > { %v4570_v29 = vsel %vm4462_vm2, %v3165_v62, 0.0  ;;  %v4123_v26 = vsel %vm4122_vm3, 1, %v7215_v47  ;;  %v4119_v38 = vshrl.u32 %v4115_v31, 16  ;;  %v4141_v30 = vshrl.u32 %v7121_v39, 16 }
 0x32b   : > { %v4634_v44 = vsel %vm269_vm0, %v4570_v29, 0.0  ;;  %v4685_v16 = vmul.f32 %v4570_v29, %v4570_v29  ;;  %4799 = vst.msk [vmem:[%s6151_s10 + $0xe8] sm:$0xff] %vm269_vm0, %v4570_v29  ;;  %v4104_v41 = vmul.u32 18, %v4103_v3  ;;  %v4125_v12 = vadd.s32 %v4123_v26, %v4117_v35 }
 0x32c   : > { %v4635_v57 = vadd.f32 %v4634_v44, %v4633_v27  ;;  %vm4126_vm4 = vc.u32 %v4124_v13, %v4120_v61  ;;  %v4121_v23 = vshrl.u32 %v4116_v36, 16  ;;  %v4143_v62 = vmul.u32 14564, %v4140_v4  ;;  %v7299_v61 = vld [vmem:[#allocation10_spill] sm:$0xff]  ;;  %v3124_v13 = vpop.f32.mrf.mxu0 }
 0x32d   : > { %v4749_v9 = vsel %vm269_vm0, %v4685_v16, 0.0  ;;  %v4105_v46 = vsub.s32 %v7095_v2, %v4104_v41  ;;  %v4127_v24 = vsel %vm4126_vm4, 1, %v7215_v47  ;;  %v4144_v21 = vmul.u32 58254, %v4140_v4  ;;  %v7298_v2 = vld [vmem:[#allocation9_spill] sm:$0xff] }
 0x32e   : > { %v4750_v50 = vadd.f32 %v4749_v9, %v4748_v43  ;;  %v4129_v59 = vadd.s32 %v4127_v24, %v4125_v12  ;;  %v4145_v52 = vmul.u32 14564, %v4141_v30  ;;  %v2247_v10 = vadd.f32 %v2203_v60, %v7298_v2  ;;  %v2817_v43 = vpop.f32.mrf.mxu3 }
 0x32f   : > { %vm4283_vm5 = vcmp.ne.s32.totalorder %v4105_v46, 0  ;;  %vm4319_vm6 = vcmp.lt.s32.totalorder %v4105_v46, 0  ;;  %v4391_v11 = vadd.s32 18, %v4105_v46  ;;  %v4146_v14 = vmul.u32 58254, %v4141_v30 }
 0x330   : > { %vm4355_vm7 = vmand %vm4319_vm6, %vm4283_vm5  ;;  %v4130_v51 = vadd.s32 %v4129_v59, %v4119_v38  ;;  %v4147_v28 = vshll.u32 %v4144_v21, 16  ;;  %v2860_v1 = vadd.f32 %v2814_v8, %v2553_v48  ;;  %v4149_v32 = vshll.u32 %v4145_v52, 16 }
 0x331   : > { %v4427_v55 = vsel %vm4355_vm7, %v4391_v11, %v4105_v46  ;;  %v2554_v37 = vadd.f32 %v2510_v5, %v2247_v10  ;;  %v4148_v18 = vshrl.u32 %v4144_v21, 16  ;;  %v7141_v45 = vadd.s32 264, %v5964_v6  ;;  %v2513_v2 = vpop.f32.mrf.mxu2 }
 0x332   : > { %vm4463_vm8 = vcmp.lt.s32.totalorder %v4427_v55, 16  ;;  %v4131_v17 = vadd.s32 %v4130_v51, %v4121_v23  ;;  %vm4151_vm9 = vc.u32 %v4143_v62, %v4147_v28  ;;  %v4153_v7 = vadd.s32 %v4147_v28, %v4143_v62 }
 0x333   : > { %v4571_v27 = vsel %vm4463_vm8, %v3166_v54, 0.0  ;;  %v4152_v19 = vsel %vm4151_vm9, 1, %v7215_v47  ;;  %v4150_v15 = vshrl.u32 %v4145_v52, 16  ;;  %v7144_v63 = vadd.s32 272, %v5964_v6 }
 0x334   : > { %v4636_v34 = vsel %vm269_vm0, %v4571_v27, 0.0  ;;  %v4686_v0 = vmul.f32 %v4571_v27, %v4571_v27  ;;  %4800 = vst.msk [vmem:[%s6151_s10 + $0xf0] sm:$0xff] %vm269_vm0, %v4571_v27  ;;  %v4132_v40 = vshrl.u32 %v4131_v17, 4  ;;  %v4154_v58 = vadd.s32 %v4152_v19, %v4146_v14 }
 0x335   : > { %v4637_v49 = vadd.f32 %v4636_v34, %v4635_v57  ;;  %vm4155_vm10 = vc.u32 %v4153_v7, %v4149_v32  ;;  %v2861_v35 = vadd.f32 %v2817_v43, %v2554_v37  ;;  %v4169_v22 = vand.u32 65535, %v7141_v45 }
 0x336   : > { %v4751_v20 = vsel %vm269_vm0, %v4686_v0, 0.0  ;;  %v4133_v25 = vmul.u32 18, %v4132_v40  ;;  %v4156_v31 = vsel %vm4155_vm10, 1, %v7215_v47  ;;  %v4170_v3 = vshrl.u32 %v7141_v45, 16  ;;  %v2820_v40 = vpop.f32.mrf.mxu3 }
 0x337   : > { %v4752_v42 = vadd.f32 %v4751_v20, %v4750_v50  ;;  %v4158_v36 = vadd.s32 %v4156_v31, %v4154_v58  ;;  %v3167_v48 = vadd.f32 %v3121_v53, %v2860_v1  ;;  %v2248_v29 = vadd.f32 %v2206_v33, %v7299_v61 }
 0x338   : > { %v4134_v54 = vsub.s32 %v7109_v56, %v4133_v25  ;;  %v4198_v16 = vand.u32 65535, %v7144_v63  ;;  %v4172_v8 = vmul.u32 14564, %v4169_v22  ;;  %v4173_v26 = vmul.u32 58254, %v4169_v22  ;;  %v2209_v25 = vpop.f32.mrf.mxu1  ;;  %v3127_v22 = vpop.f32.mrf.mxu0 }
 0x339   : > { %v4159_v4 = vadd.s32 %v4158_v36, %v4148_v18  ;;  %v4174_v56 = vmul.u32 14564, %v4170_v3  ;;  %v3168_v60 = vadd.f32 %v3124_v13, %v2861_v35  ;;  %v4199_v38 = vshrl.u32 %v7144_v63, 16 }
 0x33a   : > { %vm4284_vm11 = vcmp.ne.s32.totalorder %v4134_v54, 0  ;;  %vm4320_vm12 = vcmp.lt.s32.totalorder %v4134_v54, 0  ;;  %v4392_v44 = vadd.s32 18, %v4134_v54  ;;  %v7153_v12 = vadd.s32 280, %v5964_v6 }
 0x33b   : > { %vm4356_vm13 = vmand %vm4320_vm12, %vm4284_vm11  ;;  %v4160_v41 = vadd.s32 %v4159_v4, %v4150_v15  ;;  %v4175_v46 = vmul.u32 58254, %v4170_v3  ;;  %v4176_v24 = vshll.u32 %v4173_v26, 16  ;;  %v4178_v50 = vshll.u32 %v4174_v56, 16 }
 0x33c   : > { %v4428_v57 = vsel %vm4356_vm13, %v4392_v44, %v4134_v54  ;;  %v4201_v23 = vmul.u32 14564, %v4198_v16  ;;  %v4202_v59 = vmul.u32 58254, %v4198_v16  ;;  %v4203_v5 = vmul.u32 14564, %v4199_v38 }
 0x33d   : > { %vm4464_vm14 = vcmp.lt.s32.totalorder %v4428_v57, 16  ;;  %v4161_v9 = vshrl.u32 %v4160_v41, 4  ;;  %vm4180_vm15 = vc.u32 %v4172_v8, %v4176_v24  ;;  %v4182_v6 = vadd.s32 %v4176_v24, %v4172_v8  ;;  %v2516_v8 = vpop.f32.mrf.mxu2 }
 0x33e   : > { %v4572_v30 = vsel %vm4464_vm14, %v3167_v48, 0.0  ;;  %v4181_v51 = vsel %vm4180_vm15, 1, %v7215_v47  ;;  %v4177_v10 = vshrl.u32 %v4173_v26, 16  ;;  %v4204_v1 = vmul.u32 58254, %v4199_v38 }
 0x33f   : > { %v4638_v62 = vsel %vm269_vm0, %v4572_v30, 0.0  ;;  %v4687_v11 = vmul.f32 %v4572_v30, %v4572_v30  ;;  %4801 = vst.msk [vmem:[%s6151_s10 + $0xf8] sm:$0xff] %vm269_vm0, %v4572_v30  ;;  %v4162_v53 = vmul.u32 18, %v4161_v9  ;;  %v4183_v14 = vadd.s32 %v4181_v51, %v4175_v46 }
 0x340   : > { %v4639_v21 = vadd.f32 %v4638_v62, %v4637_v49  ;;  %vm4184_vm1 = vc.u32 %v4182_v6, %v4178_v50  ;;  %v4205_v17 = vshll.u32 %v4202_v59, 16  ;;  %v4179_v37 = vshrl.u32 %v4174_v56, 16  ;;  %v7300_v56 = vld [vmem:[#allocation11_spill] sm:$0xff]  ;;  %v2823_v62 = vpop.f32.mrf.mxu3  ;;  %v2212_v6 = vpop.f32.mrf.mxu1 }
 0x341   : > { %v4753_v52 = vsel %vm269_vm0, %v4687_v11, 0.0  ;;  %v4163_v55 = vsub.s32 %v7121_v39, %v4162_v53  ;;  %v4185_v27 = vsel %vm4184_vm1, 1, %v7215_v47  ;;  %v4207_v34 = vshll.u32 %v4203_v5, 16 }
 0x342   : > { %v4754_v28 = vadd.f32 %v4753_v52, %v4752_v42  ;;  %v4187_v7 = vadd.s32 %v4185_v27, %v4183_v14  ;;  %vm4209_vm5 = vc.u32 %v4201_v23, %v4205_v17  ;;  %v2555_v39 = vadd.f32 %v2513_v2, %v2248_v29 }
 0x343   : > { %vm4285_vm2 = vcmp.ne.s32.totalorder %v4163_v55, 0  ;;  %vm4321_vm3 = vcmp.lt.s32.totalorder %v4163_v55, 0  ;;  %v4393_v32 = vadd.s32 18, %v4163_v55  ;;  %v4210_v19 = vsel %vm4209_vm5, 1, %v7215_v47 }
 0x344   : > { %vm4357_vm4 = vmand %vm4321_vm3, %vm4285_vm2  ;;  %v4211_v49 = vadd.s32 %v4205_v17, %v4201_v23  ;;  %v4188_v43 = vadd.s32 %v4187_v7, %v4177_v10  ;;  %v4212_v18 = vadd.s32 %v4210_v19, %v4204_v1  ;;  %v4227_v58 = vand.u32 65535, %v7153_v12  ;;  %v3130_v10 = vpop.f32.mrf.mxu0  ;;  %v7301_v17 = vld [vmem:[#allocation12_spill] sm:$0xff] }
 0x345   : > { %v4429_v0 = vsel %vm4357_vm4, %v4393_v32, %v4163_v55  ;;  %v4206_v33 = vshrl.u32 %v4202_v59, 16  ;;  %v4228_v31 = vshrl.u32 %v7153_v12, 16  ;;  %v4208_v3 = vshrl.u32 %v4203_v5, 16 }
 0x346   : > { %vm4465_vm6 = vcmp.lt.s32.totalorder %v4429_v0, 16  ;;  %vm4213_vm7 = vc.u32 %v4211_v49, %v4207_v34  ;;  %v4189_v36 = vadd.s32 %v4188_v43, %v4179_v37  ;;  %v4230_v61 = vmul.u32 14564, %v4227_v58  ;;  %v2519_v34 = vpop.f32.mrf.mxu2 }
 0x347   : > { %v4573_v20 = vsel %vm4465_vm6, %v3168_v60, 0.0  ;;  %v4214_v54 = vsel %vm4213_vm7, 1, %v7215_v47  ;;  %v4231_v4 = vmul.u32 58254, %v4227_v58  ;;  %v4232_v44 = vmul.u32 14564, %v4228_v31 }
 0x348   : > { %v4640_v42 = vsel %vm269_vm0, %v4573_v20, 0.0  ;;  %v4688_v15 = vmul.f32 %v4573_v20, %v4573_v20  ;;  %4802 = vst.msk [vmem:[%s6151_s10 + $0x100] sm:$0xff] %vm269_vm0, %v4573_v20  ;;  %v4216_v48 = vadd.s32 %v4214_v54, %v4212_v18  ;;  %v4190_v13 = vshrl.u32 %v4189_v36, 4  ;;  %v2826_v58 = vpop.f32.mrf.mxu3 }
 0x349   : > { %v4641_v35 = vadd.f32 %v4640_v42, %v4639_v21  ;;  %v2862_v41 = vadd.f32 %v2820_v40, %v2555_v39  ;;  %v2249_v57 = vadd.f32 %v2209_v25, %v7300_v56  ;;  %v4233_v38 = vmul.u32 58254, %v4228_v31 }
 0x34a   : > { %v4755_v29 = vsel %vm269_vm0, %v4688_v15, 0.0  ;;  %v4217_v26 = vadd.s32 %v4216_v48, %v4206_v33  ;;  %v4191_v60 = vmul.u32 18, %v4190_v13  ;;  %v4234_v9 = vshll.u32 %v4231_v4, 16 }
 0x34b   : > { %v4756_v16 = vadd.f32 %v4755_v29, %v4754_v28  ;;  %v4236_v24 = vshll.u32 %v4232_v44, 16  ;;  %v2556_v50 = vadd.f32 %v2516_v8, %v2249_v57  ;;  %v3169_v59 = vadd.f32 %v3127_v22, %v2862_v41 }
 0x34c   : > { %v4218_v46 = vadd.s32 %v4217_v26, %v4208_v3  ;;  %v4192_v30 = vsub.s32 %v7141_v45, %v4191_v60  ;;  %vm4238_vm8 = vc.u32 %v4230_v61, %v4234_v9  ;;  %v4240_v23 = vadd.s32 %v4234_v9, %v4230_v61 }
 0x34d   : > { %v4239_v53 = vsel %vm4238_vm8, 1, %v7215_v47  ;;  %v2863_v55 = vadd.f32 %v2823_v62, %v2556_v50  ;;  %v4235_v45 = vshrl.u32 %v4231_v4, 16  ;;  %v2250_v32 = vadd.f32 %v2212_v6, %v7301_v17 }
 0x34e   : > { %v4219_v11 = vshrl.u32 %v4218_v46, 4  ;;  %vm4286_vm9 = vcmp.ne.s32.totalorder %v4192_v30, 0  ;;  %vm4322_vm10 = vcmp.lt.s32.totalorder %v4192_v30, 0  ;;  %v4394_v21 = vadd.s32 18, %v4192_v30 }
 0x34f   : > { %v4241_v51 = vadd.s32 %v4239_v53, %v4233_v38  ;;  %vm4358_vm11 = vmand %vm4322_vm10, %vm4286_vm9  ;;  %vm4242_vm12 = vc.u32 %v4240_v23, %v4236_v24  ;;  %v4237_v27 = vshrl.u32 %v4232_v44, 16  ;;  %v2557_v43 = vadd.f32 %v2519_v34, %v2250_v32 }
 0x350   : > { %v4220_v5 = vmul.u32 18, %v4219_v11  ;;  %v4430_v52 = vsel %vm4358_vm11, %v4394_v21, %v4192_v30  ;;  %v4243_v2 = vsel %vm4242_vm12, 1, %v7215_v47  ;;  %v3170_v47 = vadd.f32 %v3130_v10, %v2863_v55 }
 0x351   : > { %vm4466_vm13 = vcmp.lt.s32.totalorder %v4430_v52, 16  ;;  %v4245_v28 = vadd.s32 %v4243_v2, %v4241_v51  ;;  %v2864_v15 = vadd.f32 %v2826_v58, %v2557_v43  ;;  %vm4654_vm7 = vcmask 57344  }
 0x352   : > { %v4221_v14 = vsub.s32 %v7144_v63, %v4220_v5  ;;  %v4574_v1 = vsel %vm4466_vm13, %v3169_v59, 0.0 }
 0x353   : > { %v4642_v37 = vsel %vm269_vm0, %v4574_v1, 0.0  ;;  %v4689_v7 = vmul.f32 %v4574_v1, %v4574_v1  ;;  %4803 = vst.msk [vmem:[%s6151_s10 + $0x108] sm:$0xff] %vm269_vm0, %v4574_v1  ;;  %v4246_v40 = vadd.s32 %v4245_v28, %v4235_v45 }
 0x354   : > { %vm4287_vm14 = vcmp.ne.s32.totalorder %v4221_v14, 0  ;;  %vm4323_vm15 = vcmp.lt.s32.totalorder %v4221_v14, 0  ;;  %v4643_v0 = vadd.f32 %v4642_v37, %v4641_v35  ;;  %v4395_v39 = vadd.s32 18, %v4221_v14  ;;  %v3133_v35 = vpop.f32.mrf.mxu0 }
 0x355   : > { %vm4359_vm1 = vmand %vm4323_vm15, %vm4287_vm14  ;;  %v4757_v63 = vsel %vm269_vm0, %v4689_v7, 0.0  ;;  %v4247_v18 = vadd.s32 %v4246_v40, %v4237_v27  ;;  %v3171_v48 = vadd.f32 %v3133_v35, %v2864_v15 }
 0x356   : > { %v4758_v19 = vadd.f32 %v4757_v63, %v4756_v16  ;;  %v4431_v49 = vsel %vm4359_vm1, %v4395_v39, %v4221_v14 }
 0x357   : > { %vm4467_vm2 = vcmp.lt.s32.totalorder %v4431_v49, 16  ;;  %v4248_v25 = vshrl.u32 %v4247_v18, 4 }
 0x358   : > { %v4575_v20 = vsel %vm4467_vm2, %v3170_v47, 0.0 }
 0x359   : > { %v4644_v33 = vsel %vm269_vm0, %v4575_v20, 0.0  ;;  %v4690_v31 = vmul.f32 %v4575_v20, %v4575_v20  ;;  %4804 = vst.msk [vmem:[%s6151_s10 + $0x110] sm:$0xff] %vm269_vm0, %v4575_v20  ;;  %v4249_v36 = vmul.u32 18, %v4248_v25 }
 0x35a   : > { %v4645_v42 = vadd.f32 %v4644_v33, %v4643_v0 }
 0x35b   : > { %v4759_v54 = vsel %vm269_vm0, %v4690_v31, 0.0  ;;  %v4250_v3 = vsub.s32 %v7153_v12, %v4249_v36 }
 0x35c   : > { %v4760_v22 = vadd.f32 %v4759_v54, %v4758_v19 }
 0x35d   : > { %vm4288_vm3 = vcmp.ne.s32.totalorder %v4250_v3, 0  ;;  %vm4324_vm4 = vcmp.lt.s32.totalorder %v4250_v3, 0  ;;  %v4396_v61 = vadd.s32 18, %v4250_v3 }
 0x35e   : > { %vm4360_vm5 = vmand %vm4324_vm4, %vm4288_vm3 }
 0x35f   : > { %v4432_v29 = vsel %vm4360_vm5, %v4396_v61, %v4250_v3 }
 0x360   : > { %vm4468_vm6 = vcmp.lt.s32.totalorder %v4432_v29, 16 }
 0x361   : > { %v4576_v13 = vsel %vm4468_vm6, %v3171_v48, 0.0 }
 0x362   : > { %v4646_v4 = vsel %vm269_vm0, %v4576_v13, 0.0  ;;  %v4691_v44 = vmul.f32 %v4576_v13, %v4576_v13  ;;  %4805 = vst.msk [vmem:[%s6151_s10 + $0x118] sm:$0xff] %vm269_vm0, %v4576_v13 }
 0x363   : > { %v4647_v16 = vadd.f32 %v4646_v4, %v4645_v42 }
 0x364   : > { %v4761_v41 = vsel %vm269_vm0, %v4691_v44, 0.0 }
 0x365   : > { %v4648_v8 = vrot.slane %v4647_v16, 4  ;;  %v4762_v12 = vadd.f32 %v4761_v41, %v4760_v22 }
 0x367   : > { %v4649_v26 = vadd.f32 %v4648_v8, %v4647_v16  ;;  %v4763_v56 = vrot.slane %v4762_v12, 4 }
 0x369   : > { %v4650_v57 = vrot.slane %v4649_v26, 2  ;;  %v4764_v60 = vadd.f32 %v4763_v56, %v4762_v12 }
 0x36b   : > { %v4651_v38 = vadd.f32 %v4650_v57, %v4649_v26  ;;  %v4765_v9 = vrot.slane %v4764_v60, 2 }
 0x36d   : > { %v4652_v46 = vrot.slane %v4651_v38, 1  ;;  %v4766_v24 = vadd.f32 %v4765_v9, %v4764_v60 }
 0x36f   : > { %v4653_v30 = vadd.f32 %v4652_v46, %v4651_v38  ;;  %v4767_v50 = vrot.slane %v4766_v24, 1 }
 0x371   : > { %4655 = vst.msk [vmem:[%s265_s12] sm:$0x1] %vm4654_vm7, %v4653_v30  ;;  %v4768_v23 = vadd.f32 %v4767_v50, %v4766_v24 }
 0x373   : > { %4769 = vst.msk [vmem:[%s268_s15] sm:$0x1] %vm4654_vm7, %v4768_v23 }
 0x374 PF: > { %s17_s21 = sadd.s32 1, %s5276_s21  }
 0x375   : > { %p14_p4 = scmp.ge.s32.totalorder %s17_s21, 4  }
 0x377   :  { %16 = sbr.rel (!%p14_p4) target bundleno = 1 (0x1), region = 98 }

</bundles_post_ra>
